<compile_context>
chip_gen: v7x
topology: tpu7x:2x2x1
jax: 0.10.0
libtpu: 0.0.40
codegen_flags: <defaults>
</compile_context>

<pallas_src>
import functools

import numpy as np
import jax
import jax.numpy as jnp
from jax.experimental import pallas as pl
from jax.experimental.pallas import tpu as pltpu

KMAX = 7            # largest depthwise window; smaller windows are zero-embedded into 7x7
PAD = KMAX // 2


# ---------------------------------------------------------------------------
# Host-side parameter packing (done once, outside the kernel).
# ---------------------------------------------------------------------------
def _adaptive_pool_matrix(out_size, in_size):
    """Row-averaging matrix of AdaptiveAvgPool (PyTorch bin rule), shape (out, in)."""
    A = np.zeros((out_size, in_size), np.float32)
    for i in range(out_size):
        lo = (i * in_size) // out_size
        hi = ((i + 1) * in_size + out_size - 1) // out_size
        A[i, lo:hi] = 1.0 / (hi - lo)
    return A


def _bilinear_upsample_matrix(out_size, in_size):
    """1-D operator of F.interpolate(mode='bilinear', align_corners=False), shape (out, in)."""
    U = np.zeros((out_size, in_size), np.float32)
    scale = in_size / out_size
    for y in range(out_size):
        src = max((y + 0.5) * scale - 0.5, 0.0)
        y0 = min(int(np.floor(src)), in_size - 1)
        y1 = min(y0 + 1, in_size - 1)
        f = src - y0
        U[y, y0] += 1.0 - f
        U[y, y1] += f
    return U


def build_lowpass_kron(C, H, W, sizes):
    """Per-group (N, N) operators Lt[g] = kron(M_r, M_c)^T so LP_flat = relu(x_flat @ Lt[g]).

    Exact linear rewrite of AdaptiveAvgPool2d(s) + bilinear upsample (align_corners=False);
    only len(sizes)=4 operators (not per-channel replicas)."""
    assert C % len(sizes) == 0, "LowPassModule splits channels into 4 equal groups"
    N = H * W
    ops = np.zeros((len(sizes), N, N), np.float32)
    for g, s in enumerate(sizes):
        Mr = _bilinear_upsample_matrix(H, s) @ _adaptive_pool_matrix(s, H)
        Mc = _bilinear_upsample_matrix(W, s) @ _adaptive_pool_matrix(s, W)
        # row-major vec:  vec(Mr @ X @ Mc^T) = kron(Mr, Mc) @ vec(X)
        ops[g] = np.kron(Mr, Mc).T
    return jnp.asarray(ops)


def pack_depthwise_weights(conv_ws, conv_bs, windows, head_splits, Ch):
    """(C, KMAX*KMAX) depthwise weights (kxk zero-embedded, centered) and (C, 1) bias.

    With flat padding PAD this is numerically identical to the original conv with padding
    k//2, so a single uniform 49-tap loop in the kernel covers all window sizes."""
    C = sum(hs * Ch for hs in head_splits)
    w7 = np.zeros((C, KMAX, KMAX), np.float32)
    bd = np.zeros((C, 1), np.float32)
    c0 = 0
    for k, hs, wk, bk in zip(windows, head_splits, conv_ws, conv_bs):
        ck = hs * Ch
        off = (KMAX - k) // 2
        w7[c0:c0 + ck, off:off + k, off:off + k] = np.asarray(wk)[:, 0]
        bd[c0:c0 + ck, 0] = np.asarray(bk)
        c0 += ck
    return jnp.asarray(w7.reshape(C, KMAX * KMAX)), jnp.asarray(bd)


def build_column_masks(H, W):
    """(KMAX, N) f32 masks: mask[dx, n] = 1 iff source column (n % W) + dx - PAD is in [0, W).

    In the flattened layout a dx shift can wrap into the neighbouring row; these masks zero
    exactly those positions (the flat zero halo already handles out-of-range rows)."""
    N = H * W
    x = np.arange(N) % W
    m = np.zeros((KMAX, N), np.float32)
    for dx in range(KMAX):
        xs = x + dx - PAD
        m[dx] = ((xs >= 0) & (xs < W)).astype(np.float32)
    return jnp.asarray(m)


# ---------------------------------------------------------------------------
# Pallas kernel: one batch element per grid step, everything lane-dense (minor dim = N).
# ---------------------------------------------------------------------------
def filter_kernel(q_ref, v_ref, w_ref, b_ref, m_ref, lt_ref, o_ref, xpad_ref,
                  *, W, halo, n_groups):
    q = q_ref[0]                                   # (C, N) lane-dense
    x = v_ref[0]                                   # (C, N) lane-dense, unpadded
    C, N = q.shape

    # Stage v into a zero-haloed flat scratch so every conv tap is a static lane-dense slice.
    xpad_ref[...] = jnp.zeros(xpad_ref.shape, xpad_ref.dtype)
    xpad_ref[:, halo:halo + N] = x

    # ---- High-pass: depthwise 7x7 conv (3x3/5x5 zero-embedded) as 49 shifted FMAs. ----
    w = w_ref[...]                                 # (C, KMAX*KMAX)
    hp = jnp.zeros((C, N), jnp.float32)
    for dy in range(KMAX):
        for dx in range(KMAX):
            t = dy * KMAX + dx
            off = halo + (dy - PAD) * W + (dx - PAD)
            src = xpad_ref[:, off:off + N]         # (C, N) shifted view (halo -> zero rows)
            if dx != PAD:
                src = src * m_ref[dx:dx + 1, :]    # zero the columns that wrapped rows
            hp = hp + src * w[:, t:t + 1]
    hp = hp + b_ref[...]                           # per-channel conv bias, broadcast over N

    # ---- Low-pass: pool + bilinear upsample folded into per-group (N, N) operators. ----
    cq = C // n_groups
    lp_parts = []
    for g in range(n_groups):
        xg = x[g * cq:(g + 1) * cq, :]                                  # (cq, N)
        lp_parts.append(jnp.dot(xg, lt_ref[g],                          # (cq,N)@(N,N) on MXU
                                preferred_element_type=jnp.float32))
    lp = jnp.maximum(jnp.concatenate(lp_parts, axis=0), 0.0)            # LowPassModule ReLU

    # ---- dynamic_filters = q * HP + LP  (lane-dense store, N multiple of 128). ----
    o_ref[0] = (q * hp + lp).astype(o_ref.dtype)


@functools.partial(jax.jit, static_argnames=("size",))
def filter_module_pallas(q, v, size, w49, b_dw, col_masks, lp_ops):
    """q, v: (B, h, N, Ch) with N == H*W.  Returns (B, h, N, Ch)."""
    B, h, Nq, Ch = q.shape
    H, W = size
    N = H * W
    assert Nq == N
    C = h * Ch
    n_groups = lp_ops.shape[0]

    # Flat halo (lanes) must cover the largest tap offset PAD*W + PAD; keep it 128-aligned.
    halo = ((PAD * W + PAD + 127) // 128) * 128

    # 'B h (H W) Ch -> B (h Ch) (H W)'  (the rearrange FilterModule itself performs,
    # with H*W flattened so the kernel's minor dim is lane-dense).
    def to_flat(t):
        return t.transpose(0, 1, 3, 2).reshape(B, C, N)

    q_flat = to_flat(q)
    v_flat = to_flat(v)

    kernel = functools.partial(filter_kernel, W=W, halo=halo, n_groups=n_groups)

    out_flat = pl.pallas_call(
        kernel,
        out_shape=jax.ShapeDtypeStruct((B, C, N), q.dtype),
        grid_spec=pltpu.PrefetchScalarGridSpec(
            num_scalar_prefetch=0,
            grid=(B,),                                 # 2 parallel steps -> one per v7x TC,
            in_specs=[                                 # minimal step overhead on v5e/v6e.
                pl.BlockSpec((1, C, N), lambda b: (b, 0, 0)),          # q  (lane-dense)
                pl.BlockSpec((1, C, N), lambda b: (b, 0, 0)),          # v  (lane-dense, no pad)
                pl.BlockSpec((C, KMAX * KMAX), lambda b: (0, 0)),      # depthwise weights
                pl.BlockSpec((C, 1), lambda b: (0, 0)),                # depthwise bias
                pl.BlockSpec((KMAX, N), lambda b: (0, 0)),             # column-wrap masks
                pl.BlockSpec((n_groups, N, N), lambda b: (0, 0, 0)),   # low-pass operators
            ],
            out_specs=pl.BlockSpec((1, C, N), lambda b: (b, 0, 0)),
            scratch_shapes=[pltpu.VMEM((C, N + 2 * halo), jnp.float32)],
        ),
        compiler_params=pltpu.CompilerParams(
            dimension_semantics=("parallel",)),
    )(q_flat, v_flat, w49, b_dw, col_masks, lp_ops)

    # 'B (h Ch) (H W) -> B h (H W) Ch'
    return out_flat.reshape(B, h, Ch, N).transpose(0, 1, 3, 2)


# ---------------------------------------------------------------------------
# Pure-JAX reference (independent algorithms: lax depthwise conv, explicit adaptive
# pooling, jax.image.resize bilinear == align_corners=False).
# ---------------------------------------------------------------------------
def filter_module_reference(q, v, size, conv_ws, conv_bs, windows, head_splits, lp_sizes):
    B, h, N, Ch = q.shape
    H, W = size
    C = h * Ch

    v_img = v.reshape(B, h, H, W, Ch).transpose(0, 1, 4, 2, 3).reshape(B, C, H, W)

    # High-pass: per-group depthwise convolutions (+ bias).
    hp_parts, start = [], 0
    for k, hs, wk, bk in zip(windows, head_splits, conv_ws, conv_bs):
        ck = hs * Ch
        xg = v_img[:, start:start + ck]
        pad = k // 2
        og = jax.lax.conv_general_dilated(
            xg, wk, window_strides=(1, 1), padding=[(pad, pad), (pad, pad)],
            dimension_numbers=("NCHW", "OIHW", "NCHW"),
            feature_group_count=ck, precision=jax.lax.Precision.HIGHEST)
        hp_parts.append(og + bk[None, :, None, None])
        start += ck
    HP = jnp.concatenate(hp_parts, axis=1)

    # Low-pass: adaptive avg-pool -> bilinear upsample -> ReLU, per channel quarter.
    cq = C // len(lp_sizes)
    lp_parts = []
    for g, s in enumerate(lp_sizes):
        xg = v_img[:, g * cq:(g + 1) * cq]
        rows = []
        for i in range(s):
            r0, r1 = (i * H) // s, ((i + 1) * H + s - 1) // s
            cols = []
            for j in range(s):
                c0, c1 = (j * W) // s, ((j + 1) * W + s - 1) // s
                cols.append(jnp.mean(xg[:, :, r0:r1, c0:c1], axis=(2, 3)))
            rows.append(jnp.stack(cols, axis=-1))
        pooled = jnp.stack(rows, axis=-2)                          # (B, cq, s, s)
        lp_parts.append(jax.image.resize(pooled, (B, cq, H, W), method="bilinear"))
    LP = jax.nn.relu(jnp.concatenate(lp_parts, axis=1))

    def to_seq(t):  # 'B (h Ch) H W -> B h (H W) Ch'
        return t.reshape(B, h, Ch, H, W).transpose(0, 1, 3, 4, 2).reshape(B, h, N, Ch)

    return q * to_seq(HP) + to_seq(LP)


if __name__ == "__main__":
    # Shapes implied by FilterModule(Ch=4, h=8, window={3:2, 5:3, 7:3}) at a small spatial size.
    B, h, Ch = 2, 8, 4
    H = W = 16
    N = H * W
    C = h * Ch

    windows = (3, 5, 7)
    head_splits = (2, 3, 3)          # -> channel splits (8, 12, 12)
    lp_sizes = (1, 2, 3, 6)          # LowPassModule pooling sizes
    assert sum(head_splits) == h

    key = jax.random.PRNGKey(0)
    keys = jax.random.split(key, 2 + 2 * len(windows))
    q = jax.random.normal(keys[0], (B, h, N, Ch), dtype=jnp.float32)
    v = jax.random.normal(keys[1], (B, h, N, Ch), dtype=jnp.float32)

    conv_ws, conv_bs = [], []
    for i, (k, hs) in enumerate(zip(windows, head_splits)):
        ck = hs * Ch
        conv_ws.append(jax.random.normal(keys[2 + 2 * i], (ck, 1, k, k), jnp.float32) / k)
        conv_bs.append(jax.random.normal(keys[3 + 2 * i], (ck,), jnp.float32) * 0.1)

    w49, b_dw = pack_depthwise_weights(conv_ws, conv_bs, windows, head_splits, Ch)
    col_masks = build_column_masks(H, W)
    lp_ops = build_lowpass_kron(C, H, W, lp_sizes)

    out = filter_module_pallas(q, v, (H, W), w49, b_dw, col_masks, lp_ops)
    out = jax.block_until_ready(out)

    ref = filter_module_reference(q, v, (H, W), conv_ws, conv_bs, windows, head_splits, lp_sizes)
    assert out.shape == (B, h, N, Ch)
    max_err = float(jnp.max(jnp.abs(out - ref)))
    assert jnp.allclose(out, ref, atol=2e-3, rtol=2e-3), f"max abs err {max_err}"
    print("KERNEL_OK")
</pallas_src>

<mosaic_0001>
module attributes {stable_mosaic.version = 11 : i64} {
  func.func @filter_kernel(%arg0: i32, %arg1: memref<1x32x256xf32, #tpu.memory_space<vmem>>, %arg2: memref<1x32x256xf32, #tpu.memory_space<vmem>>, %arg3: memref<32x49xf32, #tpu.memory_space<vmem>>, %arg4: memref<32x1xf32, #tpu.memory_space<vmem>>, %arg5: memref<7x256xf32, #tpu.memory_space<vmem>>, %arg6: memref<4x256x256xf32, #tpu.memory_space<vmem>>, %arg7: memref<1x32x256xf32, #tpu.memory_space<vmem>>, %arg8: memref<32x512xf32, #tpu.memory_space<vmem>>) attributes {dimension_semantics = [#tpu.dimension_semantics<parallel>], iteration_bounds = array<i64: 2>, scalar_prefetch = 0 : i64, scratch_operands = 1 : i64, tpu.core_type = #tpu.core_type<tc>, window_params = [{transform_indices = @transform_0, window_bounds = array<i64: 1, 32, 256>}, {transform_indices = @transform_1, window_bounds = array<i64: 1, 32, 256>}, {pipeline_mode = #tpu.pipeline_mode<synchronous>, transform_indices = @transform_2, window_bounds = array<i64: 32, 49>}, {pipeline_mode = #tpu.pipeline_mode<synchronous>, transform_indices = @transform_3, window_bounds = array<i64: 32, 1>}, {pipeline_mode = #tpu.pipeline_mode<synchronous>, transform_indices = @transform_4, window_bounds = array<i64: 7, 256>}, {pipeline_mode = #tpu.pipeline_mode<synchronous>, transform_indices = @transform_5, window_bounds = array<i64: 4, 256, 256>}, {transform_indices = @transform_6, window_bounds = array<i64: 1, 32, 256>}]} {
    %c0 = arith.constant 0 : index
    %c0_0 = arith.constant 0 : index
    %c0_1 = arith.constant 0 : index
    %0 = vector.load %arg1[%c0, %c0_0, %c0_1] : memref<1x32x256xf32, #tpu.memory_space<vmem>>, vector<1x32x256xf32>
    %1 = vector.shape_cast %0 : vector<1x32x256xf32> to vector<32x256xf32>
    %c0_2 = arith.constant 0 : index
    %c0_3 = arith.constant 0 : index
    %c0_4 = arith.constant 0 : index
    %2 = vector.load %arg2[%c0_2, %c0_3, %c0_4] : memref<1x32x256xf32, #tpu.memory_space<vmem>>, vector<1x32x256xf32>
    %3 = vector.shape_cast %2 : vector<1x32x256xf32> to vector<32x256xf32>
    %cst = arith.constant 0.000000e+00 : f32
    %4 = vector.broadcast %cst : f32 to vector<32x512xf32>
    %c0_5 = arith.constant 0 : index
    %c0_6 = arith.constant 0 : index
    %5 = vector.load %arg8[%c0_5, %c0_6] : memref<32x512xf32, #tpu.memory_space<vmem>>, vector<32x512xf32>
    tpu.vector_store %arg8[%c0_5, %c0_6], %4 {strides = array<i32>} : memref<32x512xf32, #tpu.memory_space<vmem>>, vector<32x512xf32>,
    %c0_7 = arith.constant 0 : index
    %c128 = arith.constant 128 : index
    %6 = vector.load %arg8[%c0_7, %c128] : memref<32x512xf32, #tpu.memory_space<vmem>>, vector<32x256xf32>
    tpu.vector_store %arg8[%c0_7, %c128], %3 {strides = array<i32>} : memref<32x512xf32, #tpu.memory_space<vmem>>, vector<32x256xf32>,
    %c0_8 = arith.constant 0 : index
    %c0_9 = arith.constant 0 : index
    %7 = vector.load %arg3[%c0_8, %c0_9] : memref<32x49xf32, #tpu.memory_space<vmem>>, vector<32x49xf32>
    %cst_10 = arith.constant 0.000000e+00 : f32
    %8 = vector.broadcast %cst_10 : f32 to vector<32x256xf32>
    %c0_11 = arith.constant 0 : index
    %c77 = arith.constant 77 : index
    %9 = vector.load %arg8[%c0_11, %c77] : memref<32x512xf32, #tpu.memory_space<vmem>>, vector<32x256xf32>
    %c0_12 = arith.constant 0 : index
    %c0_13 = arith.constant 0 : index
    %10 = vector.load %arg5[%c0_12, %c0_13] : memref<7x256xf32, #tpu.memory_space<vmem>>, vector<1x256xf32>
    %11 = vector.broadcast %10 : vector<1x256xf32> to vector<32x256xf32>
    %12 = arith.mulf %9, %11 : vector<32x256xf32>
    %13 = vector.extract_strided_slice %7 {offsets = [0, 0], sizes = [32, 1], strides = [1, 1]} : vector<32x49xf32> to vector<32x1xf32>
    %14 = vector.broadcast %13 : vector<32x1xf32> to vector<32x256xf32>
    %15 = arith.mulf %12, %14 : vector<32x256xf32>
    %16 = arith.addf %8, %15 : vector<32x256xf32>
    %c0_14 = arith.constant 0 : index
    %c78 = arith.constant 78 : index
    %17 = vector.load %arg8[%c0_14, %c78] : memref<32x512xf32, #tpu.memory_space<vmem>>, vector<32x256xf32>
    %c1 = arith.constant 1 : index
    %c0_15 = arith.constant 0 : index
    %18 = vector.load %arg5[%c1, %c0_15] : memref<7x256xf32, #tpu.memory_space<vmem>>, vector<1x256xf32>
    %19 = vector.broadcast %18 : vector<1x256xf32> to vector<32x256xf32>
    %20 = arith.mulf %17, %19 : vector<32x256xf32>
    %21 = vector.extract_strided_slice %7 {offsets = [0, 1], sizes = [32, 1], strides = [1, 1]} : vector<32x49xf32> to vector<32x1xf32>
    %22 = vector.broadcast %21 : vector<32x1xf32> to vector<32x256xf32>
    %23 = arith.mulf %20, %22 : vector<32x256xf32>
    %24 = arith.addf %16, %23 : vector<32x256xf32>
    %c0_16 = arith.constant 0 : index
    %c79 = arith.constant 79 : index
    %25 = vector.load %arg8[%c0_16, %c79] : memref<32x512xf32, #tpu.memory_space<vmem>>, vector<32x256xf32>
    %c2 = arith.constant 2 : index
    %c0_17 = arith.constant 0 : index
    %26 = vector.load %arg5[%c2, %c0_17] : memref<7x256xf32, #tpu.memory_space<vmem>>, vector<1x256xf32>
    %27 = vector.broadcast %26 : vector<1x256xf32> to vector<32x256xf32>
    %28 = arith.mulf %25, %27 : vector<32x256xf32>
    %29 = vector.extract_strided_slice %7 {offsets = [0, 2], sizes = [32, 1], strides = [1, 1]} : vector<32x49xf32> to vector<32x1xf32>
    %30 = vector.broadcast %29 : vector<32x1xf32> to vector<32x256xf32>
    %31 = arith.mulf %28, %30 : vector<32x256xf32>
    %32 = arith.addf %24, %31 : vector<32x256xf32>
    %c0_18 = arith.constant 0 : index
    %c80 = arith.constant 80 : index
    %33 = vector.load %arg8[%c0_18, %c80] : memref<32x512xf32, #tpu.memory_space<vmem>>, vector<32x256xf32>
    %34 = vector.extract_strided_slice %7 {offsets = [0, 3], sizes = [32, 1], strides = [1, 1]} : vector<32x49xf32> to vector<32x1xf32>
    %35 = vector.broadcast %34 : vector<32x1xf32> to vector<32x256xf32>
    %36 = arith.mulf %33, %35 : vector<32x256xf32>
    %37 = arith.addf %32, %36 : vector<32x256xf32>
    %c0_19 = arith.constant 0 : index
    %c81 = arith.constant 81 : index
    %38 = vector.load %arg8[%c0_19, %c81] : memref<32x512xf32, #tpu.memory_space<vmem>>, vector<32x256xf32>
    %c4 = arith.constant 4 : index
    %c0_20 = arith.constant 0 : index
    %39 = vector.load %arg5[%c4, %c0_20] : memref<7x256xf32, #tpu.memory_space<vmem>>, vector<1x256xf32>
    %40 = vector.broadcast %39 : vector<1x256xf32> to vector<32x256xf32>
    %41 = arith.mulf %38, %40 : vector<32x256xf32>
    %42 = vector.extract_strided_slice %7 {offsets = [0, 4], sizes = [32, 1], strides = [1, 1]} : vector<32x49xf32> to vector<32x1xf32>
    %43 = vector.broadcast %42 : vector<32x1xf32> to vector<32x256xf32>
    %44 = arith.mulf %41, %43 : vector<32x256xf32>
    %45 = arith.addf %37, %44 : vector<32x256xf32>
    %c0_21 = arith.constant 0 : index
    %c82 = arith.constant 82 : index
    %46 = vector.load %arg8[%c0_21, %c82] : memref<32x512xf32, #tpu.memory_space<vmem>>, vector<32x256xf32>
    %c5 = arith.constant 5 : index
    %c0_22 = arith.constant 0 : index
    %47 = vector.load %arg5[%c5, %c0_22] : memref<7x256xf32, #tpu.memory_space<vmem>>, vector<1x256xf32>
    %48 = vector.broadcast %47 : vector<1x256xf32> to vector<32x256xf32>
    %49 = arith.mulf %46, %48 : vector<32x256xf32>
    %50 = vector.extract_strided_slice %7 {offsets = [0, 5], sizes = [32, 1], strides = [1, 1]} : vector<32x49xf32> to vector<32x1xf32>
    %51 = vector.broadcast %50 : vector<32x1xf32> to vector<32x256xf32>
    %52 = arith.mulf %49, %51 : vector<32x256xf32>
    %53 = arith.addf %45, %52 : vector<32x256xf32>
    %c0_23 = arith.constant 0 : index
    %c83 = arith.constant 83 : index
    %54 = vector.load %arg8[%c0_23, %c83] : memref<32x512xf32, #tpu.memory_space<vmem>>, vector<32x256xf32>
    %c6 = arith.constant 6 : index
    %c0_24 = arith.constant 0 : index
    %55 = vector.load %arg5[%c6, %c0_24] : memref<7x256xf32, #tpu.memory_space<vmem>>, vector<1x256xf32>
    %56 = vector.broadcast %55 : vector<1x256xf32> to vector<32x256xf32>
    %57 = arith.mulf %54, %56 : vector<32x256xf32>
    %58 = vector.extract_strided_slice %7 {offsets = [0, 6], sizes = [32, 1], strides = [1, 1]} : vector<32x49xf32> to vector<32x1xf32>
    %59 = vector.broadcast %58 : vector<32x1xf32> to vector<32x256xf32>
    %60 = arith.mulf %57, %59 : vector<32x256xf32>
    %61 = arith.addf %53, %60 : vector<32x256xf32>
    %c0_25 = arith.constant 0 : index
    %c93 = arith.constant 93 : index
    %62 = vector.load %arg8[%c0_25, %c93] : memref<32x512xf32, #tpu.memory_space<vmem>>, vector<32x256xf32>
    %c0_26 = arith.constant 0 : index
    %c0_27 = arith.constant 0 : index
    %63 = vector.load %arg5[%c0_26, %c0_27] : memref<7x256xf32, #tpu.memory_space<vmem>>, vector<1x256xf32>
    %64 = vector.broadcast %63 : vector<1x256xf32> to vector<32x256xf32>
    %65 = arith.mulf %62, %64 : vector<32x256xf32>
    %66 = vector.extract_strided_slice %7 {offsets = [0, 7], sizes = [32, 1], strides = [1, 1]} : vector<32x49xf32> to vector<32x1xf32>
    %67 = vector.broadcast %66 : vector<32x1xf32> to vector<32x256xf32>
    %68 = arith.mulf %65, %67 : vector<32x256xf32>
    %69 = arith.addf %61, %68 : vector<32x256xf32>
    %c0_28 = arith.constant 0 : index
    %c94 = arith.constant 94 : index
    %70 = vector.load %arg8[%c0_28, %c94] : memref<32x512xf32, #tpu.memory_space<vmem>>, vector<32x256xf32>
    %c1_29 = arith.constant 1 : index
    %c0_30 = arith.constant 0 : index
    %71 = vector.load %arg5[%c1_29, %c0_30] : memref<7x256xf32, #tpu.memory_space<vmem>>, vector<1x256xf32>
    %72 = vector.broadcast %71 : vector<1x256xf32> to vector<32x256xf32>
    %73 = arith.mulf %70, %72 : vector<32x256xf32>
    %74 = vector.extract_strided_slice %7 {offsets = [0, 8], sizes = [32, 1], strides = [1, 1]} : vector<32x49xf32> to vector<32x1xf32>
    %75 = vector.broadcast %74 : vector<32x1xf32> to vector<32x256xf32>
    %76 = arith.mulf %73, %75 : vector<32x256xf32>
    %77 = arith.addf %69, %76 : vector<32x256xf32>
    %c0_31 = arith.constant 0 : index
    %c95 = arith.constant 95 : index
    %78 = vector.load %arg8[%c0_31, %c95] : memref<32x512xf32, #tpu.memory_space<vmem>>, vector<32x256xf32>
    %c2_32 = arith.constant 2 : index
    %c0_33 = arith.constant 0 : index
    %79 = vector.load %arg5[%c2_32, %c0_33] : memref<7x256xf32, #tpu.memory_space<vmem>>, vector<1x256xf32>
    %80 = vector.broadcast %79 : vector<1x256xf32> to vector<32x256xf32>
    %81 = arith.mulf %78, %80 : vector<32x256xf32>
    %82 = vector.extract_strided_slice %7 {offsets = [0, 9], sizes = [32, 1], strides = [1, 1]} : vector<32x49xf32> to vector<32x1xf32>
    %83 = vector.broadcast %82 : vector<32x1xf32> to vector<32x256xf32>
    %84 = arith.mulf %81, %83 : vector<32x256xf32>
    %85 = arith.addf %77, %84 : vector<32x256xf32>
    %c0_34 = arith.constant 0 : index
    %c96 = arith.constant 96 : index
    %86 = vector.load %arg8[%c0_34, %c96] : memref<32x512xf32, #tpu.memory_space<vmem>>, vector<32x256xf32>
    %87 = vector.extract_strided_slice %7 {offsets = [0, 10], sizes = [32, 1], strides = [1, 1]} : vector<32x49xf32> to vector<32x1xf32>
    %88 = vector.broadcast %87 : vector<32x1xf32> to vector<32x256xf32>
    %89 = arith.mulf %86, %88 : vector<32x256xf32>
    %90 = arith.addf %85, %89 : vector<32x256xf32>
    %c0_35 = arith.constant 0 : index
    %c97 = arith.constant 97 : index
    %91 = vector.load %arg8[%c0_35, %c97] : memref<32x512xf32, #tpu.memory_space<vmem>>, vector<32x256xf32>
    %c4_36 = arith.constant 4 : index
    %c0_37 = arith.constant 0 : index
    %92 = vector.load %arg5[%c4_36, %c0_37] : memref<7x256xf32, #tpu.memory_space<vmem>>, vector<1x256xf32>
    %93 = vector.broadcast %92 : vector<1x256xf32> to vector<32x256xf32>
    %94 = arith.mulf %91, %93 : vector<32x256xf32>
    %95 = vector.extract_strided_slice %7 {offsets = [0, 11], sizes = [32, 1], strides = [1, 1]} : vector<32x49xf32> to vector<32x1xf32>
    %96 = vector.broadcast %95 : vector<32x1xf32> to vector<32x256xf32>
    %97 = arith.mulf %94, %96 : vector<32x256xf32>
    %98 = arith.addf %90, %97 : vector<32x256xf32>
    %c0_38 = arith.constant 0 : index
    %c98 = arith.constant 98 : index
    %99 = vector.load %arg8[%c0_38, %c98] : memref<32x512xf32, #tpu.memory_space<vmem>>, vector<32x256xf32>
    %c5_39 = arith.constant 5 : index
    %c0_40 = arith.constant 0 : index
    %100 = vector.load %arg5[%c5_39, %c0_40] : memref<7x256xf32, #tpu.memory_space<vmem>>, vector<1x256xf32>
    %101 = vector.broadcast %100 : vector<1x256xf32> to vector<32x256xf32>
    %102 = arith.mulf %99, %101 : vector<32x256xf32>
    %103 = vector.extract_strided_slice %7 {offsets = [0, 12], sizes = [32, 1], strides = [1, 1]} : vector<32x49xf32> to vector<32x1xf32>
    %104 = vector.broadcast %103 : vector<32x1xf32> to vector<32x256xf32>
    %105 = arith.mulf %102, %104 : vector<32x256xf32>
    %106 = arith.addf %98, %105 : vector<32x256xf32>
    %c0_41 = arith.constant 0 : index
    %c99 = arith.constant 99 : index
    %107 = vector.load %arg8[%c0_41, %c99] : memref<32x512xf32, #tpu.memory_space<vmem>>, vector<32x256xf32>
    %c6_42 = arith.constant 6 : index
    %c0_43 = arith.constant 0 : index
    %108 = vector.load %arg5[%c6_42, %c0_43] : memref<7x256xf32, #tpu.memory_space<vmem>>, vector<1x256xf32>
    %109 = vector.broadcast %108 : vector<1x256xf32> to vector<32x256xf32>
    %110 = arith.mulf %107, %109 : vector<32x256xf32>
    %111 = vector.extract_strided_slice %7 {offsets = [0, 13], sizes = [32, 1], strides = [1, 1]} : vector<32x49xf32> to vector<32x1xf32>
    %112 = vector.broadcast %111 : vector<32x1xf32> to vector<32x256xf32>
    %113 = arith.mulf %110, %112 : vector<32x256xf32>
    %114 = arith.addf %106, %113 : vector<32x256xf32>
    %c0_44 = arith.constant 0 : index
    %c109 = arith.constant 109 : index
    %115 = vector.load %arg8[%c0_44, %c109] : memref<32x512xf32, #tpu.memory_space<vmem>>, vector<32x256xf32>
    %c0_45 = arith.constant 0 : index
    %c0_46 = arith.constant 0 : index
    %116 = vector.load %arg5[%c0_45, %c0_46] : memref<7x256xf32, #tpu.memory_space<vmem>>, vector<1x256xf32>
    %117 = vector.broadcast %116 : vector<1x256xf32> to vector<32x256xf32>
    %118 = arith.mulf %115, %117 : vector<32x256xf32>
    %119 = vector.extract_strided_slice %7 {offsets = [0, 14], sizes = [32, 1], strides = [1, 1]} : vector<32x49xf32> to vector<32x1xf32>
    %120 = vector.broadcast %119 : vector<32x1xf32> to vector<32x256xf32>
    %121 = arith.mulf %118, %120 : vector<32x256xf32>
    %122 = arith.addf %114, %121 : vector<32x256xf32>
    %c0_47 = arith.constant 0 : index
    %c110 = arith.constant 110 : index
    %123 = vector.load %arg8[%c0_47, %c110] : memref<32x512xf32, #tpu.memory_space<vmem>>, vector<32x256xf32>
    %c1_48 = arith.constant 1 : index
    %c0_49 = arith.constant 0 : index
    %124 = vector.load %arg5[%c1_48, %c0_49] : memref<7x256xf32, #tpu.memory_space<vmem>>, vector<1x256xf32>
    %125 = vector.broadcast %124 : vector<1x256xf32> to vector<32x256xf32>
    %126 = arith.mulf %123, %125 : vector<32x256xf32>
    %127 = vector.extract_strided_slice %7 {offsets = [0, 15], sizes = [32, 1], strides = [1, 1]} : vector<32x49xf32> to vector<32x1xf32>
    %128 = vector.broadcast %127 : vector<32x1xf32> to vector<32x256xf32>
    %129 = arith.mulf %126, %128 : vector<32x256xf32>
    %130 = arith.addf %122, %129 : vector<32x256xf32>
    %c0_50 = arith.constant 0 : index
    %c111 = arith.constant 111 : index
    %131 = vector.load %arg8[%c0_50, %c111] : memref<32x512xf32, #tpu.memory_space<vmem>>, vector<32x256xf32>
    %c2_51 = arith.constant 2 : index
    %c0_52 = arith.constant 0 : index
    %132 = vector.load %arg5[%c2_51, %c0_52] : memref<7x256xf32, #tpu.memory_space<vmem>>, vector<1x256xf32>
    %133 = vector.broadcast %132 : vector<1x256xf32> to vector<32x256xf32>
    %134 = arith.mulf %131, %133 : vector<32x256xf32>
    %135 = vector.extract_strided_slice %7 {offsets = [0, 16], sizes = [32, 1], strides = [1, 1]} : vector<32x49xf32> to vector<32x1xf32>
    %136 = vector.broadcast %135 : vector<32x1xf32> to vector<32x256xf32>
    %137 = arith.mulf %134, %136 : vector<32x256xf32>
    %138 = arith.addf %130, %137 : vector<32x256xf32>
    %c0_53 = arith.constant 0 : index
    %c112 = arith.constant 112 : index
    %139 = vector.load %arg8[%c0_53, %c112] : memref<32x512xf32, #tpu.memory_space<vmem>>, vector<32x256xf32>
    %140 = vector.extract_strided_slice %7 {offsets = [0, 17], sizes = [32, 1], strides = [1, 1]} : vector<32x49xf32> to vector<32x1xf32>
    %141 = vector.broadcast %140 : vector<32x1xf32> to vector<32x256xf32>
    %142 = arith.mulf %139, %141 : vector<32x256xf32>
    %143 = arith.addf %138, %142 : vector<32x256xf32>
    %c0_54 = arith.constant 0 : index
    %c113 = arith.constant 113 : index
    %144 = vector.load %arg8[%c0_54, %c113] : memref<32x512xf32, #tpu.memory_space<vmem>>, vector<32x256xf32>
    %c4_55 = arith.constant 4 : index
    %c0_56 = arith.constant 0 : index
    %145 = vector.load %arg5[%c4_55, %c0_56] : memref<7x256xf32, #tpu.memory_space<vmem>>, vector<1x256xf32>
    %146 = vector.broadcast %145 : vector<1x256xf32> to vector<32x256xf32>
    %147 = arith.mulf %144, %146 : vector<32x256xf32>
    %148 = vector.extract_strided_slice %7 {offsets = [0, 18], sizes = [32, 1], strides = [1, 1]} : vector<32x49xf32> to vector<32x1xf32>
    %149 = vector.broadcast %148 : vector<32x1xf32> to vector<32x256xf32>
    %150 = arith.mulf %147, %149 : vector<32x256xf32>
    %151 = arith.addf %143, %150 : vector<32x256xf32>
    %c0_57 = arith.constant 0 : index
    %c114 = arith.constant 114 : index
    %152 = vector.load %arg8[%c0_57, %c114] : memref<32x512xf32, #tpu.memory_space<vmem>>, vector<32x256xf32>
    %c5_58 = arith.constant 5 : index
    %c0_59 = arith.constant 0 : index
    %153 = vector.load %arg5[%c5_58, %c0_59] : memref<7x256xf32, #tpu.memory_space<vmem>>, vector<1x256xf32>
    %154 = vector.broadcast %153 : vector<1x256xf32> to vector<32x256xf32>
    %155 = arith.mulf %152, %154 : vector<32x256xf32>
    %156 = vector.extract_strided_slice %7 {offsets = [0, 19], sizes = [32, 1], strides = [1, 1]} : vector<32x49xf32> to vector<32x1xf32>
    %157 = vector.broadcast %156 : vector<32x1xf32> to vector<32x256xf32>
    %158 = arith.mulf %155, %157 : vector<32x256xf32>
    %159 = arith.addf %151, %158 : vector<32x256xf32>
    %c0_60 = arith.constant 0 : index
    %c115 = arith.constant 115 : index
    %160 = vector.load %arg8[%c0_60, %c115] : memref<32x512xf32, #tpu.memory_space<vmem>>, vector<32x256xf32>
    %c6_61 = arith.constant 6 : index
    %c0_62 = arith.constant 0 : index
    %161 = vector.load %arg5[%c6_61, %c0_62] : memref<7x256xf32, #tpu.memory_space<vmem>>, vector<1x256xf32>
    %162 = vector.broadcast %161 : vector<1x256xf32> to vector<32x256xf32>
    %163 = arith.mulf %160, %162 : vector<32x256xf32>
    %164 = vector.extract_strided_slice %7 {offsets = [0, 20], sizes = [32, 1], strides = [1, 1]} : vector<32x49xf32> to vector<32x1xf32>
    %165 = vector.broadcast %164 : vector<32x1xf32> to vector<32x256xf32>
    %166 = arith.mulf %163, %165 : vector<32x256xf32>
    %167 = arith.addf %159, %166 : vector<32x256xf32>
    %c0_63 = arith.constant 0 : index
    %c125 = arith.constant 125 : index
    %168 = vector.load %arg8[%c0_63, %c125] : memref<32x512xf32, #tpu.memory_space<vmem>>, vector<32x256xf32>
    %c0_64 = arith.constant 0 : index
    %c0_65 = arith.constant 0 : index
    %169 = vector.load %arg5[%c0_64, %c0_65] : memref<7x256xf32, #tpu.memory_space<vmem>>, vector<1x256xf32>
    %170 = vector.broadcast %169 : vector<1x256xf32> to vector<32x256xf32>
    %171 = arith.mulf %168, %170 : vector<32x256xf32>
    %172 = vector.extract_strided_slice %7 {offsets = [0, 21], sizes = [32, 1], strides = [1, 1]} : vector<32x49xf32> to vector<32x1xf32>
    %173 = vector.broadcast %172 : vector<32x1xf32> to vector<32x256xf32>
    %174 = arith.mulf %171, %173 : vector<32x256xf32>
    %175 = arith.addf %167, %174 : vector<32x256xf32>
    %c0_66 = arith.constant 0 : index
    %c126 = arith.constant 126 : index
    %176 = vector.load %arg8[%c0_66, %c126] : memref<32x512xf32, #tpu.memory_space<vmem>>, vector<32x256xf32>
    %c1_67 = arith.constant 1 : index
    %c0_68 = arith.constant 0 : index
    %177 = vector.load %arg5[%c1_67, %c0_68] : memref<7x256xf32, #tpu.memory_space<vmem>>, vector<1x256xf32>
    %178 = vector.broadcast %177 : vector<1x256xf32> to vector<32x256xf32>
    %179 = arith.mulf %176, %178 : vector<32x256xf32>
    %180 = vector.extract_strided_slice %7 {offsets = [0, 22], sizes = [32, 1], strides = [1, 1]} : vector<32x49xf32> to vector<32x1xf32>
    %181 = vector.broadcast %180 : vector<32x1xf32> to vector<32x256xf32>
    %182 = arith.mulf %179, %181 : vector<32x256xf32>
    %183 = arith.addf %175, %182 : vector<32x256xf32>
    %c0_69 = arith.constant 0 : index
    %c127 = arith.constant 127 : index
    %184 = vector.load %arg8[%c0_69, %c127] : memref<32x512xf32, #tpu.memory_space<vmem>>, vector<32x256xf32>
    %c2_70 = arith.constant 2 : index
    %c0_71 = arith.constant 0 : index
    %185 = vector.load %arg5[%c2_70, %c0_71] : memref<7x256xf32, #tpu.memory_space<vmem>>, vector<1x256xf32>
    %186 = vector.broadcast %185 : vector<1x256xf32> to vector<32x256xf32>
    %187 = arith.mulf %184, %186 : vector<32x256xf32>
    %188 = vector.extract_strided_slice %7 {offsets = [0, 23], sizes = [32, 1], strides = [1, 1]} : vector<32x49xf32> to vector<32x1xf32>
    %189 = vector.broadcast %188 : vector<32x1xf32> to vector<32x256xf32>
    %190 = arith.mulf %187, %189 : vector<32x256xf32>
    %191 = arith.addf %183, %190 : vector<32x256xf32>
    %c0_72 = arith.constant 0 : index
    %c128_73 = arith.constant 128 : index
    %192 = vector.load %arg8[%c0_72, %c128_73] : memref<32x512xf32, #tpu.memory_space<vmem>>, vector<32x256xf32>
    %193 = vector.extract_strided_slice %7 {offsets = [0, 24], sizes = [32, 1], strides = [1, 1]} : vector<32x49xf32> to vector<32x1xf32>
    %194 = vector.broadcast %193 : vector<32x1xf32> to vector<32x256xf32>
    %195 = arith.mulf %192, %194 : vector<32x256xf32>
    %196 = arith.addf %191, %195 : vector<32x256xf32>
    %c0_74 = arith.constant 0 : index
    %c129 = arith.constant 129 : index
    %197 = vector.load %arg8[%c0_74, %c129] : memref<32x512xf32, #tpu.memory_space<vmem>>, vector<32x256xf32>
    %c4_75 = arith.constant 4 : index
    %c0_76 = arith.constant 0 : index
    %198 = vector.load %arg5[%c4_75, %c0_76] : memref<7x256xf32, #tpu.memory_space<vmem>>, vector<1x256xf32>
    %199 = vector.broadcast %198 : vector<1x256xf32> to vector<32x256xf32>
    %200 = arith.mulf %197, %199 : vector<32x256xf32>
    %201 = vector.extract_strided_slice %7 {offsets = [0, 25], sizes = [32, 1], strides = [1, 1]} : vector<32x49xf32> to vector<32x1xf32>
    %202 = vector.broadcast %201 : vector<32x1xf32> to vector<32x256xf32>
    %203 = arith.mulf %200, %202 : vector<32x256xf32>
    %204 = arith.addf %196, %203 : vector<32x256xf32>
    %c0_77 = arith.constant 0 : index
    %c130 = arith.constant 130 : index
    %205 = vector.load %arg8[%c0_77, %c130] : memref<32x512xf32, #tpu.memory_space<vmem>>, vector<32x256xf32>
    %c5_78 = arith.constant 5 : index
    %c0_79 = arith.constant 0 : index
    %206 = vector.load %arg5[%c5_78, %c0_79] : memref<7x256xf32, #tpu.memory_space<vmem>>, vector<1x256xf32>
    %207 = vector.broadcast %206 : vector<1x256xf32> to vector<32x256xf32>
    %208 = arith.mulf %205, %207 : vector<32x256xf32>
    %209 = vector.extract_strided_slice %7 {offsets = [0, 26], sizes = [32, 1], strides = [1, 1]} : vector<32x49xf32> to vector<32x1xf32>
    %210 = vector.broadcast %209 : vector<32x1xf32> to vector<32x256xf32>
    %211 = arith.mulf %208, %210 : vector<32x256xf32>
    %212 = arith.addf %204, %211 : vector<32x256xf32>
    %c0_80 = arith.constant 0 : index
    %c131 = arith.constant 131 : index
    %213 = vector.load %arg8[%c0_80, %c131] : memref<32x512xf32, #tpu.memory_space<vmem>>, vector<32x256xf32>
    %c6_81 = arith.constant 6 : index
    %c0_82 = arith.constant 0 : index
    %214 = vector.load %arg5[%c6_81, %c0_82] : memref<7x256xf32, #tpu.memory_space<vmem>>, vector<1x256xf32>
    %215 = vector.broadcast %214 : vector<1x256xf32> to vector<32x256xf32>
    %216 = arith.mulf %213, %215 : vector<32x256xf32>
    %217 = vector.extract_strided_slice %7 {offsets = [0, 27], sizes = [32, 1], strides = [1, 1]} : vector<32x49xf32> to vector<32x1xf32>
    %218 = vector.broadcast %217 : vector<32x1xf32> to vector<32x256xf32>
    %219 = arith.mulf %216, %218 : vector<32x256xf32>
    %220 = arith.addf %212, %219 : vector<32x256xf32>
    %c0_83 = arith.constant 0 : index
    %c141 = arith.constant 141 : index
    %221 = vector.load %arg8[%c0_83, %c141] : memref<32x512xf32, #tpu.memory_space<vmem>>, vector<32x256xf32>
    %c0_84 = arith.constant 0 : index
    %c0_85 = arith.constant 0 : index
    %222 = vector.load %arg5[%c0_84, %c0_85] : memref<7x256xf32, #tpu.memory_space<vmem>>, vector<1x256xf32>
    %223 = vector.broadcast %222 : vector<1x256xf32> to vector<32x256xf32>
    %224 = arith.mulf %221, %223 : vector<32x256xf32>
    %225 = vector.extract_strided_slice %7 {offsets = [0, 28], sizes = [32, 1], strides = [1, 1]} : vector<32x49xf32> to vector<32x1xf32>
    %226 = vector.broadcast %225 : vector<32x1xf32> to vector<32x256xf32>
    %227 = arith.mulf %224, %226 : vector<32x256xf32>
    %228 = arith.addf %220, %227 : vector<32x256xf32>
    %c0_86 = arith.constant 0 : index
    %c142 = arith.constant 142 : index
    %229 = vector.load %arg8[%c0_86, %c142] : memref<32x512xf32, #tpu.memory_space<vmem>>, vector<32x256xf32>
    %c1_87 = arith.constant 1 : index
    %c0_88 = arith.constant 0 : index
    %230 = vector.load %arg5[%c1_87, %c0_88] : memref<7x256xf32, #tpu.memory_space<vmem>>, vector<1x256xf32>
    %231 = vector.broadcast %230 : vector<1x256xf32> to vector<32x256xf32>
    %232 = arith.mulf %229, %231 : vector<32x256xf32>
    %233 = vector.extract_strided_slice %7 {offsets = [0, 29], sizes = [32, 1], strides = [1, 1]} : vector<32x49xf32> to vector<32x1xf32>
    %234 = vector.broadcast %233 : vector<32x1xf32> to vector<32x256xf32>
    %235 = arith.mulf %232, %234 : vector<32x256xf32>
    %236 = arith.addf %228, %235 : vector<32x256xf32>
    %c0_89 = arith.constant 0 : index
    %c143 = arith.constant 143 : index
    %237 = vector.load %arg8[%c0_89, %c143] : memref<32x512xf32, #tpu.memory_space<vmem>>, vector<32x256xf32>
    %c2_90 = arith.constant 2 : index
    %c0_91 = arith.constant 0 : index
    %238 = vector.load %arg5[%c2_90, %c0_91] : memref<7x256xf32, #tpu.memory_space<vmem>>, vector<1x256xf32>
    %239 = vector.broadcast %238 : vector<1x256xf32> to vector<32x256xf32>
    %240 = arith.mulf %237, %239 : vector<32x256xf32>
    %241 = vector.extract_strided_slice %7 {offsets = [0, 30], sizes = [32, 1], strides = [1, 1]} : vector<32x49xf32> to vector<32x1xf32>
    %242 = vector.broadcast %241 : vector<32x1xf32> to vector<32x256xf32>
    %243 = arith.mulf %240, %242 : vector<32x256xf32>
    %244 = arith.addf %236, %243 : vector<32x256xf32>
    %c0_92 = arith.constant 0 : index
    %c144 = arith.constant 144 : index
    %245 = vector.load %arg8[%c0_92, %c144] : memref<32x512xf32, #tpu.memory_space<vmem>>, vector<32x256xf32>
    %246 = vector.extract_strided_slice %7 {offsets = [0, 31], sizes = [32, 1], strides = [1, 1]} : vector<32x49xf32> to vector<32x1xf32>
    %247 = vector.broadcast %246 : vector<32x1xf32> to vector<32x256xf32>
    %248 = arith.mulf %245, %247 : vector<32x256xf32>
    %249 = arith.addf %244, %248 : vector<32x256xf32>
    %c0_93 = arith.constant 0 : index
    %c145 = arith.constant 145 : index
    %250 = vector.load %arg8[%c0_93, %c145] : memref<32x512xf32, #tpu.memory_space<vmem>>, vector<32x256xf32>
    %c4_94 = arith.constant 4 : index
    %c0_95 = arith.constant 0 : index
    %251 = vector.load %arg5[%c4_94, %c0_95] : memref<7x256xf32, #tpu.memory_space<vmem>>, vector<1x256xf32>
    %252 = vector.broadcast %251 : vector<1x256xf32> to vector<32x256xf32>
    %253 = arith.mulf %250, %252 : vector<32x256xf32>
    %254 = vector.extract_strided_slice %7 {offsets = [0, 32], sizes = [32, 1], strides = [1, 1]} : vector<32x49xf32> to vector<32x1xf32>
    %255 = vector.broadcast %254 : vector<32x1xf32> to vector<32x256xf32>
    %256 = arith.mulf %253, %255 : vector<32x256xf32>
    %257 = arith.addf %249, %256 : vector<32x256xf32>
    %c0_96 = arith.constant 0 : index
    %c146 = arith.constant 146 : index
    %258 = vector.load %arg8[%c0_96, %c146] : memref<32x512xf32, #tpu.memory_space<vmem>>, vector<32x256xf32>
    %c5_97 = arith.constant 5 : index
    %c0_98 = arith.constant 0 : index
    %259 = vector.load %arg5[%c5_97, %c0_98] : memref<7x256xf32, #tpu.memory_space<vmem>>, vector<1x256xf32>
    %260 = vector.broadcast %259 : vector<1x256xf32> to vector<32x256xf32>
    %261 = arith.mulf %258, %260 : vector<32x256xf32>
    %262 = vector.extract_strided_slice %7 {offsets = [0, 33], sizes = [32, 1], strides = [1, 1]} : vector<32x49xf32> to vector<32x1xf32>
    %263 = vector.broadcast %262 : vector<32x1xf32> to vector<32x256xf32>
    %264 = arith.mulf %261, %263 : vector<32x256xf32>
    %265 = arith.addf %257, %264 : vector<32x256xf32>
    %c0_99 = arith.constant 0 : index
    %c147 = arith.constant 147 : index
    %266 = vector.load %arg8[%c0_99, %c147] : memref<32x512xf32, #tpu.memory_space<vmem>>, vector<32x256xf32>
    %c6_100 = arith.constant 6 : index
    %c0_101 = arith.constant 0 : index
    %267 = vector.load %arg5[%c6_100, %c0_101] : memref<7x256xf32, #tpu.memory_space<vmem>>, vector<1x256xf32>
    %268 = vector.broadcast %267 : vector<1x256xf32> to vector<32x256xf32>
    %269 = arith.mulf %266, %268 : vector<32x256xf32>
    %270 = vector.extract_strided_slice %7 {offsets = [0, 34], sizes = [32, 1], strides = [1, 1]} : vector<32x49xf32> to vector<32x1xf32>
    %271 = vector.broadcast %270 : vector<32x1xf32> to vector<32x256xf32>
    %272 = arith.mulf %269, %271 : vector<32x256xf32>
    %273 = arith.addf %265, %272 : vector<32x256xf32>
    %c0_102 = arith.constant 0 : index
    %c157 = arith.constant 157 : index
    %274 = vector.load %arg8[%c0_102, %c157] : memref<32x512xf32, #tpu.memory_space<vmem>>, vector<32x256xf32>
    %c0_103 = arith.constant 0 : index
    %c0_104 = arith.constant 0 : index
    %275 = vector.load %arg5[%c0_103, %c0_104] : memref<7x256xf32, #tpu.memory_space<vmem>>, vector<1x256xf32>
    %276 = vector.broadcast %275 : vector<1x256xf32> to vector<32x256xf32>
    %277 = arith.mulf %274, %276 : vector<32x256xf32>
    %278 = vector.extract_strided_slice %7 {offsets = [0, 35], sizes = [32, 1], strides = [1, 1]} : vector<32x49xf32> to vector<32x1xf32>
    %279 = vector.broadcast %278 : vector<32x1xf32> to vector<32x256xf32>
    %280 = arith.mulf %277, %279 : vector<32x256xf32>
    %281 = arith.addf %273, %280 : vector<32x256xf32>
    %c0_105 = arith.constant 0 : index
    %c158 = arith.constant 158 : index
    %282 = vector.load %arg8[%c0_105, %c158] : memref<32x512xf32, #tpu.memory_space<vmem>>, vector<32x256xf32>
    %c1_106 = arith.constant 1 : index
    %c0_107 = arith.constant 0 : index
    %283 = vector.load %arg5[%c1_106, %c0_107] : memref<7x256xf32, #tpu.memory_space<vmem>>, vector<1x256xf32>
    %284 = vector.broadcast %283 : vector<1x256xf32> to vector<32x256xf32>
    %285 = arith.mulf %282, %284 : vector<32x256xf32>
    %286 = vector.extract_strided_slice %7 {offsets = [0, 36], sizes = [32, 1], strides = [1, 1]} : vector<32x49xf32> to vector<32x1xf32>
    %287 = vector.broadcast %286 : vector<32x1xf32> to vector<32x256xf32>
    %288 = arith.mulf %285, %287 : vector<32x256xf32>
    %289 = arith.addf %281, %288 : vector<32x256xf32>
    %c0_108 = arith.constant 0 : index
    %c159 = arith.constant 159 : index
    %290 = vector.load %arg8[%c0_108, %c159] : memref<32x512xf32, #tpu.memory_space<vmem>>, vector<32x256xf32>
    %c2_109 = arith.constant 2 : index
    %c0_110 = arith.constant 0 : index
    %291 = vector.load %arg5[%c2_109, %c0_110] : memref<7x256xf32, #tpu.memory_space<vmem>>, vector<1x256xf32>
    %292 = vector.broadcast %291 : vector<1x256xf32> to vector<32x256xf32>
    %293 = arith.mulf %290, %292 : vector<32x256xf32>
    %294 = vector.extract_strided_slice %7 {offsets = [0, 37], sizes = [32, 1], strides = [1, 1]} : vector<32x49xf32> to vector<32x1xf32>
    %295 = vector.broadcast %294 : vector<32x1xf32> to vector<32x256xf32>
    %296 = arith.mulf %293, %295 : vector<32x256xf32>
    %297 = arith.addf %289, %296 : vector<32x256xf32>
    %c0_111 = arith.constant 0 : index
    %c160 = arith.constant 160 : index
    %298 = vector.load %arg8[%c0_111, %c160] : memref<32x512xf32, #tpu.memory_space<vmem>>, vector<32x256xf32>
    %299 = vector.extract_strided_slice %7 {offsets = [0, 38], sizes = [32, 1], strides = [1, 1]} : vector<32x49xf32> to vector<32x1xf32>
    %300 = vector.broadcast %299 : vector<32x1xf32> to vector<32x256xf32>
    %301 = arith.mulf %298, %300 : vector<32x256xf32>
    %302 = arith.addf %297, %301 : vector<32x256xf32>
    %c0_112 = arith.constant 0 : index
    %c161 = arith.constant 161 : index
    %303 = vector.load %arg8[%c0_112, %c161] : memref<32x512xf32, #tpu.memory_space<vmem>>, vector<32x256xf32>
    %c4_113 = arith.constant 4 : index
    %c0_114 = arith.constant 0 : index
    %304 = vector.load %arg5[%c4_113, %c0_114] : memref<7x256xf32, #tpu.memory_space<vmem>>, vector<1x256xf32>
    %305 = vector.broadcast %304 : vector<1x256xf32> to vector<32x256xf32>
    %306 = arith.mulf %303, %305 : vector<32x256xf32>
    %307 = vector.extract_strided_slice %7 {offsets = [0, 39], sizes = [32, 1], strides = [1, 1]} : vector<32x49xf32> to vector<32x1xf32>
    %308 = vector.broadcast %307 : vector<32x1xf32> to vector<32x256xf32>
    %309 = arith.mulf %306, %308 : vector<32x256xf32>
    %310 = arith.addf %302, %309 : vector<32x256xf32>
    %c0_115 = arith.constant 0 : index
    %c162 = arith.constant 162 : index
    %311 = vector.load %arg8[%c0_115, %c162] : memref<32x512xf32, #tpu.memory_space<vmem>>, vector<32x256xf32>
    %c5_116 = arith.constant 5 : index
    %c0_117 = arith.constant 0 : index
    %312 = vector.load %arg5[%c5_116, %c0_117] : memref<7x256xf32, #tpu.memory_space<vmem>>, vector<1x256xf32>
    %313 = vector.broadcast %312 : vector<1x256xf32> to vector<32x256xf32>
    %314 = arith.mulf %311, %313 : vector<32x256xf32>
    %315 = vector.extract_strided_slice %7 {offsets = [0, 40], sizes = [32, 1], strides = [1, 1]} : vector<32x49xf32> to vector<32x1xf32>
    %316 = vector.broadcast %315 : vector<32x1xf32> to vector<32x256xf32>
    %317 = arith.mulf %314, %316 : vector<32x256xf32>
    %318 = arith.addf %310, %317 : vector<32x256xf32>
    %c0_118 = arith.constant 0 : index
    %c163 = arith.constant 163 : index
    %319 = vector.load %arg8[%c0_118, %c163] : memref<32x512xf32, #tpu.memory_space<vmem>>, vector<32x256xf32>
    %c6_119 = arith.constant 6 : index
    %c0_120 = arith.constant 0 : index
    %320 = vector.load %arg5[%c6_119, %c0_120] : memref<7x256xf32, #tpu.memory_space<vmem>>, vector<1x256xf32>
    %321 = vector.broadcast %320 : vector<1x256xf32> to vector<32x256xf32>
    %322 = arith.mulf %319, %321 : vector<32x256xf32>
    %323 = vector.extract_strided_slice %7 {offsets = [0, 41], sizes = [32, 1], strides = [1, 1]} : vector<32x49xf32> to vector<32x1xf32>
    %324 = vector.broadcast %323 : vector<32x1xf32> to vector<32x256xf32>
    %325 = arith.mulf %322, %324 : vector<32x256xf32>
    %326 = arith.addf %318, %325 : vector<32x256xf32>
    %c0_121 = arith.constant 0 : index
    %c173 = arith.constant 173 : index
    %327 = vector.load %arg8[%c0_121, %c173] : memref<32x512xf32, #tpu.memory_space<vmem>>, vector<32x256xf32>
    %c0_122 = arith.constant 0 : index
    %c0_123 = arith.constant 0 : index
    %328 = vector.load %arg5[%c0_122, %c0_123] : memref<7x256xf32, #tpu.memory_space<vmem>>, vector<1x256xf32>
    %329 = vector.broadcast %328 : vector<1x256xf32> to vector<32x256xf32>
    %330 = arith.mulf %327, %329 : vector<32x256xf32>
    %331 = vector.extract_strided_slice %7 {offsets = [0, 42], sizes = [32, 1], strides = [1, 1]} : vector<32x49xf32> to vector<32x1xf32>
    %332 = vector.broadcast %331 : vector<32x1xf32> to vector<32x256xf32>
    %333 = arith.mulf %330, %332 : vector<32x256xf32>
    %334 = arith.addf %326, %333 : vector<32x256xf32>
    %c0_124 = arith.constant 0 : index
    %c174 = arith.constant 174 : index
    %335 = vector.load %arg8[%c0_124, %c174] : memref<32x512xf32, #tpu.memory_space<vmem>>, vector<32x256xf32>
    %c1_125 = arith.constant 1 : index
    %c0_126 = arith.constant 0 : index
    %336 = vector.load %arg5[%c1_125, %c0_126] : memref<7x256xf32, #tpu.memory_space<vmem>>, vector<1x256xf32>
    %337 = vector.broadcast %336 : vector<1x256xf32> to vector<32x256xf32>
    %338 = arith.mulf %335, %337 : vector<32x256xf32>
    %339 = vector.extract_strided_slice %7 {offsets = [0, 43], sizes = [32, 1], strides = [1, 1]} : vector<32x49xf32> to vector<32x1xf32>
    %340 = vector.broadcast %339 : vector<32x1xf32> to vector<32x256xf32>
    %341 = arith.mulf %338, %340 : vector<32x256xf32>
    %342 = arith.addf %334, %341 : vector<32x256xf32>
    %c0_127 = arith.constant 0 : index
    %c175 = arith.constant 175 : index
    %343 = vector.load %arg8[%c0_127, %c175] : memref<32x512xf32, #tpu.memory_space<vmem>>, vector<32x256xf32>
    %c2_128 = arith.constant 2 : index
    %c0_129 = arith.constant 0 : index
    %344 = vector.load %arg5[%c2_128, %c0_129] : memref<7x256xf32, #tpu.memory_space<vmem>>, vector<1x256xf32>
    %345 = vector.broadcast %344 : vector<1x256xf32> to vector<32x256xf32>
    %346 = arith.mulf %343, %345 : vector<32x256xf32>
    %347 = vector.extract_strided_slice %7 {offsets = [0, 44], sizes = [32, 1], strides = [1, 1]} : vector<32x49xf32> to vector<32x1xf32>
    %348 = vector.broadcast %347 : vector<32x1xf32> to vector<32x256xf32>
    %349 = arith.mulf %346, %348 : vector<32x256xf32>
    %350 = arith.addf %342, %349 : vector<32x256xf32>
    %c0_130 = arith.constant 0 : index
    %c176 = arith.constant 176 : index
    %351 = vector.load %arg8[%c0_130, %c176] : memref<32x512xf32, #tpu.memory_space<vmem>>, vector<32x256xf32>
    %352 = vector.extract_strided_slice %7 {offsets = [0, 45], sizes = [32, 1], strides = [1, 1]} : vector<32x49xf32> to vector<32x1xf32>
    %353 = vector.broadcast %352 : vector<32x1xf32> to vector<32x256xf32>
    %354 = arith.mulf %351, %353 : vector<32x256xf32>
    %355 = arith.addf %350, %354 : vector<32x256xf32>
    %c0_131 = arith.constant 0 : index
    %c177 = arith.constant 177 : index
    %356 = vector.load %arg8[%c0_131, %c177] : memref<32x512xf32, #tpu.memory_space<vmem>>, vector<32x256xf32>
    %c4_132 = arith.constant 4 : index
    %c0_133 = arith.constant 0 : index
    %357 = vector.load %arg5[%c4_132, %c0_133] : memref<7x256xf32, #tpu.memory_space<vmem>>, vector<1x256xf32>
    %358 = vector.broadcast %357 : vector<1x256xf32> to vector<32x256xf32>
    %359 = arith.mulf %356, %358 : vector<32x256xf32>
    %360 = vector.extract_strided_slice %7 {offsets = [0, 46], sizes = [32, 1], strides = [1, 1]} : vector<32x49xf32> to vector<32x1xf32>
    %361 = vector.broadcast %360 : vector<32x1xf32> to vector<32x256xf32>
    %362 = arith.mulf %359, %361 : vector<32x256xf32>
    %363 = arith.addf %355, %362 : vector<32x256xf32>
    %c0_134 = arith.constant 0 : index
    %c178 = arith.constant 178 : index
    %364 = vector.load %arg8[%c0_134, %c178] : memref<32x512xf32, #tpu.memory_space<vmem>>, vector<32x256xf32>
    %c5_135 = arith.constant 5 : index
    %c0_136 = arith.constant 0 : index
    %365 = vector.load %arg5[%c5_135, %c0_136] : memref<7x256xf32, #tpu.memory_space<vmem>>, vector<1x256xf32>
    %366 = vector.broadcast %365 : vector<1x256xf32> to vector<32x256xf32>
    %367 = arith.mulf %364, %366 : vector<32x256xf32>
    %368 = vector.extract_strided_slice %7 {offsets = [0, 47], sizes = [32, 1], strides = [1, 1]} : vector<32x49xf32> to vector<32x1xf32>
    %369 = vector.broadcast %368 : vector<32x1xf32> to vector<32x256xf32>
    %370 = arith.mulf %367, %369 : vector<32x256xf32>
    %371 = arith.addf %363, %370 : vector<32x256xf32>
    %c0_137 = arith.constant 0 : index
    %c179 = arith.constant 179 : index
    %372 = vector.load %arg8[%c0_137, %c179] : memref<32x512xf32, #tpu.memory_space<vmem>>, vector<32x256xf32>
    %c6_138 = arith.constant 6 : index
    %c0_139 = arith.constant 0 : index
    %373 = vector.load %arg5[%c6_138, %c0_139] : memref<7x256xf32, #tpu.memory_space<vmem>>, vector<1x256xf32>
    %374 = vector.broadcast %373 : vector<1x256xf32> to vector<32x256xf32>
    %375 = arith.mulf %372, %374 : vector<32x256xf32>
    %376 = vector.extract_strided_slice %7 {offsets = [0, 48], sizes = [32, 1], strides = [1, 1]} : vector<32x49xf32> to vector<32x1xf32>
    %377 = vector.broadcast %376 : vector<32x1xf32> to vector<32x256xf32>
    %378 = arith.mulf %375, %377 : vector<32x256xf32>
    %379 = arith.addf %371, %378 : vector<32x256xf32>
    %c0_140 = arith.constant 0 : index
    %c0_141 = arith.constant 0 : index
    %380 = vector.load %arg4[%c0_140, %c0_141] : memref<32x1xf32, #tpu.memory_space<vmem>>, vector<32x1xf32>
    %381 = vector.broadcast %380 : vector<32x1xf32> to vector<32x256xf32>
    %382 = arith.addf %379, %381 : vector<32x256xf32>
    %383 = vector.extract_strided_slice %3 {offsets = [0, 0], sizes = [8, 256], strides = [1, 1]} : vector<32x256xf32> to vector<8x256xf32>
    %c0_142 = arith.constant 0 : index
    %c0_143 = arith.constant 0 : index
    %c0_144 = arith.constant 0 : index
    %384 = vector.load %arg6[%c0_142, %c0_143, %c0_144] : memref<4x256x256xf32, #tpu.memory_space<vmem>>, vector<1x256x256xf32>
    %385 = vector.shape_cast %384 : vector<1x256x256xf32> to vector<256x256xf32>
    %cst_145 = arith.constant dense<0.000000e+00> : vector<8x256xf32>
    %386 = tpu.matmul %383, %385, %cst_145 {dimension_numbers = #tpu.dot_dimension_numbers<[1], [0], [0], [1], [0, 0, 1, 1], [], []>} : vector<8x256xf32>, vector<256x256xf32>, vector<8x256xf32> -> vector<8x256xf32>
    %387 = vector.extract_strided_slice %3 {offsets = [8, 0], sizes = [8, 256], strides = [1, 1]} : vector<32x256xf32> to vector<8x256xf32>
    %c1_146 = arith.constant 1 : index
    %c0_147 = arith.constant 0 : index
    %c0_148 = arith.constant 0 : index
    %388 = vector.load %arg6[%c1_146, %c0_147, %c0_148] : memref<4x256x256xf32, #tpu.memory_space<vmem>>, vector<1x256x256xf32>
    %389 = vector.shape_cast %388 : vector<1x256x256xf32> to vector<256x256xf32>
    %cst_149 = arith.constant dense<0.000000e+00> : vector<8x256xf32>
    %390 = tpu.matmul %387, %389, %cst_149 {dimension_numbers = #tpu.dot_dimension_numbers<[1], [0], [0], [1], [0, 0, 1, 1], [], []>} : vector<8x256xf32>, vector<256x256xf32>, vector<8x256xf32> -> vector<8x256xf32>
    %391 = vector.extract_strided_slice %3 {offsets = [16, 0], sizes = [8, 256], strides = [1, 1]} : vector<32x256xf32> to vector<8x256xf32>
    %c2_150 = arith.constant 2 : index
    %c0_151 = arith.constant 0 : index
    %c0_152 = arith.constant 0 : index
    %392 = vector.load %arg6[%c2_150, %c0_151, %c0_152] : memref<4x256x256xf32, #tpu.memory_space<vmem>>, vector<1x256x256xf32>
    %393 = vector.shape_cast %392 : vector<1x256x256xf32> to vector<256x256xf32>
    %cst_153 = arith.constant dense<0.000000e+00> : vector<8x256xf32>
    %394 = tpu.matmul %391, %393, %cst_153 {dimension_numbers = #tpu.dot_dimension_numbers<[1], [0], [0], [1], [0, 0, 1, 1], [], []>} : vector<8x256xf32>, vector<256x256xf32>, vector<8x256xf32> -> vector<8x256xf32>
    %395 = vector.extract_strided_slice %3 {offsets = [24, 0], sizes = [8, 256], strides = [1, 1]} : vector<32x256xf32> to vector<8x256xf32>
    %c3 = arith.constant 3 : index
    %c0_154 = arith.constant 0 : index
    %c0_155 = arith.constant 0 : index
    %396 = vector.load %arg6[%c3, %c0_154, %c0_155] : memref<4x256x256xf32, #tpu.memory_space<vmem>>, vector<1x256x256xf32>
    %397 = vector.shape_cast %396 : vector<1x256x256xf32> to vector<256x256xf32>
    %cst_156 = arith.constant dense<0.000000e+00> : vector<8x256xf32>
    %398 = tpu.matmul %395, %397, %cst_156 {dimension_numbers = #tpu.dot_dimension_numbers<[1], [0], [0], [1], [0, 0, 1, 1], [], []>} : vector<8x256xf32>, vector<256x256xf32>, vector<8x256xf32> -> vector<8x256xf32>
    %399 = tpu.concatenate %386, %390, %394, %398 in 0 : vector<8x256xf32>, vector<8x256xf32>, vector<8x256xf32>, vector<8x256xf32> -> vector<32x256xf32>
    %cst_157 = arith.constant 0.000000e+00 : f32
    %400 = vector.broadcast %cst_157 : f32 to vector<32x256xf32>
    %401 = arith.maximumf %399, %400 : vector<32x256xf32>
    %402 = arith.mulf %1, %382 : vector<32x256xf32>
    %403 = arith.addf %402, %401 : vector<32x256xf32>
    %c0_158 = arith.constant 0 : index
    %c0_159 = arith.constant 0 : index
    %c0_160 = arith.constant 0 : index
    %404 = vector.load %arg7[%c0_158, %c0_159, %c0_160] : memref<1x32x256xf32, #tpu.memory_space<vmem>>, vector<1x32x256xf32>
    %405 = vector.shape_cast %404 : vector<1x32x256xf32> to vector<32x256xf32>
    %406 = vector.shape_cast %403 : vector<32x256xf32> to vector<1x32x256xf32>
    tpu.vector_store %arg7[%c0_158, %c0_159, %c0_160], %406 {strides = array<i32>} : memref<1x32x256xf32, #tpu.memory_space<vmem>>, vector<1x32x256xf32>,
    return
  }
  func.func @transform_0(%arg0: i32) -> (i32, i32, i32) {
    %c0_i32 = arith.constant 0 : i32
    %c0_i32_0 = arith.constant 0 : i32
    %c0_i32_1 = arith.constant 0 : i32
    return %arg0, %c0_i32, %c0_i32_0 : i32, i32, i32
  }
  func.func @transform_1(%arg0: i32) -> (i32, i32, i32) {
    %c0_i32 = arith.constant 0 : i32
    %c0_i32_0 = arith.constant 0 : i32
    %c0_i32_1 = arith.constant 0 : i32
    return %arg0, %c0_i32, %c0_i32_0 : i32, i32, i32
  }
  func.func @transform_2(%arg0: i32) -> (i32, i32) {
    %c0_i32 = arith.constant 0 : i32
    %c0_i32_0 = arith.constant 0 : i32
    %c0_i32_1 = arith.constant 0 : i32
    return %c0_i32, %c0_i32_0 : i32, i32
  }
  func.func @transform_3(%arg0: i32) -> (i32, i32) {
    %c0_i32 = arith.constant 0 : i32
    %c0_i32_0 = arith.constant 0 : i32
    %c0_i32_1 = arith.constant 0 : i32
    return %c0_i32, %c0_i32_0 : i32, i32
  }
  func.func @transform_4(%arg0: i32) -> (i32, i32) {
    %c0_i32 = arith.constant 0 : i32
    %c0_i32_0 = arith.constant 0 : i32
    %c0_i32_1 = arith.constant 0 : i32
    return %c0_i32, %c0_i32_0 : i32, i32
  }
  func.func @transform_5(%arg0: i32) -> (i32, i32, i32) {
    %c0_i32 = arith.constant 0 : i32
    %c0_i32_0 = arith.constant 0 : i32
    %c0_i32_1 = arith.constant 0 : i32
    %c0_i32_2 = arith.constant 0 : i32
    return %c0_i32, %c0_i32_0, %c0_i32_1 : i32, i32, i32
  }
  func.func @transform_6(%arg0: i32) -> (i32, i32, i32) {
    %c0_i32 = arith.constant 0 : i32
    %c0_i32_0 = arith.constant 0 : i32
    %c0_i32_1 = arith.constant 0 : i32
    return %arg0, %c0_i32, %c0_i32_0 : i32, i32, i32
  }
}

</mosaic_0001>

<bundles_post_ra>
// kernel: filter_module_pallas.1
= control target key start
LH: loop header
LB: loop body
LE: loop exit
PB: predicated region body
PF: predicated region fallthrough
CT: control target
= control target key end

     0   :  { %11 = vsyncpa [#allocation4], 0  ;;  %s7490_s21 = smov 0   ;;  %s11899_s0 = inlined_call_operand.vmem [shape: f32[2,32,256], index: 0, kind: input, shape index: {}]   ;;  %s11900_s1 = inlined_call_operand.vmem [shape: f32[2,32,256], index: 1, kind: input, shape index: {}]   ;;  %s11901_s2 = inlined_call_operand.vmem [shape: f32[32,49], index: 2, kind: input, shape index: {}]   ;;  %s11902_s3 = inlined_call_operand.vmem [shape: f32[32,1], index: 3, kind: input, shape index: {}]   ;;  %s11903_s4 = inlined_call_operand.vmem [shape: f32[7,256], index: 4, kind: input, shape index: {}]   ;;  %s11904_s5 = inlined_call_operand.hbm [shape: f32[4,256,256], index: 5, kind: input, shape index: {}]   ;;  %s11905_s6 = inlined_call_operand.vmem [shape: f32[2,32,256], index: 6, kind: output, shape index: {}]  }
   0x1 LB: > { %s7496_s22 = sadd.s32 4294967295, %s7329_s21   ;;  %p6708_p0 = scmp.ge.s32.totalorder %s7329_s21, 1  ;;  %s7329_s21 = sphi %s7490_s21, %s17_s21  }
   0x2   : > { %p184_p1 = scmp.lt.s32.totalorder %s7329_s21, 3  ;;  %s7331_s23 = smov [#allocation3]  }
   0x3   : > { %s205_s24 = sshll.u32 %s7331_s23, 4  ;;  %p11906_p3 = scmp.eq.s32.totalorder %s7496_s22, 0  ;;  %s206_s24 = int_to_ptr.vmem [resolvable:$true] %s205_s24 }
   0x4   : > { %p7500_p2 = pnand %p6708_p0, %p184_p1  ;;  %s7291_s29 = scalar_lea.hbm %s11904_s5, 32768 }
   0x5   : > { %p7292_p6 = scmp.ne.s32.totalorder %s11904_s5, %s7291_s29  ;;  %p7298_p10 = scmp.lt.u32.totalorder %s7291_s29, %s11904_s5 }
   0x6   : > { %s12271_s25 = scalar_select %p7500_p2, 1, 0 }
   0x7   : > { %p6989_p4 = pneg %p7500_p2 }
   0x9   : > { %p7509_p5 = pnand %p11906_p3, %p6989_p4 }
   0xb   : > { %p7293_p7 = pneg %p7509_p5 }
   0xd   : > { %p7294_p8 = pnand %p7293_p7, %p7292_p6 }
   0xf   : > { %p7295_p9 = pneg %p7294_p8 }
  0x11   : > { %p7300_p11 = pnand %p7298_p10, %p7295_p9 }
  0x13   : > { %7303 = shalt.err (!%p7300_p11)
}
  0x14   : > { %s7304_s10 = scalar_lea.vmem %s206_s24, 32768  ;;  %p7312_p1 = scmp.lt.s32.totalorder %s206_s24, %s206_s24 }
  0x15   : > { %p7305_p12 = scmp.ne.s32.totalorder %s206_s24, %s7304_s10  ;;  %p7313_p4 = scmp.lt.s32.totalorder %s7304_s10, %s7304_s10 }
  0x17   : > { %p7307_p13 = pnand %p7305_p12, %p7293_p7  ;;  %p7314_p3 = por %p7313_p4, %p7312_p1 }
  0x19   : > { %p7308_p0 = pneg %p7307_p13 }
  0x1b   : > { %p7315_p2 = pnand %p7314_p3, %p7308_p0 }
  0x1d   : > { %7318 = shalt.err (!%p7315_p2)
}
  0x1e   : > { %s7332_s11 = smov 256   ;;  %s7333_s12 = smov 16  }
  0x1f   : > { %6992 = dma.hbm_to_vmem [thread:$0]  (!%p7509_p5), %s11904_s5, 32768, %s206_s24, [#allocation4], %s7332_s11, %s7332_s11, %s7333_s12  }
  0x20   : > { %p12273_p6 = scmp.ne.s32.totalorder %s12271_s25, 0 }
  0x22   : > { %237 = sbr.rel (%p12273_p6) target bundleno = 7108 (0x1bc4), region = 44 }
  0x29   : > { %p12274_p8 = scmp.eq.s32.totalorder %s7496_s22, 0 }
  0x2b   : > { %7324 = dma.done.wait (%p12274_p8), [#allocation4], 32768   ;;  %p12275_p7 = pmov %p12274_p8 }
  0x2c   : > { %v345_v0 = vlaneseq  ;;  %v11908_v1 = vmov 0   ;;  %v7335_v2 = vmov 1   ;;  %p272_p2 = scmp.lt.s32.totalorder %s7496_s22, 1  ;;  %v7547_v6 = vld [vmem:[%s11901_s2] sm:$0xff]  ;;  %v7559_v9 = vld [vmem:[%s11901_s2 + $0x8] sm:$0xff]  ;;  %s7336_s26 = smov 77  }
  0x2d   : > { %7326 = vsyncadd (%p12275_p7), [#allocation4], 4294934528  ;;  %7127 = vset.pattern.permute.xlu1 %v11908_v1  ;;  %7129 = vset.pattern.permute.xlu0 %v7335_v2  ;;  %v343_v7 = vld [vmem:[%s11903_s4] ss:$8 sm:$0x3]  ;;  %v7587_v14 = vld [vmem:[%s11901_s2 + $0x18] sm:$0xff] }
  0x2e   : > { %v346_v3 = vshrl.u32 %v345_v0, 7  ;;  %s13511_s22 = smov (!%p272_p2, %s7496_s22), 1  ;;  %376 = vperm.xlu1 %7127, %v7547_v6   ;;  %v6719_v12 = vld [vmem:[%s11903_s4 + $0x1] ss:$8 sm:$0x3]  ;;  %s7337_s7 = smov 78  }
  0x2f   : > { %s7542_s15 = sshll.u32 %s13511_s22, 6  ;;  %v6720_v17 = vld [vmem:[%s11903_s4 + $0x2] ss:$8 sm:$0x3]  ;;  %v7613_v19 = vld [vmem:[%s11901_s2 + $0x10] sm:$0xff]  ;;  %s7338_s12 = smov 79  }
  0x30   : > { %v7537_v4 = vsub.s32 0, %v346_v3  ;;  %v7540_v5 = vsub.s32 1, %v346_v3  ;;  %s7565_s25 = scalar_lea.vmem %s11900_s1, %s7542_s15  ;;  %v7339_v20 = vmov 2   ;;  %v6721_v22 = vld [vmem:[%s11903_s4 + $0x4] ss:$8 sm:$0x3]  ;;  %s11856_s29 = scalar_lea.vmem %s11899_s0, %s7542_s15 }
  0x31   : > { %v7573_v11 = vld [vmem:[%s7565_s25 + $0x8] sm:$0xff]  ;;  %v7579_v13 = vld [vmem:[%s7565_s25 + $0x18] sm:$0xff]  ;;  %v7340_v23 = vmov 3   ;;  %s7341_s16 = smov 81   ;;  %v7342_v25 = vmov 4   ;;  %v7343_v27 = vmov 5  }
  0x32   : > { %v7554_v8 = vrot.slane %v343_v7, %v7537_v4  ;;  %v7570_v10 = vrot.slane %v343_v7, %v7540_v5  ;;  %6128 = vmatprep.mubr.f32.mxu0 %v7573_v11  ;;  %381 = vperm.xlu1 %7127, %v7559_v9   ;;  %v7592_v15 = vrot.slane %v6719_v12, %v7540_v5  ;;  %vm12264_vm0 = vcmask 637952   ;;  %v7658_v35 = vld [vmem:[%s7565_s25] sm:$0xff]  ;;  %s7344_s17 = smov 127   ;;  %v7666_v44 = vld [vmem:[%s7565_s25 + $0x10] sm:$0xff]  ;;  %v7679_v57 = vld [vmem:[%s7565_s25 + $0x28] sm:$0xff]  ;;  %s7345_s18 = smov 126  }
  0x33   : > { %6264 = vmatprep.mubr.f32.mxu1 %v7579_v13  ;;  %v7596_v16 = vrot.slane %v6719_v12, %v7537_v4  ;;  %v7607_v18 = vrot.slane %v6720_v17, %v7537_v4  ;;  %v7621_v21 = vrot.slane %v6720_v17, %v7540_v5  ;;  %v7631_v24 = vrot.slane %v6721_v22, %v7537_v4  ;;  %v7673_v53 = vld [vmem:[%s7565_s25 + $0x20] sm:$0xff]  ;;  %v7685_v63 = vld [vmem:[%s7565_s25 + $0x30] sm:$0xff]  ;;  %v7688_v0 = vld [vmem:[%s7565_s25 + $0x38] sm:$0xff]  ;;  %s7346_s19 = smov 125   ;;  %s7347_s20 = smov 124  }
  0x34   : > { %353 = vrot.lane.b32.xlu0 %v7554_v8, %s7336_s26  ;;  %v7642_v26 = vrot.slane %v6721_v22, %v7540_v5  ;;  %vm12259_vm1 = vcmask 646144   ;;  %vm788_vm2 = vcmask 662528   ;;  %s7348_s24 = smov 82   ;;  %vm917_vm3 = vcmask 670720   ;;  %s7350_s27 = smov 123  }
  0x35   : > { %s7351_s30 = smov 83   ;;  %vm1046_vm4 = vcmask 678912   ;;  %s7353_s8 = smov 122   ;;  %vm12253_vm5 = vcmask 760832   ;;  %vm12252_vm6 = vcmask 769024   ;;  %vm1400_vm7 = vcmask 777216  }
  0x36   : > { %391 = vperm.xlu1 %7127, %v7587_v14   ;;  %s7354_s9 = smov 93   ;;  %s7356_s10 = smov 112   ;;  %vm1615_vm8 = vcmask 793600   ;;  %vm1733_vm9 = vcmask 801792   ;;  %vm1851_vm10 = vcmask 809984   ;;  %vm12249_vm11 = vcmask 891904  }
  0x37   : > { %s7357_s11 = smov 94   ;;  %s7359_s13 = smov 111   ;;  %vm12248_vm12 = vcmask 900096   ;;  %vm1363_vm13 = vcmask 908288   ;;  %vm2414_vm14 = vcmask 924672   ;;  %vm2532_vm15 = vcmask 932864  }
  0x38   : > { %355 = vrot.lane.b32.xlu0 %v7570_v10, %s7336_s26  ;;  %s7360_s14 = smov 95   ;;  %s7362_s28 = smov 110  }
  0x39   : > { %s7370_s23 = smov 107   ;;  %s7371_s22 = smov 99  }
  0x3a   : > { %429 = vrot.lane.b32.xlu1 %v7596_v16, %s7337_s7 }
  0x3b   : > { %7128 = vset.pattern.permute.xlu1 %v7335_v2 }
  0x3c   : > { %431 = vrot.lane.b32.xlu0 %v7592_v15, %s7337_s7 }
  0x3e   : > { %451 = vperm.xlu1 %7128, %v7547_v6  }
  0x40   : > { %455 = vperm.xlu0 %7129, %v7559_v9  }
  0x42   : > { %459 = vperm.xlu1 %7128, %v7613_v19  }
  0x44   : > { %558 = vrot.lane.b32.xlu0 %v7607_v18, %s7338_s12 }
  0x45   : > { %7130 = vset.pattern.permute.xlu0 %v7339_v20 }
  0x46   : > { %463 = vperm.xlu1 %7128, %v7587_v14  }
  0x48   : > { %580 = vperm.xlu0 %7130, %v7547_v6  }
  0x4a   : > { %560 = vrot.lane.b32.xlu1 %v7621_v21, %s7338_s12 }
  0x4b   : > { %7131 = vset.pattern.permute.xlu1 %v7339_v20 }
  0x4c   : > { %592 = vperm.xlu0 %7130, %v7587_v14  }
  0x4e   : > { %584 = vperm.xlu1 %7131, %v7559_v9  }
  0x50   : > { %7133 = vset.pattern.permute.xlu0 %v7340_v23 }
  0x51   : > { %681 = vperm.xlu0 %7133, %v7559_v9  }
  0x52   : > { %588 = vperm.xlu1 %7131, %v7613_v19  }
  0x55   : > { %784 = vrot.lane.b32.xlu0 %v7631_v24, %s7341_s16 }
  0x56   : > { %7134 = vset.pattern.permute.xlu0 %v7342_v25  ;;  %7132 = vset.pattern.permute.xlu1 %v7340_v23 }
  0x57   : > { %677 = vperm.xlu1 %7132, %v7547_v6  }
  0x59   : > { %806 = vperm.xlu0 %7134, %v7547_v6  }
  0x5b   : > { %685 = vperm.xlu1 %7132, %v7613_v19  }
  0x5d   : > { %818 = vperm.xlu0 %7134, %v7587_v14  }
  0x5f   : > { %689 = vperm.xlu1 %7132, %v7587_v14  }
  0x61   : > { %7137 = vset.pattern.permute.xlu0 %v7343_v27 }
  0x63   : > { %786 = vrot.lane.b32.xlu1 %v7642_v26, %s7341_s16  ;;  %s7367_s16 = smov 108  }
  0x64   : > { %7135 = vset.pattern.permute.xlu1 %v7342_v25 }
  0x67   : > { %810 = vperm.xlu1 %7135, %v7559_v9  }
  0x6b   : > { %814 = vperm.xlu1 %7135, %v7613_v19  }
  0x6f   : > { %7136 = vset.pattern.permute.xlu1 %v7343_v27 }
  0xa6   : > { %v7649_v29 = vpop.permute.xlu0 %353 }
  0xaa   : > { %v7653_v31 = vpop.permute.xlu0 %355 }
  0xad   : > { %v7647_v28 = vpop.permute.xlu1 %376 }
  0xae   : > { %v432_v33 = vpop.permute.xlu0 %431 }
  0xaf   : > { %v440_v43 = vmul.f32 %v432_v33, %v7573_v11  ;;  %v443_v49 = vmul.f32 %v432_v33, %v7579_v13  ;;  %v446_v59 = vmul.f32 %v432_v33, %v7679_v57  ;;  %v449_v7 = vmul.f32 %v432_v33, %v7688_v0 }
  0xb1   : > { %v7651_v30 = vpop.permute.xlu1 %381 }
  0xb5   : > { %v7655_v32 = vpop.permute.xlu1 %391 }
  0xb9   : > { %v430_v34 = vpop.permute.xlu1 %429 }
  0xba   : > { %v434_v36 = vsel %vm12264_vm0, %v430_v34, %v432_v33  ;;  %v438_v38 = vmul.f32 0.0, %v430_v34 }
  0xbb   : > { %v439_v37 = vmul.f32 %v434_v36, %v7658_v35  ;;  %v442_v48 = vmul.f32 %v434_v36, %v7666_v44  ;;  %v445_v54 = vmul.f32 %v434_v36, %v7673_v53  ;;  %v448_v3 = vmul.f32 %v434_v36, %v7685_v63 }
  0xbd   : > { %v452_v39 = vpop.permute.xlu1 %451 }
  0xbe   : > { %v466_v40 = vmul.f32 %v452_v39, %v438_v38  ;;  %v467_v41 = vmul.f32 %v452_v39, %v439_v37  ;;  %v468_v46 = vmul.f32 %v452_v39, %v440_v43 }
  0xbf   : > { %v456_v42 = vpop.permute.xlu0 %455 }
  0xc0   : > { %490 = vrot.lane.b32.xlu0 %v466_v40, %s7344_s17  ;;  %492 = vrot.lane.b32.xlu1 %v467_v41, %s7344_s17  ;;  %v469_v47 = vmul.f32 %v456_v42, %v438_v38  ;;  %v470_v51 = vmul.f32 %v456_v42, %v442_v48  ;;  %v471_v52 = vmul.f32 %v456_v42, %v443_v49 }
  0xc1   : > { %v460_v45 = vpop.permute.xlu1 %459 }
  0xc2   : > { %v472_v55 = vmul.f32 %v460_v45, %v438_v38  ;;  %v473_v56 = vmul.f32 %v460_v45, %v445_v54  ;;  %v474_v61 = vmul.f32 %v460_v45, %v446_v59 }
  0xc3   : > { %v559_v60 = vpop.permute.xlu0 %558 }
  0xc4   : > { %494 = vrot.lane.b32.xlu0 %v468_v46, %s7344_s17  ;;  %496 = vrot.lane.b32.xlu1 %v469_v47, %s7344_s17  ;;  %v567_v12 = vmul.f32 0.0, %v559_v60 }
  0xc5   : > { %v464_v50 = vpop.permute.xlu1 %463 }
  0xc6   : > { %v475_v62 = vmul.f32 %v464_v50, %v438_v38  ;;  %v476_v17 = vmul.f32 %v464_v50, %v448_v3  ;;  %v477_v20 = vmul.f32 %v464_v50, %v449_v7 }
  0xc7   : > { %v581_v23 = vpop.permute.xlu0 %580 }
  0xc8   : > { %498 = vrot.lane.b32.xlu0 %v470_v51, %s7344_s17  ;;  %500 = vrot.lane.b32.xlu1 %v471_v52, %s7344_s17  ;;  %v595_v27 = vmul.f32 %v581_v23, %v567_v12 }
  0xc9   : > { %v561_v58 = vpop.permute.xlu1 %560 }
  0xca   : > { %v563_v2 = vsel %vm12259_vm1, %v559_v60, %v561_v58  ;;  %v569_v34 = vmul.f32 %v561_v58, %v7573_v11  ;;  %v572_v38 = vmul.f32 %v561_v58, %v7579_v13  ;;  %v575_v48 = vmul.f32 %v561_v58, %v7679_v57 }
  0xcb   : > { %v568_v22 = vmul.f32 %v563_v2, %v7658_v35  ;;  %v571_v39 = vmul.f32 %v563_v2, %v7666_v44  ;;  %v574_v43 = vmul.f32 %v563_v2, %v7673_v53  ;;  %v593_v47 = vpop.permute.xlu0 %592  ;;  %v578_v51 = vmul.f32 %v561_v58, %v7688_v0 }
  0xcc   : > { %502 = vrot.lane.b32.xlu0 %v472_v55, %s7344_s17  ;;  %504 = vrot.lane.b32.xlu1 %v473_v56, %s7344_s17  ;;  %v597_v36 = vmul.f32 %v581_v23, %v569_v34  ;;  %v604_v49 = vmul.f32 %v593_v47, %v567_v12  ;;  %v577_v52 = vmul.f32 %v563_v2, %v7685_v63 }
  0xcd   : > { %v596_v25 = vmul.f32 %v581_v23, %v568_v22  ;;  %v585_v37 = vpop.permute.xlu1 %584  ;;  %v606_v54 = vmul.f32 %v593_v47, %v578_v51 }
  0xce   : > { %v598_v33 = vmul.f32 %v585_v37, %v567_v12  ;;  %v600_v40 = vmul.f32 %v585_v37, %v572_v38  ;;  %v599_v41 = vmul.f32 %v585_v37, %v571_v39  ;;  %v605_v55 = vmul.f32 %v593_v47, %v577_v52 }
  0xd0   : > { %506 = vrot.lane.b32.xlu0 %v474_v61, %s7344_s17  ;;  %508 = vrot.lane.b32.xlu1 %v475_v62, %s7344_s17  ;;  %v682_v61 = vpop.permute.xlu0 %681 }
  0xd1   : > { %v589_v42 = vpop.permute.xlu1 %588  ;;  %v695_v58 = vmul.f32 0.0, %v682_v61  ;;  %v696_v3 = vmul.f32 %v682_v61, %v7666_v44  ;;  %v697_v7 = vmul.f32 %v682_v61, %v7579_v13 }
  0xd2   : > { %v602_v45 = vmul.f32 %v589_v42, %v574_v43  ;;  %v601_v46 = vmul.f32 %v589_v42, %v567_v12  ;;  %v603_v50 = vmul.f32 %v589_v42, %v575_v48 }
  0xd4   : > { %510 = vrot.lane.b32.xlu0 %v476_v17, %s7344_s17  ;;  %512 = vrot.lane.b32.xlu1 %v477_v20, %s7344_s17  ;;  %v785_v22 = vpop.permute.xlu0 %784 }
  0xd5   : > { %v793_v37 = vmul.f32 0.0, %v785_v22 }
  0xd6   : > { %v678_v56 = vpop.permute.xlu1 %677 }
  0xd7   : > { %v692_v59 = vmul.f32 0.0, %v678_v56  ;;  %v693_v60 = vmul.f32 %v678_v56, %v7658_v35  ;;  %v694_v2 = vmul.f32 %v678_v56, %v7573_v11 }
  0xd8   : > { %621 = vrot.lane.b32.xlu0 %v596_v25, %s7345_s18  ;;  %619 = vrot.lane.b32.xlu1 %v595_v27, %s7345_s18  ;;  %v807_v39 = vpop.permute.xlu0 %806 }
  0xda   : > { %v686_v62 = vpop.permute.xlu1 %685 }
  0xdb   : > { %v698_v17 = vmul.f32 0.0, %v686_v62  ;;  %v699_v20 = vmul.f32 %v686_v62, %v7673_v53  ;;  %v700_v25 = vmul.f32 %v686_v62, %v7679_v57 }
  0xdc   : > { %625 = vrot.lane.b32.xlu0 %v598_v33, %s7345_s18  ;;  %623 = vrot.lane.b32.xlu1 %v597_v36, %s7345_s18 }
  0xde   : > { %v690_v12 = vpop.permute.xlu1 %689 }
  0xdf   : > { %v701_v27 = vmul.f32 0.0, %v690_v12  ;;  %v702_v33 = vmul.f32 %v690_v12, %v7685_v63  ;;  %v703_v36 = vmul.f32 %v690_v12, %v7688_v0 }
  0xe0   : > { %629 = vrot.lane.b32.xlu0 %v600_v40, %s7345_s18  ;;  %627 = vrot.lane.b32.xlu1 %v599_v41, %s7345_s18  ;;  %v821_v41 = vmul.f32 %v807_v39, %v793_v37 }
  0xe2   : > { %v787_v23 = vpop.permute.xlu1 %786 }
  0xe3   : > { %v789_v34 = vsel %vm788_vm2, %v785_v22, %v787_v23  ;;  %v795_v42 = vmul.f32 %v787_v23, %v7573_v11  ;;  %v798_v47 = vmul.f32 %v787_v23, %v7579_v13  ;;  %v801_v56 = vmul.f32 %v787_v23, %v7679_v57 }
  0xe4   : > { %633 = vrot.lane.b32.xlu0 %v602_v45, %s7345_s18  ;;  %631 = vrot.lane.b32.xlu1 %v601_v46, %s7345_s18  ;;  %v794_v38 = vmul.f32 %v789_v34, %v7658_v35  ;;  %v797_v48 = vmul.f32 %v789_v34, %v7666_v44  ;;  %v800_v51 = vmul.f32 %v789_v34, %v7673_v53  ;;  %vm2650_vm2 = vcmask 941056  }
  0xe5   : > { %v823_v46 = vmul.f32 %v807_v39, %v795_v42  ;;  %v803_v62 = vmul.f32 %v789_v34, %v7685_v63 }
  0xe6   : > { %v822_v40 = vmul.f32 %v807_v39, %v794_v38  ;;  %v811_v43 = vpop.permute.xlu1 %810 }
  0xe7   : > { %v824_v45 = vmul.f32 %v811_v43, %v793_v37 }
  0xe8   : > { %637 = vrot.lane.b32.xlu0 %v604_v49, %s7345_s18  ;;  %635 = vrot.lane.b32.xlu1 %v603_v50, %s7345_s18  ;;  %v826_v49 = vmul.f32 %v811_v43, %v798_v47  ;;  %v825_v50 = vmul.f32 %v811_v43, %v797_v48 }
  0xea   : > { %v815_v52 = vpop.permute.xlu1 %814 }
  0xeb   : > { %v829_v61 = vmul.f32 %v815_v52, %v801_v56 }
  0xec   : > { %641 = vrot.lane.b32.xlu0 %v606_v54, %s7345_s18  ;;  %639 = vrot.lane.b32.xlu1 %v605_v55, %s7345_s18  ;;  %v828_v54 = vmul.f32 %v815_v52, %v800_v51  ;;  %v827_v55 = vmul.f32 %v815_v52, %v793_v37 }
  0xf0   : > { %716 = vrot.lane.b32.xlu0 %v692_v59, %s7346_s19  ;;  %718 = vrot.lane.b32.xlu1 %v693_v60, %s7346_s19  ;;  %v819_v59 = vpop.permute.xlu0 %818 }
  0xf1   : > { %v830_v60 = vmul.f32 %v819_v59, %v793_v37 }
  0xf4   : > { %720 = vrot.lane.b32.xlu0 %v694_v2, %s7346_s19  ;;  %722 = vrot.lane.b32.xlu1 %v695_v58, %s7346_s19  ;;  %v804_v58 = vmul.f32 %v787_v23, %v7688_v0  ;;  %v6722_v2 = vld [vmem:[%s11903_s4 + $0x5] ss:$8 sm:$0x3] }
  0xf5   : > { %v7761_v12 = vrot.slane %v6722_v2, %v7540_v5 }
  0xf8   : > { %724 = vrot.lane.b32.xlu0 %v696_v3, %s7346_s19  ;;  %726 = vrot.lane.b32.xlu1 %v697_v7, %s7346_s19  ;;  %v832_v3 = vmul.f32 %v819_v59, %v804_v58  ;;  %v831_v7 = vmul.f32 %v819_v59, %v803_v62 }
  0xfc   : > { %728 = vrot.lane.b32.xlu0 %v698_v17, %s7346_s19  ;;  %730 = vrot.lane.b32.xlu1 %v699_v20, %s7346_s19  ;;  %v7764_v17 = vrot.slane %v6722_v2, %v7537_v4 }
 0x100   : > { %732 = vrot.lane.b32.xlu0 %v700_v25, %s7346_s19  ;;  %734 = vrot.lane.b32.xlu1 %v701_v27, %s7346_s19 }
 0x104   : > { %736 = vrot.lane.b32.xlu0 %v702_v33, %s7346_s19  ;;  %738 = vrot.lane.b32.xlu1 %v703_v36, %s7346_s19  ;;  %v7349_v36 = vmov 6  }
 0x108   : > { %847 = vrot.lane.b32.xlu0 %v822_v40, %s7347_s20  ;;  %845 = vrot.lane.b32.xlu1 %v821_v41, %s7347_s20 }
 0x10c   : > { %851 = vrot.lane.b32.xlu0 %v824_v45, %s7347_s20  ;;  %849 = vrot.lane.b32.xlu1 %v823_v46, %s7347_s20 }
 0x110   : > { %855 = vrot.lane.b32.xlu0 %v826_v49, %s7347_s20  ;;  %853 = vrot.lane.b32.xlu1 %v825_v50, %s7347_s20 }
 0x114   : > { %859 = vrot.lane.b32.xlu0 %v828_v54, %s7347_s20  ;;  %857 = vrot.lane.b32.xlu1 %v827_v55, %s7347_s20 }
 0x118   : > { %863 = vrot.lane.b32.xlu0 %v830_v60, %s7347_s20  ;;  %861 = vrot.lane.b32.xlu1 %v829_v61, %s7347_s20 }
 0x11c   : > { %867 = vrot.lane.b32.xlu0 %v832_v3, %s7347_s20  ;;  %865 = vrot.lane.b32.xlu1 %v831_v7, %s7347_s20  ;;  %s7368_s20 = smov 98  }
 0x120   : > { %915 = vrot.lane.b32.xlu0 %v7761_v12, %s7348_s24  ;;  %913 = vrot.lane.b32.xlu1 %v7764_v17, %s7348_s24  ;;  %s7373_s24 = smov 106  }
 0x124   : > { %939 = vperm.xlu0 %7137, %v7559_v9   ;;  %935 = vperm.xlu1 %7136, %v7547_v6  }
 0x128   : > { %943 = vperm.xlu1 %7136, %v7613_v19   ;;  %7138 = vset.pattern.permute.xlu0 %v7349_v36 }
 0x12c   : > { %947 = vperm.xlu1 %7136, %v7587_v14  }
 0x130   : > { %7139 = vset.pattern.permute.xlu1 %v7349_v36 }
 0x132   : > { %v7772_v20 = vpop.permute.xlu0 %490  ;;  %v7774_v22 = vpop.permute.xlu1 %492 }
 0x136   : > { %v7776_v23 = vpop.permute.xlu0 %494  ;;  %v7778_v25 = vpop.permute.xlu1 %496 }
 0x13a   : > { %v7780_v27 = vpop.permute.xlu0 %498  ;;  %v7782_v34 = vpop.permute.xlu1 %500 }
 0x13e   : > { %v7784_v37 = vpop.permute.xlu0 %502  ;;  %v7786_v33 = vpop.permute.xlu1 %504 }
 0x142   : > { %v7788_v38 = vpop.permute.xlu0 %506  ;;  %v7790_v39 = vpop.permute.xlu1 %508 }
 0x146   : > { %v7792_v40 = vpop.permute.xlu0 %510  ;;  %v7794_v41 = vpop.permute.xlu1 %512 }
 0x14a   : > { %v7796_v42 = vpop.permute.xlu0 %621  ;;  %v7798_v43 = vpop.permute.xlu1 %619 }
 0x14e   : > { %v7800_v45 = vpop.permute.xlu0 %625  ;;  %v7802_v46 = vpop.permute.xlu1 %623 }
 0x14f   : > { %12276 = vst [vmem:[#allocation6_spill] sm:$0xff] %v7800_v45 }
 0x152   : > { %v7804_v47 = vpop.permute.xlu0 %629  ;;  %v7806_v48 = vpop.permute.xlu1 %627 }
 0x153   : > { %12277 = vst [vmem:[#allocation7_spill] sm:$0xff] %v7804_v47 }
 0x156   : > { %v7808_v49 = vpop.permute.xlu0 %633  ;;  %v7810_v50 = vpop.permute.xlu1 %631 }
 0x157   : > { %12278 = vst [vmem:[#allocation8_spill] sm:$0xff] %v7808_v49  ;;  %12279 = vst [vmem:[#allocation9_spill] sm:$0xff] %v7810_v50 }
 0x15a   : > { %v7812_v51 = vpop.permute.xlu0 %637  ;;  %v7814_v52 = vpop.permute.xlu1 %635 }
 0x15b   : > { %12280 = vst [vmem:[#allocation10_spill] sm:$0xff] %v7812_v51  ;;  %12281 = vst [vmem:[#allocation11_spill] sm:$0xff] %v7814_v52 }
 0x15e   : > { %v7816_v54 = vpop.permute.xlu0 %641  ;;  %v7818_v55 = vpop.permute.xlu1 %639 }
 0x15f   : > { %12282 = vst [vmem:[#allocation12_spill] sm:$0xff] %v7816_v54  ;;  %12283 = vst [vmem:[#allocation13_spill] sm:$0xff] %v7818_v55 }
 0x162   : > { %v7820_v56 = vpop.permute.xlu0 %716  ;;  %v7822_v59 = vpop.permute.xlu1 %718 }
 0x163   : > { %12284 = vst [vmem:[#allocation14_spill] sm:$0xff] %v7820_v56  ;;  %12285 = vst [vmem:[#allocation15_spill] sm:$0xff] %v7822_v59 }
 0x166   : > { %v7824_v60 = vpop.permute.xlu0 %720  ;;  %v7826_v61 = vpop.permute.xlu1 %722 }
 0x167   : > { %12286 = vst [vmem:[#allocation16_spill] sm:$0xff] %v7824_v60  ;;  %12287 = vst [vmem:[#allocation17_spill] sm:$0xff] %v7826_v61 }
 0x16a   : > { %v7828_v58 = vpop.permute.xlu0 %724  ;;  %v7830_v62 = vpop.permute.xlu1 %726 }
 0x16b   : > { %12288 = vst [vmem:[#allocation18_spill] sm:$0xff] %v7828_v58  ;;  %12289 = vst [vmem:[#allocation19_spill] sm:$0xff] %v7830_v62 }
 0x16e   : > { %v7832_v2 = vpop.permute.xlu0 %728  ;;  %v7834_v3 = vpop.permute.xlu1 %730 }
 0x16f   : > { %12290 = vst [vmem:[#allocation20_spill] sm:$0xff] %v7832_v2  ;;  %12291 = vst [vmem:[#allocation21_spill] sm:$0xff] %v7834_v3 }
 0x172   : > { %v7836_v7 = vpop.permute.xlu0 %732  ;;  %v7838_v36 = vpop.permute.xlu1 %734 }
 0x173   : > { %12292 = vst [vmem:[#allocation22_spill] sm:$0xff] %v7836_v7  ;;  %12293 = vst [vmem:[#allocation23_spill] sm:$0xff] %v7838_v36 }
 0x176   : > { %v7840_v1 = vpop.permute.xlu0 %736  ;;  %v7842_v56 = vpop.permute.xlu1 %738 }
 0x177   : > { %12294 = vst [vmem:[#allocation24_spill] sm:$0xff] %v7840_v1  ;;  %12295 = vst [vmem:[#allocation25_spill] sm:$0xff] %v7842_v56 }
 0x17a   : > { %v7844_v52 = vpop.permute.xlu0 %847  ;;  %v7846_v50 = vpop.permute.xlu1 %845 }
 0x17b   : > { %12296 = vst [vmem:[#allocation26_spill] sm:$0xff] %v7844_v52  ;;  %12297 = vst [vmem:[#allocation27_spill] sm:$0xff] %v7846_v50 }
 0x17e   : > { %v7848_v61 = vpop.permute.xlu0 %851  ;;  %v7850_v58 = vpop.permute.xlu1 %849 }
 0x17f   : > { %12298 = vst [vmem:[#allocation28_spill] sm:$0xff] %v7848_v61  ;;  %12299 = vst [vmem:[#allocation29_spill] sm:$0xff] %v7850_v58 }
 0x182   : > { %v7852_v62 = vpop.permute.xlu0 %855  ;;  %v7854_v2 = vpop.permute.xlu1 %853 }
 0x183   : > { %12300 = vst [vmem:[#allocation30_spill] sm:$0xff] %v7852_v62  ;;  %12301 = vst [vmem:[#allocation31_spill] sm:$0xff] %v7854_v2 }
 0x186   : > { %v7856_v3 = vpop.permute.xlu0 %859  ;;  %v7858_v7 = vpop.permute.xlu1 %857 }
 0x187   : > { %12302 = vst [vmem:[#allocation32_spill] sm:$0xff] %v7856_v3  ;;  %12303 = vst [vmem:[#allocation33_spill] sm:$0xff] %v7858_v7 }
 0x18a   : > { %v7860_v36 = vpop.permute.xlu0 %863  ;;  %v7862_v1 = vpop.permute.xlu1 %861 }
 0x18b   : > { %12304 = vst [vmem:[#allocation34_spill] sm:$0xff] %v7860_v36  ;;  %12305 = vst [vmem:[#allocation35_spill] sm:$0xff] %v7862_v1 }
 0x18e   : > { %v7864_v56 = vpop.permute.xlu0 %867  ;;  %v7866_v52 = vpop.permute.xlu1 %865 }
 0x18f   : > { %12306 = vst [vmem:[#allocation36_spill] sm:$0xff] %v7864_v56  ;;  %12307 = vst [vmem:[#allocation37_spill] sm:$0xff] %v7866_v52 }
 0x192   : > { %v916_v50 = vpop.permute.xlu0 %915  ;;  %v914_v61 = vpop.permute.xlu1 %913 }
 0x193   : > { %v918_v58 = vsel %vm917_vm3, %v914_v61, %v916_v50  ;;  %v922_v49 = vmul.f32 0.0, %v914_v61  ;;  %v924_v1 = vmul.f32 %v916_v50, %v7573_v11  ;;  %v927_v61 = vmul.f32 %v916_v50, %v7579_v13 }
 0x194   : > { %v923_v62 = vmul.f32 %v918_v58, %v7658_v35  ;;  %v926_v36 = vmul.f32 %v918_v58, %v7666_v44  ;;  %vm12238_vm3 = vcmask 1022976  }
 0x1a3   : > { %v936_v2 = vpop.permute.xlu1 %935  ;;  %v940_v60 = vpop.permute.xlu0 %939 }
 0x1a4   : > { %v951_v59 = vmul.f32 %v936_v2, %v923_v62  ;;  %v950_v3 = vmul.f32 %v936_v2, %v922_v49  ;;  %v953_v7 = vmul.f32 %v940_v60, %v922_v49  ;;  %v952_v56 = vmul.f32 %v936_v2, %v924_v1 }
 0x1a5   : > { %v955_v52 = vmul.f32 %v940_v60, %v927_v61  ;;  %v954_v54 = vmul.f32 %v940_v60, %v926_v36  ;;  %v933_v61 = vmul.f32 %v916_v50, %v7688_v0 }
 0x1a6   : > { %976 = vrot.lane.b32.xlu1 %v951_v59, %s7350_s27  ;;  %974 = vrot.lane.b32.xlu0 %v950_v3, %s7350_s27  ;;  %v929_v59 = vmul.f32 %v918_v58, %v7673_v53 }
 0x1a7   : > { %v944_v62 = vpop.permute.xlu1 %943 }
 0x1a8   : > { %v957_v3 = vmul.f32 %v944_v62, %v929_v59  ;;  %v956_v51 = vmul.f32 %v944_v62, %v922_v49 }
 0x1aa   : > { %980 = vrot.lane.b32.xlu1 %v953_v7, %s7350_s27  ;;  %978 = vrot.lane.b32.xlu0 %v952_v56, %s7350_s27  ;;  %v930_v56 = vmul.f32 %v916_v50, %v7679_v57 }
 0x1ab   : > { %v948_v1 = vpop.permute.xlu1 %947 }
 0x1ac   : > { %v958_v2 = vmul.f32 %v944_v62, %v930_v56  ;;  %v959_v7 = vmul.f32 %v948_v1, %v922_v49  ;;  %v961_v60 = vmul.f32 %v948_v1, %v933_v61 }
 0x1ae   : > { %984 = vrot.lane.b32.xlu1 %v955_v52, %s7350_s27  ;;  %982 = vrot.lane.b32.xlu0 %v954_v54, %s7350_s27  ;;  %v932_v52 = vmul.f32 %v918_v58, %v7685_v63  ;;  %v6723_v54 = vld [vmem:[%s11903_s4 + $0x6] ss:$8 sm:$0x3] }
 0x1af   : > { %v7892_v49 = vrot.slane %v6723_v54, %v7537_v4  ;;  %v7895_v50 = vrot.slane %v6723_v54, %v7540_v5 }
 0x1b0   : > { %v960_v36 = vmul.f32 %v948_v1, %v932_v52 }
 0x1b2   : > { %988 = vrot.lane.b32.xlu1 %v957_v3, %s7350_s27  ;;  %986 = vrot.lane.b32.xlu0 %v956_v51, %s7350_s27  ;;  %v7352_v51 = vmov 7  }
 0x1b6   : > { %990 = vrot.lane.b32.xlu0 %v958_v2, %s7350_s27  ;;  %992 = vrot.lane.b32.xlu1 %v959_v7, %s7350_s27 }
 0x1ba   : > { %994 = vrot.lane.b32.xlu0 %v960_v36, %s7350_s27  ;;  %996 = vrot.lane.b32.xlu1 %v961_v60, %s7350_s27  ;;  %s7375_s27 = smov 96  }
 0x1be   : > { %1042 = vrot.lane.b32.xlu0 %v7892_v49, %s7351_s30  ;;  %1044 = vrot.lane.b32.xlu1 %v7895_v50, %s7351_s30  ;;  %s7402_s30 = smov 13  }
 0x1c2   : > { %1064 = vperm.xlu0 %7138, %v7547_v6   ;;  %1068 = vperm.xlu1 %7139, %v7559_v9  }
 0x1c6   : > { %1076 = vperm.xlu0 %7138, %v7587_v14   ;;  %1072 = vperm.xlu1 %7139, %v7613_v19  }
 0x1ca   : > { %7141 = vset.pattern.permute.xlu0 %v7352_v51  ;;  %7140 = vset.pattern.permute.xlu1 %v7352_v51 }
 0x218   : > { %v7903_v4 = vpop.permute.xlu0 %974  ;;  %v7905_v5 = vpop.permute.xlu1 %976 }
 0x219   : > { %12308 = vst [vmem:[#allocation38_spill] sm:$0xff] %v7903_v4  ;;  %12309 = vst [vmem:[#allocation39_spill] sm:$0xff] %v7905_v5 }
 0x21c   : > { %v7907_v58 = vpop.permute.xlu0 %978  ;;  %v7909_v62 = vpop.permute.xlu1 %980 }
 0x21d   : > { %12310 = vst [vmem:[#allocation40_spill] sm:$0xff] %v7907_v58  ;;  %12311 = vst [vmem:[#allocation41_spill] sm:$0xff] %v7909_v62 }
 0x220   : > { %v7911_v59 = vpop.permute.xlu0 %982  ;;  %v7913_v3 = vpop.permute.xlu1 %984 }
 0x221   : > { %12312 = vst [vmem:[#allocation42_spill] sm:$0xff] %v7911_v59  ;;  %12313 = vst [vmem:[#allocation43_spill] sm:$0xff] %v7913_v3 }
 0x224   : > { %v7915_v1 = vpop.permute.xlu0 %986  ;;  %v7917_v56 = vpop.permute.xlu1 %988 }
 0x225   : > { %12314 = vst [vmem:[#allocation44_spill] sm:$0xff] %v7915_v1  ;;  %12315 = vst [vmem:[#allocation45_spill] sm:$0xff] %v7917_v56 }
 0x228   : > { %v7919_v2 = vpop.permute.xlu0 %990  ;;  %v7921_v7 = vpop.permute.xlu1 %992 }
 0x229   : > { %12316 = vst [vmem:[#allocation46_spill] sm:$0xff] %v7919_v2  ;;  %12317 = vst [vmem:[#allocation47_spill] sm:$0xff] %v7921_v7 }
 0x22c   : > { %v7923_v61 = vpop.permute.xlu0 %994  ;;  %v7925_v52 = vpop.permute.xlu1 %996 }
 0x22d   : > { %12318 = vst [vmem:[#allocation48_spill] sm:$0xff] %v7923_v61  ;;  %12319 = vst [vmem:[#allocation49_spill] sm:$0xff] %v7925_v52 }
 0x230   : > { %v1043_v54 = vpop.permute.xlu0 %1042  ;;  %v1045_v60 = vpop.permute.xlu1 %1044 }
 0x231   : > { %v1047_v36 = vsel %vm1046_vm4, %v1043_v54, %v1045_v60  ;;  %v1051_v51 = vmul.f32 0.0, %v1043_v54  ;;  %v1053_v56 = vmul.f32 %v1045_v60, %v7573_v11  ;;  %v1056_v61 = vmul.f32 %v1045_v60, %v7579_v13 }
 0x232   : > { %v1052_v4 = vmul.f32 %v1047_v36, %v7658_v35  ;;  %v1055_v52 = vmul.f32 %v1047_v36, %v7666_v44  ;;  %v1058_v55 = vmul.f32 %v1047_v36, %v7673_v53  ;;  %vm643_vm4 = vcmask 1031168  }
 0x241   : > { %v1065_v3 = vpop.permute.xlu0 %1064  ;;  %v1069_v59 = vpop.permute.xlu1 %1068 }
 0x242   : > { %v1079_v62 = vmul.f32 %v1065_v3, %v1051_v51  ;;  %v1080_v1 = vmul.f32 %v1065_v3, %v1052_v4  ;;  %v1081_v2 = vmul.f32 %v1065_v3, %v1053_v56  ;;  %v1082_v7 = vmul.f32 %v1069_v59, %v1051_v51 }
 0x243   : > { %v1083_v54 = vmul.f32 %v1069_v59, %v1055_v52  ;;  %v1084_v5 = vmul.f32 %v1069_v59, %v1056_v61  ;;  %v1061_v56 = vmul.f32 %v1047_v36, %v7685_v63 }
 0x244   : > { %1103 = vrot.lane.b32.xlu1 %v1079_v62, %s7353_s8  ;;  %1105 = vrot.lane.b32.xlu0 %v1080_v1, %s7353_s8  ;;  %v1059_v62 = vmul.f32 %v1045_v60, %v7679_v57 }
 0x245   : > { %v1073_v58 = vpop.permute.xlu1 %1072  ;;  %v1077_v45 = vpop.permute.xlu0 %1076 }
 0x246   : > { %v1085_v4 = vmul.f32 %v1073_v58, %v1051_v51  ;;  %v1086_v47 = vmul.f32 %v1073_v58, %v1058_v55  ;;  %v1088_v3 = vmul.f32 %v1077_v45, %v1051_v51  ;;  %v1087_v1 = vmul.f32 %v1073_v58, %v1059_v62 }
 0x247   : > { %v1089_v59 = vmul.f32 %v1077_v45, %v1061_v56 }
 0x248   : > { %1107 = vrot.lane.b32.xlu1 %v1081_v2, %s7353_s8  ;;  %1109 = vrot.lane.b32.xlu0 %v1082_v7, %s7353_s8  ;;  %v1062_v2 = vmul.f32 %v1045_v60, %v7688_v0 }
 0x24a   : > { %v1090_v7 = vmul.f32 %v1077_v45, %v1062_v2 }
 0x24c   : > { %1111 = vrot.lane.b32.xlu1 %v1083_v54, %s7353_s8  ;;  %1113 = vrot.lane.b32.xlu0 %v1084_v5, %s7353_s8 }
 0x250   : > { %1117 = vrot.lane.b32.xlu0 %v1086_v47, %s7353_s8  ;;  %1115 = vrot.lane.b32.xlu1 %v1085_v4, %s7353_s8  ;;  %v7355_v47 = vmov 8  }
 0x254   : > { %1121 = vrot.lane.b32.xlu0 %v1088_v3, %s7353_s8  ;;  %1119 = vrot.lane.b32.xlu1 %v1087_v1, %s7353_s8 }
 0x258   : > { %1125 = vrot.lane.b32.xlu0 %v1090_v7, %s7353_s8  ;;  %1123 = vrot.lane.b32.xlu1 %v1089_v59, %s7353_s8  ;;  %s7364_s8 = smov 109  }
 0x25c   : > { %1162 = vrot.lane.b32.xlu0 %v7570_v10, %s7354_s9  ;;  %1160 = vrot.lane.b32.xlu1 %v7554_v8, %s7354_s9 }
 0x260   : > { %1186 = vperm.xlu0 %7141, %v7559_v9   ;;  %1182 = vperm.xlu1 %7140, %v7547_v6  }
 0x264   : > { %1190 = vperm.xlu1 %7140, %v7613_v19   ;;  %7142 = vset.pattern.permute.xlu0 %v7355_v47 }
 0x268   : > { %1194 = vperm.xlu1 %7140, %v7587_v14  }
 0x26c   : > { %7143 = vset.pattern.permute.xlu1 %v7355_v47 }
 0x2b6   : > { %v7943_v45 = vpop.permute.xlu0 %1105  ;;  %v7945_v55 = vpop.permute.xlu1 %1103 }
 0x2b7   : > { %12320 = vst [vmem:[#allocation50_spill] sm:$0xff] %v7943_v45  ;;  %12321 = vst [vmem:[#allocation51_spill] sm:$0xff] %v7945_v55 }
 0x2ba   : > { %v7947_v5 = vpop.permute.xlu0 %1109  ;;  %v7949_v58 = vpop.permute.xlu1 %1107 }
 0x2bb   : > { %12322 = vst [vmem:[#allocation52_spill] sm:$0xff] %v7947_v5  ;;  %12323 = vst [vmem:[#allocation53_spill] sm:$0xff] %v7949_v58 }
 0x2be   : > { %v7951_v61 = vpop.permute.xlu0 %1113  ;;  %v7953_v52 = vpop.permute.xlu1 %1111 }
 0x2bf   : > { %12324 = vst [vmem:[#allocation54_spill] sm:$0xff] %v7951_v61  ;;  %12325 = vst [vmem:[#allocation55_spill] sm:$0xff] %v7953_v52 }
 0x2c2   : > { %v7955_v60 = vpop.permute.xlu0 %1117  ;;  %v7957_v36 = vpop.permute.xlu1 %1115 }
 0x2c3   : > { %12326 = vst [vmem:[#allocation56_spill] sm:$0xff] %v7955_v60  ;;  %12327 = vst [vmem:[#allocation57_spill] sm:$0xff] %v7957_v36 }
 0x2c6   : > { %v7959_v51 = vpop.permute.xlu0 %1121  ;;  %v7961_v54 = vpop.permute.xlu1 %1119 }
 0x2c7   : > { %12328 = vst [vmem:[#allocation58_spill] sm:$0xff] %v7959_v51  ;;  %12329 = vst [vmem:[#allocation59_spill] sm:$0xff] %v7961_v54 }
 0x2ca   : > { %v7963_v4 = vpop.permute.xlu0 %1125  ;;  %v7965_v62 = vpop.permute.xlu1 %1123 }
 0x2cb   : > { %12330 = vst [vmem:[#allocation60_spill] sm:$0xff] %v7963_v4  ;;  %12331 = vst [vmem:[#allocation61_spill] sm:$0xff] %v7965_v62 }
 0x2ce   : > { %v1163_v3 = vpop.permute.xlu0 %1162  ;;  %v1161_v1 = vpop.permute.xlu1 %1160 }
 0x2cf   : > { %v1165_v56 = vsel %vm12253_vm5, %v1161_v1, %v1163_v3  ;;  %v1169_v2 = vmul.f32 0.0, %v1161_v1  ;;  %v1171_v60 = vmul.f32 %v1163_v3, %v7573_v11  ;;  %v1174_v62 = vmul.f32 %v1163_v3, %v7579_v13 }
 0x2d0   : > { %v1170_v59 = vmul.f32 %v1165_v56, %v7658_v35  ;;  %v1173_v51 = vmul.f32 %v1165_v56, %v7666_v44 }
 0x2df   : > { %v1183_v7 = vpop.permute.xlu1 %1182  ;;  %v1187_v36 = vpop.permute.xlu0 %1186 }
 0x2e0   : > { %v1197_v47 = vmul.f32 %v1183_v7, %v1169_v2  ;;  %v1198_v55 = vmul.f32 %v1183_v7, %v1170_v59  ;;  %v1199_v54 = vmul.f32 %v1183_v7, %v1171_v60  ;;  %v1200_v4 = vmul.f32 %v1187_v36, %v1169_v2 }
 0x2e1   : > { %v1201_v1 = vmul.f32 %v1187_v36, %v1173_v51  ;;  %v1202_v5 = vmul.f32 %v1187_v36, %v1174_v62  ;;  %v1176_v59 = vmul.f32 %v1165_v56, %v7673_v53  ;;  %v1180_v51 = vmul.f32 %v1163_v3, %v7688_v0 }
 0x2e2   : > { %1221 = vrot.lane.b32.xlu0 %v1197_v47, %s7356_s10  ;;  %1223 = vrot.lane.b32.xlu1 %v1198_v55, %s7356_s10  ;;  %v1177_v47 = vmul.f32 %v1163_v3, %v7679_v57 }
 0x2e3   : > { %v1191_v61 = vpop.permute.xlu1 %1190 }
 0x2e4   : > { %v1203_v52 = vmul.f32 %v1191_v61, %v1169_v2  ;;  %v1204_v45 = vmul.f32 %v1191_v61, %v1176_v59  ;;  %v1205_v60 = vmul.f32 %v1191_v61, %v1177_v47 }
 0x2e6   : > { %1225 = vrot.lane.b32.xlu0 %v1199_v54, %s7356_s10  ;;  %1227 = vrot.lane.b32.xlu1 %v1200_v4, %s7356_s10  ;;  %v1179_v54 = vmul.f32 %v1165_v56, %v7685_v63 }
 0x2e7   : > { %v1195_v55 = vpop.permute.xlu1 %1194 }
 0x2e8   : > { %v1206_v7 = vmul.f32 %v1195_v55, %v1169_v2  ;;  %v1207_v36 = vmul.f32 %v1195_v55, %v1179_v54  ;;  %v1208_v4 = vmul.f32 %v1195_v55, %v1180_v51 }
 0x2ea   : > { %1229 = vrot.lane.b32.xlu0 %v1201_v1, %s7356_s10  ;;  %1231 = vrot.lane.b32.xlu1 %v1202_v5, %s7356_s10 }
 0x2ee   : > { %1233 = vrot.lane.b32.xlu0 %v1203_v52, %s7356_s10  ;;  %1235 = vrot.lane.b32.xlu1 %v1204_v45, %s7356_s10  ;;  %v7358_v45 = vmov 9  }
 0x2f2   : > { %1237 = vrot.lane.b32.xlu0 %v1205_v60, %s7356_s10  ;;  %1239 = vrot.lane.b32.xlu1 %v1206_v7, %s7356_s10 }
 0x2f6   : > { %1241 = vrot.lane.b32.xlu0 %v1207_v36, %s7356_s10  ;;  %1243 = vrot.lane.b32.xlu1 %v1208_v4, %s7356_s10  ;;  %s7365_s10 = smov 97  }
 0x2fa   : > { %1278 = vrot.lane.b32.xlu0 %v7596_v16, %s7357_s11  ;;  %1280 = vrot.lane.b32.xlu1 %v7592_v15, %s7357_s11 }
 0x2fe   : > { %1300 = vperm.xlu0 %7142, %v7547_v6   ;;  %1304 = vperm.xlu1 %7143, %v7559_v9  }
 0x302   : > { %1312 = vperm.xlu0 %7142, %v7587_v14   ;;  %1308 = vperm.xlu1 %7143, %v7613_v19  }
 0x306   : > { %7145 = vset.pattern.permute.xlu0 %v7358_v45  ;;  %7144 = vset.pattern.permute.xlu1 %v7358_v45 }
 0x354   : > { %v7984_v5 = vpop.permute.xlu0 %1221  ;;  %v7986_v61 = vpop.permute.xlu1 %1223 }
 0x355   : > { %12332 = vst [vmem:[#allocation62_spill] sm:$0xff] %v7984_v5  ;;  %12333 = vst [vmem:[#allocation63_spill] sm:$0xff] %v7986_v61 }
 0x358   : > { %v7988_v52 = vpop.permute.xlu0 %1225  ;;  %v7990_v62 = vpop.permute.xlu1 %1227 }
 0x359   : > { %12334 = vst [vmem:[#allocation64_spill] sm:$0xff] %v7988_v52  ;;  %12335 = vst [vmem:[#allocation65_spill] sm:$0xff] %v7990_v62 }
 0x35c   : > { %v7992_v3 = vpop.permute.xlu0 %1229  ;;  %v7994_v6 = vpop.permute.xlu1 %1231 }
 0x35d   : > { %12336 = vst [vmem:[#allocation66_spill] sm:$0xff] %v7992_v3  ;;  %12337 = vst [vmem:[#allocation67_spill] sm:$0xff] %v7994_v6 }
 0x360   : > { %v7996_v9 = vpop.permute.xlu0 %1233  ;;  %v7998_v14 = vpop.permute.xlu1 %1235 }
 0x361   : > { %12338 = vst [vmem:[#allocation68_spill] sm:$0xff] %v7996_v9  ;;  %12339 = vst [vmem:[#allocation69_spill] sm:$0xff] %v7998_v14 }
 0x364   : > { %v8000_v56 = vpop.permute.xlu0 %1237  ;;  %v8002_v2 = vpop.permute.xlu1 %1239 }
 0x365   : > { %12340 = vst [vmem:[#allocation70_spill] sm:$0xff] %v8000_v56  ;;  %12341 = vst [vmem:[#allocation71_spill] sm:$0xff] %v8002_v2 }
 0x368   : > { %v8004_v1 = vpop.permute.xlu0 %1241  ;;  %v8006_v59 = vpop.permute.xlu1 %1243 }
 0x369   : > { %12342 = vst [vmem:[#allocation72_spill] sm:$0xff] %v8004_v1  ;;  %12343 = vst [vmem:[#allocation73_spill] sm:$0xff] %v8006_v59 }
 0x36c   : > { %v1279_v47 = vpop.permute.xlu0 %1278  ;;  %v1281_v55 = vpop.permute.xlu1 %1280 }
 0x36d   : > { %v1283_v60 = vsel %vm12252_vm6, %v1279_v47, %v1281_v55  ;;  %v1287_v7 = vmul.f32 0.0, %v1279_v47  ;;  %v1289_v5 = vmul.f32 %v1281_v55, %v7573_v11  ;;  %v1292_v59 = vmul.f32 %v1281_v55, %v7579_v13 }
 0x36e   : > { %v1288_v54 = vmul.f32 %v1283_v60, %v7658_v35  ;;  %v1291_v14 = vmul.f32 %v1283_v60, %v7666_v44  ;;  %v1294_v11 = vmul.f32 %v1283_v60, %v7673_v53 }
 0x37d   : > { %v1301_v51 = vpop.permute.xlu0 %1300  ;;  %v1305_v45 = vpop.permute.xlu1 %1304 }
 0x37e   : > { %v1315_v36 = vmul.f32 %v1301_v51, %v1287_v7  ;;  %v1316_v4 = vmul.f32 %v1301_v51, %v1288_v54  ;;  %v1317_v56 = vmul.f32 %v1301_v51, %v1289_v5  ;;  %v1318_v9 = vmul.f32 %v1305_v45, %v1287_v7 }
 0x37f   : > { %v1319_v47 = vmul.f32 %v1305_v45, %v1291_v14  ;;  %v1320_v54 = vmul.f32 %v1305_v45, %v1292_v59  ;;  %v1297_v14 = vmul.f32 %v1283_v60, %v7685_v63  ;;  %v8049_v60 = vld [vmem:[%s11901_s2 + $0x18] sm:$0xff] }
 0x380   : > { %1339 = vrot.lane.b32.xlu1 %v1315_v36, %s7359_s13  ;;  %1341 = vrot.lane.b32.xlu0 %v1316_v4, %s7359_s13  ;;  %v1295_v4 = vmul.f32 %v1281_v55, %v7679_v57 }
 0x381   : > { %v1309_v2 = vpop.permute.xlu1 %1308  ;;  %v1313_v51 = vpop.permute.xlu0 %1312 }
 0x382   : > { %v1321_v36 = vmul.f32 %v1309_v2, %v1287_v7  ;;  %v1322_v5 = vmul.f32 %v1309_v2, %v1294_v11  ;;  %v1324_v13 = vmul.f32 %v1313_v51, %v1287_v7  ;;  %v1325_v59 = vmul.f32 %v1313_v51, %v1297_v14 }
 0x383   : > { %v7361_v7 = vmov 10  }
 0x384   : > { %1343 = vrot.lane.b32.xlu1 %v1317_v56, %s7359_s13  ;;  %1345 = vrot.lane.b32.xlu0 %v1318_v9, %s7359_s13  ;;  %v1323_v9 = vmul.f32 %v1309_v2, %v1295_v4  ;;  %v1298_v56 = vmul.f32 %v1281_v55, %v7688_v0  ;;  %v8036_v2 = vld [vmem:[%s11901_s2 + $0x8] sm:$0xff]  ;;  %v8042_v55 = vld [vmem:[%s11901_s2] sm:$0xff] }
 0x386   : > { %v1326_v45 = vmul.f32 %v1313_v51, %v1298_v56 }
 0x388   : > { %1347 = vrot.lane.b32.xlu1 %v1319_v47, %s7359_s13  ;;  %1349 = vrot.lane.b32.xlu0 %v1320_v54, %s7359_s13 }
 0x38c   : > { %1353 = vrot.lane.b32.xlu0 %v1322_v5, %s7359_s13  ;;  %1351 = vrot.lane.b32.xlu1 %v1321_v36, %s7359_s13 }
 0x390   : > { %1357 = vrot.lane.b32.xlu0 %v1324_v13, %s7359_s13  ;;  %1355 = vrot.lane.b32.xlu1 %v1323_v9, %s7359_s13 }
 0x394   : > { %1361 = vrot.lane.b32.xlu0 %v1326_v45, %s7359_s13  ;;  %1359 = vrot.lane.b32.xlu1 %v1325_v59, %s7359_s13 }
 0x398   : > { %1398 = vrot.lane.b32.xlu0 %v7621_v21, %s7360_s14  ;;  %1396 = vrot.lane.b32.xlu1 %v7607_v18, %s7360_s14 }
 0x39c   : > { %1422 = vperm.xlu0 %7145, %v8036_v2   ;;  %1418 = vperm.xlu1 %7144, %v8042_v55  }
 0x3a0   : > { %1426 = vperm.xlu1 %7144, %v7613_v19   ;;  %7146 = vset.pattern.permute.xlu0 %v7361_v7 }
 0x3a4   : > { %1430 = vperm.xlu1 %7144, %v8049_v60  }
 0x3a8   : > { %7147 = vset.pattern.permute.xlu1 %v7361_v7 }
 0x3f2   : > { %v8052_v47 = vpop.permute.xlu0 %1341  ;;  %v8054_v54 = vpop.permute.xlu1 %1339 }
 0x3f3   : > { %12344 = vst [vmem:[#allocation74_spill] sm:$0xff] %v8052_v47  ;;  %12345 = vst [vmem:[#allocation75_spill] sm:$0xff] %v8054_v54 }
 0x3f6   : > { %v8056_v11 = vpop.permute.xlu0 %1345  ;;  %v8058_v36 = vpop.permute.xlu1 %1343 }
 0x3f7   : > { %12346 = vst [vmem:[#allocation76_spill] sm:$0xff] %v8056_v11  ;;  %12347 = vst [vmem:[#allocation77_spill] sm:$0xff] %v8058_v36 }
 0x3fa   : > { %v8060_v5 = vpop.permute.xlu0 %1349  ;;  %v8062_v19 = vpop.permute.xlu1 %1347 }
 0x3fb   : > { %12348 = vst [vmem:[#allocation78_spill] sm:$0xff] %v8060_v5  ;;  %12349 = vst [vmem:[#allocation79_spill] sm:$0xff] %v8062_v19 }
 0x3fe   : > { %v8064_v51 = vpop.permute.xlu0 %1353  ;;  %v8066_v4 = vpop.permute.xlu1 %1351 }
 0x3ff   : > { %12350 = vst [vmem:[#allocation80_spill] sm:$0xff] %v8064_v51  ;;  %12351 = vst [vmem:[#allocation81_spill] sm:$0xff] %v8066_v4 }
 0x402   : > { %v8068_v13 = vpop.permute.xlu0 %1357  ;;  %v8070_v9 = vpop.permute.xlu1 %1355 }
 0x403   : > { %12352 = vst [vmem:[#allocation82_spill] sm:$0xff] %v8068_v13  ;;  %12353 = vst [vmem:[#allocation83_spill] sm:$0xff] %v8070_v9  ;;  %v8079_v13 = vld [vmem:[%s7565_s25 + $0x8] sm:$0xff] }
 0x406   : > { %v8072_v14 = vpop.permute.xlu0 %1361  ;;  %v8074_v56 = vpop.permute.xlu1 %1359 }
 0x407   : > { %12354 = vst [vmem:[#allocation84_spill] sm:$0xff] %v8072_v14  ;;  %12355 = vst [vmem:[#allocation85_spill] sm:$0xff] %v8074_v56 }
 0x40a   : > { %v1399_v59 = vpop.permute.xlu0 %1398  ;;  %v1397_v45 = vpop.permute.xlu1 %1396 }
 0x40b   : > { %v1401_v7 = vsel %vm1400_vm7, %v1397_v45, %v1399_v59  ;;  %v1405_v54 = vmul.f32 0.0, %v1397_v45  ;;  %v1407_v9 = vmul.f32 %v8079_v13, %v1399_v59 }
 0x40c   : > { %v1406_v51 = vmul.f32 %v1401_v7, %v7658_v35  ;;  %v1409_v47 = vmul.f32 %v1401_v7, %v7666_v44  ;;  %v8087_v35 = vld [vmem:[%s7565_s25 + $0x18] sm:$0xff]  ;;  %v1413_v44 = vmul.f32 %v1399_v59, %v7679_v57  ;;  %v8109_v57 = vld [vmem:[%s11901_s2 + $0x10] sm:$0xff] }
 0x41b   : > { %v1419_v5 = vpop.permute.xlu1 %1418  ;;  %v1423_v19 = vpop.permute.xlu0 %1422 }
 0x41c   : > { %v1433_v11 = vmul.f32 %v1419_v5, %v1405_v54  ;;  %v1434_v4 = vmul.f32 %v1419_v5, %v1406_v51  ;;  %v1435_v14 = vmul.f32 %v1419_v5, %v1407_v9  ;;  %v1436_v56 = vmul.f32 %v1423_v19, %v1405_v54 }
 0x41d   : > { %v1410_v51 = vmul.f32 %v8087_v35, %v1399_v59  ;;  %v1437_v45 = vmul.f32 %v1423_v19, %v1409_v47  ;;  %v1415_v47 = vmul.f32 %v1401_v7, %v7685_v63  ;;  %v7363_v63 = vmov 11  }
 0x41e   : > { %1457 = vrot.lane.b32.xlu0 %v1433_v11, %s7362_s28  ;;  %1459 = vrot.lane.b32.xlu1 %v1434_v4, %s7362_s28  ;;  %v1412_v11 = vmul.f32 %v1401_v7, %v7673_v53 }
 0x41f   : > { %v1427_v36 = vpop.permute.xlu1 %1426  ;;  %v1438_v1 = vmul.f32 %v1423_v19, %v1410_v51  ;;  %v1416_v19 = vmul.f32 %v1399_v59, %v7688_v0 }
 0x420   : > { %v1439_v5 = vmul.f32 %v1427_v36, %v1405_v54  ;;  %v1440_v4 = vmul.f32 %v1427_v36, %v1412_v11 }
 0x422   : > { %1461 = vrot.lane.b32.xlu0 %v1435_v14, %s7362_s28  ;;  %1463 = vrot.lane.b32.xlu1 %v1436_v56, %s7362_s28  ;;  %v1441_v14 = vmul.f32 %v1427_v36, %v1413_v44 }
 0x423   : > { %v1431_v9 = vpop.permute.xlu1 %1430 }
 0x424   : > { %v1442_v56 = vmul.f32 %v1431_v9, %v1405_v54  ;;  %v1443_v53 = vmul.f32 %v1431_v9, %v1415_v47  ;;  %v8137_v47 = vld [vmem:[%s7565_s25] sm:$0xff] }
 0x426   : > { %1465 = vrot.lane.b32.xlu0 %v1437_v45, %s7362_s28  ;;  %1467 = vrot.lane.b32.xlu1 %v1438_v1, %s7362_s28  ;;  %v1444_v1 = vmul.f32 %v1431_v9, %v1416_v19 }
 0x42a   : > { %1469 = vrot.lane.b32.xlu0 %v1439_v5, %s7362_s28  ;;  %1471 = vrot.lane.b32.xlu1 %v1440_v4, %s7362_s28 }
 0x42e   : > { %1473 = vrot.lane.b32.xlu0 %v1441_v14, %s7362_s28  ;;  %1475 = vrot.lane.b32.xlu1 %v1442_v56, %s7362_s28 }
 0x432   : > { %1477 = vrot.lane.b32.xlu0 %v1443_v53, %s7362_s28  ;;  %1479 = vrot.lane.b32.xlu1 %v1444_v1, %s7362_s28 }
 0x436   : > { %1515 = vperm.xlu0 %7146, %v8042_v55   ;;  %1519 = vperm.xlu1 %7147, %v8036_v2  }
 0x43a   : > { %1527 = vperm.xlu0 %7146, %v8049_v60   ;;  %1523 = vperm.xlu1 %7147, %v8109_v57  }
 0x43e   : > { %7149 = vset.pattern.permute.xlu0 %v7363_v63  ;;  %7148 = vset.pattern.permute.xlu1 %v7363_v63 }
 0x490   : > { %v8112_v0 = vpop.permute.xlu0 %1457  ;;  %v8114_v54 = vpop.permute.xlu1 %1459 }
 0x491   : > { %12356 = vst [vmem:[#allocation86_spill] sm:$0xff] %v8112_v0  ;;  %12357 = vst [vmem:[#allocation87_spill] sm:$0xff] %v8114_v54  ;;  %v8144_v0 = vld [vmem:[%s7565_s25 + $0x10] sm:$0xff] }
 0x494   : > { %v8116_v36 = vpop.permute.xlu0 %1461  ;;  %v8118_v59 = vpop.permute.xlu1 %1463 }
 0x495   : > { %12358 = vst [vmem:[#allocation88_spill] sm:$0xff] %v8116_v36  ;;  %12359 = vst [vmem:[#allocation89_spill] sm:$0xff] %v8118_v59 }
 0x498   : > { %v8120_v7 = vpop.permute.xlu0 %1465  ;;  %v8122_v51 = vpop.permute.xlu1 %1467 }
 0x499   : > { %12360 = vst [vmem:[#allocation90_spill] sm:$0xff] %v8120_v7  ;;  %12361 = vst [vmem:[#allocation91_spill] sm:$0xff] %v8122_v51 }
 0x49c   : > { %v8124_v45 = vpop.permute.xlu0 %1469  ;;  %v8126_v11 = vpop.permute.xlu1 %1471 }
 0x49d   : > { %12362 = vst [vmem:[#allocation92_spill] sm:$0xff] %v8124_v45  ;;  %12363 = vst [vmem:[#allocation93_spill] sm:$0xff] %v8126_v11 }
 0x4a0   : > { %v8128_v5 = vpop.permute.xlu0 %1473  ;;  %v8130_v4 = vpop.permute.xlu1 %1475 }
 0x4a1   : > { %12364 = vst [vmem:[#allocation94_spill] sm:$0xff] %v8128_v5  ;;  %12365 = vst [vmem:[#allocation95_spill] sm:$0xff] %v8130_v4  ;;  %v8169_v4 = vld [vmem:[%s7565_s25 + $0x38] sm:$0xff] }
 0x4a4   : > { %v8132_v44 = vpop.permute.xlu0 %1477  ;;  %v8134_v9 = vpop.permute.xlu1 %1479 }
 0x4a5   : > { %12366 = vst [vmem:[#allocation96_spill] sm:$0xff] %v8132_v44  ;;  %12367 = vst [vmem:[#allocation97_spill] sm:$0xff] %v8134_v9 }
 0x4b5   : > { %v1516_v14 = vpop.permute.xlu0 %1515  ;;  %v1520_v53 = vpop.permute.xlu1 %1519 }
 0x4b6   : > { %v1530_v56 = vmul.f32 0.0, %v1516_v14  ;;  %v1531_v19 = vmul.f32 %v8137_v47, %v1516_v14  ;;  %v1533_v1 = vmul.f32 0.0, %v1520_v53  ;;  %v1532_v63 = vmul.f32 %v8079_v13, %v1516_v14  ;;  %v8153_v14 = vld [vmem:[%s7565_s25 + $0x20] sm:$0xff] }
 0x4b7   : > { %v1534_v5 = vmul.f32 %v8144_v0, %v1520_v53  ;;  %v1535_v45 = vmul.f32 %v8087_v35, %v1520_v53 }
 0x4b8   : > { %1556 = vrot.lane.b32.xlu0 %v1531_v19, %s7364_s8  ;;  %1554 = vrot.lane.b32.xlu1 %v1530_v56, %s7364_s8 }
 0x4b9   : > { %v1524_v11 = vpop.permute.xlu1 %1523  ;;  %v1528_v9 = vpop.permute.xlu0 %1527 }
 0x4ba   : > { %v1536_v56 = vmul.f32 0.0, %v1524_v11  ;;  %v1537_v19 = vmul.f32 %v8153_v14, %v1524_v11  ;;  %v1539_v53 = vmul.f32 0.0, %v1528_v9  ;;  %v1541_v44 = vmul.f32 %v8169_v4, %v1528_v9 }
 0x4bc   : > { %1558 = vrot.lane.b32.xlu1 %v1532_v63, %s7364_s8  ;;  %1560 = vrot.lane.b32.xlu0 %v1533_v1, %s7364_s8  ;;  %v8159_v63 = vld [vmem:[%s7565_s25 + $0x28] sm:$0xff] }
 0x4bd   : > { %v1538_v1 = vmul.f32 %v8159_v63, %v1524_v11  ;;  %v7366_v11 = vmov 12  }
 0x4c0   : > { %1562 = vrot.lane.b32.xlu1 %v1534_v5, %s7364_s8  ;;  %1564 = vrot.lane.b32.xlu0 %v1535_v45, %s7364_s8  ;;  %v8165_v45 = vld [vmem:[%s7565_s25 + $0x30] sm:$0xff] }
 0x4c1   : > { %v1540_v5 = vmul.f32 %v8165_v45, %v1528_v9 }
 0x4c4   : > { %1568 = vrot.lane.b32.xlu0 %v1537_v19, %s7364_s8  ;;  %1566 = vrot.lane.b32.xlu1 %v1536_v56, %s7364_s8 }
 0x4c8   : > { %1572 = vrot.lane.b32.xlu0 %v1539_v53, %s7364_s8  ;;  %1570 = vrot.lane.b32.xlu1 %v1538_v1, %s7364_s8 }
 0x4cc   : > { %1576 = vrot.lane.b32.xlu0 %v1541_v44, %s7364_s8  ;;  %1574 = vrot.lane.b32.xlu1 %v1540_v5, %s7364_s8 }
 0x4d0   : > { %1613 = vrot.lane.b32.xlu0 %v7642_v26, %s7365_s10  ;;  %1611 = vrot.lane.b32.xlu1 %v7631_v24, %s7365_s10  ;;  %s7382_s10 = smov 114  }
 0x4d4   : > { %1637 = vperm.xlu0 %7149, %v8036_v2   ;;  %1633 = vperm.xlu1 %7148, %v8042_v55  }
 0x4d8   : > { %1641 = vperm.xlu1 %7148, %v8109_v57   ;;  %7150 = vset.pattern.permute.xlu0 %v7366_v11 }
 0x4dc   : > { %1645 = vperm.xlu1 %7148, %v8049_v60  }
 0x4e0   : > { %7151 = vset.pattern.permute.xlu1 %v7366_v11 }
 0x52a   : > { %v8180_v9 = vpop.permute.xlu0 %1556  ;;  %v8182_v44 = vpop.permute.xlu1 %1554 }
 0x52b   : > { %12368 = vst [vmem:[#allocation98_spill] sm:$0xff] %v8180_v9  ;;  %12369 = vst [vmem:[#allocation99_spill] sm:$0xff] %v8182_v44 }
 0x52e   : > { %v8184_v56 = vpop.permute.xlu0 %1560  ;;  %v8186_v19 = vpop.permute.xlu1 %1558 }
 0x52f   : > { %12370 = vst [vmem:[#allocation100_spill] sm:$0xff] %v8184_v56  ;;  %12371 = vst [vmem:[#allocation101_spill] sm:$0xff] %v8186_v19 }
 0x532   : > { %v8188_v53 = vpop.permute.xlu0 %1564  ;;  %v8190_v1 = vpop.permute.xlu1 %1562 }
 0x533   : > { %12372 = vst [vmem:[#allocation102_spill] sm:$0xff] %v8188_v53  ;;  %12373 = vst [vmem:[#allocation103_spill] sm:$0xff] %v8190_v1 }
 0x536   : > { %v8192_v5 = vpop.permute.xlu0 %1568  ;;  %v8194_v51 = vpop.permute.xlu1 %1566 }
 0x537   : > { %12374 = vst [vmem:[#allocation104_spill] sm:$0xff] %v8192_v5  ;;  %12375 = vst [vmem:[#allocation105_spill] sm:$0xff] %v8194_v51 }
 0x53a   : > { %v8196_v59 = vpop.permute.xlu0 %1572  ;;  %v8198_v7 = vpop.permute.xlu1 %1570 }
 0x53b   : > { %12376 = vst [vmem:[#allocation106_spill] sm:$0xff] %v8196_v59  ;;  %12377 = vst [vmem:[#allocation107_spill] sm:$0xff] %v8198_v7 }
 0x53e   : > { %v8200_v11 = vpop.permute.xlu0 %1576  ;;  %v8202_v9 = vpop.permute.xlu1 %1574 }
 0x53f   : > { %12378 = vst [vmem:[#allocation108_spill] sm:$0xff] %v8200_v11  ;;  %12379 = vst [vmem:[#allocation109_spill] sm:$0xff] %v8202_v9 }
 0x542   : > { %v1614_v44 = vpop.permute.xlu0 %1613  ;;  %v1612_v56 = vpop.permute.xlu1 %1611 }
 0x543   : > { %v1616_v19 = vsel %vm1615_vm8, %v1612_v56, %v1614_v44  ;;  %v1620_v54 = vmul.f32 0.0, %v1612_v56  ;;  %v1622_v51 = vmul.f32 %v8079_v13, %v1614_v44  ;;  %v1625_v9 = vmul.f32 %v8087_v35, %v1614_v44 }
 0x544   : > { %v1621_v53 = vmul.f32 %v8137_v47, %v1616_v19  ;;  %v1624_v59 = vmul.f32 %v8144_v0, %v1616_v19  ;;  %vm514_vm8 = vcmask 1039360  }
 0x553   : > { %v1634_v1 = vpop.permute.xlu1 %1633  ;;  %v1638_v6 = vpop.permute.xlu0 %1637 }
 0x554   : > { %v1648_v36 = vmul.f32 %v1634_v1, %v1620_v54  ;;  %v1649_v5 = vmul.f32 %v1634_v1, %v1621_v53  ;;  %v1650_v7 = vmul.f32 %v1634_v1, %v1622_v51  ;;  %v1651_v11 = vmul.f32 %v1638_v6, %v1620_v54 }
 0x555   : > { %v1652_v56 = vmul.f32 %v1638_v6, %v1624_v59  ;;  %v1653_v3 = vmul.f32 %v1638_v6, %v1625_v9  ;;  %v1627_v53 = vmul.f32 %v8153_v14, %v1616_v19  ;;  %v1631_v59 = vmul.f32 %v8169_v4, %v1614_v44 }
 0x556   : > { %1672 = vrot.lane.b32.xlu0 %v1648_v36, %s7367_s16  ;;  %1674 = vrot.lane.b32.xlu1 %v1649_v5, %s7367_s16  ;;  %v1628_v36 = vmul.f32 %v8159_v63, %v1614_v44 }
 0x557   : > { %v1642_v62 = vpop.permute.xlu1 %1641 }
 0x558   : > { %v1654_v61 = vmul.f32 %v1642_v62, %v1620_v54  ;;  %v1655_v52 = vmul.f32 %v1642_v62, %v1627_v53  ;;  %v1656_v51 = vmul.f32 %v1642_v62, %v1628_v36 }
 0x55a   : > { %1676 = vrot.lane.b32.xlu0 %v1650_v7, %s7367_s16  ;;  %1678 = vrot.lane.b32.xlu1 %v1651_v11, %s7367_s16  ;;  %v1630_v7 = vmul.f32 %v8165_v45, %v1616_v19 }
 0x55b   : > { %v1646_v5 = vpop.permute.xlu1 %1645 }
 0x55c   : > { %v1657_v1 = vmul.f32 %v1646_v5, %v1620_v54  ;;  %v1658_v6 = vmul.f32 %v1646_v5, %v1630_v7  ;;  %v1659_v9 = vmul.f32 %v1646_v5, %v1631_v59 }
 0x55e   : > { %1680 = vrot.lane.b32.xlu0 %v1652_v56, %s7367_s16  ;;  %1682 = vrot.lane.b32.xlu1 %v1653_v3, %s7367_s16 }
 0x562   : > { %1684 = vrot.lane.b32.xlu0 %v1654_v61, %s7367_s16  ;;  %1686 = vrot.lane.b32.xlu1 %v1655_v52, %s7367_s16  ;;  %v7369_v61 = vmov 13  }
 0x566   : > { %1688 = vrot.lane.b32.xlu0 %v1656_v51, %s7367_s16  ;;  %1690 = vrot.lane.b32.xlu1 %v1657_v1, %s7367_s16 }
 0x56a   : > { %1692 = vrot.lane.b32.xlu0 %v1658_v6, %s7367_s16  ;;  %1694 = vrot.lane.b32.xlu1 %v1659_v9, %s7367_s16  ;;  %s7404_s16 = smov 64  }
 0x56e   : > { %1729 = vrot.lane.b32.xlu0 %v7764_v17, %s7368_s20  ;;  %1731 = vrot.lane.b32.xlu1 %v7761_v12, %s7368_s20  ;;  %s7405_s20 = smov 14  }
 0x572   : > { %1751 = vperm.xlu0 %7150, %v8042_v55   ;;  %1755 = vperm.xlu1 %7151, %v8036_v2  }
 0x576   : > { %1763 = vperm.xlu0 %7150, %v8049_v60   ;;  %1759 = vperm.xlu1 %7151, %v8109_v57  }
 0x57a   : > { %7153 = vset.pattern.permute.xlu0 %v7369_v61  ;;  %7152 = vset.pattern.permute.xlu1 %v7369_v61 }
 0x5c8   : > { %v8218_v52 = vpop.permute.xlu0 %1672  ;;  %v8220_v62 = vpop.permute.xlu1 %1674 }
 0x5c9   : > { %12380 = vst [vmem:[#allocation110_spill] sm:$0xff] %v8218_v52  ;;  %12381 = vst [vmem:[#allocation111_spill] sm:$0xff] %v8220_v62 }
 0x5cc   : > { %v8222_v3 = vpop.permute.xlu0 %1676  ;;  %v8224_v54 = vpop.permute.xlu1 %1678 }
 0x5cd   : > { %12382 = vst [vmem:[#allocation112_spill] sm:$0xff] %v8222_v3  ;;  %12383 = vst [vmem:[#allocation113_spill] sm:$0xff] %v8224_v54 }
 0x5d0   : > { %v8226_v44 = vpop.permute.xlu0 %1680  ;;  %v8228_v19 = vpop.permute.xlu1 %1682 }
 0x5d1   : > { %12384 = vst [vmem:[#allocation114_spill] sm:$0xff] %v8226_v44  ;;  %12385 = vst [vmem:[#allocation115_spill] sm:$0xff] %v8228_v19 }
 0x5d4   : > { %v8230_v11 = vpop.permute.xlu0 %1684  ;;  %v8232_v56 = vpop.permute.xlu1 %1686 }
 0x5d5   : > { %12386 = vst [vmem:[#allocation116_spill] sm:$0xff] %v8230_v11  ;;  %12387 = vst [vmem:[#allocation117_spill] sm:$0xff] %v8232_v56 }
 0x5d8   : > { %v8234_v53 = vpop.permute.xlu0 %1688  ;;  %v8236_v36 = vpop.permute.xlu1 %1690 }
 0x5d9   : > { %12388 = vst [vmem:[#allocation118_spill] sm:$0xff] %v8234_v53  ;;  %12389 = vst [vmem:[#allocation119_spill] sm:$0xff] %v8236_v36 }
 0x5dc   : > { %v8238_v5 = vpop.permute.xlu0 %1692  ;;  %v8240_v51 = vpop.permute.xlu1 %1694 }
 0x5dd   : > { %12390 = vst [vmem:[#allocation120_spill] sm:$0xff] %v8238_v5  ;;  %12391 = vst [vmem:[#allocation121_spill] sm:$0xff] %v8240_v51 }
 0x5e0   : > { %v1730_v1 = vpop.permute.xlu0 %1729  ;;  %v1732_v7 = vpop.permute.xlu1 %1731 }
 0x5e1   : > { %v1734_v59 = vsel %vm1733_vm9, %v1730_v1, %v1732_v7  ;;  %v1738_v6 = vmul.f32 0.0, %v1730_v1  ;;  %v1740_v56 = vmul.f32 %v8079_v13, %v1732_v7  ;;  %v1743_v5 = vmul.f32 %v8087_v35, %v1732_v7 }
 0x5e2   : > { %v1739_v9 = vmul.f32 %v8137_v47, %v1734_v59  ;;  %v1742_v51 = vmul.f32 %v8144_v0, %v1734_v59  ;;  %v1745_v62 = vmul.f32 %v8153_v14, %v1734_v59  ;;  %vm3205_vm9 = vcmask 7168  }
 0x5f1   : > { %v1752_v61 = vpop.permute.xlu0 %1751  ;;  %v1756_v19 = vpop.permute.xlu1 %1755 }
 0x5f2   : > { %v1766_v52 = vmul.f32 %v1752_v61, %v1738_v6  ;;  %v1767_v11 = vmul.f32 %v1752_v61, %v1739_v9  ;;  %v1768_v53 = vmul.f32 %v1752_v61, %v1740_v56  ;;  %v1769_v36 = vmul.f32 %v1756_v19, %v1738_v6 }
 0x5f3   : > { %v1770_v1 = vmul.f32 %v1756_v19, %v1742_v51  ;;  %v1771_v54 = vmul.f32 %v1756_v19, %v1743_v5  ;;  %v1748_v61 = vmul.f32 %v8165_v45, %v1734_v59 }
 0x5f4   : > { %1790 = vrot.lane.b32.xlu1 %v1766_v52, %s7370_s23  ;;  %1792 = vrot.lane.b32.xlu0 %v1767_v11, %s7370_s23  ;;  %v1746_v52 = vmul.f32 %v8159_v63, %v1732_v7 }
 0x5f5   : > { %v1760_v44 = vpop.permute.xlu1 %1759  ;;  %v1764_v58 = vpop.permute.xlu0 %1763 }
 0x5f6   : > { %v1772_v9 = vmul.f32 %v1760_v44, %v1738_v6  ;;  %v1773_v3 = vmul.f32 %v1760_v44, %v1745_v62  ;;  %v1775_v11 = vmul.f32 %v1764_v58, %v1738_v6  ;;  %v1774_v56 = vmul.f32 %v1760_v44, %v1746_v52 }
 0x5f7   : > { %v1776_v19 = vmul.f32 %v1764_v58, %v1748_v61  ;;  %v7372_v62 = vmov 14  }
 0x5f8   : > { %1794 = vrot.lane.b32.xlu1 %v1768_v53, %s7370_s23  ;;  %1796 = vrot.lane.b32.xlu0 %v1769_v36, %s7370_s23  ;;  %v1749_v53 = vmul.f32 %v8169_v4, %v1732_v7 }
 0x5fa   : > { %v1777_v36 = vmul.f32 %v1764_v58, %v1749_v53 }
 0x5fc   : > { %1798 = vrot.lane.b32.xlu1 %v1770_v1, %s7370_s23  ;;  %1800 = vrot.lane.b32.xlu0 %v1771_v54, %s7370_s23 }
 0x600   : > { %1804 = vrot.lane.b32.xlu0 %v1773_v3, %s7370_s23  ;;  %1802 = vrot.lane.b32.xlu1 %v1772_v9, %s7370_s23 }
 0x604   : > { %1808 = vrot.lane.b32.xlu0 %v1775_v11, %s7370_s23  ;;  %1806 = vrot.lane.b32.xlu1 %v1774_v56, %s7370_s23 }
 0x608   : > { %1812 = vrot.lane.b32.xlu0 %v1777_v36, %s7370_s23  ;;  %1810 = vrot.lane.b32.xlu1 %v1776_v19, %s7370_s23  ;;  %s7384_s23 = smov 91  }
 0x60c   : > { %1849 = vrot.lane.b32.xlu0 %v7895_v50, %s7371_s22  ;;  %1847 = vrot.lane.b32.xlu1 %v7892_v49, %s7371_s22  ;;  %s7385_s22 = smov 115  }
 0x610   : > { %1873 = vperm.xlu0 %7153, %v8036_v2   ;;  %1869 = vperm.xlu1 %7152, %v8042_v55  }
 0x614   : > { %1877 = vperm.xlu1 %7152, %v8109_v57   ;;  %7154 = vset.pattern.permute.xlu0 %v7372_v62 }
 0x618   : > { %1881 = vperm.xlu1 %7152, %v8049_v60  }
 0x61c   : > { %7155 = vset.pattern.permute.xlu1 %v7372_v62 }
 0x666   : > { %v8256_v3 = vpop.permute.xlu0 %1792  ;;  %v8258_v58 = vpop.permute.xlu1 %1790 }
 0x667   : > { %12392 = vst [vmem:[#allocation122_spill] sm:$0xff] %v8256_v3  ;;  %12393 = vst [vmem:[#allocation123_spill] sm:$0xff] %v8258_v58 }
 0x66a   : > { %v8260_v54 = vpop.permute.xlu0 %1796  ;;  %v8262_v44 = vpop.permute.xlu1 %1794 }
 0x66b   : > { %12394 = vst [vmem:[#allocation124_spill] sm:$0xff] %v8260_v54  ;;  %12395 = vst [vmem:[#allocation125_spill] sm:$0xff] %v8262_v44 }
 0x66e   : > { %v8264_v5 = vpop.permute.xlu0 %1800  ;;  %v8266_v51 = vpop.permute.xlu1 %1798 }
 0x66f   : > { %12396 = vst [vmem:[#allocation126_spill] sm:$0xff] %v8264_v5  ;;  %12397 = vst [vmem:[#allocation127_spill] sm:$0xff] %v8266_v51 }
 0x672   : > { %v8268_v7 = vpop.permute.xlu0 %1804  ;;  %v8270_v59 = vpop.permute.xlu1 %1802 }
 0x673   : > { %12398 = vst [vmem:[#allocation128_spill] sm:$0xff] %v8268_v7  ;;  %12399 = vst [vmem:[#allocation129_spill] sm:$0xff] %v8270_v59 }
 0x676   : > { %v8272_v6 = vpop.permute.xlu0 %1808  ;;  %v8274_v1 = vpop.permute.xlu1 %1806 }
 0x677   : > { %12400 = vst [vmem:[#allocation130_spill] sm:$0xff] %v8272_v6  ;;  %12401 = vst [vmem:[#allocation131_spill] sm:$0xff] %v8274_v1 }
 0x67a   : > { %v8276_v9 = vpop.permute.xlu0 %1812  ;;  %v8278_v52 = vpop.permute.xlu1 %1810 }
 0x67b   : > { %12402 = vst [vmem:[#allocation132_spill] sm:$0xff] %v8276_v9  ;;  %12403 = vst [vmem:[#allocation133_spill] sm:$0xff] %v8278_v52 }
 0x67e   : > { %v1850_v11 = vpop.permute.xlu0 %1849  ;;  %v1848_v56 = vpop.permute.xlu1 %1847 }
 0x67f   : > { %v1852_v61 = vsel %vm1851_vm10, %v1848_v56, %v1850_v11  ;;  %v1856_v53 = vmul.f32 0.0, %v1848_v56  ;;  %v1858_v59 = vmul.f32 %v8079_v13, %v1850_v11  ;;  %v1861_v52 = vmul.f32 %v8087_v35, %v1850_v11 }
 0x680   : > { %v1857_v19 = vmul.f32 %v8137_v47, %v1852_v61  ;;  %v1860_v6 = vmul.f32 %v8144_v0, %v1852_v61  ;;  %vm3323_vm10 = vcmask 15360  }
 0x68f   : > { %v1870_v36 = vpop.permute.xlu1 %1869  ;;  %v1874_v7 = vpop.permute.xlu0 %1873 }
 0x690   : > { %v1884_v62 = vmul.f32 %v1870_v36, %v1856_v53  ;;  %v1885_v58 = vmul.f32 %v1870_v36, %v1857_v19  ;;  %v1886_v1 = vmul.f32 %v1870_v36, %v1858_v59  ;;  %v1887_v9 = vmul.f32 %v1874_v7, %v1856_v53 }
 0x691   : > { %v1888_v56 = vmul.f32 %v1874_v7, %v1860_v6  ;;  %v1889_v54 = vmul.f32 %v1874_v7, %v1861_v52  ;;  %v1863_v19 = vmul.f32 %v8153_v14, %v1852_v61  ;;  %v1867_v6 = vmul.f32 %v8169_v4, %v1850_v11 }
 0x692   : > { %1908 = vrot.lane.b32.xlu0 %v1884_v62, %s7373_s24  ;;  %1910 = vrot.lane.b32.xlu1 %v1885_v58, %s7373_s24  ;;  %v1864_v62 = vmul.f32 %v8159_v63, %v1850_v11 }
 0x693   : > { %v1878_v5 = vpop.permute.xlu1 %1877 }
 0x694   : > { %v1890_v51 = vmul.f32 %v1878_v5, %v1856_v53  ;;  %v1891_v3 = vmul.f32 %v1878_v5, %v1863_v19  ;;  %v1892_v59 = vmul.f32 %v1878_v5, %v1864_v62 }
 0x696   : > { %1912 = vrot.lane.b32.xlu0 %v1886_v1, %s7373_s24  ;;  %1914 = vrot.lane.b32.xlu1 %v1887_v9, %s7373_s24  ;;  %v1866_v1 = vmul.f32 %v8165_v45, %v1852_v61 }
 0x697   : > { %v1882_v58 = vpop.permute.xlu1 %1881 }
 0x698   : > { %v1893_v36 = vmul.f32 %v1882_v58, %v1856_v53  ;;  %v1894_v7 = vmul.f32 %v1882_v58, %v1866_v1  ;;  %v1895_v9 = vmul.f32 %v1882_v58, %v1867_v6 }
 0x69a   : > { %1916 = vrot.lane.b32.xlu0 %v1888_v56, %s7373_s24  ;;  %1918 = vrot.lane.b32.xlu1 %v1889_v54, %s7373_s24 }
 0x69e   : > { %1920 = vrot.lane.b32.xlu0 %v1890_v51, %s7373_s24  ;;  %1922 = vrot.lane.b32.xlu1 %v1891_v3, %s7373_s24  ;;  %v7374_v3 = vmov 15  }
 0x6a2   : > { %1924 = vrot.lane.b32.xlu0 %v1892_v59, %s7373_s24  ;;  %1926 = vrot.lane.b32.xlu1 %v1893_v36, %s7373_s24 }
 0x6a6   : > { %1928 = vrot.lane.b32.xlu0 %v1894_v7, %s7373_s24  ;;  %1930 = vrot.lane.b32.xlu1 %v1895_v9, %s7373_s24  ;;  %s7387_s24 = smov 90  }
 0x6aa   : > { %1965 = vrot.lane.b32.xlu0 %v7554_v8, %s7364_s8  ;;  %1967 = vrot.lane.b32.xlu1 %v7570_v10, %s7364_s8  ;;  %s7381_s8 = smov 92  }
 0x6ae   : > { %1986 = vperm.xlu0 %7154, %v8042_v55   ;;  %1990 = vperm.xlu1 %7155, %v8036_v2  }
 0x6b2   : > { %1998 = vperm.xlu0 %7154, %v8049_v60   ;;  %1994 = vperm.xlu1 %7155, %v8109_v57  }
 0x6b6   : > { %7157 = vset.pattern.permute.xlu0 %v7374_v3  ;;  %7156 = vset.pattern.permute.xlu1 %v7374_v3 }
 0x704   : > { %v8296_v54 = vpop.permute.xlu0 %1908  ;;  %v8298_v5 = vpop.permute.xlu1 %1910 }
 0x705   : > { %12404 = vst [vmem:[#allocation134_spill] sm:$0xff] %v8296_v54  ;;  %12405 = vst [vmem:[#allocation135_spill] sm:$0xff] %v8298_v5 }
 0x708   : > { %v8300_v51 = vpop.permute.xlu0 %1912  ;;  %v8302_v52 = vpop.permute.xlu1 %1914 }
 0x709   : > { %12406 = vst [vmem:[#allocation136_spill] sm:$0xff] %v8300_v51  ;;  %12407 = vst [vmem:[#allocation137_spill] sm:$0xff] %v8302_v52 }
 0x70c   : > { %v8304_v11 = vpop.permute.xlu0 %1916  ;;  %v8306_v61 = vpop.permute.xlu1 %1918 }
 0x70d   : > { %12408 = vst [vmem:[#allocation138_spill] sm:$0xff] %v8304_v11  ;;  %12409 = vst [vmem:[#allocation139_spill] sm:$0xff] %v8306_v61 }
 0x710   : > { %v8308_v53 = vpop.permute.xlu0 %1920  ;;  %v8310_v56 = vpop.permute.xlu1 %1922 }
 0x711   : > { %12410 = vst [vmem:[#allocation140_spill] sm:$0xff] %v8308_v53  ;;  %12411 = vst [vmem:[#allocation141_spill] sm:$0xff] %v8310_v56 }
 0x714   : > { %v8312_v19 = vpop.permute.xlu0 %1924  ;;  %v8314_v62 = vpop.permute.xlu1 %1926 }
 0x715   : > { %12412 = vst [vmem:[#allocation142_spill] sm:$0xff] %v8312_v19  ;;  %12413 = vst [vmem:[#allocation143_spill] sm:$0xff] %v8314_v62 }
 0x718   : > { %v8316_v58 = vpop.permute.xlu0 %1928  ;;  %v8318_v59 = vpop.permute.xlu1 %1930 }
 0x719   : > { %12414 = vst [vmem:[#allocation144_spill] sm:$0xff] %v8316_v58  ;;  %12415 = vst [vmem:[#allocation145_spill] sm:$0xff] %v8318_v59 }
 0x71c   : > { %v1966_v36 = vpop.permute.xlu0 %1965  ;;  %v1968_v1 = vpop.permute.xlu1 %1967 }
 0x71d   : > { %v1969_v6 = vsel %vm12249_vm11, %v1966_v36, %v1968_v1  ;;  %v1973_v7 = vmul.f32 0.0, %v1966_v36  ;;  %v1975_v19 = vmul.f32 %v8079_v13, %v1968_v1  ;;  %v1978_v61 = vmul.f32 %v8087_v35, %v1968_v1 }
 0x71e   : > { %v1974_v9 = vmul.f32 %v8137_v47, %v1969_v6  ;;  %v1977_v59 = vmul.f32 %v8144_v0, %v1969_v6  ;;  %v1980_v5 = vmul.f32 %v8153_v14, %v1969_v6 }
 0x72d   : > { %v1987_v3 = vpop.permute.xlu0 %1986  ;;  %v1991_v56 = vpop.permute.xlu1 %1990 }
 0x72e   : > { %v2001_v54 = vmul.f32 %v1987_v3, %v1973_v7  ;;  %v2002_v53 = vmul.f32 %v1987_v3, %v1974_v9  ;;  %v2003_v62 = vmul.f32 %v1987_v3, %v1975_v19  ;;  %v2004_v58 = vmul.f32 %v1991_v56, %v1973_v7 }
 0x72f   : > { %v2005_v36 = vmul.f32 %v1991_v56, %v1977_v59  ;;  %v2006_v52 = vmul.f32 %v1991_v56, %v1978_v61  ;;  %v1983_v3 = vmul.f32 %v8165_v45, %v1969_v6 }
 0x730   : > { %2025 = vrot.lane.b32.xlu1 %v2001_v54, %s7375_s27  ;;  %2027 = vrot.lane.b32.xlu0 %v2002_v53, %s7375_s27  ;;  %v1981_v54 = vmul.f32 %v8159_v63, %v1968_v1 }
 0x731   : > { %v1995_v11 = vpop.permute.xlu1 %1994  ;;  %v1999_v44 = vpop.permute.xlu0 %1998 }
 0x732   : > { %v2007_v9 = vmul.f32 %v1995_v11, %v1973_v7  ;;  %v2008_v51 = vmul.f32 %v1995_v11, %v1980_v5  ;;  %v2010_v53 = vmul.f32 %v1999_v44, %v1973_v7  ;;  %v2009_v19 = vmul.f32 %v1995_v11, %v1981_v54 }
 0x733   : > { %v2011_v61 = vmul.f32 %v1999_v44, %v1983_v3  ;;  %v7376_v5 = vmov 16  }
 0x734   : > { %2029 = vrot.lane.b32.xlu1 %v2003_v62, %s7375_s27  ;;  %2031 = vrot.lane.b32.xlu0 %v2004_v58, %s7375_s27  ;;  %v1984_v62 = vmul.f32 %v8169_v4, %v1968_v1 }
 0x736   : > { %v2012_v56 = vmul.f32 %v1999_v44, %v1984_v62 }
 0x738   : > { %2033 = vrot.lane.b32.xlu1 %v2005_v36, %s7375_s27  ;;  %2035 = vrot.lane.b32.xlu0 %v2006_v52, %s7375_s27 }
 0x73c   : > { %2039 = vrot.lane.b32.xlu0 %v2008_v51, %s7375_s27  ;;  %2037 = vrot.lane.b32.xlu1 %v2007_v9, %s7375_s27 }
 0x740   : > { %2043 = vrot.lane.b32.xlu0 %v2010_v53, %s7375_s27  ;;  %2041 = vrot.lane.b32.xlu1 %v2009_v19, %s7375_s27 }
 0x744   : > { %2047 = vrot.lane.b32.xlu0 %v2012_v56, %s7375_s27  ;;  %2045 = vrot.lane.b32.xlu1 %v2011_v61, %s7375_s27  ;;  %s7421_s27 = smov 58  }
 0x748   : > { %2084 = vrot.lane.b32.xlu0 %v7592_v15, %s7362_s28  ;;  %2082 = vrot.lane.b32.xlu1 %v7596_v16, %s7362_s28 }
 0x74c   : > { %2107 = vperm.xlu0 %7157, %v8036_v2   ;;  %2103 = vperm.xlu1 %7156, %v8042_v55  }
 0x750   : > { %2111 = vperm.xlu1 %7156, %v8109_v57   ;;  %7158 = vset.pattern.permute.xlu0 %v7376_v5 }
 0x754   : > { %2115 = vperm.xlu1 %7156, %v8049_v60  }
 0x758   : > { %7159 = vset.pattern.permute.xlu1 %v7376_v5 }
 0x7a2   : > { %v8337_v44 = vpop.permute.xlu0 %2027  ;;  %v8339_v51 = vpop.permute.xlu1 %2025 }
 0x7a3   : > { %12416 = vst [vmem:[#allocation146_spill] sm:$0xff] %v8337_v44  ;;  %12417 = vst [vmem:[#allocation147_spill] sm:$0xff] %v8339_v51 }
 0x7a6   : > { %v8341_v52 = vpop.permute.xlu0 %2031  ;;  %v8343_v11 = vpop.permute.xlu1 %2029 }
 0x7a7   : > { %12418 = vst [vmem:[#allocation148_spill] sm:$0xff] %v8341_v52  ;;  %12419 = vst [vmem:[#allocation149_spill] sm:$0xff] %v8343_v11 }
 0x7aa   : > { %v8345_v58 = vpop.permute.xlu0 %2035  ;;  %v8347_v59 = vpop.permute.xlu1 %2033 }
 0x7ab   : > { %12420 = vst [vmem:[#allocation150_spill] sm:$0xff] %v8345_v58  ;;  %12421 = vst [vmem:[#allocation151_spill] sm:$0xff] %v8347_v59 }
 0x7ae   : > { %v8349_v1 = vpop.permute.xlu0 %2039  ;;  %v8351_v6 = vpop.permute.xlu1 %2037 }
 0x7af   : > { %12422 = vst [vmem:[#allocation152_spill] sm:$0xff] %v8349_v1  ;;  %12423 = vst [vmem:[#allocation153_spill] sm:$0xff] %v8351_v6 }
 0x7b2   : > { %v8353_v7 = vpop.permute.xlu0 %2043  ;;  %v8355_v36 = vpop.permute.xlu1 %2041 }
 0x7b3   : > { %12424 = vst [vmem:[#allocation154_spill] sm:$0xff] %v8353_v7  ;;  %12425 = vst [vmem:[#allocation155_spill] sm:$0xff] %v8355_v36 }
 0x7b6   : > { %v8357_v9 = vpop.permute.xlu0 %2047  ;;  %v8359_v54 = vpop.permute.xlu1 %2045 }
 0x7b7   : > { %12426 = vst [vmem:[#allocation156_spill] sm:$0xff] %v8357_v9  ;;  %12427 = vst [vmem:[#allocation157_spill] sm:$0xff] %v8359_v54 }
 0x7ba   : > { %v2085_v53 = vpop.permute.xlu0 %2084  ;;  %v2083_v19 = vpop.permute.xlu1 %2082 }
 0x7bb   : > { %v2086_v3 = vsel %vm12248_vm12, %v2083_v19, %v2085_v53  ;;  %v2090_v62 = vmul.f32 0.0, %v2083_v19  ;;  %v2092_v1 = vmul.f32 %v8079_v13, %v2085_v53  ;;  %v2095_v19 = vmul.f32 %v8087_v35, %v2085_v53 }
 0x7bc   : > { %v2091_v61 = vmul.f32 %v8137_v47, %v2086_v3  ;;  %v2094_v7 = vmul.f32 %v8144_v0, %v2086_v3  ;;  %v2097_v52 = vmul.f32 %v8153_v14, %v2086_v3 }
 0x7cb   : > { %v2104_v56 = vpop.permute.xlu1 %2103  ;;  %v2108_v6 = vpop.permute.xlu0 %2107 }
 0x7cc   : > { %v2118_v5 = vmul.f32 %v2104_v56, %v2090_v62  ;;  %v2119_v51 = vmul.f32 %v2104_v56, %v2091_v61  ;;  %v2120_v36 = vmul.f32 %v2104_v56, %v2092_v1  ;;  %v2121_v9 = vmul.f32 %v2108_v6, %v2090_v62 }
 0x7cd   : > { %v2122_v54 = vmul.f32 %v2108_v6, %v2094_v7  ;;  %v2123_v61 = vmul.f32 %v2108_v6, %v2095_v19  ;;  %v2098_v56 = vmul.f32 %v8159_v63, %v2085_v53  ;;  %v2100_v7 = vmul.f32 %v8165_v45, %v2086_v3 }
 0x7ce   : > { %2142 = vrot.lane.b32.xlu0 %v2118_v5, %s7360_s14  ;;  %2144 = vrot.lane.b32.xlu1 %v2119_v51, %s7360_s14  ;;  %v2101_v6 = vmul.f32 %v8169_v4, %v2085_v53 }
 0x7cf   : > { %v2112_v58 = vpop.permute.xlu1 %2111 }
 0x7d0   : > { %v2124_v51 = vmul.f32 %v2112_v58, %v2090_v62  ;;  %v2125_v1 = vmul.f32 %v2112_v58, %v2097_v52  ;;  %v7377_v52 = vmov 17  }
 0x7d2   : > { %2146 = vrot.lane.b32.xlu0 %v2120_v36, %s7360_s14  ;;  %2148 = vrot.lane.b32.xlu1 %v2121_v9, %s7360_s14  ;;  %v2126_v36 = vmul.f32 %v2112_v58, %v2098_v56 }
 0x7d3   : > { %v2116_v5 = vpop.permute.xlu1 %2115 }
 0x7d4   : > { %v2127_v9 = vmul.f32 %v2116_v5, %v2090_v62  ;;  %v2129_v19 = vmul.f32 %v2116_v5, %v2101_v6 }
 0x7d6   : > { %2150 = vrot.lane.b32.xlu0 %v2122_v54, %s7360_s14  ;;  %2152 = vrot.lane.b32.xlu1 %v2123_v61, %s7360_s14  ;;  %v2128_v54 = vmul.f32 %v2116_v5, %v2100_v7 }
 0x7da   : > { %2154 = vrot.lane.b32.xlu0 %v2124_v51, %s7360_s14  ;;  %2156 = vrot.lane.b32.xlu1 %v2125_v1, %s7360_s14 }
 0x7de   : > { %2158 = vrot.lane.b32.xlu0 %v2126_v36, %s7360_s14  ;;  %2160 = vrot.lane.b32.xlu1 %v2127_v9, %s7360_s14 }
 0x7e2   : > { %2162 = vrot.lane.b32.xlu0 %v2128_v54, %s7360_s14  ;;  %2164 = vrot.lane.b32.xlu1 %v2129_v19, %s7360_s14  ;;  %s7425_s14 = smov 30  }
 0x7e6   : > { %2198 = vrot.lane.b32.xlu0 %v7607_v18, %s7359_s13  ;;  %2200 = vrot.lane.b32.xlu1 %v7621_v21, %s7359_s13  ;;  %s7424_s13 = smov 48  }
 0x7ea   : > { %2219 = vperm.xlu0 %7158, %v8042_v55   ;;  %2223 = vperm.xlu1 %7159, %v8036_v2  }
 0x7ee   : > { %2231 = vperm.xlu0 %7158, %v8049_v60   ;;  %2227 = vperm.xlu1 %7159, %v8109_v57  }
 0x7f2   : > { %7160 = vset.pattern.permute.xlu1 %v7377_v52  ;;  %7161 = vset.pattern.permute.xlu0 %v7377_v52 }
 0x840   : > { %v8390_v58 = vpop.permute.xlu0 %2142  ;;  %v8392_v53 = vpop.permute.xlu1 %2144 }
 0x841   : > { %12428 = vst [vmem:[#allocation158_spill] sm:$0xff] %v8390_v58  ;;  %12429 = vst [vmem:[#allocation159_spill] sm:$0xff] %v8392_v53 }
 0x844   : > { %v8394_v3 = vpop.permute.xlu0 %2146  ;;  %v8396_v62 = vpop.permute.xlu1 %2148 }
 0x845   : > { %12430 = vst [vmem:[#allocation160_spill] sm:$0xff] %v8394_v3  ;;  %12431 = vst [vmem:[#allocation161_spill] sm:$0xff] %v8396_v62 }
 0x848   : > { %v8398_v61 = vpop.permute.xlu0 %2150  ;;  %v8400_v51 = vpop.permute.xlu1 %2152 }
 0x849   : > { %12432 = vst [vmem:[#allocation162_spill] sm:$0xff] %v8398_v61  ;;  %12433 = vst [vmem:[#allocation163_spill] sm:$0xff] %v8400_v51 }
 0x84c   : > { %v8402_v1 = vpop.permute.xlu0 %2154  ;;  %v8404_v56 = vpop.permute.xlu1 %2156 }
 0x84d   : > { %12434 = vst [vmem:[#allocation164_spill] sm:$0xff] %v8402_v1  ;;  %12435 = vst [vmem:[#allocation165_spill] sm:$0xff] %v8404_v56 }
 0x850   : > { %v8406_v5 = vpop.permute.xlu0 %2158  ;;  %v8408_v36 = vpop.permute.xlu1 %2160 }
 0x851   : > { %12436 = vst [vmem:[#allocation166_spill] sm:$0xff] %v8406_v5  ;;  %12437 = vst [vmem:[#allocation167_spill] sm:$0xff] %v8408_v36 }
 0x854   : > { %v8410_v9 = vpop.permute.xlu0 %2162  ;;  %v8412_v7 = vpop.permute.xlu1 %2164 }
 0x855   : > { %12438 = vst [vmem:[#allocation168_spill] sm:$0xff] %v8410_v9  ;;  %12439 = vst [vmem:[#allocation169_spill] sm:$0xff] %v8412_v7 }
 0x858   : > { %v2199_v6 = vpop.permute.xlu0 %2198  ;;  %v2201_v54 = vpop.permute.xlu1 %2200 }
 0x859   : > { %v2202_v19 = vsel %vm1363_vm13, %v2199_v6, %v2201_v54  ;;  %v2206_v52 = vmul.f32 0.0, %v2199_v6  ;;  %v2208_v5 = vmul.f32 %v8079_v13, %v2201_v54  ;;  %v2211_v61 = vmul.f32 %v8087_v35, %v2201_v54 }
 0x85a   : > { %v2207_v58 = vmul.f32 %v8137_v47, %v2202_v19  ;;  %v2210_v9 = vmul.f32 %v8144_v0, %v2202_v19  ;;  %v2213_v3 = vmul.f32 %v8153_v14, %v2202_v19 }
 0x869   : > { %v2220_v51 = vpop.permute.xlu0 %2219  ;;  %v2224_v56 = vpop.permute.xlu1 %2223 }
 0x86a   : > { %v2234_v1 = vmul.f32 %v2220_v51, %v2206_v52  ;;  %v2235_v62 = vmul.f32 %v2220_v51, %v2207_v58  ;;  %v2236_v36 = vmul.f32 %v2220_v51, %v2208_v5  ;;  %v2237_v7 = vmul.f32 %v2224_v56, %v2206_v52 }
 0x86b   : > { %v2238_v6 = vmul.f32 %v2224_v56, %v2210_v9  ;;  %v2239_v53 = vmul.f32 %v2224_v56, %v2211_v61  ;;  %v2214_v5 = vmul.f32 %v8159_v63, %v2201_v54  ;;  %v2216_v61 = vmul.f32 %v8165_v45, %v2202_v19 }
 0x86c   : > { %2258 = vrot.lane.b32.xlu1 %v2234_v1, %s7357_s11  ;;  %2260 = vrot.lane.b32.xlu0 %v2235_v62, %s7357_s11  ;;  %v2217_v56 = vmul.f32 %v8169_v4, %v2201_v54 }
 0x86d   : > { %v2228_v58 = vpop.permute.xlu1 %2227  ;;  %v2232_v1 = vpop.permute.xlu0 %2231 }
 0x86e   : > { %v2240_v62 = vmul.f32 %v2228_v58, %v2206_v52  ;;  %v2241_v51 = vmul.f32 %v2228_v58, %v2213_v3  ;;  %v2245_v9 = vmul.f32 %v2232_v1, %v2217_v56  ;;  %v7378_v3 = vmov 18  }
 0x870   : > { %2262 = vrot.lane.b32.xlu1 %v2236_v36, %s7357_s11  ;;  %2264 = vrot.lane.b32.xlu0 %v2237_v7, %s7357_s11  ;;  %v2243_v36 = vmul.f32 %v2232_v1, %v2206_v52  ;;  %v2242_v7 = vmul.f32 %v2228_v58, %v2214_v5 }
 0x874   : > { %2266 = vrot.lane.b32.xlu1 %v2238_v6, %s7357_s11  ;;  %2268 = vrot.lane.b32.xlu0 %v2239_v53, %s7357_s11  ;;  %v2244_v53 = vmul.f32 %v2232_v1, %v2216_v61 }
 0x878   : > { %2272 = vrot.lane.b32.xlu0 %v2241_v51, %s7357_s11  ;;  %2270 = vrot.lane.b32.xlu1 %v2240_v62, %s7357_s11 }
 0x87c   : > { %2276 = vrot.lane.b32.xlu0 %v2243_v36, %s7357_s11  ;;  %2274 = vrot.lane.b32.xlu1 %v2242_v7, %s7357_s11 }
 0x880   : > { %2280 = vrot.lane.b32.xlu0 %v2245_v9, %s7357_s11  ;;  %2278 = vrot.lane.b32.xlu1 %v2244_v53, %s7357_s11  ;;  %s7379_s11 = smov 113  }
 0x884   : > { %2315 = vperm.xlu1 %7160, %v8042_v55   ;;  %2319 = vperm.xlu0 %7161, %v8036_v2  }
 0x888   : > { %2323 = vperm.xlu1 %7160, %v8109_v57   ;;  %7162 = vset.pattern.permute.xlu0 %v7378_v3 }
 0x88c   : > { %2327 = vperm.xlu1 %7160, %v8049_v60  }
 0x890   : > { %7163 = vset.pattern.permute.xlu1 %v7378_v3 }
 0x8de   : > { %v8439_v54 = vpop.permute.xlu0 %2260  ;;  %v8441_v19 = vpop.permute.xlu1 %2258 }
 0x8df   : > { %12440 = vst [vmem:[#allocation170_spill] sm:$0xff] %v8439_v54  ;;  %12441 = vst [vmem:[#allocation171_spill] sm:$0xff] %v8441_v19 }
 0x8e2   : > { %v8443_v52 = vpop.permute.xlu0 %2264  ;;  %v8445_v6 = vpop.permute.xlu1 %2262 }
 0x8e3   : > { %12442 = vst [vmem:[#allocation172_spill] sm:$0xff] %v8443_v52  ;;  %12443 = vst [vmem:[#allocation173_spill] sm:$0xff] %v8445_v6 }
 0x8e6   : > { %v8447_v58 = vpop.permute.xlu0 %2268  ;;  %v8449_v55 = vpop.permute.xlu1 %2266 }
 0x8e7   : > { %12444 = vst [vmem:[#allocation174_spill] sm:$0xff] %v8447_v58  ;;  %12445 = vst [vmem:[#allocation175_spill] sm:$0xff] %v8449_v55 }
 0x8ea   : > { %v8451_v2 = vpop.permute.xlu0 %2272  ;;  %v8453_v62 = vpop.permute.xlu1 %2270 }
 0x8eb   : > { %12446 = vst [vmem:[#allocation176_spill] sm:$0xff] %v8451_v2  ;;  %12447 = vst [vmem:[#allocation177_spill] sm:$0xff] %v8453_v62 }
 0x8ee   : > { %v8455_v60 = vpop.permute.xlu0 %2276  ;;  %v8457_v51 = vpop.permute.xlu1 %2274 }
 0x8ef   : > { %12448 = vst [vmem:[#allocation178_spill] sm:$0xff] %v8455_v60  ;;  %12449 = vst [vmem:[#allocation179_spill] sm:$0xff] %v8457_v51 }
 0x8f2   : > { %v8459_v1 = vpop.permute.xlu0 %2280  ;;  %v8461_v5 = vpop.permute.xlu1 %2278 }
 0x8f3   : > { %12450 = vst [vmem:[#allocation180_spill] sm:$0xff] %v8459_v1  ;;  %12451 = vst [vmem:[#allocation181_spill] sm:$0xff] %v8461_v5  ;;  %v8530_v5 = vld [vmem:[%s7565_s25 + $0x8] sm:$0xff] }
 0x903   : > { %v2316_v36 = vpop.permute.xlu1 %2315  ;;  %v2320_v7 = vpop.permute.xlu0 %2319 }
 0x904   : > { %v2330_v61 = vmul.f32 0.0, %v2316_v36  ;;  %v2331_v56 = vmul.f32 %v8137_v47, %v2316_v36  ;;  %v2333_v53 = vmul.f32 0.0, %v2320_v7  ;;  %v2332_v9 = vmul.f32 %v8079_v13, %v2316_v36 }
 0x905   : > { %v2334_v3 = vmul.f32 %v8144_v0, %v2320_v7  ;;  %v2335_v19 = vmul.f32 %v8087_v35, %v2320_v7  ;;  %v8500_v7 = vld [vmem:[%s11901_s2 + $0x18] sm:$0xff] }
 0x906   : > { %2356 = vrot.lane.b32.xlu1 %v2331_v56, %s7354_s9  ;;  %2354 = vrot.lane.b32.xlu0 %v2330_v61, %s7354_s9 }
 0x907   : > { %v2324_v51 = vpop.permute.xlu1 %2323 }
 0x908   : > { %v2336_v62 = vmul.f32 0.0, %v2324_v51  ;;  %v2337_v56 = vmul.f32 %v8153_v14, %v2324_v51  ;;  %v2338_v13 = vmul.f32 %v8159_v63, %v2324_v51  ;;  %v8494_v51 = vld [vmem:[%s11901_s2 + $0x8] sm:$0xff] }
 0x90a   : > { %2360 = vrot.lane.b32.xlu1 %v2333_v53, %s7354_s9  ;;  %2358 = vrot.lane.b32.xlu0 %v2332_v9, %s7354_s9  ;;  %v7380_v53 = vmov 19  }
 0x90b   : > { %v2328_v61 = vpop.permute.xlu1 %2327 }
 0x90c   : > { %v2339_v35 = vmul.f32 0.0, %v2328_v61  ;;  %v2340_v36 = vmul.f32 %v8165_v45, %v2328_v61 }
 0x90e   : > { %2364 = vrot.lane.b32.xlu1 %v2335_v19, %s7354_s9  ;;  %2362 = vrot.lane.b32.xlu0 %v2334_v3, %s7354_s9  ;;  %v2341_v19 = vmul.f32 %v8169_v4, %v2328_v61 }
 0x912   : > { %2368 = vrot.lane.b32.xlu1 %v2337_v56, %s7354_s9  ;;  %2366 = vrot.lane.b32.xlu0 %v2336_v62, %s7354_s9  ;;  %v8488_v62 = vld [vmem:[%s11901_s2] sm:$0xff] }
 0x916   : > { %2370 = vrot.lane.b32.xlu0 %v2338_v13, %s7354_s9  ;;  %2372 = vrot.lane.b32.xlu1 %v2339_v35, %s7354_s9 }
 0x91a   : > { %2374 = vrot.lane.b32.xlu0 %v2340_v36, %s7354_s9  ;;  %2376 = vrot.lane.b32.xlu1 %v2341_v19, %s7354_s9  ;;  %s7401_s9 = smov 74  }
 0x91e   : > { %2410 = vrot.lane.b32.xlu0 %v7631_v24, %s7379_s11  ;;  %2412 = vrot.lane.b32.xlu1 %v7642_v26, %s7379_s11  ;;  %s7422_s11 = smov 29  }
 0x922   : > { %2432 = vperm.xlu0 %7162, %v8488_v62   ;;  %2436 = vperm.xlu1 %7163, %v8494_v51  }
 0x926   : > { %2444 = vperm.xlu0 %7162, %v8500_v7   ;;  %2440 = vperm.xlu1 %7163, %v8109_v57  }
 0x92a   : > { %7165 = vset.pattern.permute.xlu0 %v7380_v53  ;;  %7164 = vset.pattern.permute.xlu1 %v7380_v53 }
 0x978   : > { %v8504_v9 = vpop.permute.xlu0 %2354  ;;  %v8506_v3 = vpop.permute.xlu1 %2356 }
 0x979   : > { %12452 = vst [vmem:[#allocation182_spill] sm:$0xff] %v8504_v9  ;;  %12453 = vst [vmem:[#allocation183_spill] sm:$0xff] %v8506_v3 }
 0x97c   : > { %v8508_v56 = vpop.permute.xlu0 %2358  ;;  %v8510_v61 = vpop.permute.xlu1 %2360 }
 0x97d   : > { %12454 = vst [vmem:[#allocation184_spill] sm:$0xff] %v8508_v56  ;;  %12455 = vst [vmem:[#allocation185_spill] sm:$0xff] %v8510_v61 }
 0x980   : > { %v8512_v13 = vpop.permute.xlu0 %2362  ;;  %v8514_v35 = vpop.permute.xlu1 %2364 }
 0x981   : > { %12456 = vst [vmem:[#allocation186_spill] sm:$0xff] %v8512_v13  ;;  %12457 = vst [vmem:[#allocation187_spill] sm:$0xff] %v8514_v35 }
 0x984   : > { %v8516_v36 = vpop.permute.xlu0 %2366  ;;  %v8518_v19 = vpop.permute.xlu1 %2368 }
 0x985   : > { %12458 = vst [vmem:[#allocation188_spill] sm:$0xff] %v8516_v36  ;;  %12459 = vst [vmem:[#allocation189_spill] sm:$0xff] %v8518_v19 }
 0x988   : > { %v8520_v57 = vpop.permute.xlu0 %2370  ;;  %v8522_v53 = vpop.permute.xlu1 %2372 }
 0x989   : > { %12460 = vst [vmem:[#allocation190_spill] sm:$0xff] %v8520_v57  ;;  %12461 = vst [vmem:[#allocation191_spill] sm:$0xff] %v8522_v53 }
 0x98c   : > { %v8524_v9 = vpop.permute.xlu0 %2374  ;;  %v8526_v3 = vpop.permute.xlu1 %2376 }
 0x98d   : > { %12462 = vst [vmem:[#allocation192_spill] sm:$0xff] %v8524_v9  ;;  %12463 = vst [vmem:[#allocation193_spill] sm:$0xff] %v8526_v3 }
 0x990   : > { %v2411_v56 = vpop.permute.xlu0 %2410  ;;  %v2413_v2 = vpop.permute.xlu1 %2412 }
 0x991   : > { %v2415_v61 = vsel %vm2414_vm14, %v2411_v56, %v2413_v2  ;;  %v2419_v13 = vmul.f32 0.0, %v2411_v56  ;;  %v2421_v57 = vmul.f32 %v8530_v5, %v2413_v2  ;;  %v8537_v56 = vld [vmem:[%s7565_s25 + $0x18] sm:$0xff]  ;;  %vm3441_vm14 = vcmask 23552  }
 0x992   : > { %v2420_v35 = vmul.f32 %v8137_v47, %v2415_v61  ;;  %v2423_v9 = vmul.f32 %v8144_v0, %v2415_v61  ;;  %v2424_v47 = vmul.f32 %v8537_v56, %v2413_v2  ;;  %v2426_v55 = vmul.f32 %v8153_v14, %v2415_v61 }
 0x9a1   : > { %v2433_v36 = vpop.permute.xlu0 %2432  ;;  %v2437_v19 = vpop.permute.xlu1 %2436 }
 0x9a2   : > { %v2447_v1 = vmul.f32 %v2433_v36, %v2419_v13  ;;  %v2448_v60 = vmul.f32 %v2433_v36, %v2420_v35  ;;  %v2449_v3 = vmul.f32 %v2433_v36, %v2421_v57  ;;  %v2450_v53 = vmul.f32 %v2437_v19, %v2419_v13 }
 0x9a3   : > { %v2451_v35 = vmul.f32 %v2437_v19, %v2423_v9  ;;  %v2452_v58 = vmul.f32 %v2437_v19, %v2424_v47  ;;  %v2427_v36 = vmul.f32 %v8159_v63, %v2413_v2  ;;  %v2429_v9 = vmul.f32 %v8165_v45, %v2415_v61 }
 0x9a4   : > { %2471 = vrot.lane.b32.xlu1 %v2447_v1, %s7381_s8  ;;  %2473 = vrot.lane.b32.xlu0 %v2448_v60, %s7381_s8  ;;  %v2430_v19 = vmul.f32 %v8169_v4, %v2413_v2  ;;  %v8561_v4 = vld [vmem:[%s11901_s2 + $0x10] sm:$0xff]  ;;  %v7383_v63 = vmov 20  }
 0x9a5   : > { %v2441_v52 = vpop.permute.xlu1 %2440  ;;  %v2445_v0 = vpop.permute.xlu0 %2444 }
 0x9a6   : > { %v2453_v60 = vmul.f32 %v2441_v52, %v2419_v13  ;;  %v2454_v1 = vmul.f32 %v2441_v52, %v2426_v55  ;;  %v2455_v57 = vmul.f32 %v2441_v52, %v2427_v36  ;;  %v2457_v14 = vmul.f32 %v2445_v0, %v2429_v9 }
 0x9a8   : > { %2475 = vrot.lane.b32.xlu1 %v2449_v3, %s7381_s8  ;;  %2477 = vrot.lane.b32.xlu0 %v2450_v53, %s7381_s8  ;;  %v2456_v3 = vmul.f32 %v2445_v0, %v2419_v13 }
 0x9ac   : > { %2479 = vrot.lane.b32.xlu1 %v2451_v35, %s7381_s8  ;;  %2481 = vrot.lane.b32.xlu0 %v2452_v58, %s7381_s8  ;;  %v2458_v58 = vmul.f32 %v2445_v0, %v2430_v19  ;;  %v8590_v19 = vld [vmem:[%s7565_s25] sm:$0xff] }
 0x9b0   : > { %2485 = vrot.lane.b32.xlu0 %v2454_v1, %s7381_s8  ;;  %2483 = vrot.lane.b32.xlu1 %v2453_v60, %s7381_s8 }
 0x9b4   : > { %2489 = vrot.lane.b32.xlu0 %v2456_v3, %s7381_s8  ;;  %2487 = vrot.lane.b32.xlu1 %v2455_v57, %s7381_s8 }
 0x9b8   : > { %2493 = vrot.lane.b32.xlu0 %v2458_v58, %s7381_s8  ;;  %2491 = vrot.lane.b32.xlu1 %v2457_v14, %s7381_s8  ;;  %s11868_s8 = scalar_lea.vmem %s11905_s6, %s7542_s15 }
 0x9bc   : > { %2530 = vrot.lane.b32.xlu0 %v7761_v12, %s7382_s10  ;;  %2528 = vrot.lane.b32.xlu1 %v7764_v17, %s7382_s10 }
 0x9c0   : > { %2554 = vperm.xlu0 %7165, %v8494_v51   ;;  %2550 = vperm.xlu1 %7164, %v8488_v62  }
 0x9c4   : > { %2558 = vperm.xlu1 %7164, %v8561_v4   ;;  %7166 = vset.pattern.permute.xlu0 %v7383_v63 }
 0x9c8   : > { %2562 = vperm.xlu1 %7164, %v8500_v7  }
 0x9cc   : > { %7167 = vset.pattern.permute.xlu1 %v7383_v63 }
 0xa16   : > { %v8565_v45 = vpop.permute.xlu0 %2473  ;;  %v8567_v52 = vpop.permute.xlu1 %2471 }
 0xa17   : > { %12464 = vst [vmem:[#allocation194_spill] sm:$0xff] %v8565_v45  ;;  %12465 = vst [vmem:[#allocation195_spill] sm:$0xff] %v8567_v52 }
 0xa1a   : > { %v8569_v55 = vpop.permute.xlu0 %2477  ;;  %v8571_v2 = vpop.permute.xlu1 %2475 }
 0xa1b   : > { %12466 = vst [vmem:[#allocation196_spill] sm:$0xff] %v8569_v55  ;;  %12467 = vst [vmem:[#allocation197_spill] sm:$0xff] %v8571_v2 }
 0xa1e   : > { %v8573_v61 = vpop.permute.xlu0 %2481  ;;  %v8575_v13 = vpop.permute.xlu1 %2479 }
 0xa1f   : > { %12468 = vst [vmem:[#allocation198_spill] sm:$0xff] %v8573_v61  ;;  %12469 = vst [vmem:[#allocation199_spill] sm:$0xff] %v8575_v13 }
 0xa22   : > { %v8577_v53 = vpop.permute.xlu0 %2485  ;;  %v8579_v47 = vpop.permute.xlu1 %2483 }
 0xa23   : > { %12470 = vst [vmem:[#allocation200_spill] sm:$0xff] %v8577_v53  ;;  %12471 = vst [vmem:[#allocation201_spill] sm:$0xff] %v8579_v47 }
 0xa26   : > { %v8581_v35 = vpop.permute.xlu0 %2489  ;;  %v8583_v60 = vpop.permute.xlu1 %2487 }
 0xa27   : > { %12472 = vst [vmem:[#allocation202_spill] sm:$0xff] %v8581_v35  ;;  %12473 = vst [vmem:[#allocation203_spill] sm:$0xff] %v8583_v60 }
 0xa2a   : > { %v8585_v1 = vpop.permute.xlu0 %2493  ;;  %v8587_v0 = vpop.permute.xlu1 %2491 }
 0xa2b   : > { %12474 = vst [vmem:[#allocation204_spill] sm:$0xff] %v8585_v1  ;;  %12475 = vst [vmem:[#allocation205_spill] sm:$0xff] %v8587_v0 }
 0xa2e   : > { %v2531_v36 = vpop.permute.xlu0 %2530  ;;  %v2529_v3 = vpop.permute.xlu1 %2528 }
 0xa2f   : > { %v2533_v57 = vsel %vm2532_vm15, %v2529_v3, %v2531_v36  ;;  %v2537_v9 = vmul.f32 0.0, %v2529_v3  ;;  %v2539_v60 = vmul.f32 %v8530_v5, %v2531_v36  ;;  %v8597_v3 = vld [vmem:[%s7565_s25 + $0x10] sm:$0xff]  ;;  %vm3559_vm15 = vcmask 105472  }
 0xa30   : > { %v2538_v14 = vmul.f32 %v8590_v19, %v2533_v57  ;;  %v2541_v35 = vmul.f32 %v8597_v3, %v2533_v57 }
 0xa3f   : > { %v2551_v58 = vpop.permute.xlu1 %2550  ;;  %v2555_v47 = vpop.permute.xlu0 %2554 }
 0xa40   : > { %v2565_v63 = vmul.f32 %v2551_v58, %v2537_v9  ;;  %v2566_v52 = vmul.f32 %v2551_v58, %v2538_v14  ;;  %v2567_v53 = vmul.f32 %v2551_v58, %v2539_v60  ;;  %v2568_v1 = vmul.f32 %v2555_v47, %v2537_v9 }
 0xa41   : > { %v2542_v14 = vmul.f32 %v8537_v56, %v2531_v36  ;;  %v2569_v0 = vmul.f32 %v2555_v47, %v2541_v35 }
 0xa42   : > { %2589 = vrot.lane.b32.xlu0 %v2565_v63, %s7384_s23  ;;  %2591 = vrot.lane.b32.xlu1 %v2566_v52, %s7384_s23  ;;  %v8605_v52 = vld [vmem:[%s7565_s25 + $0x20] sm:$0xff] }
 0xa43   : > { %v2559_v61 = vpop.permute.xlu1 %2558  ;;  %v2570_v55 = vmul.f32 %v2555_v47, %v2542_v14  ;;  %v2544_v60 = vmul.f32 %v8605_v52, %v2533_v57 }
 0xa44   : > { %v2571_v58 = vmul.f32 %v2559_v61, %v2537_v9 }
 0xa45   : > { %v2572_v63 = vmul.f32 %v2559_v61, %v2544_v60 }
 0xa46   : > { %2593 = vrot.lane.b32.xlu0 %v2567_v53, %s7384_s23  ;;  %2595 = vrot.lane.b32.xlu1 %v2568_v1, %s7384_s23  ;;  %v8610_v53 = vld [vmem:[%s7565_s25 + $0x28] sm:$0xff] }
 0xa47   : > { %v2545_v13 = vmul.f32 %v8610_v53, %v2531_v36  ;;  %v2563_v1 = vpop.permute.xlu1 %2562 }
 0xa48   : > { %v2574_v35 = vmul.f32 %v2563_v1, %v2537_v9 }
 0xa49   : > { %v2573_v47 = vmul.f32 %v2559_v61, %v2545_v13  ;;  %v7386_v61 = vmov 21  }
 0xa4a   : > { %2597 = vrot.lane.b32.xlu0 %v2569_v0, %s7384_s23  ;;  %2599 = vrot.lane.b32.xlu1 %v2570_v55, %s7384_s23  ;;  %v8616_v0 = vld [vmem:[%s7565_s25 + $0x30] sm:$0xff]  ;;  %v8621_v55 = vld [vmem:[%s7565_s25 + $0x38] sm:$0xff] }
 0xa4b   : > { %v2547_v14 = vmul.f32 %v8616_v0, %v2533_v57  ;;  %v2548_v60 = vmul.f32 %v8621_v55, %v2531_v36 }
 0xa4d   : > { %v2575_v45 = vmul.f32 %v2563_v1, %v2547_v14  ;;  %v2576_v2 = vmul.f32 %v2563_v1, %v2548_v60 }
 0xa4e   : > { %2601 = vrot.lane.b32.xlu0 %v2571_v58, %s7384_s23  ;;  %2603 = vrot.lane.b32.xlu1 %v2572_v63, %s7384_s23 }
 0xa52   : > { %2605 = vrot.lane.b32.xlu0 %v2573_v47, %s7384_s23  ;;  %2607 = vrot.lane.b32.xlu1 %v2574_v35, %s7384_s23 }
 0xa56   : > { %2609 = vrot.lane.b32.xlu0 %v2575_v45, %s7384_s23  ;;  %2611 = vrot.lane.b32.xlu1 %v2576_v2, %s7384_s23  ;;  %s7407_s23 = smov 63  }
 0xa5a   : > { %2646 = vrot.lane.b32.xlu0 %v7892_v49, %s7385_s22  ;;  %2648 = vrot.lane.b32.xlu1 %v7895_v50, %s7385_s22  ;;  %s7408_s22 = smov 15  }
 0xa5e   : > { %2668 = vperm.xlu0 %7166, %v8488_v62   ;;  %2672 = vperm.xlu1 %7167, %v8494_v51  }
 0xa62   : > { %2680 = vperm.xlu0 %7166, %v8500_v7   ;;  %2676 = vperm.xlu1 %7167, %v8561_v4  }
 0xa66   : > { %7169 = vset.pattern.permute.xlu0 %v7386_v61  ;;  %7168 = vset.pattern.permute.xlu1 %v7386_v61 }
 0xab4   : > { %v8633_v13 = vpop.permute.xlu0 %2589  ;;  %v8635_v45 = vpop.permute.xlu1 %2591 }
 0xab5   : > { %12476 = vst [vmem:[#allocation206_spill] sm:$0xff] %v8633_v13  ;;  %12477 = vst [vmem:[#allocation207_spill] sm:$0xff] %v8635_v45 }
 0xab8   : > { %v8637_v2 = vpop.permute.xlu0 %2593  ;;  %v8639_v36 = vpop.permute.xlu1 %2595 }
 0xab9   : > { %12478 = vst [vmem:[#allocation208_spill] sm:$0xff] %v8637_v2  ;;  %12479 = vst [vmem:[#allocation209_spill] sm:$0xff] %v8639_v36 }
 0xabc   : > { %v8641_v57 = vpop.permute.xlu0 %2597  ;;  %v8643_v9 = vpop.permute.xlu1 %2599 }
 0xabd   : > { %12480 = vst [vmem:[#allocation210_spill] sm:$0xff] %v8641_v57  ;;  %12481 = vst [vmem:[#allocation211_spill] sm:$0xff] %v8643_v9 }
 0xac0   : > { %v8645_v58 = vpop.permute.xlu0 %2601  ;;  %v8647_v63 = vpop.permute.xlu1 %2603 }
 0xac1   : > { %12482 = vst [vmem:[#allocation212_spill] sm:$0xff] %v8645_v58  ;;  %12483 = vst [vmem:[#allocation213_spill] sm:$0xff] %v8647_v63 }
 0xac4   : > { %v8649_v1 = vpop.permute.xlu0 %2605  ;;  %v8651_v47 = vpop.permute.xlu1 %2607 }
 0xac5   : > { %12484 = vst [vmem:[#allocation214_spill] sm:$0xff] %v8649_v1  ;;  %12485 = vst [vmem:[#allocation215_spill] sm:$0xff] %v8651_v47 }
 0xac8   : > { %v8653_v35 = vpop.permute.xlu0 %2609  ;;  %v8655_v14 = vpop.permute.xlu1 %2611 }
 0xac9   : > { %12486 = vst [vmem:[#allocation216_spill] sm:$0xff] %v8653_v35  ;;  %12487 = vst [vmem:[#allocation217_spill] sm:$0xff] %v8655_v14 }
 0xacc   : > { %v2647_v60 = vpop.permute.xlu0 %2646  ;;  %v2649_v61 = vpop.permute.xlu1 %2648 }
 0xacd   : > { %v2651_v13 = vsel %vm2650_vm2, %v2647_v60, %v2649_v61  ;;  %v2655_v36 = vmul.f32 0.0, %v2647_v60  ;;  %v2657_v63 = vmul.f32 %v8530_v5, %v2649_v61  ;;  %v2660_v35 = vmul.f32 %v8537_v56, %v2649_v61 }
 0xace   : > { %v2656_v57 = vmul.f32 %v8590_v19, %v2651_v13  ;;  %v2659_v14 = vmul.f32 %v8597_v3, %v2651_v13  ;;  %v2662_v59 = vmul.f32 %v8605_v52, %v2651_v13  ;;  %vm3677_vm2 = vcmask 113664  }
 0xadd   : > { %v2669_v9 = vpop.permute.xlu0 %2668  ;;  %v2673_v2 = vpop.permute.xlu1 %2672 }
 0xade   : > { %v2683_v45 = vmul.f32 %v2669_v9, %v2655_v36  ;;  %v2684_v58 = vmul.f32 %v2669_v9, %v2656_v57  ;;  %v2685_v1 = vmul.f32 %v2669_v9, %v2657_v63  ;;  %v2686_v47 = vmul.f32 %v2673_v2, %v2655_v36 }
 0xadf   : > { %v2687_v60 = vmul.f32 %v2673_v2, %v2659_v14  ;;  %v2688_v54 = vmul.f32 %v2673_v2, %v2660_v35  ;;  %v2665_v63 = vmul.f32 %v8616_v0, %v2651_v13 }
 0xae0   : > { %2707 = vrot.lane.b32.xlu1 %v2683_v45, %s7387_s24  ;;  %2709 = vrot.lane.b32.xlu0 %v2684_v58, %s7387_s24  ;;  %v2663_v45 = vmul.f32 %v8610_v53, %v2649_v61 }
 0xae1   : > { %v2677_v6 = vpop.permute.xlu1 %2676  ;;  %v2681_v11 = vpop.permute.xlu0 %2680 }
 0xae2   : > { %v2689_v57 = vmul.f32 %v2677_v6, %v2655_v36  ;;  %v2690_v44 = vmul.f32 %v2677_v6, %v2662_v59  ;;  %v2692_v9 = vmul.f32 %v2681_v11, %v2655_v36  ;;  %v2691_v58 = vmul.f32 %v2677_v6, %v2663_v45 }
 0xae3   : > { %v2693_v2 = vmul.f32 %v2681_v11, %v2665_v63 }
 0xae4   : > { %2711 = vrot.lane.b32.xlu1 %v2685_v1, %s7387_s24  ;;  %2713 = vrot.lane.b32.xlu0 %v2686_v47, %s7387_s24  ;;  %v2666_v1 = vmul.f32 %v8621_v55, %v2649_v61 }
 0xae6   : > { %v2694_v47 = vmul.f32 %v2681_v11, %v2666_v1 }
 0xae8   : > { %2715 = vrot.lane.b32.xlu1 %v2687_v60, %s7387_s24  ;;  %2717 = vrot.lane.b32.xlu0 %v2688_v54, %s7387_s24 }
 0xaec   : > { %2721 = vrot.lane.b32.xlu0 %v2690_v44, %s7387_s24  ;;  %2719 = vrot.lane.b32.xlu1 %v2689_v57, %s7387_s24  ;;  %v7388_v44 = vmov 22  }
 0xaf0   : > { %2725 = vrot.lane.b32.xlu0 %v2692_v9, %s7387_s24  ;;  %2723 = vrot.lane.b32.xlu1 %v2691_v58, %s7387_s24 }
 0xaf4   : > { %2729 = vrot.lane.b32.xlu0 %v2694_v47, %s7387_s24  ;;  %2727 = vrot.lane.b32.xlu1 %v2693_v2, %s7387_s24  ;;  %s7410_s24 = smov 62  }
 0xaf8   : > { %2766 = vrot.lane.b32.xlu0 %v7570_v10, %s7346_s19  ;;  %2764 = vrot.lane.b32.xlu1 %v7554_v8, %s7346_s19  ;;  %s7389_s19 = smov 80  }
 0xafc   : > { %2789 = vperm.xlu0 %7169, %v8494_v51   ;;  %2785 = vperm.xlu1 %7168, %v8488_v62  }
 0xb00   : > { %2793 = vperm.xlu1 %7168, %v8561_v4   ;;  %7170 = vset.pattern.permute.xlu0 %v7388_v44 }
 0xb04   : > { %2797 = vperm.xlu1 %7168, %v8500_v7  }
 0xb08   : > { %7171 = vset.pattern.permute.xlu1 %v7388_v44 }
 0xb52   : > { %v8673_v11 = vpop.permute.xlu0 %2709  ;;  %v8675_v59 = vpop.permute.xlu1 %2707 }
 0xb53   : > { %12488 = vst [vmem:[#allocation218_spill] sm:$0xff] %v8673_v11  ;;  %12489 = vst [vmem:[#allocation219_spill] sm:$0xff] %v8675_v59 }
 0xb56   : > { %v8677_v54 = vpop.permute.xlu0 %2713  ;;  %v8679_v6 = vpop.permute.xlu1 %2711 }
 0xb57   : > { %12490 = vst [vmem:[#allocation220_spill] sm:$0xff] %v8677_v54  ;;  %12491 = vst [vmem:[#allocation221_spill] sm:$0xff] %v8679_v6 }
 0xb5a   : > { %v8681_v13 = vpop.permute.xlu0 %2717  ;;  %v8683_v36 = vpop.permute.xlu1 %2715 }
 0xb5b   : > { %12492 = vst [vmem:[#allocation222_spill] sm:$0xff] %v8681_v13  ;;  %12493 = vst [vmem:[#allocation223_spill] sm:$0xff] %v8683_v36 }
 0xb5e   : > { %v8685_v35 = vpop.permute.xlu0 %2721  ;;  %v8687_v14 = vpop.permute.xlu1 %2719 }
 0xb5f   : > { %12494 = vst [vmem:[#allocation224_spill] sm:$0xff] %v8685_v35  ;;  %12495 = vst [vmem:[#allocation225_spill] sm:$0xff] %v8687_v14 }
 0xb62   : > { %v8689_v61 = vpop.permute.xlu0 %2725  ;;  %v8691_v60 = vpop.permute.xlu1 %2723 }
 0xb63   : > { %12496 = vst [vmem:[#allocation226_spill] sm:$0xff] %v8689_v61  ;;  %12497 = vst [vmem:[#allocation227_spill] sm:$0xff] %v8691_v60 }
 0xb66   : > { %v8693_v57 = vpop.permute.xlu0 %2729  ;;  %v8695_v45 = vpop.permute.xlu1 %2727 }
 0xb67   : > { %12498 = vst [vmem:[#allocation228_spill] sm:$0xff] %v8693_v57  ;;  %12499 = vst [vmem:[#allocation229_spill] sm:$0xff] %v8695_v45 }
 0xb6a   : > { %v2767_v9 = vpop.permute.xlu0 %2766  ;;  %v2765_v58 = vpop.permute.xlu1 %2764 }
 0xb6b   : > { %v2768_v63 = vsel %vm12238_vm3, %v2765_v58, %v2767_v9  ;;  %v2772_v1 = vmul.f32 0.0, %v2765_v58  ;;  %v2774_v35 = vmul.f32 %v8530_v5, %v2767_v9  ;;  %v2777_v45 = vmul.f32 %v8537_v56, %v2767_v9 }
 0xb6c   : > { %v2773_v2 = vmul.f32 %v8590_v19, %v2768_v63  ;;  %v2776_v61 = vmul.f32 %v8597_v3, %v2768_v63 }
 0xb7b   : > { %v2786_v47 = vpop.permute.xlu1 %2785  ;;  %v2790_v14 = vpop.permute.xlu0 %2789 }
 0xb7c   : > { %v2800_v44 = vmul.f32 %v2786_v47, %v2772_v1  ;;  %v2801_v59 = vmul.f32 %v2786_v47, %v2773_v2  ;;  %v2802_v60 = vmul.f32 %v2786_v47, %v2774_v35  ;;  %v2803_v57 = vmul.f32 %v2790_v14, %v2772_v1 }
 0xb7d   : > { %v2804_v58 = vmul.f32 %v2790_v14, %v2776_v61  ;;  %v2805_v54 = vmul.f32 %v2790_v14, %v2777_v45  ;;  %v2779_v2 = vmul.f32 %v8605_v52, %v2768_v63  ;;  %v2783_v61 = vmul.f32 %v8621_v55, %v2767_v9 }
 0xb7e   : > { %2824 = vrot.lane.b32.xlu0 %v2800_v44, %s7389_s19  ;;  %2826 = vrot.lane.b32.xlu1 %v2801_v59, %s7389_s19  ;;  %v2780_v44 = vmul.f32 %v8610_v53, %v2767_v9 }
 0xb7f   : > { %v2794_v13 = vpop.permute.xlu1 %2793 }
 0xb80   : > { %v2806_v36 = vmul.f32 %v2794_v13, %v2772_v1  ;;  %v2807_v11 = vmul.f32 %v2794_v13, %v2779_v2  ;;  %v2808_v35 = vmul.f32 %v2794_v13, %v2780_v44 }
 0xb82   : > { %2828 = vrot.lane.b32.xlu0 %v2802_v60, %s7389_s19  ;;  %2830 = vrot.lane.b32.xlu1 %v2803_v57, %s7389_s19  ;;  %v2782_v60 = vmul.f32 %v8616_v0, %v2768_v63 }
 0xb83   : > { %v2798_v59 = vpop.permute.xlu1 %2797 }
 0xb84   : > { %v2809_v47 = vmul.f32 %v2798_v59, %v2772_v1  ;;  %v2810_v14 = vmul.f32 %v2798_v59, %v2782_v60  ;;  %v2811_v57 = vmul.f32 %v2798_v59, %v2783_v61 }
 0xb86   : > { %2832 = vrot.lane.b32.xlu0 %v2804_v58, %s7389_s19  ;;  %2834 = vrot.lane.b32.xlu1 %v2805_v54, %s7389_s19 }
 0xb8a   : > { %2836 = vrot.lane.b32.xlu0 %v2806_v36, %s7389_s19  ;;  %2838 = vrot.lane.b32.xlu1 %v2807_v11, %s7389_s19  ;;  %v7390_v11 = vmov 23  }
 0xb8e   : > { %2840 = vrot.lane.b32.xlu0 %v2808_v35, %s7389_s19  ;;  %2842 = vrot.lane.b32.xlu1 %v2809_v47, %s7389_s19 }
 0xb92   : > { %2844 = vrot.lane.b32.xlu0 %v2810_v14, %s7389_s19  ;;  %2846 = vrot.lane.b32.xlu1 %v2811_v57, %s7389_s19  ;;  %s7412_s19 = smov 61  }
 0xb96   : > { %2881 = vrot.lane.b32.xlu0 %v7596_v16, %s7345_s18  ;;  %2883 = vrot.lane.b32.xlu1 %v7592_v15, %s7345_s18  ;;  %s7399_s18 = smov 3  }
 0xb9a   : > { %2902 = vperm.xlu0 %7170, %v8488_v62   ;;  %2906 = vperm.xlu1 %7171, %v8494_v51  }
 0xb9e   : > { %2914 = vperm.xlu0 %7170, %v8500_v7   ;;  %2910 = vperm.xlu1 %7171, %v8561_v4  }
 0xba2   : > { %7173 = vset.pattern.permute.xlu0 %v7390_v11  ;;  %7172 = vset.pattern.permute.xlu1 %v7390_v11 }
 0xbf0   : > { %v8714_v54 = vpop.permute.xlu0 %2824  ;;  %v8716_v13 = vpop.permute.xlu1 %2826 }
 0xbf1   : > { %12500 = vst [vmem:[#allocation230_spill] sm:$0xff] %v8714_v54  ;;  %12501 = vst [vmem:[#allocation231_spill] sm:$0xff] %v8716_v13 }
 0xbf4   : > { %v8718_v36 = vpop.permute.xlu0 %2828  ;;  %v8720_v45 = vpop.permute.xlu1 %2830 }
 0xbf5   : > { %12502 = vst [vmem:[#allocation232_spill] sm:$0xff] %v8718_v36  ;;  %12503 = vst [vmem:[#allocation233_spill] sm:$0xff] %v8720_v45 }
 0xbf8   : > { %v8722_v9 = vpop.permute.xlu0 %2832  ;;  %v8724_v63 = vpop.permute.xlu1 %2834 }
 0xbf9   : > { %12504 = vst [vmem:[#allocation234_spill] sm:$0xff] %v8722_v9  ;;  %12505 = vst [vmem:[#allocation235_spill] sm:$0xff] %v8724_v63 }
 0xbfc   : > { %v8726_v1 = vpop.permute.xlu0 %2836  ;;  %v8728_v58 = vpop.permute.xlu1 %2838 }
 0xbfd   : > { %12506 = vst [vmem:[#allocation236_spill] sm:$0xff] %v8726_v1  ;;  %12507 = vst [vmem:[#allocation237_spill] sm:$0xff] %v8728_v58 }
 0xc00   : > { %v8730_v2 = vpop.permute.xlu0 %2840  ;;  %v8732_v44 = vpop.permute.xlu1 %2842 }
 0xc01   : > { %12508 = vst [vmem:[#allocation238_spill] sm:$0xff] %v8730_v2  ;;  %12509 = vst [vmem:[#allocation239_spill] sm:$0xff] %v8732_v44 }
 0xc04   : > { %v8734_v59 = vpop.permute.xlu0 %2844  ;;  %v8736_v35 = vpop.permute.xlu1 %2846 }
 0xc05   : > { %12510 = vst [vmem:[#allocation240_spill] sm:$0xff] %v8734_v59  ;;  %12511 = vst [vmem:[#allocation241_spill] sm:$0xff] %v8736_v35 }
 0xc08   : > { %v2882_v47 = vpop.permute.xlu0 %2881  ;;  %v2884_v60 = vpop.permute.xlu1 %2883 }
 0xc09   : > { %v2885_v61 = vsel %vm643_vm4, %v2882_v47, %v2884_v60  ;;  %v2889_v14 = vmul.f32 0.0, %v2882_v47  ;;  %v2891_v2 = vmul.f32 %v8530_v5, %v2884_v60  ;;  %v2894_v63 = vmul.f32 %v8537_v56, %v2884_v60 }
 0xc0a   : > { %v2890_v57 = vmul.f32 %v8590_v19, %v2885_v61  ;;  %v2893_v59 = vmul.f32 %v8597_v3, %v2885_v61  ;;  %v2896_v9 = vmul.f32 %v8605_v52, %v2885_v61 }
 0xc19   : > { %v2903_v11 = vpop.permute.xlu0 %2902  ;;  %v2907_v58 = vpop.permute.xlu1 %2906 }
 0xc1a   : > { %v2917_v54 = vmul.f32 %v2903_v11, %v2889_v14  ;;  %v2918_v1 = vmul.f32 %v2903_v11, %v2890_v57  ;;  %v2919_v44 = vmul.f32 %v2903_v11, %v2891_v2  ;;  %v2920_v35 = vmul.f32 %v2907_v58, %v2889_v14 }
 0xc1b   : > { %v2921_v47 = vmul.f32 %v2907_v58, %v2893_v59  ;;  %v2922_v45 = vmul.f32 %v2907_v58, %v2894_v63  ;;  %v2897_v11 = vmul.f32 %v8610_v53, %v2884_v60  ;;  %v2899_v63 = vmul.f32 %v8616_v0, %v2885_v61 }
 0xc1c   : > { %2941 = vrot.lane.b32.xlu1 %v2917_v54, %s7338_s12  ;;  %2943 = vrot.lane.b32.xlu0 %v2918_v1, %s7338_s12  ;;  %v2900_v58 = vmul.f32 %v8621_v55, %v2884_v60 }
 0xc1d   : > { %v2911_v57 = vpop.permute.xlu1 %2910  ;;  %v2915_v2 = vpop.permute.xlu0 %2914 }
 0xc1e   : > { %v2923_v54 = vmul.f32 %v2911_v57, %v2889_v14  ;;  %v2924_v1 = vmul.f32 %v2911_v57, %v2896_v9  ;;  %v2928_v59 = vmul.f32 %v2915_v2, %v2900_v58  ;;  %v7391_v9 = vmov 24  }
 0xc20   : > { %2945 = vrot.lane.b32.xlu1 %v2919_v44, %s7338_s12  ;;  %2947 = vrot.lane.b32.xlu0 %v2920_v35, %s7338_s12  ;;  %v2926_v44 = vmul.f32 %v2915_v2, %v2889_v14  ;;  %v2925_v35 = vmul.f32 %v2911_v57, %v2897_v11 }
 0xc24   : > { %2949 = vrot.lane.b32.xlu1 %v2921_v47, %s7338_s12  ;;  %2951 = vrot.lane.b32.xlu0 %v2922_v45, %s7338_s12  ;;  %v2927_v45 = vmul.f32 %v2915_v2, %v2899_v63 }
 0xc28   : > { %2955 = vrot.lane.b32.xlu0 %v2924_v1, %s7338_s12  ;;  %2953 = vrot.lane.b32.xlu1 %v2923_v54, %s7338_s12 }
 0xc2c   : > { %2959 = vrot.lane.b32.xlu0 %v2926_v44, %s7338_s12  ;;  %2957 = vrot.lane.b32.xlu1 %v2925_v35, %s7338_s12 }
 0xc30   : > { %2963 = vrot.lane.b32.xlu0 %v2928_v59, %s7338_s12  ;;  %2961 = vrot.lane.b32.xlu1 %v2927_v45, %s7338_s12  ;;  %s7396_s12 = smov 2  }
 0xc34   : > { %2999 = vrot.lane.b32.xlu0 %v7621_v21, %s7344_s17  ;;  %2997 = vrot.lane.b32.xlu1 %v7607_v18, %s7344_s17  ;;  %s7398_s17 = smov 75  }
 0xc38   : > { %3022 = vperm.xlu0 %7173, %v8494_v51   ;;  %3018 = vperm.xlu1 %7172, %v8488_v62  }
 0xc3c   : > { %3026 = vperm.xlu1 %7172, %v8561_v4   ;;  %7174 = vset.pattern.permute.xlu0 %v7391_v9 }
 0xc40   : > { %3030 = vperm.xlu1 %7172, %v8500_v7  }
 0xc44   : > { %7175 = vset.pattern.permute.xlu1 %v7391_v9 }
 0xc8e   : > { %v8767_v60 = vpop.permute.xlu0 %2943  ;;  %v8769_v61 = vpop.permute.xlu1 %2941 }
 0xc8f   : > { %12512 = vst [vmem:[#allocation242_spill] sm:$0xff] %v8767_v60  ;;  %12513 = vst [vmem:[#allocation243_spill] sm:$0xff] %v8769_v61 }
 0xc92   : > { %v8771_v14 = vpop.permute.xlu0 %2947  ;;  %v8773_v47 = vpop.permute.xlu1 %2945 }
 0xc93   : > { %12514 = vst [vmem:[#allocation244_spill] sm:$0xff] %v8771_v14  ;;  %12515 = vst [vmem:[#allocation245_spill] sm:$0xff] %v8773_v47 }
 0xc96   : > { %v8775_v57 = vpop.permute.xlu0 %2951  ;;  %v8777_v54 = vpop.permute.xlu1 %2949 }
 0xc97   : > { %12516 = vst [vmem:[#allocation246_spill] sm:$0xff] %v8775_v57  ;;  %12517 = vst [vmem:[#allocation247_spill] sm:$0xff] %v8777_v54 }
 0xc9a   : > { %v8779_v1 = vpop.permute.xlu0 %2955  ;;  %v8781_v2 = vpop.permute.xlu1 %2953 }
 0xc9b   : > { %12518 = vst [vmem:[#allocation248_spill] sm:$0xff] %v8779_v1  ;;  %12519 = vst [vmem:[#allocation249_spill] sm:$0xff] %v8781_v2 }
 0xc9e   : > { %v8783_v11 = vpop.permute.xlu0 %2959  ;;  %v8785_v44 = vpop.permute.xlu1 %2957 }
 0xc9f   : > { %12520 = vst [vmem:[#allocation250_spill] sm:$0xff] %v8783_v11  ;;  %12521 = vst [vmem:[#allocation251_spill] sm:$0xff] %v8785_v44 }
 0xca2   : > { %v8787_v35 = vpop.permute.xlu0 %2963  ;;  %v8789_v63 = vpop.permute.xlu1 %2961 }
 0xca3   : > { %12522 = vst [vmem:[#allocation252_spill] sm:$0xff] %v8787_v35  ;;  %12523 = vst [vmem:[#allocation253_spill] sm:$0xff] %v8789_v63 }
 0xca6   : > { %v3000_v58 = vpop.permute.xlu0 %2999  ;;  %v2998_v45 = vpop.permute.xlu1 %2997 }
 0xca7   : > { %v3001_v59 = vsel %vm514_vm8, %v2998_v45, %v3000_v58  ;;  %v3005_v9 = vmul.f32 0.0, %v2998_v45  ;;  %v3007_v11 = vmul.f32 %v8530_v5, %v3000_v58  ;;  %v3010_v45 = vmul.f32 %v8537_v56, %v3000_v58 }
 0xca8   : > { %v3006_v61 = vmul.f32 %v8590_v19, %v3001_v59  ;;  %v3009_v63 = vmul.f32 %v8597_v3, %v3001_v59  ;;  %v3012_v47 = vmul.f32 %v8605_v52, %v3001_v59 }
 0xcb7   : > { %v3019_v57 = vpop.permute.xlu1 %3018  ;;  %v3023_v2 = vpop.permute.xlu0 %3022 }
 0xcb8   : > { %v3033_v1 = vmul.f32 %v3019_v57, %v3005_v9  ;;  %v3034_v14 = vmul.f32 %v3019_v57, %v3006_v61  ;;  %v3035_v44 = vmul.f32 %v3019_v57, %v3007_v11  ;;  %v3036_v35 = vmul.f32 %v3023_v2, %v3005_v9 }
 0xcb9   : > { %v3037_v54 = vmul.f32 %v3023_v2, %v3009_v63  ;;  %v3038_v61 = vmul.f32 %v3023_v2, %v3010_v45  ;;  %v3015_v63 = vmul.f32 %v8616_v0, %v3001_v59 }
 0xcba   : > { %3057 = vrot.lane.b32.xlu0 %v3033_v1, %s7337_s7  ;;  %3059 = vrot.lane.b32.xlu1 %v3034_v14, %s7337_s7  ;;  %v3013_v1 = vmul.f32 %v8610_v53, %v3000_v58 }
 0xcbb   : > { %v3027_v60 = vpop.permute.xlu1 %3026 }
 0xcbc   : > { %v3039_v14 = vmul.f32 %v3027_v60, %v3005_v9  ;;  %v3040_v57 = vmul.f32 %v3027_v60, %v3012_v47 }
 0xcbe   : > { %3061 = vrot.lane.b32.xlu0 %v3035_v44, %s7337_s7  ;;  %3063 = vrot.lane.b32.xlu1 %v3036_v35, %s7337_s7  ;;  %v3041_v44 = vmul.f32 %v3027_v60, %v3013_v1  ;;  %v7392_v60 = vmov 25  }
 0xcbf   : > { %v3031_v11 = vpop.permute.xlu1 %3030 }
 0xcc0   : > { %v3042_v35 = vmul.f32 %v3031_v11, %v3005_v9  ;;  %v3043_v2 = vmul.f32 %v3031_v11, %v3015_v63 }
 0xcc2   : > { %3065 = vrot.lane.b32.xlu0 %v3037_v54, %s7337_s7  ;;  %3067 = vrot.lane.b32.xlu1 %v3038_v61, %s7337_s7  ;;  %v3016_v54 = vmul.f32 %v8621_v55, %v3000_v58 }
 0xcc4   : > { %v3044_v45 = vmul.f32 %v3031_v11, %v3016_v54 }
 0xcc6   : > { %3069 = vrot.lane.b32.xlu0 %v3039_v14, %s7337_s7  ;;  %3071 = vrot.lane.b32.xlu1 %v3040_v57, %s7337_s7 }
 0xcca   : > { %3073 = vrot.lane.b32.xlu0 %v3041_v44, %s7337_s7  ;;  %3075 = vrot.lane.b32.xlu1 %v3042_v35, %s7337_s7 }
 0xcce   : > { %3077 = vrot.lane.b32.xlu0 %v3043_v2, %s7337_s7  ;;  %3079 = vrot.lane.b32.xlu1 %v3044_v45, %s7337_s7  ;;  %s7393_s7 = smov 1  }
 0xcd2   : > { %3114 = vperm.xlu0 %7174, %v8488_v62   ;;  %3118 = vperm.xlu1 %7175, %v8494_v51  }
 0xcd6   : > { %3126 = vperm.xlu0 %7174, %v8500_v7   ;;  %3122 = vperm.xlu1 %7175, %v8561_v4  }
 0xcda   : > { %7177 = vset.pattern.permute.xlu0 %v7392_v60  ;;  %7176 = vset.pattern.permute.xlu1 %v7392_v60 }
 0xd2c   : > { %v8816_v47 = vpop.permute.xlu0 %3057  ;;  %v8818_v58 = vpop.permute.xlu1 %3059 }
 0xd2d   : > { %12524 = vst [vmem:[#allocation254_spill] sm:$0xff] %v8816_v47  ;;  %12525 = vst [vmem:[#allocation255_spill] sm:$0xff] %v8818_v58 }
 0xd30   : > { %v8820_v59 = vpop.permute.xlu0 %3061  ;;  %v8822_v9 = vpop.permute.xlu1 %3063 }
 0xd31   : > { %12526 = vst [vmem:[#allocation256_spill] sm:$0xff] %v8820_v59  ;;  %12527 = vst [vmem:[#allocation257_spill] sm:$0xff] %v8822_v9 }
 0xd34   : > { %v8824_v61 = vpop.permute.xlu0 %3065  ;;  %v8826_v14 = vpop.permute.xlu1 %3067 }
 0xd35   : > { %12528 = vst [vmem:[#allocation258_spill] sm:$0xff] %v8824_v61  ;;  %12529 = vst [vmem:[#allocation259_spill] sm:$0xff] %v8826_v14 }
 0xd38   : > { %v8828_v57 = vpop.permute.xlu0 %3069  ;;  %v8830_v1 = vpop.permute.xlu1 %3071 }
 0xd39   : > { %12530 = vst [vmem:[#allocation260_spill] sm:$0xff] %v8828_v57  ;;  %12531 = vst [vmem:[#allocation261_spill] sm:$0xff] %v8830_v1 }
 0xd3c   : > { %v8832_v11 = vpop.permute.xlu0 %3073  ;;  %v8834_v44 = vpop.permute.xlu1 %3075 }
 0xd3d   : > { %12532 = vst [vmem:[#allocation262_spill] sm:$0xff] %v8832_v11  ;;  %12533 = vst [vmem:[#allocation263_spill] sm:$0xff] %v8834_v44 }
 0xd40   : > { %v8836_v35 = vpop.permute.xlu0 %3077  ;;  %v8838_v63 = vpop.permute.xlu1 %3079 }
 0xd41   : > { %12534 = vst [vmem:[#allocation264_spill] sm:$0xff] %v8836_v35  ;;  %12535 = vst [vmem:[#allocation265_spill] sm:$0xff] %v8838_v63 }
 0xd51   : > { %v3115_v54 = vpop.permute.xlu0 %3114  ;;  %v3119_v60 = vpop.permute.xlu1 %3118 }
 0xd52   : > { %v3129_v2 = vmul.f32 %v8590_v19, %v3115_v54  ;;  %v3130_v45 = vmul.f32 %v8530_v5, %v3115_v54  ;;  %v3131_v47 = vmul.f32 %v8597_v3, %v3119_v60  ;;  %v3132_v57 = vmul.f32 %v8537_v56, %v3119_v60 }
 0xd54   : > { %3147 = vrot.lane.b32.xlu0 %v3130_v45, %s7336_s26  ;;  %3145 = vrot.lane.b32.xlu1 %v3129_v2, %s7336_s26 }
 0xd55   : > { %v3123_v11 = vpop.permute.xlu1 %3122  ;;  %v3127_v44 = vpop.permute.xlu0 %3126 }
 0xd56   : > { %v3133_v63 = vmul.f32 %v8605_v52, %v3123_v11  ;;  %v3134_v1 = vmul.f32 %v8610_v53, %v3123_v11  ;;  %v3135_v54 = vmul.f32 %v8616_v0, %v3127_v44  ;;  %v3136_v45 = vmul.f32 %v8621_v55, %v3127_v44 }
 0xd58   : > { %3151 = vrot.lane.b32.xlu0 %v3132_v57, %s7336_s26  ;;  %3149 = vrot.lane.b32.xlu1 %v3131_v47, %s7336_s26  ;;  %v7394_v47 = vmov 26  }
 0xd5c   : > { %3155 = vrot.lane.b32.xlu0 %v3134_v1, %s7336_s26  ;;  %3153 = vrot.lane.b32.xlu1 %v3133_v63, %s7336_s26 }
 0xd60   : > { %3159 = vrot.lane.b32.xlu0 %v3136_v45, %s7336_s26  ;;  %3157 = vrot.lane.b32.xlu1 %v3135_v54, %s7336_s26  ;;  %s7395_s26 = smov 76  }
 0xd64   : > { %3203 = vrot.lane.b32.xlu0 %v7642_v26, %s7393_s7  ;;  %3201 = vrot.lane.b32.xlu1 %v7631_v24, %s7393_s7  ;;  %s7413_s7 = smov 17  }
 0xd68   : > { %3227 = vperm.xlu0 %7177, %v8494_v51   ;;  %3223 = vperm.xlu1 %7176, %v8488_v62  }
 0xd6c   : > { %3231 = vperm.xlu1 %7176, %v8561_v4   ;;  %7178 = vset.pattern.permute.xlu0 %v7394_v47 }
 0xd70   : > { %3235 = vperm.xlu1 %7176, %v8500_v7  }
 0xd74   : > { %7179 = vset.pattern.permute.xlu1 %v7394_v47 }
 0xdc6   : > { %v8862_v57 = vpop.permute.xlu0 %3147  ;;  %v8864_v1 = vpop.permute.xlu1 %3145 }
 0xdc7   : > { %12536 = vst [vmem:[#allocation266_spill] sm:$0xff] %v8862_v57  ;;  %12537 = vst [vmem:[#allocation267_spill] sm:$0xff] %v8864_v1 }
 0xdca   : > { %v8866_v11 = vpop.permute.xlu0 %3151  ;;  %v8868_v44 = vpop.permute.xlu1 %3149 }
 0xdcb   : > { %12538 = vst [vmem:[#allocation268_spill] sm:$0xff] %v8866_v11  ;;  %12539 = vst [vmem:[#allocation269_spill] sm:$0xff] %v8868_v44 }
 0xdce   : > { %v8870_v63 = vpop.permute.xlu0 %3155  ;;  %v8872_v2 = vpop.permute.xlu1 %3153 }
 0xdcf   : > { %12540 = vst [vmem:[#allocation270_spill] sm:$0xff] %v8870_v63  ;;  %12541 = vst [vmem:[#allocation271_spill] sm:$0xff] %v8872_v2 }
 0xdd2   : > { %v8874_v60 = vpop.permute.xlu0 %3159  ;;  %v8876_v54 = vpop.permute.xlu1 %3157 }
 0xdd3   : > { %12542 = vst [vmem:[#allocation272_spill] sm:$0xff] %v8874_v60  ;;  %12543 = vst [vmem:[#allocation273_spill] sm:$0xff] %v8876_v54 }
 0xdd6   : > { %v3204_v45 = vpop.permute.xlu0 %3203  ;;  %v3202_v35 = vpop.permute.xlu1 %3201 }
 0xdd7   : > { %v3206_v47 = vsel %vm3205_vm9, %v3202_v35, %v3204_v45  ;;  %v3210_v57 = vmul.f32 %v8590_v19, %v3202_v35  ;;  %v3212_v44 = vmul.f32 0.0, %v3204_v45  ;;  %v3213_v2 = vmul.f32 %v8597_v3, %v3202_v35 }
 0xdd8   : > { %v3211_v1 = vmul.f32 %v8530_v5, %v3206_v47  ;;  %v3214_v63 = vmul.f32 %v8537_v56, %v3206_v47  ;;  %v3216_v36 = vmul.f32 %v8605_v52, %v3202_v35  ;;  %vm3795_vm9 = vcmask 121856  }
 0xde7   : > { %v3224_v14 = vpop.permute.xlu1 %3223  ;;  %v3228_v61 = vpop.permute.xlu0 %3227 }
 0xde8   : > { %v3238_v11 = vmul.f32 %v3224_v14, %v3210_v57  ;;  %v3239_v9 = vmul.f32 %v3224_v14, %v3211_v1  ;;  %v3240_v60 = vmul.f32 %v3224_v14, %v3212_v44  ;;  %v3241_v54 = vmul.f32 %v3228_v61, %v3213_v2 }
 0xde9   : > { %v3242_v58 = vmul.f32 %v3228_v61, %v3214_v63  ;;  %v3243_v13 = vmul.f32 %v3228_v61, %v3212_v44  ;;  %v3217_v57 = vmul.f32 %v8610_v53, %v3206_v47 }
 0xdea   : > { %3262 = vrot.lane.b32.xlu0 %v3238_v11, %s7395_s26  ;;  %3264 = vrot.lane.b32.xlu1 %v3239_v9, %s7395_s26  ;;  %v3219_v9 = vmul.f32 %v8616_v0, %v3202_v35 }
 0xdeb   : > { %v3232_v59 = vpop.permute.xlu1 %3231 }
 0xdec   : > { %v3244_v1 = vmul.f32 %v3232_v59, %v3216_v36  ;;  %v3245_v11 = vmul.f32 %v3232_v59, %v3217_v57  ;;  %v3246_v14 = vmul.f32 %v3232_v59, %v3212_v44 }
 0xdee   : > { %3266 = vrot.lane.b32.xlu0 %v3240_v60, %s7395_s26  ;;  %3268 = vrot.lane.b32.xlu1 %v3241_v54, %s7395_s26  ;;  %v3220_v60 = vmul.f32 %v8621_v55, %v3206_v47 }
 0xdef   : > { %v3236_v45 = vpop.permute.xlu1 %3235 }
 0xdf0   : > { %v3247_v2 = vmul.f32 %v3236_v45, %v3219_v9  ;;  %v3248_v61 = vmul.f32 %v3236_v45, %v3220_v60  ;;  %v3249_v63 = vmul.f32 %v3236_v45, %v3212_v44 }
 0xdf2   : > { %3270 = vrot.lane.b32.xlu0 %v3242_v58, %s7395_s26  ;;  %3272 = vrot.lane.b32.xlu1 %v3243_v13, %s7395_s26  ;;  %v7397_v13 = vmov 27  }
 0xdf6   : > { %3274 = vrot.lane.b32.xlu0 %v3244_v1, %s7395_s26  ;;  %3276 = vrot.lane.b32.xlu1 %v3245_v11, %s7395_s26 }
 0xdfa   : > { %3278 = vrot.lane.b32.xlu0 %v3246_v14, %s7395_s26  ;;  %3280 = vrot.lane.b32.xlu1 %v3247_v2, %s7395_s26 }
 0xdfe   : > { %3282 = vrot.lane.b32.xlu0 %v3248_v61, %s7395_s26  ;;  %3284 = vrot.lane.b32.xlu1 %v3249_v63, %s7395_s26  ;;  %s7415_s26 = smov 60  }
 0xe02   : > { %3319 = vrot.lane.b32.xlu0 %v7764_v17, %s7396_s12  ;;  %3321 = vrot.lane.b32.xlu1 %v7761_v12, %s7396_s12  ;;  %s7416_s12 = smov 18  }
 0xe06   : > { %3341 = vperm.xlu0 %7178, %v8488_v62   ;;  %3345 = vperm.xlu1 %7179, %v8494_v51  }
 0xe0a   : > { %3353 = vperm.xlu0 %7178, %v8500_v7   ;;  %3349 = vperm.xlu1 %7179, %v8561_v4  }
 0xe0e   : > { %7181 = vset.pattern.permute.xlu0 %v7397_v13  ;;  %7180 = vset.pattern.permute.xlu1 %v7397_v13 }
 0xe5c   : > { %v8892_v36 = vpop.permute.xlu0 %3262  ;;  %v8894_v58 = vpop.permute.xlu1 %3264 }
 0xe5d   : > { %12544 = vst [vmem:[#allocation274_spill] sm:$0xff] %v8892_v36  ;;  %12545 = vst [vmem:[#allocation275_spill] sm:$0xff] %v8894_v58 }
 0xe60   : > { %v8896_v59 = vpop.permute.xlu0 %3266  ;;  %v8898_v35 = vpop.permute.xlu1 %3268 }
 0xe61   : > { %12546 = vst [vmem:[#allocation276_spill] sm:$0xff] %v8896_v59  ;;  %12547 = vst [vmem:[#allocation277_spill] sm:$0xff] %v8898_v35 }
 0xe64   : > { %v8900_v44 = vpop.permute.xlu0 %3270  ;;  %v8902_v62 = vpop.permute.xlu1 %3272 }
 0xe65   : > { %12548 = vst [vmem:[#allocation278_spill] sm:$0xff] %v8900_v44  ;;  %12549 = vst [vmem:[#allocation279_spill] sm:$0xff] %v8902_v62 }
 0xe68   : > { %v8904_v51 = vpop.permute.xlu0 %3274  ;;  %v8906_v7 = vpop.permute.xlu1 %3276 }
 0xe69   : > { %12550 = vst [vmem:[#allocation280_spill] sm:$0xff] %v8904_v51  ;;  %12551 = vst [vmem:[#allocation281_spill] sm:$0xff] %v8906_v7 }
 0xe6c   : > { %v8908_v54 = vpop.permute.xlu0 %3278  ;;  %v8910_v47 = vpop.permute.xlu1 %3280 }
 0xe6d   : > { %12552 = vst [vmem:[#allocation282_spill] sm:$0xff] %v8908_v54  ;;  %12553 = vst [vmem:[#allocation283_spill] sm:$0xff] %v8910_v47 }
 0xe70   : > { %v8912_v57 = vpop.permute.xlu0 %3282  ;;  %v8914_v1 = vpop.permute.xlu1 %3284 }
 0xe71   : > { %12554 = vst [vmem:[#allocation284_spill] sm:$0xff] %v8912_v57  ;;  %12555 = vst [vmem:[#allocation285_spill] sm:$0xff] %v8914_v1 }
 0xe74   : > { %v3320_v11 = vpop.permute.xlu0 %3319  ;;  %v3322_v45 = vpop.permute.xlu1 %3321 }
 0xe75   : > { %v3324_v9 = vsel %vm3323_vm10, %v3320_v11, %v3322_v45  ;;  %v3328_v2 = vmul.f32 %v8590_v19, %v3320_v11  ;;  %v3330_v51 = vmul.f32 0.0, %v3322_v45  ;;  %v3331_v54 = vmul.f32 %v8597_v3, %v3320_v11 }
 0xe76   : > { %v3329_v14 = vmul.f32 %v8530_v5, %v3324_v9  ;;  %v3332_v57 = vmul.f32 %v8537_v56, %v3324_v9  ;;  %v3335_v35 = vmul.f32 %v8610_v53, %v3324_v9  ;;  %vm4010_vm10 = vcmask 138240  }
 0xe85   : > { %v3342_v60 = vpop.permute.xlu0 %3341  ;;  %v3346_v13 = vpop.permute.xlu1 %3345 }
 0xe86   : > { %v3356_v61 = vmul.f32 %v3342_v60, %v3328_v2  ;;  %v3357_v63 = vmul.f32 %v3342_v60, %v3329_v14  ;;  %v3358_v47 = vmul.f32 %v3342_v60, %v3330_v51  ;;  %v3359_v1 = vmul.f32 %v3346_v13, %v3331_v54 }
 0xe87   : > { %v3360_v7 = vmul.f32 %v3346_v13, %v3332_v57  ;;  %v3361_v5 = vmul.f32 %v3346_v13, %v3330_v51  ;;  %v3334_v14 = vmul.f32 %v8605_v52, %v3320_v11 }
 0xe88   : > { %3380 = vrot.lane.b32.xlu1 %v3356_v61, %s7398_s17  ;;  %3382 = vrot.lane.b32.xlu0 %v3357_v63, %s7398_s17  ;;  %v3337_v61 = vmul.f32 %v8616_v0, %v3320_v11 }
 0xe89   : > { %v3350_v62 = vpop.permute.xlu1 %3349  ;;  %v3354_v44 = vpop.permute.xlu0 %3353 }
 0xe8a   : > { %v3362_v45 = vmul.f32 %v3350_v62, %v3334_v14  ;;  %v3363_v2 = vmul.f32 %v3350_v62, %v3335_v35  ;;  %v3365_v54 = vmul.f32 %v3354_v44, %v3337_v61  ;;  %v3364_v56 = vmul.f32 %v3350_v62, %v3330_v51  ;;  %v8929_v35 = vld [vmem:[%s11901_s2 + $0x8] sm:$0xff]  ;;  %v8935_v62 = vld [vmem:[%s11901_s2] sm:$0xff] }
 0xe8c   : > { %3384 = vrot.lane.b32.xlu1 %v3358_v47, %s7398_s17  ;;  %3386 = vrot.lane.b32.xlu0 %v3359_v1, %s7398_s17  ;;  %v3338_v47 = vmul.f32 %v8621_v55, %v3324_v9  ;;  %v3367_v1 = vmul.f32 %v3354_v44, %v3330_v51  ;;  %v7400_v51 = vmov 28  }
 0xe8e   : > { %v3366_v57 = vmul.f32 %v3354_v44, %v3338_v47  ;;  %v8942_v44 = vld [vmem:[%s11901_s2 + $0x18] sm:$0xff] }
 0xe90   : > { %3388 = vrot.lane.b32.xlu1 %v3360_v7, %s7398_s17  ;;  %3390 = vrot.lane.b32.xlu0 %v3361_v5, %s7398_s17 }
 0xe94   : > { %3394 = vrot.lane.b32.xlu0 %v3363_v2, %s7398_s17  ;;  %3392 = vrot.lane.b32.xlu1 %v3362_v45, %s7398_s17 }
 0xe98   : > { %3398 = vrot.lane.b32.xlu0 %v3365_v54, %s7398_s17  ;;  %3396 = vrot.lane.b32.xlu1 %v3364_v56, %s7398_s17 }
 0xe9c   : > { %3402 = vrot.lane.b32.xlu0 %v3367_v1, %s7398_s17  ;;  %3400 = vrot.lane.b32.xlu1 %v3366_v57, %s7398_s17  ;;  %v8971_v1 = vld [vmem:[%s7565_s25 + $0x8] sm:$0xff]  ;;  %s7418_s17 = smov 59  }
 0xea0   : > { %3439 = vrot.lane.b32.xlu0 %v7895_v50, %s7399_s18  ;;  %3437 = vrot.lane.b32.xlu1 %v7892_v49, %s7399_s18  ;;  %s7419_s18 = smov 19  }
 0xea4   : > { %3463 = vperm.xlu0 %7181, %v8929_v35   ;;  %3459 = vperm.xlu1 %7180, %v8935_v62  }
 0xea8   : > { %3467 = vperm.xlu1 %7180, %v8561_v4   ;;  %7182 = vset.pattern.permute.xlu0 %v7400_v51 }
 0xeac   : > { %3471 = vperm.xlu1 %7180, %v8942_v44  }
 0xeb0   : > { %7183 = vset.pattern.permute.xlu1 %v7400_v51 }
 0xefa   : > { %v8945_v7 = vpop.permute.xlu0 %3382  ;;  %v8947_v11 = vpop.permute.xlu1 %3380 }
 0xefb   : > { %12556 = vst [vmem:[#allocation286_spill] sm:$0xff] %v8945_v7  ;;  %12557 = vst [vmem:[#allocation287_spill] sm:$0xff] %v8947_v11  ;;  %v9061_v11 = vld [vmem:[%s7565_s25 + $0x38] sm:$0xff] }
 0xefe   : > { %v8949_v9 = vpop.permute.xlu0 %3386  ;;  %v8951_v60 = vpop.permute.xlu1 %3384 }
 0xeff   : > { %12558 = vst [vmem:[#allocation288_spill] sm:$0xff] %v8949_v9  ;;  %12559 = vst [vmem:[#allocation289_spill] sm:$0xff] %v8951_v60 }
 0xf02   : > { %v8953_v4 = vpop.permute.xlu0 %3390  ;;  %v8955_v63 = vpop.permute.xlu1 %3388 }
 0xf03   : > { %12560 = vst [vmem:[#allocation290_spill] sm:$0xff] %v8953_v4  ;;  %12561 = vst [vmem:[#allocation291_spill] sm:$0xff] %v8955_v63  ;;  %v8978_v63 = vld [vmem:[%s7565_s25 + $0x18] sm:$0xff] }
 0xf06   : > { %v8957_v13 = vpop.permute.xlu0 %3394  ;;  %v8959_v5 = vpop.permute.xlu1 %3392 }
 0xf07   : > { %12562 = vst [vmem:[#allocation292_spill] sm:$0xff] %v8957_v13  ;;  %12563 = vst [vmem:[#allocation293_spill] sm:$0xff] %v8959_v5 }
 0xf0a   : > { %v8961_v14 = vpop.permute.xlu0 %3398  ;;  %v8963_v45 = vpop.permute.xlu1 %3396 }
 0xf0b   : > { %12564 = vst [vmem:[#allocation294_spill] sm:$0xff] %v8961_v14  ;;  %12565 = vst [vmem:[#allocation295_spill] sm:$0xff] %v8963_v45 }
 0xf0e   : > { %v8965_v2 = vpop.permute.xlu0 %3402  ;;  %v8967_v61 = vpop.permute.xlu1 %3400 }
 0xf0f   : > { %12566 = vst [vmem:[#allocation296_spill] sm:$0xff] %v8965_v2  ;;  %12567 = vst [vmem:[#allocation297_spill] sm:$0xff] %v8967_v61 }
 0xf12   : > { %v3440_v54 = vpop.permute.xlu0 %3439  ;;  %v3438_v56 = vpop.permute.xlu1 %3437 }
 0xf13   : > { %v3442_v47 = vsel %vm3441_vm14, %v3438_v56, %v3440_v54  ;;  %v3446_v57 = vmul.f32 %v8590_v19, %v3438_v56  ;;  %v3448_v4 = vmul.f32 0.0, %v3440_v54  ;;  %v3449_v2 = vmul.f32 %v8597_v3, %v3438_v56 }
 0xf14   : > { %v3447_v51 = vmul.f32 %v8971_v1, %v3442_v47  ;;  %v3450_v19 = vmul.f32 %v8978_v63, %v3442_v47  ;;  %v3452_v60 = vmul.f32 %v8605_v52, %v3438_v56  ;;  %v3453_v3 = vmul.f32 %v8610_v53, %v3442_v47 }
 0xf15   : > { %vm4128_vm14 = vcmask 146432  }
 0xf23   : > { %v3460_v5 = vpop.permute.xlu1 %3459  ;;  %v3464_v45 = vpop.permute.xlu0 %3463 }
 0xf24   : > { %v3474_v13 = vmul.f32 %v3460_v5, %v3446_v57  ;;  %v3475_v14 = vmul.f32 %v3460_v5, %v3447_v51  ;;  %v3476_v61 = vmul.f32 %v3460_v5, %v3448_v4  ;;  %v3477_v9 = vmul.f32 %v3464_v45, %v3449_v2 }
 0xf25   : > { %v3478_v57 = vmul.f32 %v3464_v45, %v3450_v19  ;;  %v3479_v51 = vmul.f32 %v3464_v45, %v3448_v4  ;;  %v3455_v2 = vmul.f32 %v8616_v0, %v3438_v56  ;;  %v3456_v45 = vmul.f32 %v8621_v55, %v3442_v47  ;;  %v9003_v0 = vld [vmem:[%s11901_s2 + $0x10] sm:$0xff] }
 0xf26   : > { %3498 = vrot.lane.b32.xlu0 %v3474_v13, %s7401_s9  ;;  %3500 = vrot.lane.b32.xlu1 %v3475_v14, %s7401_s9  ;;  %v7403_v55 = vmov 29  }
 0xf27   : > { %v3468_v54 = vpop.permute.xlu1 %3467 }
 0xf28   : > { %v3480_v13 = vmul.f32 %v3468_v54, %v3452_v60  ;;  %v3481_v5 = vmul.f32 %v3468_v54, %v3453_v3 }
 0xf2a   : > { %3502 = vrot.lane.b32.xlu0 %v3476_v61, %s7401_s9  ;;  %3504 = vrot.lane.b32.xlu1 %v3477_v9, %s7401_s9  ;;  %v3482_v9 = vmul.f32 %v3468_v54, %v3448_v4 }
 0xf2b   : > { %v3472_v14 = vpop.permute.xlu1 %3471 }
 0xf2c   : > { %v3483_v61 = vmul.f32 %v3472_v14, %v3455_v2  ;;  %v3484_v52 = vmul.f32 %v3472_v14, %v3456_v45  ;;  %v3485_v53 = vmul.f32 %v3472_v14, %v3448_v4 }
 0xf2e   : > { %3506 = vrot.lane.b32.xlu0 %v3478_v57, %s7401_s9  ;;  %3508 = vrot.lane.b32.xlu1 %v3479_v51, %s7401_s9 }
 0xf32   : > { %3510 = vrot.lane.b32.xlu0 %v3480_v13, %s7401_s9  ;;  %3512 = vrot.lane.b32.xlu1 %v3481_v5, %s7401_s9 }
 0xf36   : > { %3514 = vrot.lane.b32.xlu0 %v3482_v9, %s7401_s9  ;;  %3516 = vrot.lane.b32.xlu1 %v3483_v61, %s7401_s9 }
 0xf3a   : > { %3518 = vrot.lane.b32.xlu0 %v3484_v52, %s7401_s9  ;;  %3520 = vrot.lane.b32.xlu1 %v3485_v53, %s7401_s9  ;;  %v9032_v52 = vld [vmem:[%s7565_s25] sm:$0xff] }
 0xf3e   : > { %3555 = vrot.lane.b32.xlu0 %v7554_v8, %s7402_s30  ;;  %3557 = vrot.lane.b32.xlu1 %v7570_v10, %s7402_s30 }
 0xf42   : > { %3577 = vperm.xlu0 %7182, %v8935_v62   ;;  %3581 = vperm.xlu1 %7183, %v8929_v35  }
 0xf46   : > { %3589 = vperm.xlu0 %7182, %v8942_v44   ;;  %3585 = vperm.xlu1 %7183, %v9003_v0  }
 0xf4a   : > { %7185 = vset.pattern.permute.xlu0 %v7403_v55  ;;  %7184 = vset.pattern.permute.xlu1 %v7403_v55 }
 0xf98   : > { %v9006_v60 = vpop.permute.xlu0 %3498  ;;  %v9008_v4 = vpop.permute.xlu1 %3500 }
 0xf99   : > { %12568 = vst [vmem:[#allocation298_spill] sm:$0xff] %v9006_v60  ;;  %12569 = vst [vmem:[#allocation299_spill] sm:$0xff] %v9008_v4 }
 0xf9c   : > { %v9010_v56 = vpop.permute.xlu0 %3502  ;;  %v9012_v47 = vpop.permute.xlu1 %3504 }
 0xf9d   : > { %12570 = vst [vmem:[#allocation300_spill] sm:$0xff] %v9010_v56  ;;  %12571 = vst [vmem:[#allocation301_spill] sm:$0xff] %v9012_v47  ;;  %v9045_v56 = vld [vmem:[%s7565_s25 + $0x28] sm:$0xff] }
 0xfa0   : > { %v9014_v19 = vpop.permute.xlu0 %3506  ;;  %v9016_v57 = vpop.permute.xlu1 %3508 }
 0xfa1   : > { %12572 = vst [vmem:[#allocation302_spill] sm:$0xff] %v9014_v19  ;;  %12573 = vst [vmem:[#allocation303_spill] sm:$0xff] %v9016_v57 }
 0xfa4   : > { %v9018_v54 = vpop.permute.xlu0 %3510  ;;  %v9020_v51 = vpop.permute.xlu1 %3512 }
 0xfa5   : > { %12574 = vst [vmem:[#allocation304_spill] sm:$0xff] %v9018_v54  ;;  %12575 = vst [vmem:[#allocation305_spill] sm:$0xff] %v9020_v51 }
 0xfa8   : > { %v9022_v3 = vpop.permute.xlu0 %3514  ;;  %v9024_v13 = vpop.permute.xlu1 %3516 }
 0xfa9   : > { %12576 = vst [vmem:[#allocation306_spill] sm:$0xff] %v9022_v3  ;;  %12577 = vst [vmem:[#allocation307_spill] sm:$0xff] %v9024_v13 }
 0xfac   : > { %v9026_v5 = vpop.permute.xlu0 %3518  ;;  %v9028_v14 = vpop.permute.xlu1 %3520 }
 0xfad   : > { %12578 = vst [vmem:[#allocation308_spill] sm:$0xff] %v9026_v5  ;;  %12579 = vst [vmem:[#allocation309_spill] sm:$0xff] %v9028_v14  ;;  %v9036_v5 = vld [vmem:[%s7565_s25 + $0x10] sm:$0xff] }
 0xfb0   : > { %v3556_v2 = vpop.permute.xlu0 %3555  ;;  %v3558_v9 = vpop.permute.xlu1 %3557 }
 0xfb1   : > { %v3560_v61 = vsel %vm3559_vm15, %v3556_v2, %v3558_v9  ;;  %v3564_v53 = vmul.f32 %v9032_v52, %v3556_v2  ;;  %v3566_v13 = vmul.f32 0.0, %v3558_v9  ;;  %v3567_v14 = vmul.f32 %v9036_v5, %v3556_v2 }
 0xfb2   : > { %v3565_v45 = vmul.f32 %v8971_v1, %v3560_v61  ;;  %v3568_v19 = vmul.f32 %v8978_v63, %v3560_v61  ;;  %v3571_v60 = vmul.f32 %v9045_v56, %v3560_v61  ;;  %v3574_v7 = vmul.f32 %v9061_v11, %v3560_v61 }
 0xfb3   : > { %vm4246_vm15 = vcmask 154624  }
 0xfc1   : > { %v3578_v55 = vpop.permute.xlu0 %3577  ;;  %v3582_v51 = vpop.permute.xlu1 %3581 }
 0xfc2   : > { %v3592_v54 = vmul.f32 %v3578_v55, %v3564_v53  ;;  %v3593_v3 = vmul.f32 %v3578_v55, %v3565_v45  ;;  %v3594_v57 = vmul.f32 %v3578_v55, %v3566_v13  ;;  %v3595_v47 = vmul.f32 %v3582_v51, %v3567_v14 }
 0xfc3   : > { %v3596_v9 = vmul.f32 %v3582_v51, %v3568_v19  ;;  %v3597_v45 = vmul.f32 %v3582_v51, %v3566_v13 }
 0xfc4   : > { %3616 = vrot.lane.b32.xlu1 %v3592_v54, %s7404_s16  ;;  %3618 = vrot.lane.b32.xlu0 %v3593_v3, %s7404_s16  ;;  %v9049_v54 = vld [vmem:[%s7565_s25 + $0x20] sm:$0xff] }
 0xfc5   : > { %v3586_v53 = vpop.permute.xlu1 %3585  ;;  %v3570_v3 = vmul.f32 %v9049_v54, %v3556_v2  ;;  %v3590_v55 = vpop.permute.xlu0 %3589 }
 0xfc6   : > { %v3600_v4 = vmul.f32 %v3586_v53, %v3566_v13 }
 0xfc7   : > { %v3598_v14 = vmul.f32 %v3586_v53, %v3570_v3 }
 0xfc8   : > { %3620 = vrot.lane.b32.xlu1 %v3594_v57, %s7404_s16  ;;  %3622 = vrot.lane.b32.xlu0 %v3595_v47, %s7404_s16  ;;  %v3599_v57 = vmul.f32 %v3586_v53, %v3571_v60  ;;  %v9055_v47 = vld [vmem:[%s7565_s25 + $0x30] sm:$0xff]  ;;  %v3602_v60 = vmul.f32 %v3590_v55, %v3574_v7 }
 0xfc9   : > { %v3573_v19 = vmul.f32 %v9055_v47, %v3556_v2 }
 0xfcb   : > { %v3601_v51 = vmul.f32 %v3590_v55, %v3573_v19 }
 0xfcc   : > { %3624 = vrot.lane.b32.xlu1 %v3596_v9, %s7404_s16  ;;  %3626 = vrot.lane.b32.xlu0 %v3597_v45, %s7404_s16  ;;  %v3603_v9 = vmul.f32 %v3590_v55, %v3566_v13 }
 0xfd0   : > { %3630 = vrot.lane.b32.xlu0 %v3599_v57, %s7404_s16  ;;  %3628 = vrot.lane.b32.xlu1 %v3598_v14, %s7404_s16 }
 0xfd4   : > { %3634 = vrot.lane.b32.xlu0 %v3601_v51, %s7404_s16  ;;  %3632 = vrot.lane.b32.xlu1 %v3600_v4, %s7404_s16  ;;  %v7406_v4 = vmov 30  }
 0xfd8   : > { %3638 = vrot.lane.b32.xlu0 %v3603_v9, %s7404_s16  ;;  %3636 = vrot.lane.b32.xlu1 %v3602_v60, %s7404_s16  ;;  %s7427_s16 = smov 47  }
 0xfdc   : > { %3675 = vrot.lane.b32.xlu0 %v7592_v15, %s7405_s20  ;;  %3673 = vrot.lane.b32.xlu1 %v7596_v16, %s7405_s20  ;;  %s7428_s20 = smov 31  }
 0xfe0   : > { %3699 = vperm.xlu0 %7185, %v8929_v35   ;;  %3695 = vperm.xlu1 %7184, %v8935_v62  }
 0xfe4   : > { %3703 = vperm.xlu1 %7184, %v9003_v0   ;;  %7186 = vset.pattern.permute.xlu0 %v7406_v4 }
 0xfe8   : > { %3707 = vperm.xlu1 %7184, %v8942_v44  }
 0xfec   : > { %7187 = vset.pattern.permute.xlu1 %v7406_v4 }
0x1036   : > { %v9074_v7 = vpop.permute.xlu0 %3618  ;;  %v9076_v13 = vpop.permute.xlu1 %3616 }
0x1037   : > { %12580 = vst [vmem:[#allocation310_spill] sm:$0xff] %v9074_v7  ;;  %12581 = vst [vmem:[#allocation311_spill] sm:$0xff] %v9076_v13 }
0x103a   : > { %v9078_v2 = vpop.permute.xlu0 %3622  ;;  %v9080_v61 = vpop.permute.xlu1 %3620 }
0x103b   : > { %12582 = vst [vmem:[#allocation312_spill] sm:$0xff] %v9078_v2  ;;  %12583 = vst [vmem:[#allocation313_spill] sm:$0xff] %v9080_v61 }
0x103e   : > { %v9082_v45 = vpop.permute.xlu0 %3626  ;;  %v9084_v53 = vpop.permute.xlu1 %3624 }
0x103f   : > { %12584 = vst [vmem:[#allocation314_spill] sm:$0xff] %v9082_v45  ;;  %12585 = vst [vmem:[#allocation315_spill] sm:$0xff] %v9084_v53 }
0x1042   : > { %v9086_v3 = vpop.permute.xlu0 %3630  ;;  %v9088_v14 = vpop.permute.xlu1 %3628 }
0x1043   : > { %12586 = vst [vmem:[#allocation316_spill] sm:$0xff] %v9086_v3  ;;  %12587 = vst [vmem:[#allocation317_spill] sm:$0xff] %v9088_v14 }
0x1046   : > { %v9090_v57 = vpop.permute.xlu0 %3634  ;;  %v9092_v55 = vpop.permute.xlu1 %3632 }
0x1047   : > { %12588 = vst [vmem:[#allocation318_spill] sm:$0xff] %v9090_v57  ;;  %12589 = vst [vmem:[#allocation319_spill] sm:$0xff] %v9092_v55 }
0x104a   : > { %v9094_v19 = vpop.permute.xlu0 %3638  ;;  %v9096_v51 = vpop.permute.xlu1 %3636 }
0x104b   : > { %12590 = vst [vmem:[#allocation320_spill] sm:$0xff] %v9094_v19  ;;  %12591 = vst [vmem:[#allocation321_spill] sm:$0xff] %v9096_v51 }
0x104e   : > { %v3676_v60 = vpop.permute.xlu0 %3675  ;;  %v3674_v9 = vpop.permute.xlu1 %3673 }
0x104f   : > { %v3678_v4 = vsel %vm3677_vm2, %v3674_v9, %v3676_v60  ;;  %v3682_v45 = vmul.f32 %v9032_v52, %v3674_v9  ;;  %v3684_v14 = vmul.f32 0.0, %v3676_v60  ;;  %v3685_v55 = vmul.f32 %v9036_v5, %v3674_v9 }
0x1050   : > { %v3683_v2 = vmul.f32 %v8971_v1, %v3678_v4  ;;  %v3686_v51 = vmul.f32 %v8978_v63, %v3678_v4  ;;  %v3688_v58 = vmul.f32 %v9049_v54, %v3674_v9  ;;  %vm12229_vm2 = vcmask 236544  }
0x105f   : > { %v3696_v53 = vpop.permute.xlu1 %3695  ;;  %v3700_v13 = vpop.permute.xlu0 %3699 }
0x1060   : > { %v3710_v3 = vmul.f32 %v3696_v53, %v3682_v45  ;;  %v3711_v61 = vmul.f32 %v3696_v53, %v3683_v2  ;;  %v3712_v19 = vmul.f32 %v3696_v53, %v3684_v14  ;;  %v3713_v57 = vmul.f32 %v3700_v13, %v3685_v55 }
0x1061   : > { %v3714_v7 = vmul.f32 %v3700_v13, %v3686_v51  ;;  %v3715_v36 = vmul.f32 %v3700_v13, %v3684_v14  ;;  %v3689_v2 = vmul.f32 %v9045_v56, %v3678_v4 }
0x1062   : > { %3734 = vrot.lane.b32.xlu0 %v3710_v3, %s7407_s23  ;;  %3736 = vrot.lane.b32.xlu1 %v3711_v61, %s7407_s23  ;;  %v3691_v61 = vmul.f32 %v9055_v47, %v3674_v9 }
0x1063   : > { %v3704_v59 = vpop.permute.xlu1 %3703 }
0x1064   : > { %v3716_v45 = vmul.f32 %v3704_v59, %v3688_v58  ;;  %v3717_v3 = vmul.f32 %v3704_v59, %v3689_v2  ;;  %v3718_v53 = vmul.f32 %v3704_v59, %v3684_v14 }
0x1066   : > { %3738 = vrot.lane.b32.xlu0 %v3712_v19, %s7407_s23  ;;  %3740 = vrot.lane.b32.xlu1 %v3713_v57, %s7407_s23  ;;  %v3692_v57 = vmul.f32 %v9061_v11, %v3678_v4 }
0x1067   : > { %v3708_v60 = vpop.permute.xlu1 %3707 }
0x1068   : > { %v3719_v55 = vmul.f32 %v3708_v60, %v3691_v61  ;;  %v3720_v13 = vmul.f32 %v3708_v60, %v3692_v57  ;;  %v3721_v19 = vmul.f32 %v3708_v60, %v3684_v14 }
0x106a   : > { %3742 = vrot.lane.b32.xlu0 %v3714_v7, %s7407_s23  ;;  %3744 = vrot.lane.b32.xlu1 %v3715_v36, %s7407_s23  ;;  %v7409_v36 = vmov 31  }
0x106e   : > { %3746 = vrot.lane.b32.xlu0 %v3716_v45, %s7407_s23  ;;  %3748 = vrot.lane.b32.xlu1 %v3717_v3, %s7407_s23 }
0x1072   : > { %3750 = vrot.lane.b32.xlu0 %v3718_v53, %s7407_s23  ;;  %3752 = vrot.lane.b32.xlu1 %v3719_v55, %s7407_s23 }
0x1076   : > { %3754 = vrot.lane.b32.xlu0 %v3720_v13, %s7407_s23  ;;  %3756 = vrot.lane.b32.xlu1 %v3721_v19, %s7407_s23  ;;  %s7450_s23 = smov 50  }
0x107a   : > { %3791 = vrot.lane.b32.xlu0 %v7607_v18, %s7408_s22  ;;  %3793 = vrot.lane.b32.xlu1 %v7621_v21, %s7408_s22  ;;  %s7451_s22 = smov 51  }
0x107e   : > { %3813 = vperm.xlu0 %7186, %v8935_v62   ;;  %3817 = vperm.xlu1 %7187, %v8929_v35  }
0x1082   : > { %3825 = vperm.xlu0 %7186, %v8942_v44   ;;  %3821 = vperm.xlu1 %7187, %v9003_v0  }
0x1086   : > { %7188 = vset.pattern.permute.xlu1 %v7409_v36  ;;  %7189 = vset.pattern.permute.xlu0 %v7409_v36 }
0x10d4   : > { %v9112_v58 = vpop.permute.xlu0 %3734  ;;  %v9114_v59 = vpop.permute.xlu1 %3736 }
0x10d5   : > { %12592 = vst [vmem:[#allocation322_spill] sm:$0xff] %v9112_v58  ;;  %12593 = vst [vmem:[#allocation323_spill] sm:$0xff] %v9114_v59 }
0x10d8   : > { %v9116_v7 = vpop.permute.xlu0 %3738  ;;  %v9118_v14 = vpop.permute.xlu1 %3740 }
0x10d9   : > { %12594 = vst [vmem:[#allocation324_spill] sm:$0xff] %v9116_v7  ;;  %12595 = vst [vmem:[#allocation325_spill] sm:$0xff] %v9118_v14 }
0x10dc   : > { %v9120_v51 = vpop.permute.xlu0 %3742  ;;  %v9122_v9 = vpop.permute.xlu1 %3744 }
0x10dd   : > { %12596 = vst [vmem:[#allocation326_spill] sm:$0xff] %v9120_v51  ;;  %12597 = vst [vmem:[#allocation327_spill] sm:$0xff] %v9122_v9 }
0x10e0   : > { %v9124_v4 = vpop.permute.xlu0 %3746  ;;  %v9126_v2 = vpop.permute.xlu1 %3748 }
0x10e1   : > { %12598 = vst [vmem:[#allocation328_spill] sm:$0xff] %v9124_v4  ;;  %12599 = vst [vmem:[#allocation329_spill] sm:$0xff] %v9126_v2 }
0x10e4   : > { %v9128_v45 = vpop.permute.xlu0 %3750  ;;  %v9130_v3 = vpop.permute.xlu1 %3752 }
0x10e5   : > { %12600 = vst [vmem:[#allocation330_spill] sm:$0xff] %v9128_v45  ;;  %12601 = vst [vmem:[#allocation331_spill] sm:$0xff] %v9130_v3 }
0x10e8   : > { %v9132_v60 = vpop.permute.xlu0 %3754  ;;  %v9134_v61 = vpop.permute.xlu1 %3756 }
0x10e9   : > { %12602 = vst [vmem:[#allocation332_spill] sm:$0xff] %v9132_v60  ;;  %12603 = vst [vmem:[#allocation333_spill] sm:$0xff] %v9134_v61 }
0x10ec   : > { %v3792_v53 = vpop.permute.xlu0 %3791  ;;  %v3794_v55 = vpop.permute.xlu1 %3793 }
0x10ed   : > { %v3796_v57 = vsel %vm3795_vm9, %v3792_v53, %v3794_v55  ;;  %v3800_v19 = vmul.f32 %v9032_v52, %v3792_v53  ;;  %v3802_v14 = vmul.f32 0.0, %v3794_v55  ;;  %v3803_v45 = vmul.f32 %v9036_v5, %v3792_v53 }
0x10ee   : > { %v3801_v13 = vmul.f32 %v8971_v1, %v3796_v57  ;;  %v3804_v3 = vmul.f32 %v8978_v63, %v3796_v57  ;;  %v3807_v59 = vmul.f32 %v9045_v56, %v3796_v57  ;;  %vm4482_vm9 = vcmask 244736  }
0x10fd   : > { %v3814_v36 = vpop.permute.xlu0 %3813  ;;  %v3818_v2 = vpop.permute.xlu1 %3817 }
0x10fe   : > { %v3828_v4 = vmul.f32 %v3814_v36, %v3800_v19  ;;  %v3829_v9 = vmul.f32 %v3814_v36, %v3801_v13  ;;  %v3830_v60 = vmul.f32 %v3814_v36, %v3802_v14  ;;  %v3831_v61 = vmul.f32 %v3818_v2, %v3803_v45 }
0x10ff   : > { %v3832_v51 = vmul.f32 %v3818_v2, %v3804_v3  ;;  %v3833_v7 = vmul.f32 %v3818_v2, %v3802_v14  ;;  %v3806_v13 = vmul.f32 %v9049_v54, %v3792_v53 }
0x1100   : > { %3852 = vrot.lane.b32.xlu1 %v3828_v4, %s7410_s24  ;;  %3854 = vrot.lane.b32.xlu0 %v3829_v9, %s7410_s24  ;;  %v3809_v9 = vmul.f32 %v9055_v47, %v3792_v53 }
0x1101   : > { %v3822_v58 = vpop.permute.xlu1 %3821  ;;  %v3826_v6 = vpop.permute.xlu0 %3825 }
0x1102   : > { %v3834_v55 = vmul.f32 %v3822_v58, %v3806_v13  ;;  %v3835_v19 = vmul.f32 %v3822_v58, %v3807_v59  ;;  %v3837_v4 = vmul.f32 %v3826_v6, %v3809_v9  ;;  %v3836_v45 = vmul.f32 %v3822_v58, %v3802_v14 }
0x1103   : > { %v3839_v3 = vmul.f32 %v3826_v6, %v3802_v14  ;;  %v7411_v59 = vmov 32  }
0x1104   : > { %3856 = vrot.lane.b32.xlu1 %v3830_v60, %s7410_s24  ;;  %3858 = vrot.lane.b32.xlu0 %v3831_v61, %s7410_s24  ;;  %v3810_v60 = vmul.f32 %v9061_v11, %v3796_v57 }
0x1106   : > { %v3838_v2 = vmul.f32 %v3826_v6, %v3810_v60 }
0x1108   : > { %3860 = vrot.lane.b32.xlu1 %v3832_v51, %s7410_s24  ;;  %3862 = vrot.lane.b32.xlu0 %v3833_v7, %s7410_s24 }
0x110c   : > { %3866 = vrot.lane.b32.xlu0 %v3835_v19, %s7410_s24  ;;  %3864 = vrot.lane.b32.xlu1 %v3834_v55, %s7410_s24 }
0x1110   : > { %3870 = vrot.lane.b32.xlu0 %v3837_v4, %s7410_s24  ;;  %3868 = vrot.lane.b32.xlu1 %v3836_v45, %s7410_s24 }
0x1114   : > { %3874 = vrot.lane.b32.xlu0 %v3839_v3, %s7410_s24  ;;  %3872 = vrot.lane.b32.xlu1 %v3838_v2, %s7410_s24  ;;  %s7430_s24 = smov 46  }
0x1118   : > { %3910 = vperm.xlu1 %7188, %v8935_v62   ;;  %3914 = vperm.xlu0 %7189, %v8929_v35  }
0x111c   : > { %3918 = vperm.xlu1 %7188, %v9003_v0   ;;  %7190 = vset.pattern.permute.xlu0 %v7411_v59 }
0x1120   : > { %3922 = vperm.xlu1 %7188, %v8942_v44  }
0x1124   : > { %7191 = vset.pattern.permute.xlu1 %v7411_v59 }
0x1172   : > { %v9148_v58 = vpop.permute.xlu0 %3854  ;;  %v9150_v7 = vpop.permute.xlu1 %3852 }
0x1173   : > { %12604 = vst [vmem:[#allocation334_spill] sm:$0xff] %v9148_v58  ;;  %12605 = vst [vmem:[#allocation335_spill] sm:$0xff] %v9150_v7 }
0x1176   : > { %v9152_v51 = vpop.permute.xlu0 %3858  ;;  %v9154_v6 = vpop.permute.xlu1 %3856 }
0x1177   : > { %12606 = vst [vmem:[#allocation336_spill] sm:$0xff] %v9152_v51  ;;  %12607 = vst [vmem:[#allocation337_spill] sm:$0xff] %v9154_v6 }
0x117a   : > { %v9156_v14 = vpop.permute.xlu0 %3862  ;;  %v9158_v61 = vpop.permute.xlu1 %3860 }
0x117b   : > { %12608 = vst [vmem:[#allocation338_spill] sm:$0xff] %v9156_v14  ;;  %12609 = vst [vmem:[#allocation339_spill] sm:$0xff] %v9158_v61 }
0x117e   : > { %v9160_v53 = vpop.permute.xlu0 %3866  ;;  %v9162_v57 = vpop.permute.xlu1 %3864 }
0x117f   : > { %12610 = vst [vmem:[#allocation340_spill] sm:$0xff] %v9160_v53  ;;  %12611 = vst [vmem:[#allocation341_spill] sm:$0xff] %v9162_v57 }
0x1182   : > { %v9164_v36 = vpop.permute.xlu0 %3870  ;;  %v9166_v13 = vpop.permute.xlu1 %3868 }
0x1183   : > { %12612 = vst [vmem:[#allocation342_spill] sm:$0xff] %v9164_v36  ;;  %12613 = vst [vmem:[#allocation343_spill] sm:$0xff] %v9166_v13 }
0x1186   : > { %v9168_v55 = vpop.permute.xlu0 %3874  ;;  %v9170_v19 = vpop.permute.xlu1 %3872 }
0x1187   : > { %12614 = vst [vmem:[#allocation344_spill] sm:$0xff] %v9168_v55  ;;  %12615 = vst [vmem:[#allocation345_spill] sm:$0xff] %v9170_v19 }
0x1197   : > { %v3911_v9 = vpop.permute.xlu1 %3910  ;;  %v3915_v4 = vpop.permute.xlu0 %3914 }
0x1198   : > { %v3925_v45 = vmul.f32 %v9032_v52, %v3911_v9  ;;  %v3926_v60 = vmul.f32 %v8971_v1, %v3911_v9  ;;  %v3928_v2 = vmul.f32 %v9036_v5, %v3915_v4  ;;  %v3927_v3 = vmul.f32 0.0, %v3911_v9 }
0x1199   : > { %v3929_v59 = vmul.f32 %v8978_v63, %v3915_v4  ;;  %v3930_v36 = vmul.f32 0.0, %v3915_v4 }
0x119a   : > { %3951 = vrot.lane.b32.xlu1 %v3926_v60, %s7412_s19  ;;  %3949 = vrot.lane.b32.xlu0 %v3925_v45, %s7412_s19 }
0x119b   : > { %v3919_v13 = vpop.permute.xlu1 %3918 }
0x119c   : > { %v3931_v55 = vmul.f32 %v9049_v54, %v3919_v13  ;;  %v3932_v19 = vmul.f32 %v9045_v56, %v3919_v13  ;;  %v3933_v60 = vmul.f32 0.0, %v3919_v13 }
0x119e   : > { %3955 = vrot.lane.b32.xlu1 %v3928_v2, %s7412_s19  ;;  %3953 = vrot.lane.b32.xlu0 %v3927_v3, %s7412_s19 }
0x119f   : > { %v3923_v57 = vpop.permute.xlu1 %3922 }
0x11a0   : > { %v3934_v45 = vmul.f32 %v9055_v47, %v3923_v57  ;;  %v3935_v9 = vmul.f32 %v9061_v11, %v3923_v57  ;;  %v3936_v4 = vmul.f32 0.0, %v3923_v57 }
0x11a2   : > { %3959 = vrot.lane.b32.xlu1 %v3930_v36, %s7412_s19  ;;  %3957 = vrot.lane.b32.xlu0 %v3929_v59, %s7412_s19  ;;  %v7414_v36 = vmov 33  }
0x11a6   : > { %3963 = vrot.lane.b32.xlu1 %v3932_v19, %s7412_s19  ;;  %3961 = vrot.lane.b32.xlu0 %v3931_v55, %s7412_s19 }
0x11aa   : > { %3965 = vrot.lane.b32.xlu0 %v3933_v60, %s7412_s19  ;;  %3967 = vrot.lane.b32.xlu1 %v3934_v45, %s7412_s19 }
0x11ae   : > { %3969 = vrot.lane.b32.xlu0 %v3935_v9, %s7412_s19  ;;  %3971 = vrot.lane.b32.xlu1 %v3936_v4, %s7412_s19  ;;  %s7432_s19 = smov 45  }
0x11b2   : > { %4006 = vrot.lane.b32.xlu0 %v7631_v24, %s7413_s7  ;;  %4008 = vrot.lane.b32.xlu1 %v7642_v26, %s7413_s7  ;;  %s7433_s7 = smov 33  }
0x11b6   : > { %4028 = vperm.xlu0 %7190, %v8935_v62   ;;  %4032 = vperm.xlu1 %7191, %v8929_v35  }
0x11ba   : > { %4040 = vperm.xlu0 %7190, %v8942_v44   ;;  %4036 = vperm.xlu1 %7191, %v9003_v0  }
0x11be   : > { %7193 = vset.pattern.permute.xlu0 %v7414_v36  ;;  %7192 = vset.pattern.permute.xlu1 %v7414_v36 }
0x120c   : > { %v9186_v13 = vpop.permute.xlu0 %3949  ;;  %v9188_v57 = vpop.permute.xlu1 %3951 }
0x120d   : > { %12616 = vst [vmem:[#allocation346_spill] sm:$0xff] %v9186_v13  ;;  %12617 = vst [vmem:[#allocation347_spill] sm:$0xff] %v9188_v57 }
0x1210   : > { %v9190_v55 = vpop.permute.xlu0 %3953  ;;  %v9192_v19 = vpop.permute.xlu1 %3955 }
0x1211   : > { %12618 = vst [vmem:[#allocation348_spill] sm:$0xff] %v9190_v55  ;;  %12619 = vst [vmem:[#allocation349_spill] sm:$0xff] %v9192_v19 }
0x1214   : > { %v9194_v2 = vpop.permute.xlu0 %3957  ;;  %v9196_v3 = vpop.permute.xlu1 %3959 }
0x1215   : > { %12620 = vst [vmem:[#allocation350_spill] sm:$0xff] %v9194_v2  ;;  %12621 = vst [vmem:[#allocation351_spill] sm:$0xff] %v9196_v3 }
0x1218   : > { %v9198_v59 = vpop.permute.xlu0 %3961  ;;  %v9200_v60 = vpop.permute.xlu1 %3963 }
0x1219   : > { %12622 = vst [vmem:[#allocation352_spill] sm:$0xff] %v9198_v59  ;;  %12623 = vst [vmem:[#allocation353_spill] sm:$0xff] %v9200_v60 }
0x121c   : > { %v9202_v45 = vpop.permute.xlu0 %3965  ;;  %v9204_v9 = vpop.permute.xlu1 %3967 }
0x121d   : > { %12624 = vst [vmem:[#allocation354_spill] sm:$0xff] %v9202_v45  ;;  %12625 = vst [vmem:[#allocation355_spill] sm:$0xff] %v9204_v9 }
0x1220   : > { %v9206_v4 = vpop.permute.xlu0 %3969  ;;  %v9208_v36 = vpop.permute.xlu1 %3971 }
0x1221   : > { %12626 = vst [vmem:[#allocation356_spill] sm:$0xff] %v9206_v4  ;;  %12627 = vst [vmem:[#allocation357_spill] sm:$0xff] %v9208_v36 }
0x1224   : > { %v4007_v13 = vpop.permute.xlu0 %4006  ;;  %v4009_v55 = vpop.permute.xlu1 %4008 }
0x1225   : > { %v4011_v19 = vsel %vm4010_vm10, %v4007_v13, %v4009_v55  ;;  %v4015_v3 = vmul.f32 %v9032_v52, %v4007_v13  ;;  %v4017_v14 = vmul.f32 0.0, %v4009_v55  ;;  %v4018_v45 = vmul.f32 %v9036_v5, %v4007_v13 }
0x1226   : > { %v4016_v2 = vmul.f32 %v8971_v1, %v4011_v19  ;;  %v4019_v4 = vmul.f32 %v8978_v63, %v4011_v19  ;;  %v4022_v7 = vmul.f32 %v9045_v56, %v4011_v19  ;;  %vm12230_vm10 = vcmask 252928  }
0x1235   : > { %v4029_v57 = vpop.permute.xlu0 %4028  ;;  %v4033_v60 = vpop.permute.xlu1 %4032 }
0x1236   : > { %v4043_v59 = vmul.f32 %v4029_v57, %v4015_v3  ;;  %v4044_v53 = vmul.f32 %v4029_v57, %v4016_v2  ;;  %v4045_v9 = vmul.f32 %v4029_v57, %v4017_v14  ;;  %v4046_v36 = vmul.f32 %v4033_v60, %v4018_v45 }
0x1237   : > { %v4047_v51 = vmul.f32 %v4033_v60, %v4019_v4  ;;  %v4048_v61 = vmul.f32 %v4033_v60, %v4017_v14  ;;  %v4021_v2 = vmul.f32 %v9049_v54, %v4007_v13  ;;  %v4025_v45 = vmul.f32 %v9061_v11, %v4011_v19 }
0x1238   : > { %4067 = vrot.lane.b32.xlu1 %v4043_v59, %s7415_s26  ;;  %4069 = vrot.lane.b32.xlu0 %v4044_v53, %s7415_s26  ;;  %v4024_v53 = vmul.f32 %v9055_v47, %v4007_v13 }
0x1239   : > { %v4037_v6 = vpop.permute.xlu1 %4036  ;;  %v4041_v58 = vpop.permute.xlu0 %4040 }
0x123a   : > { %v4049_v55 = vmul.f32 %v4037_v6, %v4021_v2  ;;  %v4050_v3 = vmul.f32 %v4037_v6, %v4022_v7  ;;  %v4052_v57 = vmul.f32 %v4041_v58, %v4024_v53  ;;  %v4051_v59 = vmul.f32 %v4037_v6, %v4017_v14 }
0x123b   : > { %v4053_v60 = vmul.f32 %v4041_v58, %v4025_v45  ;;  %v7417_v7 = vmov 34  }
0x123c   : > { %4071 = vrot.lane.b32.xlu1 %v4045_v9, %s7415_s26  ;;  %4073 = vrot.lane.b32.xlu0 %v4046_v36, %s7415_s26  ;;  %v4054_v9 = vmul.f32 %v4041_v58, %v4017_v14 }
0x1240   : > { %4075 = vrot.lane.b32.xlu1 %v4047_v51, %s7415_s26  ;;  %4077 = vrot.lane.b32.xlu0 %v4048_v61, %s7415_s26 }
0x1244   : > { %4081 = vrot.lane.b32.xlu0 %v4050_v3, %s7415_s26  ;;  %4079 = vrot.lane.b32.xlu1 %v4049_v55, %s7415_s26 }
0x1248   : > { %4085 = vrot.lane.b32.xlu0 %v4052_v57, %s7415_s26  ;;  %4083 = vrot.lane.b32.xlu1 %v4051_v59, %s7415_s26 }
0x124c   : > { %4089 = vrot.lane.b32.xlu0 %v4054_v9, %s7415_s26  ;;  %4087 = vrot.lane.b32.xlu1 %v4053_v60, %s7415_s26  ;;  %s7435_s26 = smov 44  }
0x1250   : > { %4126 = vrot.lane.b32.xlu0 %v7761_v12, %s7416_s12  ;;  %4124 = vrot.lane.b32.xlu1 %v7764_v17, %s7416_s12  ;;  %s7436_s12 = smov 34  }
0x1254   : > { %4150 = vperm.xlu0 %7193, %v8929_v35   ;;  %4146 = vperm.xlu1 %7192, %v8935_v62  }
0x1258   : > { %4154 = vperm.xlu1 %7192, %v9003_v0   ;;  %7194 = vset.pattern.permute.xlu0 %v7417_v7 }
0x125c   : > { %4158 = vperm.xlu1 %7192, %v8942_v44  }
0x1260   : > { %7195 = vset.pattern.permute.xlu1 %v7417_v7 }
0x12aa   : > { %v9224_v51 = vpop.permute.xlu0 %4069  ;;  %v9226_v58 = vpop.permute.xlu1 %4067 }
0x12ab   : > { %12628 = vst [vmem:[#allocation358_spill] sm:$0xff] %v9224_v51  ;;  %12629 = vst [vmem:[#allocation359_spill] sm:$0xff] %v9226_v58 }
0x12ae   : > { %v9228_v6 = vpop.permute.xlu0 %4073  ;;  %v9230_v14 = vpop.permute.xlu1 %4071 }
0x12af   : > { %12630 = vst [vmem:[#allocation360_spill] sm:$0xff] %v9228_v6  ;;  %12631 = vst [vmem:[#allocation361_spill] sm:$0xff] %v9230_v14 }
0x12b2   : > { %v9232_v61 = vpop.permute.xlu0 %4077  ;;  %v9234_v13 = vpop.permute.xlu1 %4075 }
0x12b3   : > { %12632 = vst [vmem:[#allocation362_spill] sm:$0xff] %v9232_v61  ;;  %12633 = vst [vmem:[#allocation363_spill] sm:$0xff] %v9234_v13 }
0x12b6   : > { %v9236_v19 = vpop.permute.xlu0 %4081  ;;  %v9238_v4 = vpop.permute.xlu1 %4079 }
0x12b7   : > { %12634 = vst [vmem:[#allocation364_spill] sm:$0xff] %v9236_v19  ;;  %12635 = vst [vmem:[#allocation365_spill] sm:$0xff] %v9238_v4 }
0x12ba   : > { %v9240_v36 = vpop.permute.xlu0 %4085  ;;  %v9242_v2 = vpop.permute.xlu1 %4083 }
0x12bb   : > { %12636 = vst [vmem:[#allocation366_spill] sm:$0xff] %v9240_v36  ;;  %12637 = vst [vmem:[#allocation367_spill] sm:$0xff] %v9242_v2 }
0x12be   : > { %v9244_v55 = vpop.permute.xlu0 %4089  ;;  %v9246_v3 = vpop.permute.xlu1 %4087 }
0x12bf   : > { %12638 = vst [vmem:[#allocation368_spill] sm:$0xff] %v9244_v55  ;;  %12639 = vst [vmem:[#allocation369_spill] sm:$0xff] %v9246_v3 }
0x12c2   : > { %v4127_v53 = vpop.permute.xlu0 %4126  ;;  %v4125_v57 = vpop.permute.xlu1 %4124 }
0x12c3   : > { %v4129_v59 = vsel %vm4128_vm14, %v4125_v57, %v4127_v53  ;;  %v4133_v45 = vmul.f32 %v9032_v52, %v4125_v57  ;;  %v4135_v4 = vmul.f32 0.0, %v4127_v53  ;;  %v4136_v2 = vmul.f32 %v9036_v5, %v4125_v57 }
0x12c4   : > { %v4134_v60 = vmul.f32 %v8971_v1, %v4129_v59  ;;  %v4137_v3 = vmul.f32 %v8978_v63, %v4129_v59  ;;  %v4139_v58 = vmul.f32 %v9049_v54, %v4125_v57  ;;  %v4140_v53 = vmul.f32 %v9045_v56, %v4129_v59 }
0x12c5   : > { %vm4815_vm14 = vcmask 269312  }
0x12d3   : > { %v4147_v9 = vpop.permute.xlu1 %4146  ;;  %v4151_v61 = vpop.permute.xlu0 %4150 }
0x12d4   : > { %v4161_v7 = vmul.f32 %v4147_v9, %v4133_v45  ;;  %v4162_v19 = vmul.f32 %v4147_v9, %v4134_v60  ;;  %v4163_v55 = vmul.f32 %v4147_v9, %v4135_v4  ;;  %v4164_v36 = vmul.f32 %v4151_v61, %v4136_v2 }
0x12d5   : > { %v4165_v6 = vmul.f32 %v4151_v61, %v4137_v3  ;;  %v4166_v14 = vmul.f32 %v4151_v61, %v4135_v4 }
0x12d6   : > { %4185 = vrot.lane.b32.xlu0 %v4161_v7, %s7418_s17  ;;  %4187 = vrot.lane.b32.xlu1 %v4162_v19, %s7418_s17  ;;  %v4142_v19 = vmul.f32 %v9055_v47, %v4125_v57 }
0x12d7   : > { %v4155_v13 = vpop.permute.xlu1 %4154 }
0x12d8   : > { %v4167_v45 = vmul.f32 %v4155_v13, %v4139_v58  ;;  %v4168_v60 = vmul.f32 %v4155_v13, %v4140_v53  ;;  %v4169_v2 = vmul.f32 %v4155_v13, %v4135_v4  ;;  %v7420_v58 = vmov 35  }
0x12da   : > { %4189 = vrot.lane.b32.xlu0 %v4163_v55, %s7418_s17  ;;  %4191 = vrot.lane.b32.xlu1 %v4164_v36, %s7418_s17  ;;  %v4143_v36 = vmul.f32 %v9061_v11, %v4129_v59 }
0x12db   : > { %v4159_v7 = vpop.permute.xlu1 %4158 }
0x12dc   : > { %v4170_v9 = vmul.f32 %v4159_v7, %v4142_v19  ;;  %v4171_v61 = vmul.f32 %v4159_v7, %v4143_v36  ;;  %v4172_v55 = vmul.f32 %v4159_v7, %v4135_v4 }
0x12de   : > { %4193 = vrot.lane.b32.xlu0 %v4165_v6, %s7418_s17  ;;  %4195 = vrot.lane.b32.xlu1 %v4166_v14, %s7418_s17 }
0x12e2   : > { %4197 = vrot.lane.b32.xlu0 %v4167_v45, %s7418_s17  ;;  %4199 = vrot.lane.b32.xlu1 %v4168_v60, %s7418_s17 }
0x12e6   : > { %4201 = vrot.lane.b32.xlu0 %v4169_v2, %s7418_s17  ;;  %4203 = vrot.lane.b32.xlu1 %v4170_v9, %s7418_s17 }
0x12ea   : > { %4205 = vrot.lane.b32.xlu0 %v4171_v61, %s7418_s17  ;;  %4207 = vrot.lane.b32.xlu1 %v4172_v55, %s7418_s17  ;;  %s7438_s17 = smov 43  }
0x12ee   : > { %4242 = vrot.lane.b32.xlu0 %v7892_v49, %s7419_s18  ;;  %4244 = vrot.lane.b32.xlu1 %v7895_v50, %s7419_s18  ;;  %s7439_s18 = smov 35  }
0x12f2   : > { %4264 = vperm.xlu0 %7194, %v8935_v62   ;;  %4268 = vperm.xlu1 %7195, %v8929_v35  }
0x12f6   : > { %4276 = vperm.xlu0 %7194, %v8942_v44   ;;  %4272 = vperm.xlu1 %7195, %v9003_v0  }
0x12fa   : > { %7197 = vset.pattern.permute.xlu0 %v7420_v58  ;;  %7196 = vset.pattern.permute.xlu1 %v7420_v58 }
0x1348   : > { %v9262_v6 = vpop.permute.xlu0 %4185  ;;  %v9264_v14 = vpop.permute.xlu1 %4187 }
0x1349   : > { %12640 = vst [vmem:[#allocation370_spill] sm:$0xff] %v9262_v6  ;;  %12641 = vst [vmem:[#allocation371_spill] sm:$0xff] %v9264_v14 }
0x134c   : > { %v9266_v13 = vpop.permute.xlu0 %4189  ;;  %v9268_v4 = vpop.permute.xlu1 %4191 }
0x134d   : > { %12642 = vst [vmem:[#allocation372_spill] sm:$0xff] %v9266_v13  ;;  %12643 = vst [vmem:[#allocation373_spill] sm:$0xff] %v9268_v4 }
0x1350   : > { %v9270_v3 = vpop.permute.xlu0 %4193  ;;  %v9272_v57 = vpop.permute.xlu1 %4195 }
0x1351   : > { %12644 = vst [vmem:[#allocation374_spill] sm:$0xff] %v9270_v3  ;;  %12645 = vst [vmem:[#allocation375_spill] sm:$0xff] %v9272_v57 }
0x1354   : > { %v9274_v59 = vpop.permute.xlu0 %4197  ;;  %v9276_v53 = vpop.permute.xlu1 %4199 }
0x1355   : > { %12646 = vst [vmem:[#allocation376_spill] sm:$0xff] %v9274_v59  ;;  %12647 = vst [vmem:[#allocation377_spill] sm:$0xff] %v9276_v53 }
0x1358   : > { %v9278_v45 = vpop.permute.xlu0 %4201  ;;  %v9280_v60 = vpop.permute.xlu1 %4203 }
0x1359   : > { %12648 = vst [vmem:[#allocation378_spill] sm:$0xff] %v9278_v45  ;;  %12649 = vst [vmem:[#allocation379_spill] sm:$0xff] %v9280_v60 }
0x135c   : > { %v9282_v7 = vpop.permute.xlu0 %4205  ;;  %v9284_v19 = vpop.permute.xlu1 %4207 }
0x135d   : > { %12650 = vst [vmem:[#allocation380_spill] sm:$0xff] %v9282_v7  ;;  %12651 = vst [vmem:[#allocation381_spill] sm:$0xff] %v9284_v19 }
0x1360   : > { %v4243_v2 = vpop.permute.xlu0 %4242  ;;  %v4245_v9 = vpop.permute.xlu1 %4244 }
0x1361   : > { %v4247_v36 = vsel %vm4246_vm15, %v4243_v2, %v4245_v9  ;;  %v4251_v55 = vmul.f32 %v9032_v52, %v4243_v2  ;;  %v4253_v4 = vmul.f32 0.0, %v4245_v9  ;;  %v4254_v45 = vmul.f32 %v9036_v5, %v4243_v2 }
0x1362   : > { %v4252_v61 = vmul.f32 %v8971_v1, %v4247_v36  ;;  %v4255_v7 = vmul.f32 %v8978_v63, %v4247_v36  ;;  %v4258_v14 = vmul.f32 %v9045_v56, %v4247_v36  ;;  %vm4933_vm15 = vcmask 277504  }
0x1371   : > { %v4265_v58 = vpop.permute.xlu0 %4264  ;;  %v4269_v53 = vpop.permute.xlu1 %4268 }
0x1372   : > { %v4279_v59 = vmul.f32 %v4265_v58, %v4251_v55  ;;  %v4280_v57 = vmul.f32 %v4265_v58, %v4252_v61  ;;  %v4281_v60 = vmul.f32 %v4265_v58, %v4253_v4  ;;  %v4282_v19 = vmul.f32 %v4269_v53, %v4254_v45 }
0x1373   : > { %v4283_v3 = vmul.f32 %v4269_v53, %v4255_v7  ;;  %v4284_v13 = vmul.f32 %v4269_v53, %v4253_v4  ;;  %v4257_v61 = vmul.f32 %v9049_v54, %v4243_v2 }
0x1374   : > { %4303 = vrot.lane.b32.xlu1 %v4279_v59, %s7421_s27  ;;  %4305 = vrot.lane.b32.xlu0 %v4280_v57, %s7421_s27  ;;  %v4260_v57 = vmul.f32 %v9055_v47, %v4243_v2 }
0x1375   : > { %v4273_v6 = vpop.permute.xlu1 %4272  ;;  %v4277_v51 = vpop.permute.xlu0 %4276 }
0x1376   : > { %v4285_v9 = vmul.f32 %v4273_v6, %v4257_v61  ;;  %v4286_v55 = vmul.f32 %v4273_v6, %v4258_v14  ;;  %v4288_v59 = vmul.f32 %v4277_v51, %v4260_v57  ;;  %v4287_v45 = vmul.f32 %v4273_v6, %v4253_v4 }
0x1377   : > { %v4290_v7 = vmul.f32 %v4277_v51, %v4253_v4  ;;  %v7423_v6 = vmov 36  }
0x1378   : > { %4307 = vrot.lane.b32.xlu1 %v4281_v60, %s7421_s27  ;;  %4309 = vrot.lane.b32.xlu0 %v4282_v19, %s7421_s27  ;;  %v4261_v60 = vmul.f32 %v9061_v11, %v4247_v36 }
0x137a   : > { %v4289_v53 = vmul.f32 %v4277_v51, %v4261_v60 }
0x137c   : > { %4311 = vrot.lane.b32.xlu1 %v4283_v3, %s7421_s27  ;;  %4313 = vrot.lane.b32.xlu0 %v4284_v13, %s7421_s27 }
0x1380   : > { %4317 = vrot.lane.b32.xlu0 %v4286_v55, %s7421_s27  ;;  %4315 = vrot.lane.b32.xlu1 %v4285_v9, %s7421_s27 }
0x1384   : > { %4321 = vrot.lane.b32.xlu0 %v4288_v59, %s7421_s27  ;;  %4319 = vrot.lane.b32.xlu1 %v4287_v45, %s7421_s27 }
0x1388   : > { %4325 = vrot.lane.b32.xlu0 %v4290_v7, %s7421_s27  ;;  %4323 = vrot.lane.b32.xlu1 %v4289_v53, %s7421_s27  ;;  %s7441_s27 = smov 42  }
0x138c   : > { %4362 = vrot.lane.b32.xlu0 %v7570_v10, %s7422_s11  ;;  %4360 = vrot.lane.b32.xlu1 %v7554_v8, %s7422_s11 }
0x1390   : > { %4386 = vperm.xlu0 %7197, %v8929_v35   ;;  %4382 = vperm.xlu1 %7196, %v8935_v62  }
0x1394   : > { %4390 = vperm.xlu1 %7196, %v9003_v0   ;;  %7198 = vset.pattern.permute.xlu0 %v7423_v6 }
0x1398   : > { %4394 = vperm.xlu1 %7196, %v8942_v44  }
0x139c   : > { %7199 = vset.pattern.permute.xlu1 %v7423_v6 }
0x13e6   : > { %v9302_v51 = vpop.permute.xlu0 %4305  ;;  %v9304_v14 = vpop.permute.xlu1 %4303 }
0x13e7   : > { %12652 = vst [vmem:[#allocation382_spill] sm:$0xff] %v9302_v51  ;;  %12653 = vst [vmem:[#allocation383_spill] sm:$0xff] %v9304_v14 }
0x13ea   : > { %v9306_v13 = vpop.permute.xlu0 %4309  ;;  %v9308_v4 = vpop.permute.xlu1 %4307 }
0x13eb   : > { %12654 = vst [vmem:[#allocation384_spill] sm:$0xff] %v9306_v13  ;;  %12655 = vst [vmem:[#allocation385_spill] sm:$0xff] %v9308_v4 }
0x13ee   : > { %v9310_v3 = vpop.permute.xlu0 %4313  ;;  %v9312_v35 = vpop.permute.xlu1 %4311 }
0x13ef   : > { %12656 = vst [vmem:[#allocation386_spill] sm:$0xff] %v9310_v3  ;;  %12657 = vst [vmem:[#allocation387_spill] sm:$0xff] %v9312_v35 }
0x13f2   : > { %v9314_v62 = vpop.permute.xlu0 %4317  ;;  %v9316_v19 = vpop.permute.xlu1 %4315 }
0x13f3   : > { %12658 = vst [vmem:[#allocation388_spill] sm:$0xff] %v9314_v62  ;;  %12659 = vst [vmem:[#allocation389_spill] sm:$0xff] %v9316_v19 }
0x13f6   : > { %v9318_v44 = vpop.permute.xlu0 %4321  ;;  %v9320_v2 = vpop.permute.xlu1 %4319 }
0x13f7   : > { %12660 = vst [vmem:[#allocation390_spill] sm:$0xff] %v9318_v44  ;;  %12661 = vst [vmem:[#allocation391_spill] sm:$0xff] %v9320_v2 }
0x13fa   : > { %v9322_v36 = vpop.permute.xlu0 %4325  ;;  %v9324_v58 = vpop.permute.xlu1 %4323 }
0x13fb   : > { %12662 = vst [vmem:[#allocation392_spill] sm:$0xff] %v9322_v36  ;;  %12663 = vst [vmem:[#allocation393_spill] sm:$0xff] %v9324_v58 }
0x13fe   : > { %v4363_v61 = vpop.permute.xlu0 %4362  ;;  %v4361_v9 = vpop.permute.xlu1 %4360 }
0x13ff   : > { %v4365_v55 = vsel %vm12229_vm2, %v4361_v9, %v4363_v61  ;;  %v4369_v57 = vmul.f32 %v9032_v52, %v4361_v9  ;;  %v4371_v7 = vmul.f32 0.0, %v4363_v61  ;;  %v4372_v2 = vmul.f32 %v9036_v5, %v4361_v9 }
0x1400   : > { %v4370_v59 = vmul.f32 %v8971_v1, %v4365_v55  ;;  %v4373_v44 = vmul.f32 %v8978_v63, %v4365_v55  ;;  %v4375_v1 = vmul.f32 %v9049_v54, %v4361_v9  ;;  %v4376_v61 = vmul.f32 %v9045_v56, %v4365_v55 }
0x1401   : > { %vm357_vm2 = vcmask 629760  }
0x140f   : > { %v4383_v45 = vpop.permute.xlu1 %4382  ;;  %v4387_v6 = vpop.permute.xlu0 %4386 }
0x1410   : > { %v4397_v60 = vmul.f32 %v4383_v45, %v4369_v57  ;;  %v4398_v53 = vmul.f32 %v4383_v45, %v4370_v59  ;;  %v4399_v36 = vmul.f32 %v4383_v45, %v4371_v7  ;;  %v4400_v58 = vmul.f32 %v4387_v6, %v4372_v2 }
0x1411   : > { %v4401_v19 = vmul.f32 %v4387_v6, %v4373_v44  ;;  %v4402_v3 = vmul.f32 %v4387_v6, %v4371_v7  ;;  %v4378_v45 = vmul.f32 %v9055_v47, %v4361_v9  ;;  %v7426_v9 = vmov 37  }
0x1412   : > { %4421 = vrot.lane.b32.xlu0 %v4397_v60, %s7424_s13  ;;  %4423 = vrot.lane.b32.xlu1 %v4398_v53, %s7424_s13 }
0x1413   : > { %v4391_v62 = vpop.permute.xlu1 %4390 }
0x1414   : > { %v4403_v57 = vmul.f32 %v4391_v62, %v4375_v1  ;;  %v4404_v59 = vmul.f32 %v4391_v62, %v4376_v61  ;;  %v4405_v2 = vmul.f32 %v4391_v62, %v4371_v7  ;;  %v9348_v62 = vld [vmem:[%s11901_s2 + $0x8] sm:$0xff] }
0x1416   : > { %4425 = vrot.lane.b32.xlu0 %v4399_v36, %s7424_s13  ;;  %4427 = vrot.lane.b32.xlu1 %v4400_v58, %s7424_s13  ;;  %v4379_v36 = vmul.f32 %v9061_v11, %v4365_v55 }
0x1417   : > { %v4395_v60 = vpop.permute.xlu1 %4394 }
0x1418   : > { %v4406_v63 = vmul.f32 %v4395_v60, %v4378_v45  ;;  %v4407_v44 = vmul.f32 %v4395_v60, %v4379_v36  ;;  %v4408_v58 = vmul.f32 %v4395_v60, %v4371_v7 }
0x141a   : > { %4429 = vrot.lane.b32.xlu0 %v4401_v19, %s7424_s13  ;;  %4431 = vrot.lane.b32.xlu1 %v4402_v3, %s7424_s13  ;;  %v9342_v3 = vld [vmem:[%s11901_s2] sm:$0xff]  ;;  %v9354_v19 = vld [vmem:[%s11901_s2 + $0x18] sm:$0xff] }
0x141e   : > { %4433 = vrot.lane.b32.xlu0 %v4403_v57, %s7424_s13  ;;  %4435 = vrot.lane.b32.xlu1 %v4404_v59, %s7424_s13 }
0x1422   : > { %4437 = vrot.lane.b32.xlu0 %v4405_v2, %s7424_s13  ;;  %4439 = vrot.lane.b32.xlu1 %v4406_v63, %s7424_s13 }
0x1426   : > { %4441 = vrot.lane.b32.xlu0 %v4407_v44, %s7424_s13  ;;  %4443 = vrot.lane.b32.xlu1 %v4408_v58, %s7424_s13  ;;  %v9384_v58 = vld [vmem:[%s7565_s25 + $0x8] sm:$0xff]  ;;  %s7443_s13 = smov 32  }
0x142a   : > { %4478 = vrot.lane.b32.xlu0 %v7596_v16, %s7425_s14  ;;  %4480 = vrot.lane.b32.xlu1 %v7592_v15, %s7425_s14 }
0x142e   : > { %4500 = vperm.xlu0 %7198, %v9342_v3   ;;  %4504 = vperm.xlu1 %7199, %v9348_v62  }
0x1432   : > { %4512 = vperm.xlu0 %7198, %v9354_v19   ;;  %4508 = vperm.xlu1 %7199, %v9003_v0  }
0x1436   : > { %7201 = vset.pattern.permute.xlu0 %v7426_v9  ;;  %7200 = vset.pattern.permute.xlu1 %v7426_v9 }
0x1484   : > { %v9358_v55 = vpop.permute.xlu0 %4421  ;;  %v9360_v53 = vpop.permute.xlu1 %4423 }
0x1485   : > { %12664 = vst [vmem:[#allocation394_spill] sm:$0xff] %v9358_v55  ;;  %12665 = vst [vmem:[#allocation395_spill] sm:$0xff] %v9360_v53 }
0x1488   : > { %v9362_v7 = vpop.permute.xlu0 %4425  ;;  %v9364_v6 = vpop.permute.xlu1 %4427 }
0x1489   : > { %12666 = vst [vmem:[#allocation396_spill] sm:$0xff] %v9362_v7  ;;  %12667 = vst [vmem:[#allocation397_spill] sm:$0xff] %v9364_v6  ;;  %v9392_v7 = vld [vmem:[%s7565_s25 + $0x18] sm:$0xff] }
0x148c   : > { %v9366_v1 = vpop.permute.xlu0 %4429  ;;  %v9368_v61 = vpop.permute.xlu1 %4431 }
0x148d   : > { %12668 = vst [vmem:[#allocation398_spill] sm:$0xff] %v9366_v1  ;;  %12669 = vst [vmem:[#allocation399_spill] sm:$0xff] %v9368_v61 }
0x1490   : > { %v9370_v57 = vpop.permute.xlu0 %4433  ;;  %v9372_v59 = vpop.permute.xlu1 %4435 }
0x1491   : > { %12670 = vst [vmem:[#allocation400_spill] sm:$0xff] %v9370_v57  ;;  %12671 = vst [vmem:[#allocation401_spill] sm:$0xff] %v9372_v59 }
0x1494   : > { %v9374_v0 = vpop.permute.xlu0 %4437  ;;  %v9376_v60 = vpop.permute.xlu1 %4439 }
0x1495   : > { %12672 = vst [vmem:[#allocation402_spill] sm:$0xff] %v9374_v0  ;;  %12673 = vst [vmem:[#allocation403_spill] sm:$0xff] %v9376_v60 }
0x1498   : > { %v9378_v45 = vpop.permute.xlu0 %4441  ;;  %v9380_v2 = vpop.permute.xlu1 %4443 }
0x1499   : > { %12674 = vst [vmem:[#allocation404_spill] sm:$0xff] %v9378_v45  ;;  %12675 = vst [vmem:[#allocation405_spill] sm:$0xff] %v9380_v2 }
0x149c   : > { %v4479_v63 = vpop.permute.xlu0 %4478  ;;  %v4481_v36 = vpop.permute.xlu1 %4480 }
0x149d   : > { %v4483_v44 = vsel %vm4482_vm9, %v4479_v63, %v4481_v36  ;;  %v4487_v57 = vmul.f32 %v9032_v52, %v4479_v63  ;;  %v4489_v6 = vmul.f32 0.0, %v4481_v36  ;;  %v4490_v45 = vmul.f32 %v9036_v5, %v4479_v63 }
0x149e   : > { %v4488_v9 = vmul.f32 %v9384_v58, %v4483_v44  ;;  %v4491_v55 = vmul.f32 %v9392_v7, %v4483_v44  ;;  %v4494_v5 = vmul.f32 %v9045_v56, %v4483_v44 }
0x14ad   : > { %v4501_v59 = vpop.permute.xlu0 %4500  ;;  %v4505_v60 = vpop.permute.xlu1 %4504 }
0x14ae   : > { %v4515_v0 = vmul.f32 %v4501_v59, %v4487_v57  ;;  %v4516_v61 = vmul.f32 %v4501_v59, %v4488_v9  ;;  %v4517_v2 = vmul.f32 %v4501_v59, %v4489_v6  ;;  %v4518_v1 = vmul.f32 %v4505_v60, %v4490_v45 }
0x14af   : > { %v4519_v52 = vmul.f32 %v4505_v60, %v4491_v55  ;;  %v4520_v57 = vmul.f32 %v4505_v60, %v4489_v6  ;;  %v4493_v9 = vmul.f32 %v9049_v54, %v4479_v63  ;;  %v4496_v45 = vmul.f32 %v9055_v47, %v4479_v63 }
0x14b0   : > { %4539 = vrot.lane.b32.xlu1 %v4515_v0, %s7427_s16  ;;  %4541 = vrot.lane.b32.xlu0 %v4516_v61, %s7427_s16  ;;  %v4497_v60 = vmul.f32 %v9061_v11, %v4483_v44  ;;  %v9418_v11 = vld [vmem:[%s11901_s2 + $0x10] sm:$0xff]  ;;  %v7429_v47 = vmov 38  }
0x14b1   : > { %v4509_v36 = vpop.permute.xlu1 %4508  ;;  %v4513_v0 = vpop.permute.xlu0 %4512 }
0x14b2   : > { %v4521_v61 = vmul.f32 %v4509_v36, %v4493_v9  ;;  %v4522_v59 = vmul.f32 %v4509_v36, %v4494_v5  ;;  %v4524_v55 = vmul.f32 %v4513_v0, %v4496_v45  ;;  %v4525_v56 = vmul.f32 %v4513_v0, %v4497_v60  ;;  %v9448_v60 = vld [vmem:[%s7565_s25] sm:$0xff] }
0x14b3   : > { %v4526_v54 = vmul.f32 %v4513_v0, %v4489_v6 }
0x14b4   : > { %4543 = vrot.lane.b32.xlu1 %v4517_v2, %s7427_s16  ;;  %4545 = vrot.lane.b32.xlu0 %v4518_v1, %s7427_s16  ;;  %v4523_v1 = vmul.f32 %v4509_v36, %v4489_v6 }
0x14b8   : > { %4547 = vrot.lane.b32.xlu1 %v4519_v52, %s7427_s16  ;;  %4549 = vrot.lane.b32.xlu0 %v4520_v57, %s7427_s16 }
0x14bc   : > { %4553 = vrot.lane.b32.xlu0 %v4522_v59, %s7427_s16  ;;  %4551 = vrot.lane.b32.xlu1 %v4521_v61, %s7427_s16 }
0x14c0   : > { %4557 = vrot.lane.b32.xlu0 %v4524_v55, %s7427_s16  ;;  %4555 = vrot.lane.b32.xlu1 %v4523_v1, %s7427_s16 }
0x14c4   : > { %4561 = vrot.lane.b32.xlu0 %v4526_v54, %s7427_s16  ;;  %4559 = vrot.lane.b32.xlu1 %v4525_v56, %s7427_s16 }
0x14c8   : > { %4598 = vrot.lane.b32.xlu0 %v7621_v21, %s7428_s20  ;;  %4596 = vrot.lane.b32.xlu1 %v7607_v18, %s7428_s20 }
0x14cc   : > { %4622 = vperm.xlu0 %7201, %v9348_v62   ;;  %4618 = vperm.xlu1 %7200, %v9342_v3  }
0x14d0   : > { %4626 = vperm.xlu1 %7200, %v9418_v11   ;;  %7202 = vset.pattern.permute.xlu0 %v7429_v47 }
0x14d4   : > { %4630 = vperm.xlu1 %7200, %v9354_v19  }
0x14d8   : > { %7203 = vset.pattern.permute.xlu1 %v7429_v47 }
0x1522   : > { %v9422_v6 = vpop.permute.xlu0 %4541  ;;  %v9424_v2 = vpop.permute.xlu1 %4539 }
0x1523   : > { %12676 = vst [vmem:[#allocation406_spill] sm:$0xff] %v9422_v6  ;;  %12677 = vst [vmem:[#allocation407_spill] sm:$0xff] %v9424_v2 }
0x1526   : > { %v9426_v63 = vpop.permute.xlu0 %4545  ;;  %v9428_v44 = vpop.permute.xlu1 %4543 }
0x1527   : > { %12678 = vst [vmem:[#allocation408_spill] sm:$0xff] %v9426_v63  ;;  %12679 = vst [vmem:[#allocation409_spill] sm:$0xff] %v9428_v44 }
0x152a   : > { %v9430_v52 = vpop.permute.xlu0 %4549  ;;  %v9432_v57 = vpop.permute.xlu1 %4547 }
0x152b   : > { %12680 = vst [vmem:[#allocation410_spill] sm:$0xff] %v9430_v52  ;;  %12681 = vst [vmem:[#allocation411_spill] sm:$0xff] %v9432_v57 }
0x152e   : > { %v9434_v36 = vpop.permute.xlu0 %4553  ;;  %v9436_v5 = vpop.permute.xlu1 %4551 }
0x152f   : > { %12682 = vst [vmem:[#allocation412_spill] sm:$0xff] %v9434_v36  ;;  %12683 = vst [vmem:[#allocation413_spill] sm:$0xff] %v9436_v5 }
0x1532   : > { %v9438_v9 = vpop.permute.xlu0 %4557  ;;  %v9440_v61 = vpop.permute.xlu1 %4555 }
0x1533   : > { %12684 = vst [vmem:[#allocation414_spill] sm:$0xff] %v9438_v9  ;;  %12685 = vst [vmem:[#allocation415_spill] sm:$0xff] %v9440_v61  ;;  %v9454_v9 = vld [vmem:[%s7565_s25 + $0x10] sm:$0xff] }
0x1536   : > { %v9442_v59 = vpop.permute.xlu0 %4561  ;;  %v9444_v0 = vpop.permute.xlu1 %4559 }
0x1537   : > { %12686 = vst [vmem:[#allocation416_spill] sm:$0xff] %v9442_v59  ;;  %12687 = vst [vmem:[#allocation417_spill] sm:$0xff] %v9444_v0 }
0x153a   : > { %v4599_v45 = vpop.permute.xlu0 %4598  ;;  %v4597_v55 = vpop.permute.xlu1 %4596 }
0x153b   : > { %v4601_v1 = vsel %vm12230_vm10, %v4597_v55, %v4599_v45  ;;  %v4605_v56 = vmul.f32 %v9448_v60, %v4597_v55  ;;  %v4607_v61 = vmul.f32 0.0, %v4599_v45  ;;  %v4608_v0 = vmul.f32 %v9454_v9, %v4597_v55 }
0x153c   : > { %v4606_v54 = vmul.f32 %v9384_v58, %v4601_v1  ;;  %v4609_v57 = vmul.f32 %v9392_v7, %v4601_v1  ;;  %vm4563_vm10 = vcmask 384000  }
0x154b   : > { %v4619_v47 = vpop.permute.xlu1 %4618  ;;  %v4623_v59 = vpop.permute.xlu0 %4622 }
0x154c   : > { %v4633_v5 = vmul.f32 %v4619_v47, %v4605_v56  ;;  %v4634_v36 = vmul.f32 %v4619_v47, %v4606_v54  ;;  %v4635_v52 = vmul.f32 %v4619_v47, %v4607_v61  ;;  %v4636_v63 = vmul.f32 %v4623_v59, %v4608_v0 }
0x154d   : > { %v4637_v45 = vmul.f32 %v4623_v59, %v4609_v57  ;;  %v4638_v54 = vmul.f32 %v4623_v59, %v4607_v61 }
0x154e   : > { %4657 = vrot.lane.b32.xlu0 %v4633_v5, %s7430_s24  ;;  %4659 = vrot.lane.b32.xlu1 %v4634_v36, %s7430_s24  ;;  %v9462_v5 = vld [vmem:[%s7565_s25 + $0x20] sm:$0xff]  ;;  %v9467_v36 = vld [vmem:[%s7565_s25 + $0x28] sm:$0xff] }
0x154f   : > { %v4627_v56 = vpop.permute.xlu1 %4626  ;;  %v4611_v44 = vmul.f32 %v9462_v5, %v4597_v55  ;;  %v4612_v0 = vmul.f32 %v9467_v36, %v4601_v1 }
0x1550   : > { %v4641_v59 = vmul.f32 %v4627_v56, %v4607_v61 }
0x1551   : > { %v4639_v47 = vmul.f32 %v4627_v56, %v4611_v44 }
0x1552   : > { %4661 = vrot.lane.b32.xlu0 %v4635_v52, %s7430_s24  ;;  %4663 = vrot.lane.b32.xlu1 %v4636_v63, %s7430_s24  ;;  %v4640_v52 = vmul.f32 %v4627_v56, %v4612_v0  ;;  %v9473_v63 = vld [vmem:[%s7565_s25 + $0x30] sm:$0xff] }
0x1553   : > { %v4631_v2 = vpop.permute.xlu1 %4630  ;;  %v4614_v57 = vmul.f32 %v9473_v63, %v4597_v55  ;;  %v7431_v55 = vmov 39  }
0x1555   : > { %v4642_v6 = vmul.f32 %v4631_v2, %v4614_v57 }
0x1556   : > { %4665 = vrot.lane.b32.xlu0 %v4637_v45, %s7430_s24  ;;  %4667 = vrot.lane.b32.xlu1 %v4638_v54, %s7430_s24  ;;  %v9478_v45 = vld [vmem:[%s7565_s25 + $0x38] sm:$0xff]  ;;  %v4644_v54 = vmul.f32 %v4631_v2, %v4607_v61 }
0x1557   : > { %v4615_v53 = vmul.f32 %v9478_v45, %v4601_v1 }
0x1559   : > { %v4643_v44 = vmul.f32 %v4631_v2, %v4615_v53 }
0x155a   : > { %4669 = vrot.lane.b32.xlu0 %v4639_v47, %s7430_s24  ;;  %4671 = vrot.lane.b32.xlu1 %v4640_v52, %s7430_s24 }
0x155e   : > { %4673 = vrot.lane.b32.xlu0 %v4641_v59, %s7430_s24  ;;  %4675 = vrot.lane.b32.xlu1 %v4642_v6, %s7430_s24 }
0x1562   : > { %4677 = vrot.lane.b32.xlu0 %v4643_v44, %s7430_s24  ;;  %4679 = vrot.lane.b32.xlu1 %v4644_v54, %s7430_s24 }
0x1566   : > { %4715 = vperm.xlu0 %7202, %v9342_v3   ;;  %4719 = vperm.xlu1 %7203, %v9348_v62  }
0x156a   : > { %4727 = vperm.xlu0 %7202, %v9354_v19   ;;  %4723 = vperm.xlu1 %7203, %v9418_v11  }
0x156e   : > { %7205 = vset.pattern.permute.xlu0 %v7431_v55  ;;  %7204 = vset.pattern.permute.xlu1 %v7431_v55 }
0x15c0   : > { %v9489_v1 = vpop.permute.xlu0 %4657  ;;  %v9491_v6 = vpop.permute.xlu1 %4659 }
0x15c1   : > { %12688 = vst [vmem:[#allocation418_spill] sm:$0xff] %v9489_v1  ;;  %12689 = vst [vmem:[#allocation419_spill] sm:$0xff] %v9491_v6 }
0x15c4   : > { %v9493_v53 = vpop.permute.xlu0 %4661  ;;  %v9495_v2 = vpop.permute.xlu1 %4663 }
0x15c5   : > { %12690 = vst [vmem:[#allocation420_spill] sm:$0xff] %v9493_v53  ;;  %12691 = vst [vmem:[#allocation421_spill] sm:$0xff] %v9495_v2 }
0x15c8   : > { %v9497_v61 = vpop.permute.xlu0 %4665  ;;  %v9499_v56 = vpop.permute.xlu1 %4667 }
0x15c9   : > { %12692 = vst [vmem:[#allocation422_spill] sm:$0xff] %v9497_v61  ;;  %12693 = vst [vmem:[#allocation423_spill] sm:$0xff] %v9499_v56 }
0x15cc   : > { %v9501_v0 = vpop.permute.xlu0 %4669  ;;  %v9503_v47 = vpop.permute.xlu1 %4671 }
0x15cd   : > { %12694 = vst [vmem:[#allocation424_spill] sm:$0xff] %v9501_v0  ;;  %12695 = vst [vmem:[#allocation425_spill] sm:$0xff] %v9503_v47 }
0x15d0   : > { %v9505_v52 = vpop.permute.xlu0 %4673  ;;  %v9507_v57 = vpop.permute.xlu1 %4675 }
0x15d1   : > { %12696 = vst [vmem:[#allocation426_spill] sm:$0xff] %v9505_v52  ;;  %12697 = vst [vmem:[#allocation427_spill] sm:$0xff] %v9507_v57 }
0x15d4   : > { %v9509_v59 = vpop.permute.xlu0 %4677  ;;  %v9511_v44 = vpop.permute.xlu1 %4679 }
0x15d5   : > { %12698 = vst [vmem:[#allocation428_spill] sm:$0xff] %v9509_v59  ;;  %12699 = vst [vmem:[#allocation429_spill] sm:$0xff] %v9511_v44 }
0x15e5   : > { %v4716_v54 = vpop.permute.xlu0 %4715  ;;  %v4720_v61 = vpop.permute.xlu1 %4719 }
0x15e6   : > { %v4730_v55 = vmul.f32 %v9448_v60, %v4716_v54  ;;  %v4731_v2 = vmul.f32 %v9384_v58, %v4716_v54  ;;  %v4733_v0 = vmul.f32 %v9454_v9, %v4720_v61  ;;  %v4732_v52 = vmul.f32 0.0, %v4716_v54 }
0x15e7   : > { %v4734_v57 = vmul.f32 %v9392_v7, %v4720_v61  ;;  %v4735_v47 = vmul.f32 0.0, %v4720_v61 }
0x15e8   : > { %4756 = vrot.lane.b32.xlu0 %v4731_v2, %s7432_s19  ;;  %4754 = vrot.lane.b32.xlu1 %v4730_v55, %s7432_s19 }
0x15e9   : > { %v4724_v44 = vpop.permute.xlu1 %4723  ;;  %v4728_v55 = vpop.permute.xlu0 %4727 }
0x15ea   : > { %v4736_v59 = vmul.f32 %v9462_v5, %v4724_v44  ;;  %v4737_v2 = vmul.f32 %v9467_v36, %v4724_v44  ;;  %v4739_v61 = vmul.f32 %v9473_v63, %v4728_v55  ;;  %v4738_v54 = vmul.f32 0.0, %v4724_v44 }
0x15ec   : > { %4758 = vrot.lane.b32.xlu1 %v4732_v52, %s7432_s19  ;;  %4760 = vrot.lane.b32.xlu0 %v4733_v0, %s7432_s19  ;;  %v4740_v0 = vmul.f32 %v9478_v45, %v4728_v55  ;;  %v4741_v52 = vmul.f32 0.0, %v4728_v55 }
0x15f0   : > { %4762 = vrot.lane.b32.xlu1 %v4734_v57, %s7432_s19  ;;  %4764 = vrot.lane.b32.xlu0 %v4735_v47, %s7432_s19  ;;  %v7434_v47 = vmov 40  }
0x15f4   : > { %4768 = vrot.lane.b32.xlu0 %v4737_v2, %s7432_s19  ;;  %4766 = vrot.lane.b32.xlu1 %v4736_v59, %s7432_s19 }
0x15f8   : > { %4772 = vrot.lane.b32.xlu0 %v4739_v61, %s7432_s19  ;;  %4770 = vrot.lane.b32.xlu1 %v4738_v54, %s7432_s19 }
0x15fc   : > { %4776 = vrot.lane.b32.xlu0 %v4741_v52, %s7432_s19  ;;  %4774 = vrot.lane.b32.xlu1 %v4740_v0, %s7432_s19 }
0x1600   : > { %4813 = vrot.lane.b32.xlu0 %v7642_v26, %s7433_s7  ;;  %4811 = vrot.lane.b32.xlu1 %v7631_v24, %s7433_s7 }
0x1604   : > { %4837 = vperm.xlu0 %7205, %v9348_v62   ;;  %4833 = vperm.xlu1 %7204, %v9342_v3  }
0x1608   : > { %4841 = vperm.xlu1 %7204, %v9418_v11   ;;  %7206 = vset.pattern.permute.xlu0 %v7434_v47 }
0x160c   : > { %4845 = vperm.xlu1 %7204, %v9354_v19  }
0x1610   : > { %7207 = vset.pattern.permute.xlu1 %v7434_v47 }
0x165a   : > { %v9539_v57 = vpop.permute.xlu0 %4756  ;;  %v9541_v59 = vpop.permute.xlu1 %4754 }
0x165b   : > { %12700 = vst [vmem:[#allocation430_spill] sm:$0xff] %v9539_v57  ;;  %12701 = vst [vmem:[#allocation431_spill] sm:$0xff] %v9541_v59 }
0x165e   : > { %v9543_v44 = vpop.permute.xlu0 %4760  ;;  %v9545_v2 = vpop.permute.xlu1 %4758 }
0x165f   : > { %12702 = vst [vmem:[#allocation432_spill] sm:$0xff] %v9543_v44  ;;  %12703 = vst [vmem:[#allocation433_spill] sm:$0xff] %v9545_v2 }
0x1662   : > { %v9547_v55 = vpop.permute.xlu0 %4764  ;;  %v9549_v61 = vpop.permute.xlu1 %4762 }
0x1663   : > { %12704 = vst [vmem:[#allocation434_spill] sm:$0xff] %v9547_v55  ;;  %12705 = vst [vmem:[#allocation435_spill] sm:$0xff] %v9549_v61 }
0x1666   : > { %v9551_v54 = vpop.permute.xlu0 %4768  ;;  %v9553_v0 = vpop.permute.xlu1 %4766 }
0x1667   : > { %12706 = vst [vmem:[#allocation436_spill] sm:$0xff] %v9551_v54  ;;  %12707 = vst [vmem:[#allocation437_spill] sm:$0xff] %v9553_v0 }
0x166a   : > { %v9555_v52 = vpop.permute.xlu0 %4772  ;;  %v9557_v56 = vpop.permute.xlu1 %4770 }
0x166b   : > { %12708 = vst [vmem:[#allocation438_spill] sm:$0xff] %v9555_v52  ;;  %12709 = vst [vmem:[#allocation439_spill] sm:$0xff] %v9557_v56 }
0x166e   : > { %v9559_v47 = vpop.permute.xlu0 %4776  ;;  %v9561_v57 = vpop.permute.xlu1 %4774 }
0x166f   : > { %12710 = vst [vmem:[#allocation440_spill] sm:$0xff] %v9559_v47  ;;  %12711 = vst [vmem:[#allocation441_spill] sm:$0xff] %v9561_v57 }
0x1672   : > { %v4814_v59 = vpop.permute.xlu0 %4813  ;;  %v4812_v44 = vpop.permute.xlu1 %4811 }
0x1673   : > { %v4816_v2 = vsel %vm4815_vm14, %v4812_v44, %v4814_v59  ;;  %v4820_v55 = vmul.f32 %v9448_v60, %v4812_v44  ;;  %v4822_v0 = vmul.f32 0.0, %v4814_v59  ;;  %v4823_v56 = vmul.f32 %v9454_v9, %v4812_v44 }
0x1674   : > { %v4821_v61 = vmul.f32 %v9384_v58, %v4816_v2  ;;  %v4824_v52 = vmul.f32 %v9392_v7, %v4816_v2  ;;  %v4826_v14 = vmul.f32 %v9462_v5, %v4812_v44  ;;  %v4827_v59 = vmul.f32 %v9467_v36, %v4816_v2 }
0x1675   : > { %vm5051_vm14 = vcmask 285696  }
0x1683   : > { %v4834_v53 = vpop.permute.xlu1 %4833  ;;  %v4838_v6 = vpop.permute.xlu0 %4837 }
0x1684   : > { %v4848_v54 = vmul.f32 %v4834_v53, %v4820_v55  ;;  %v4849_v1 = vmul.f32 %v4834_v53, %v4821_v61  ;;  %v4850_v47 = vmul.f32 %v4834_v53, %v4822_v0  ;;  %v4851_v57 = vmul.f32 %v4838_v6, %v4823_v56 }
0x1685   : > { %v4852_v13 = vmul.f32 %v4838_v6, %v4824_v52  ;;  %v4853_v4 = vmul.f32 %v4838_v6, %v4822_v0 }
0x1686   : > { %4872 = vrot.lane.b32.xlu0 %v4848_v54, %s7435_s26  ;;  %4874 = vrot.lane.b32.xlu1 %v4849_v1, %s7435_s26  ;;  %v4829_v1 = vmul.f32 %v9473_v63, %v4812_v44 }
0x1687   : > { %v4842_v35 = vpop.permute.xlu1 %4841 }
0x1688   : > { %v4854_v55 = vmul.f32 %v4842_v35, %v4826_v14  ;;  %v4855_v61 = vmul.f32 %v4842_v35, %v4827_v59  ;;  %v4856_v53 = vmul.f32 %v4842_v35, %v4822_v0  ;;  %v7437_v14 = vmov 41  }
0x168a   : > { %4876 = vrot.lane.b32.xlu0 %v4850_v47, %s7435_s26  ;;  %4878 = vrot.lane.b32.xlu1 %v4851_v57, %s7435_s26  ;;  %v4830_v57 = vmul.f32 %v9478_v45, %v4816_v2 }
0x168b   : > { %v4846_v54 = vpop.permute.xlu1 %4845 }
0x168c   : > { %v4857_v56 = vmul.f32 %v4846_v54, %v4829_v1  ;;  %v4858_v6 = vmul.f32 %v4846_v54, %v4830_v57  ;;  %v4859_v52 = vmul.f32 %v4846_v54, %v4822_v0 }
0x168e   : > { %4880 = vrot.lane.b32.xlu0 %v4852_v13, %s7435_s26  ;;  %4882 = vrot.lane.b32.xlu1 %v4853_v4, %s7435_s26 }
0x1692   : > { %4884 = vrot.lane.b32.xlu0 %v4854_v55, %s7435_s26  ;;  %4886 = vrot.lane.b32.xlu1 %v4855_v61, %s7435_s26 }
0x1696   : > { %4888 = vrot.lane.b32.xlu0 %v4856_v53, %s7435_s26  ;;  %4890 = vrot.lane.b32.xlu1 %v4857_v56, %s7435_s26 }
0x169a   : > { %4892 = vrot.lane.b32.xlu0 %v4858_v6, %s7435_s26  ;;  %4894 = vrot.lane.b32.xlu1 %v4859_v52, %s7435_s26 }
0x169e   : > { %4929 = vrot.lane.b32.xlu0 %v7764_v17, %s7436_s12  ;;  %4931 = vrot.lane.b32.xlu1 %v7761_v12, %s7436_s12 }
0x16a2   : > { %4951 = vperm.xlu0 %7206, %v9342_v3   ;;  %4955 = vperm.xlu1 %7207, %v9348_v62  }
0x16a6   : > { %4963 = vperm.xlu0 %7206, %v9354_v19   ;;  %4959 = vperm.xlu1 %7207, %v9418_v11  }
0x16aa   : > { %7209 = vset.pattern.permute.xlu0 %v7437_v14  ;;  %7208 = vset.pattern.permute.xlu1 %v7437_v14 }
0x16f8   : > { %v9577_v13 = vpop.permute.xlu0 %4872  ;;  %v9579_v4 = vpop.permute.xlu1 %4874 }
0x16f9   : > { %12712 = vst [vmem:[#allocation442_spill] sm:$0xff] %v9577_v13  ;;  %12713 = vst [vmem:[#allocation443_spill] sm:$0xff] %v9579_v4 }
0x16fc   : > { %v9581_v35 = vpop.permute.xlu0 %4876  ;;  %v9583_v44 = vpop.permute.xlu1 %4878 }
0x16fd   : > { %12714 = vst [vmem:[#allocation444_spill] sm:$0xff] %v9581_v35  ;;  %12715 = vst [vmem:[#allocation445_spill] sm:$0xff] %v9583_v44 }
0x1700   : > { %v9585_v2 = vpop.permute.xlu0 %4880  ;;  %v9587_v0 = vpop.permute.xlu1 %4882 }
0x1701   : > { %12716 = vst [vmem:[#allocation446_spill] sm:$0xff] %v9585_v2  ;;  %12717 = vst [vmem:[#allocation447_spill] sm:$0xff] %v9587_v0 }
0x1704   : > { %v9589_v47 = vpop.permute.xlu0 %4884  ;;  %v9591_v59 = vpop.permute.xlu1 %4886 }
0x1705   : > { %12718 = vst [vmem:[#allocation448_spill] sm:$0xff] %v9589_v47  ;;  %12719 = vst [vmem:[#allocation449_spill] sm:$0xff] %v9591_v59 }
0x1708   : > { %v9593_v55 = vpop.permute.xlu0 %4888  ;;  %v9595_v61 = vpop.permute.xlu1 %4890 }
0x1709   : > { %12720 = vst [vmem:[#allocation450_spill] sm:$0xff] %v9593_v55  ;;  %12721 = vst [vmem:[#allocation451_spill] sm:$0xff] %v9595_v61 }
0x170c   : > { %v9597_v54 = vpop.permute.xlu0 %4892  ;;  %v9599_v1 = vpop.permute.xlu1 %4894 }
0x170d   : > { %12722 = vst [vmem:[#allocation452_spill] sm:$0xff] %v9597_v54  ;;  %12723 = vst [vmem:[#allocation453_spill] sm:$0xff] %v9599_v1 }
0x1710   : > { %v4930_v53 = vpop.permute.xlu0 %4929  ;;  %v4932_v56 = vpop.permute.xlu1 %4931 }
0x1711   : > { %v4934_v57 = vsel %vm4933_vm15, %v4930_v53, %v4932_v56  ;;  %v4938_v52 = vmul.f32 %v9448_v60, %v4930_v53  ;;  %v4940_v44 = vmul.f32 0.0, %v4932_v56  ;;  %v4941_v55 = vmul.f32 %v9454_v9, %v4930_v53 }
0x1712   : > { %v4939_v6 = vmul.f32 %v9384_v58, %v4934_v57  ;;  %v4942_v61 = vmul.f32 %v9392_v7, %v4934_v57  ;;  %v4945_v4 = vmul.f32 %v9467_v36, %v4934_v57  ;;  %vm4778_vm15 = vcmask 367616  }
0x1721   : > { %v4952_v14 = vpop.permute.xlu0 %4951  ;;  %v4956_v59 = vpop.permute.xlu1 %4955 }
0x1722   : > { %v4966_v47 = vmul.f32 %v4952_v14, %v4938_v52  ;;  %v4967_v0 = vmul.f32 %v4952_v14, %v4939_v6  ;;  %v4968_v54 = vmul.f32 %v4952_v14, %v4940_v44  ;;  %v4969_v1 = vmul.f32 %v4956_v59, %v4941_v55 }
0x1723   : > { %v4970_v2 = vmul.f32 %v4956_v59, %v4942_v61  ;;  %v4971_v35 = vmul.f32 %v4956_v59, %v4940_v44  ;;  %v4944_v6 = vmul.f32 %v9462_v5, %v4930_v53 }
0x1724   : > { %4990 = vrot.lane.b32.xlu1 %v4966_v47, %s7438_s17  ;;  %4992 = vrot.lane.b32.xlu0 %v4967_v0, %s7438_s17  ;;  %v4947_v0 = vmul.f32 %v9473_v63, %v4930_v53 }
0x1725   : > { %v4960_v13 = vpop.permute.xlu1 %4959  ;;  %v4964_v51 = vpop.permute.xlu0 %4963 }
0x1726   : > { %v4972_v56 = vmul.f32 %v4960_v13, %v4944_v6  ;;  %v4973_v52 = vmul.f32 %v4960_v13, %v4945_v4  ;;  %v4975_v47 = vmul.f32 %v4964_v51, %v4947_v0  ;;  %v4974_v55 = vmul.f32 %v4960_v13, %v4940_v44 }
0x1727   : > { %v4977_v61 = vmul.f32 %v4964_v51, %v4940_v44  ;;  %v7440_v13 = vmov 42  }
0x1728   : > { %4994 = vrot.lane.b32.xlu1 %v4968_v54, %s7438_s17  ;;  %4996 = vrot.lane.b32.xlu0 %v4969_v1, %s7438_s17  ;;  %v4948_v54 = vmul.f32 %v9478_v45, %v4934_v57 }
0x172a   : > { %v4976_v59 = vmul.f32 %v4964_v51, %v4948_v54 }
0x172c   : > { %4998 = vrot.lane.b32.xlu1 %v4970_v2, %s7438_s17  ;;  %5000 = vrot.lane.b32.xlu0 %v4971_v35, %s7438_s17 }
0x1730   : > { %5004 = vrot.lane.b32.xlu0 %v4973_v52, %s7438_s17  ;;  %5002 = vrot.lane.b32.xlu1 %v4972_v56, %s7438_s17 }
0x1734   : > { %5008 = vrot.lane.b32.xlu0 %v4975_v47, %s7438_s17  ;;  %5006 = vrot.lane.b32.xlu1 %v4974_v55, %s7438_s17 }
0x1738   : > { %5012 = vrot.lane.b32.xlu0 %v4977_v61, %s7438_s17  ;;  %5010 = vrot.lane.b32.xlu1 %v4976_v59, %s7438_s17 }
0x173c   : > { %5049 = vrot.lane.b32.xlu0 %v7895_v50, %s7439_s18  ;;  %5047 = vrot.lane.b32.xlu1 %v7892_v49, %s7439_s18 }
0x1740   : > { %5073 = vperm.xlu0 %7209, %v9348_v62   ;;  %5069 = vperm.xlu1 %7208, %v9342_v3  }
0x1744   : > { %5077 = vperm.xlu1 %7208, %v9418_v11   ;;  %7210 = vset.pattern.permute.xlu0 %v7440_v13 }
0x1748   : > { %5081 = vperm.xlu1 %7208, %v9354_v19  }
0x174c   : > { %7211 = vset.pattern.permute.xlu1 %v7440_v13 }
0x1796   : > { %v9615_v4 = vpop.permute.xlu0 %4992  ;;  %v9617_v51 = vpop.permute.xlu1 %4990 }
0x1797   : > { %12724 = vst [vmem:[#allocation454_spill] sm:$0xff] %v9615_v4  ;;  %12725 = vst [vmem:[#allocation455_spill] sm:$0xff] %v9617_v51 }
0x179a   : > { %v9619_v35 = vpop.permute.xlu0 %4996  ;;  %v9621_v44 = vpop.permute.xlu1 %4994 }
0x179b   : > { %12726 = vst [vmem:[#allocation456_spill] sm:$0xff] %v9619_v35  ;;  %12727 = vst [vmem:[#allocation457_spill] sm:$0xff] %v9621_v44 }
0x179e   : > { %v9623_v2 = vpop.permute.xlu0 %5000  ;;  %v9625_v1 = vpop.permute.xlu1 %4998 }
0x179f   : > { %12728 = vst [vmem:[#allocation458_spill] sm:$0xff] %v9623_v2  ;;  %12729 = vst [vmem:[#allocation459_spill] sm:$0xff] %v9625_v1 }
0x17a2   : > { %v9627_v53 = vpop.permute.xlu0 %5004  ;;  %v9629_v57 = vpop.permute.xlu1 %5002 }
0x17a3   : > { %12730 = vst [vmem:[#allocation460_spill] sm:$0xff] %v9627_v53  ;;  %12731 = vst [vmem:[#allocation461_spill] sm:$0xff] %v9629_v57 }
0x17a6   : > { %v9631_v14 = vpop.permute.xlu0 %5008  ;;  %v9633_v6 = vpop.permute.xlu1 %5006 }
0x17a7   : > { %12732 = vst [vmem:[#allocation462_spill] sm:$0xff] %v9631_v14  ;;  %12733 = vst [vmem:[#allocation463_spill] sm:$0xff] %v9633_v6 }
0x17aa   : > { %v9635_v56 = vpop.permute.xlu0 %5012  ;;  %v9637_v52 = vpop.permute.xlu1 %5010 }
0x17ab   : > { %12734 = vst [vmem:[#allocation464_spill] sm:$0xff] %v9635_v56  ;;  %12735 = vst [vmem:[#allocation465_spill] sm:$0xff] %v9637_v52 }
0x17ae   : > { %v5050_v0 = vpop.permute.xlu0 %5049  ;;  %v5048_v47 = vpop.permute.xlu1 %5047 }
0x17af   : > { %v5052_v55 = vsel %vm5051_vm14, %v5048_v47, %v5050_v0  ;;  %v5056_v54 = vmul.f32 %v9448_v60, %v5048_v47  ;;  %v5058_v57 = vmul.f32 0.0, %v5050_v0  ;;  %v5059_v14 = vmul.f32 %v9454_v9, %v5048_v47 }
0x17b0   : > { %v5057_v59 = vmul.f32 %v9384_v58, %v5052_v55  ;;  %v5060_v6 = vmul.f32 %v9392_v7, %v5052_v55  ;;  %v5062_v51 = vmul.f32 %v9462_v5, %v5048_v47  ;;  %v5063_v0 = vmul.f32 %v9467_v36, %v5052_v55 }
0x17b1   : > { %vm4681_vm14 = vcmask 375808  }
0x17bf   : > { %v5070_v61 = vpop.permute.xlu1 %5069  ;;  %v5074_v2 = vpop.permute.xlu0 %5073 }
0x17c0   : > { %v5084_v13 = vmul.f32 %v5070_v61, %v5056_v54  ;;  %v5085_v53 = vmul.f32 %v5070_v61, %v5057_v59  ;;  %v5086_v56 = vmul.f32 %v5070_v61, %v5058_v57  ;;  %v5087_v52 = vmul.f32 %v5074_v2, %v5059_v14 }
0x17c1   : > { %v5088_v35 = vmul.f32 %v5074_v2, %v5060_v6  ;;  %v5089_v44 = vmul.f32 %v5074_v2, %v5058_v57 }
0x17c2   : > { %5108 = vrot.lane.b32.xlu0 %v5084_v13, %s7441_s27  ;;  %5110 = vrot.lane.b32.xlu1 %v5085_v53, %s7441_s27  ;;  %v5065_v53 = vmul.f32 %v9473_v63, %v5048_v47 }
0x17c3   : > { %v5078_v1 = vpop.permute.xlu1 %5077 }
0x17c4   : > { %v5090_v54 = vmul.f32 %v5078_v1, %v5062_v51  ;;  %v5091_v59 = vmul.f32 %v5078_v1, %v5063_v0  ;;  %v5092_v14 = vmul.f32 %v5078_v1, %v5058_v57  ;;  %v7442_v51 = vmov 43  }
0x17c6   : > { %5112 = vrot.lane.b32.xlu0 %v5086_v56, %s7441_s27  ;;  %5114 = vrot.lane.b32.xlu1 %v5087_v52, %s7441_s27  ;;  %v5066_v56 = vmul.f32 %v9478_v45, %v5052_v55 }
0x17c7   : > { %v5082_v13 = vpop.permute.xlu1 %5081 }
0x17c8   : > { %v5093_v61 = vmul.f32 %v5082_v13, %v5065_v53  ;;  %v5094_v2 = vmul.f32 %v5082_v13, %v5066_v56  ;;  %v5095_v6 = vmul.f32 %v5082_v13, %v5058_v57 }
0x17ca   : > { %5116 = vrot.lane.b32.xlu0 %v5088_v35, %s7441_s27  ;;  %5118 = vrot.lane.b32.xlu1 %v5089_v44, %s7441_s27 }
0x17ce   : > { %5120 = vrot.lane.b32.xlu0 %v5090_v54, %s7441_s27  ;;  %5122 = vrot.lane.b32.xlu1 %v5091_v59, %s7441_s27 }
0x17d2   : > { %5124 = vrot.lane.b32.xlu0 %v5092_v14, %s7441_s27  ;;  %5126 = vrot.lane.b32.xlu1 %v5093_v61, %s7441_s27 }
0x17d6   : > { %5128 = vrot.lane.b32.xlu0 %v5094_v2, %s7441_s27  ;;  %5130 = vrot.lane.b32.xlu1 %v5095_v6, %s7441_s27 }
0x17da   : > { %5165 = vrot.lane.b32.xlu0 %v7554_v8, %s7432_s19  ;;  %5167 = vrot.lane.b32.xlu1 %v7570_v10, %s7432_s19 }
0x17de   : > { %5186 = vperm.xlu0 %7210, %v9342_v3   ;;  %5190 = vperm.xlu1 %7211, %v9348_v62  }
0x17e2   : > { %5198 = vperm.xlu0 %7210, %v9354_v19   ;;  %5194 = vperm.xlu1 %7211, %v9418_v11  }
0x17e6   : > { %7213 = vset.pattern.permute.xlu0 %v7442_v51  ;;  %7212 = vset.pattern.permute.xlu1 %v7442_v51 }
0x1834   : > { %v9655_v35 = vpop.permute.xlu0 %5108  ;;  %v9657_v44 = vpop.permute.xlu1 %5110 }
0x1835   : > { %12736 = vst [vmem:[#allocation466_spill] sm:$0xff] %v9655_v35  ;;  %12737 = vst [vmem:[#allocation467_spill] sm:$0xff] %v9657_v44 }
0x1838   : > { %v9659_v1 = vpop.permute.xlu0 %5112  ;;  %v9661_v8 = vpop.permute.xlu1 %5114 }
0x1839   : > { %12738 = vst [vmem:[#allocation468_spill] sm:$0xff] %v9659_v1  ;;  %12739 = vst [vmem:[#allocation469_spill] sm:$0xff] %v9661_v8 }
0x183c   : > { %v9663_v10 = vpop.permute.xlu0 %5116  ;;  %v9665_v57 = vpop.permute.xlu1 %5118 }
0x183d   : > { %12740 = vst [vmem:[#allocation470_spill] sm:$0xff] %v9663_v10  ;;  %12741 = vst [vmem:[#allocation471_spill] sm:$0xff] %v9665_v57 }
0x1840   : > { %v9667_v52 = vpop.permute.xlu0 %5120  ;;  %v9669_v47 = vpop.permute.xlu1 %5122 }
0x1841   : > { %12742 = vst [vmem:[#allocation472_spill] sm:$0xff] %v9667_v52  ;;  %12743 = vst [vmem:[#allocation473_spill] sm:$0xff] %v9669_v47 }
0x1844   : > { %v9671_v55 = vpop.permute.xlu0 %5124  ;;  %v9673_v0 = vpop.permute.xlu1 %5126 }
0x1845   : > { %12744 = vst [vmem:[#allocation474_spill] sm:$0xff] %v9671_v55  ;;  %12745 = vst [vmem:[#allocation475_spill] sm:$0xff] %v9673_v0 }
0x1848   : > { %v9675_v54 = vpop.permute.xlu0 %5128  ;;  %v9677_v59 = vpop.permute.xlu1 %5130 }
0x1849   : > { %12746 = vst [vmem:[#allocation476_spill] sm:$0xff] %v9675_v54  ;;  %12747 = vst [vmem:[#allocation477_spill] sm:$0xff] %v9677_v59 }
0x184c   : > { %v5166_v13 = vpop.permute.xlu0 %5165  ;;  %v5168_v53 = vpop.permute.xlu1 %5167 }
0x184d   : > { %v5169_v14 = vsel %vm4778_vm15, %v5166_v13, %v5168_v53  ;;  %v5173_v56 = vmul.f32 %v9448_v60, %v5166_v13  ;;  %v5175_v55 = vmul.f32 0.0, %v5168_v53  ;;  %v5176_v0 = vmul.f32 %v9454_v9, %v5166_v13 }
0x184e   : > { %v5174_v61 = vmul.f32 %v9384_v58, %v5169_v14  ;;  %v5177_v47 = vmul.f32 %v9392_v7, %v5169_v14  ;;  %v5180_v1 = vmul.f32 %v9467_v36, %v5169_v14 }
0x185d   : > { %v5187_v2 = vpop.permute.xlu0 %5186  ;;  %v5191_v52 = vpop.permute.xlu1 %5190 }
0x185e   : > { %v5201_v6 = vmul.f32 %v5187_v2, %v5173_v56  ;;  %v5202_v51 = vmul.f32 %v5187_v2, %v5174_v61  ;;  %v5203_v59 = vmul.f32 %v5187_v2, %v5175_v55  ;;  %v5204_v54 = vmul.f32 %v5191_v52, %v5176_v0 }
0x185f   : > { %v5205_v57 = vmul.f32 %v5191_v52, %v5177_v47  ;;  %v5206_v8 = vmul.f32 %v5191_v52, %v5175_v55  ;;  %v5179_v61 = vmul.f32 %v9462_v5, %v5166_v13 }
0x1860   : > { %5225 = vrot.lane.b32.xlu1 %v5201_v6, %s7443_s13  ;;  %5227 = vrot.lane.b32.xlu0 %v5202_v51, %s7443_s13  ;;  %v5182_v6 = vmul.f32 %v9473_v63, %v5166_v13 }
0x1861   : > { %v5195_v10 = vpop.permute.xlu1 %5194  ;;  %v5199_v35 = vpop.permute.xlu0 %5198 }
0x1862   : > { %v5207_v53 = vmul.f32 %v5195_v10, %v5179_v61  ;;  %v5208_v56 = vmul.f32 %v5195_v10, %v5180_v1  ;;  %v5210_v0 = vmul.f32 %v5199_v35, %v5182_v6  ;;  %v5209_v2 = vmul.f32 %v5195_v10, %v5175_v55 }
0x1863   : > { %v5212_v47 = vmul.f32 %v5199_v35, %v5175_v55  ;;  %v7444_v1 = vmov 44  }
0x1864   : > { %5229 = vrot.lane.b32.xlu1 %v5203_v59, %s7443_s13  ;;  %5231 = vrot.lane.b32.xlu0 %v5204_v54, %s7443_s13  ;;  %v5183_v54 = vmul.f32 %v9478_v45, %v5169_v14 }
0x1866   : > { %v5211_v52 = vmul.f32 %v5199_v35, %v5183_v54 }
0x1868   : > { %5233 = vrot.lane.b32.xlu1 %v5205_v57, %s7443_s13  ;;  %5235 = vrot.lane.b32.xlu0 %v5206_v8, %s7443_s13 }
0x186c   : > { %5239 = vrot.lane.b32.xlu0 %v5208_v56, %s7443_s13  ;;  %5237 = vrot.lane.b32.xlu1 %v5207_v53, %s7443_s13 }
0x1870   : > { %5243 = vrot.lane.b32.xlu0 %v5210_v0, %s7443_s13  ;;  %5241 = vrot.lane.b32.xlu1 %v5209_v2, %s7443_s13 }
0x1874   : > { %5247 = vrot.lane.b32.xlu0 %v5212_v47, %s7443_s13  ;;  %5245 = vrot.lane.b32.xlu1 %v5211_v52, %s7443_s13  ;;  %s7453_s13 = smov 27  }
0x1878   : > { %5284 = vrot.lane.b32.xlu0 %v7592_v15, %s7430_s24  ;;  %5282 = vrot.lane.b32.xlu1 %v7596_v16, %s7430_s24 }
0x187c   : > { %5307 = vperm.xlu0 %7213, %v9348_v62   ;;  %5303 = vperm.xlu1 %7212, %v9342_v3  }
0x1880   : > { %5311 = vperm.xlu1 %7212, %v9418_v11   ;;  %7214 = vset.pattern.permute.xlu0 %v7444_v1 }
0x1884   : > { %5315 = vperm.xlu1 %7212, %v9354_v19  }
0x1888   : > { %7215 = vset.pattern.permute.xlu1 %v7444_v1 }
0x18d2   : > { %v9696_v35 = vpop.permute.xlu0 %5227  ;;  %v9698_v8 = vpop.permute.xlu1 %5225 }
0x18d3   : > { %12748 = vst [vmem:[#allocation478_spill] sm:$0xff] %v9696_v35  ;;  %12749 = vst [vmem:[#allocation479_spill] sm:$0xff] %v9698_v8 }
0x18d6   : > { %v9700_v10 = vpop.permute.xlu0 %5231  ;;  %v9702_v15 = vpop.permute.xlu1 %5229 }
0x18d7   : > { %12750 = vst [vmem:[#allocation480_spill] sm:$0xff] %v9700_v10  ;;  %12751 = vst [vmem:[#allocation481_spill] sm:$0xff] %v9702_v15  ;;  %v12844_v15 = vld [vmem:[#allocation82_spill] sm:$0xff] }
0x18da   : > { %v9704_v16 = vpop.permute.xlu0 %5235  ;;  %v9706_v57 = vpop.permute.xlu1 %5233 }
0x18db   : > { %12752 = vst [vmem:[#allocation482_spill] sm:$0xff] %v9704_v16  ;;  %12753 = vst [vmem:[#allocation483_spill] sm:$0xff] %v9706_v57 }
0x18de   : > { %v9708_v55 = vpop.permute.xlu0 %5239  ;;  %v9710_v59 = vpop.permute.xlu1 %5237 }
0x18df   : > { %12754 = vst [vmem:[#allocation484_spill] sm:$0xff] %v9708_v55  ;;  %12755 = vst [vmem:[#allocation485_spill] sm:$0xff] %v9710_v59 }
0x18e2   : > { %v9712_v13 = vpop.permute.xlu0 %5243  ;;  %v9714_v14 = vpop.permute.xlu1 %5241 }
0x18e3   : > { %12756 = vst [vmem:[#allocation486_spill] sm:$0xff] %v9712_v13  ;;  %12757 = vst [vmem:[#allocation487_spill] sm:$0xff] %v9714_v14 }
0x18e6   : > { %v9716_v51 = vpop.permute.xlu0 %5247  ;;  %v9718_v61 = vpop.permute.xlu1 %5245 }
0x18e7   : > { %12758 = vst [vmem:[#allocation488_spill] sm:$0xff] %v9716_v51  ;;  %12759 = vst [vmem:[#allocation489_spill] sm:$0xff] %v9718_v61 }
0x18ea   : > { %v5285_v53 = vpop.permute.xlu0 %5284  ;;  %v5283_v56 = vpop.permute.xlu1 %5282 }
0x18eb   : > { %v5286_v6 = vsel %vm4681_vm14, %v5283_v56, %v5285_v53  ;;  %v5290_v0 = vmul.f32 %v9448_v60, %v5283_v56  ;;  %v5292_v1 = vmul.f32 0.0, %v5285_v53  ;;  %v5293_v51 = vmul.f32 %v9454_v9, %v5283_v56 }
0x18ec   : > { %v5291_v2 = vmul.f32 %v9384_v58, %v5286_v6  ;;  %v5294_v14 = vmul.f32 %v9392_v7, %v5286_v6  ;;  %v5296_v53 = vmul.f32 %v9462_v5, %v5283_v56 }
0x18fb   : > { %v5304_v54 = vpop.permute.xlu1 %5303  ;;  %v5308_v13 = vpop.permute.xlu0 %5307 }
0x18fc   : > { %v5318_v52 = vmul.f32 %v5304_v54, %v5290_v0  ;;  %v5319_v47 = vmul.f32 %v5304_v54, %v5291_v2  ;;  %v5320_v61 = vmul.f32 %v5304_v54, %v5292_v1  ;;  %v5321_v16 = vmul.f32 %v5308_v13, %v5293_v51 }
0x18fd   : > { %v5322_v59 = vmul.f32 %v5308_v13, %v5294_v14  ;;  %v5323_v0 = vmul.f32 %v5308_v13, %v5292_v1  ;;  %v5297_v2 = vmul.f32 %v9467_v36, %v5286_v6  ;;  %v5300_v13 = vmul.f32 %v9478_v45, %v5286_v6 }
0x18fe   : > { %5342 = vrot.lane.b32.xlu0 %v5318_v52, %s7428_s20  ;;  %5344 = vrot.lane.b32.xlu1 %v5319_v47, %s7428_s20 }
0x18ff   : > { %v5312_v55 = vpop.permute.xlu1 %5311 }
0x1900   : > { %v5324_v52 = vmul.f32 %v5312_v55, %v5296_v53  ;;  %v5325_v54 = vmul.f32 %v5312_v55, %v5297_v2 }
0x1902   : > { %5346 = vrot.lane.b32.xlu0 %v5320_v61, %s7428_s20  ;;  %5348 = vrot.lane.b32.xlu1 %v5321_v16, %s7428_s20  ;;  %v5299_v61 = vmul.f32 %v9473_v63, %v5283_v56  ;;  %v5326_v16 = vmul.f32 %v5312_v55, %v5292_v1  ;;  %v7445_v55 = vmov 45  }
0x1903   : > { %v5316_v51 = vpop.permute.xlu1 %5315 }
0x1904   : > { %v5327_v14 = vmul.f32 %v5316_v51, %v5299_v61  ;;  %v5329_v47 = vmul.f32 %v5316_v51, %v5292_v1 }
0x1906   : > { %5350 = vrot.lane.b32.xlu0 %v5322_v59, %s7428_s20  ;;  %5352 = vrot.lane.b32.xlu1 %v5323_v0, %s7428_s20  ;;  %v5328_v59 = vmul.f32 %v5316_v51, %v5300_v13  ;;  %v358_v51 = vsel %vm357_vm2, %v7649_v29, %v7653_v31  ;;  %v367_v13 = vmul.f32 %v9392_v7, %v7653_v31 }
0x1907   : > { %v9801_v7 = vmul.f32 %v9462_v5, %v358_v51 }
0x1908   : > { %v399_v57 = vmul.f32 %v7651_v30, %v367_v13 }
0x190a   : > { %5354 = vrot.lane.b32.xlu0 %v5324_v52, %s7428_s20  ;;  %5356 = vrot.lane.b32.xlu1 %v5325_v54, %s7428_s20 }
0x190e   : > { %5358 = vrot.lane.b32.xlu0 %v5326_v16, %s7428_s20  ;;  %5360 = vrot.lane.b32.xlu1 %v5327_v14, %s7428_s20  ;;  %v9783_v16 = vmul.f32 0.0, %v7649_v29  ;;  %v364_v14 = vmul.f32 %v9384_v58, %v7653_v31 }
0x1912   : > { %5362 = vrot.lane.b32.xlu0 %v5328_v59, %s7428_s20  ;;  %5364 = vrot.lane.b32.xlu1 %v5329_v47, %s7428_s20  ;;  %v373_v59 = vmul.f32 %v9478_v45, %v7653_v31  ;;  %v363_v47 = vmul.f32 %v9448_v60, %v358_v51  ;;  %s7448_s20 = smov 49  }
0x1916   : > { %5398 = vrot.lane.b32.xlu0 %v7607_v18, %s7427_s16  ;;  %5400 = vrot.lane.b32.xlu1 %v7621_v21, %s7427_s16 }
0x191a   : > { %5419 = vperm.xlu0 %7214, %v9342_v3   ;;  %5423 = vperm.xlu1 %7215, %v9348_v62  }
0x191e   : > { %5431 = vperm.xlu0 %7214, %v9354_v19   ;;  %5427 = vperm.xlu1 %7215, %v9418_v11  }
0x1922   : > { %7217 = vset.pattern.permute.xlu0 %v7445_v55  ;;  %7216 = vset.pattern.permute.xlu1 %v7445_v55  ;;  %v366_v55 = vmul.f32 %v9454_v9, %v358_v51 }
0x1970   : > { %v9749_v56 = vpop.permute.xlu0 %5342  ;;  %v9751_v6 = vpop.permute.xlu1 %5344 }
0x1971   : > { %12760 = vst [vmem:[#allocation490_spill] sm:$0xff] %v9749_v56  ;;  %12761 = vst [vmem:[#allocation491_spill] sm:$0xff] %v9751_v6 }
0x1974   : > { %v9753_v1 = vpop.permute.xlu0 %5346  ;;  %v9755_v18 = vpop.permute.xlu1 %5348 }
0x1975   : > { %12762 = vst [vmem:[#allocation492_spill] sm:$0xff] %v9753_v1  ;;  %12763 = vst [vmem:[#allocation493_spill] sm:$0xff] %v9755_v18  ;;  %v397_v18 = vmul.f32 %v7651_v30, %v9783_v16 }
0x1978   : > { %v9757_v21 = vpop.permute.xlu0 %5350  ;;  %v9759_v3 = vpop.permute.xlu1 %5352 }
0x1979   : > { %12764 = vst [vmem:[#allocation494_spill] sm:$0xff] %v9757_v21  ;;  %12765 = vst [vmem:[#allocation495_spill] sm:$0xff] %v9759_v3  ;;  %v9805_v21 = vmul.f32 %v9467_v36, %v7653_v31  ;;  %v516_v31 = vsel %vm514_vm8, %v7774_v22, %v7776_v23 }
0x197c   : > { %v9761_v62 = vpop.permute.xlu0 %5354  ;;  %v9763_v19 = vpop.permute.xlu1 %5356 }
0x197d   : > { %12766 = vst [vmem:[#allocation496_spill] sm:$0xff] %v9761_v62  ;;  %12767 = vst [vmem:[#allocation497_spill] sm:$0xff] %v9763_v19  ;;  %v396_v19 = vmul.f32 %v7647_v28, %v364_v14 }
0x1980   : > { %v9765_v11 = vpop.permute.xlu0 %5358  ;;  %v9767_v0 = vpop.permute.xlu1 %5360 }
0x1981   : > { %12768 = vst [vmem:[#allocation498_spill] sm:$0xff] %v9765_v11  ;;  %12769 = vst [vmem:[#allocation499_spill] sm:$0xff] %v9767_v0  ;;  %v394_v0 = vmul.f32 %v7647_v28, %v9783_v16  ;;  %v395_v11 = vmul.f32 %v7647_v28, %v363_v47 }
0x1984   : > { %v9769_v53 = vpop.permute.xlu0 %5362  ;;  %v9771_v2 = vpop.permute.xlu1 %5364 }
0x1985   : > { %12770 = vst [vmem:[#allocation500_spill] sm:$0xff] %v9769_v53  ;;  %12771 = vst [vmem:[#allocation501_spill] sm:$0xff] %v9771_v2  ;;  %v372_v53 = vmul.f32 %v9473_v63, %v358_v51  ;;  %v398_v51 = vmul.f32 %v7651_v30, %v366_v55  ;;  %v403_v30 = vmul.f32 %v7655_v32, %v9783_v16 }
0x1986   : > { %v536_v55 = vadd.f32 %v516_v31, %v395_v11 }
0x1987   : > { %v404_v14 = vmul.f32 %v7655_v32, %v372_v53  ;;  %v521_v53 = vsel %vm514_vm8, %v7790_v39, %v7792_v40  ;;  %v9854_v39 = vsel %vm514_vm8, %v7784_v37, %v7786_v33 }
0x1988   : > { %v9773_v52 = vpop.permute.xlu0 %5398  ;;  %v5401_v54 = vpop.permute.xlu1 %5400  ;;  %v544_v37 = vadd.f32 %v521_v53, %v403_v30  ;;  %v12776_v30 = vld [vmem:[#allocation10_spill] sm:$0xff] }
0x1989   : > { %v9780_v61 = vsel %vm4563_vm10, %v9773_v52, %v5401_v54  ;;  %v5406_v2 = vmul.f32 %v9448_v60, %v9773_v52  ;;  %v515_v60 = vsel %vm514_vm8, %v7772_v20, %v7774_v22  ;;  %v517_v20 = vsel %vm514_vm8, %v7778_v25, %v7780_v27 }
0x198a   : > { %v5407_v29 = vmul.f32 %v9384_v58, %v9780_v61  ;;  %v5409_v28 = vmul.f32 %v9454_v9, %v9773_v52  ;;  %v405_v22 = vmul.f32 %v7655_v32, %v373_v59  ;;  %v535_v13 = vadd.f32 %v515_v60, %v394_v0 }
0x198b   : > { %v537_v25 = vadd.f32 %v7776_v23, %v396_v19  ;;  %v522_v32 = vsel %vm514_vm8, %v7792_v40, %v7794_v41  ;;  %v644_v23 = vsel %vm643_vm4, %v7798_v43, %v7796_v42  ;;  %v9859_v40 = vsel %vm514_vm8, %v7786_v33, %v7788_v38 }
0x198c   : > { %v546_v43 = vadd.f32 %v7794_v41, %v405_v22  ;;  %v545_v59 = vadd.f32 %v522_v32, %v404_v14  ;;  %v9869_v60 = vadd.f32 %v644_v23, %v535_v13  ;;  %v5412_v31 = vmul.f32 %v9462_v5, %v9773_v52  ;;  %v12777_v22 = vld [vmem:[#allocation12_spill] sm:$0xff]  ;;  %v12779_v13 = vld [vmem:[#allocation15_spill] sm:$0xff] }
0x198d   : > { %v666_v33 = vadd.f32 %v7802_v46, %v537_v25 }
0x198e   : > { %v675_v32 = vadd.f32 %v12777_v22, %v546_v43 }
0x1999   : > { %v5420_v3 = vpop.permute.xlu0 %5419  ;;  %v5424_v1 = vpop.permute.xlu1 %5423 }
0x199a   : > { %v5434_v58 = vmul.f32 %v5420_v3, %v5406_v2  ;;  %v5435_v62 = vmul.f32 %v5420_v3, %v5407_v29  ;;  %v9822_v2 = vmul.f32 0.0, %v5401_v54  ;;  %v518_v54 = vsel %vm514_vm8, %v7780_v27, %v7782_v34  ;;  %v7274_v27 = vld [vmem:[%s7565_s25 + $0x18] sm:$0xff] }
0x199b   : > { %v5437_v47 = vmul.f32 %v5424_v1, %v5409_v28  ;;  %v538_v29 = vadd.f32 %v517_v20, %v397_v18  ;;  %v12772_v18 = vld [vmem:[#allocation6_spill] sm:$0xff]  ;;  %vm869_vm8 = vcmask 1014784  }
0x199c   : > { %5458 = vrot.lane.b32.xlu1 %v5434_v58, %s7425_s14  ;;  %5460 = vrot.lane.b32.xlu0 %v5435_v62, %s7425_s14  ;;  %v5436_v9 = vmul.f32 %v5420_v3, %v9822_v2  ;;  %v540_v62 = vadd.f32 %v7782_v34, %v399_v57  ;;  %v5410_v3 = vmul.f32 %v7274_v27, %v9780_v61  ;;  %v12783_v27 = vld [vmem:[#allocation18_spill] sm:$0xff] }
0x199d   : > { %v539_v34 = vadd.f32 %v518_v54, %v398_v51  ;;  %v645_v57 = vsel %vm643_vm4, %v7796_v42, %v7802_v46  ;;  %v646_v19 = vsel %vm643_vm4, %v12772_v18, %v7806_v48  ;;  %v5439_v0 = vmul.f32 %v5424_v1, %v9822_v2  ;;  %12773 = vst [vmem:[#allocation6_spill] sm:$0xff] %v9869_v60  ;;  %v5428_v58 = vpop.permute.xlu1 %5427  ;;  %v12774_v51 = vld [vmem:[#allocation7_spill] sm:$0xff]  ;;  %v12775_v46 = vld [vmem:[#allocation13_spill] sm:$0xff]  ;;  %v5432_v23 = vpop.permute.xlu0 %5431  ;;  %v12830_v60 = vld [vmem:[#allocation72_spill] sm:$0xff] }
0x199e   : > { %v5438_v11 = vmul.f32 %v5424_v1, %v5410_v3  ;;  %v647_v41 = vsel %vm643_vm4, %v7806_v48, %v12774_v51  ;;  %v5413_v42 = vmul.f32 %v9467_v36, %v9780_v61  ;;  %v665_v1 = vadd.f32 %v645_v57, %v536_v55  ;;  %v12778_v36 = vld [vmem:[#allocation16_spill] sm:$0xff]  ;;  %v12781_v55 = vld [vmem:[#allocation9_spill] sm:$0xff]  ;;  %v12785_v18 = vld [vmem:[#allocation19_spill] sm:$0xff] }
0x199f   : > { %v669_v20 = vadd.f32 %v12774_v51, %v540_v62  ;;  %v667_v28 = vadd.f32 %v646_v19, %v538_v29  ;;  %v650_v14 = vsel %vm643_vm4, %v12776_v30, %v12775_v46  ;;  %v651_v48 = vsel %vm643_vm4, %v12775_v46, %v12777_v22  ;;  %v12782_v29 = vld [vmem:[#allocation11_spill] sm:$0xff]  ;;  %v12784_v3 = vld [vmem:[#allocation17_spill] sm:$0xff] }
0x19a0   : > { %5462 = vrot.lane.b32.xlu1 %v5436_v9, %s7425_s14  ;;  %5464 = vrot.lane.b32.xlu0 %v5437_v47, %s7425_s14  ;;  %v742_v5 = vsel %vm12238_vm3, %v12779_v13, %v12778_v36  ;;  %v5440_v25 = vmul.f32 %v5428_v58, %v5412_v31  ;;  %v5441_v54 = vmul.f32 %v5428_v58, %v5413_v42  ;;  %v12780_v47 = vld [vmem:[#allocation8_spill] sm:$0xff]  ;;  %v12787_v42 = vld [vmem:[#allocation23_spill] sm:$0xff]  ;;  %v12788_v46 = vld [vmem:[#allocation25_spill] sm:$0xff] }
0x19a1   : > { %v668_v9 = vadd.f32 %v647_v41, %v539_v34  ;;  %v9894_v62 = vsel %vm643_vm4, %v12781_v55, %v12780_v47  ;;  %v9899_v53 = vsel %vm643_vm4, %v12780_v47, %v12782_v29  ;;  %v743_v57 = vsel %vm12238_vm3, %v12784_v3, %v12783_v27  ;;  %v12786_v41 = vld [vmem:[#allocation24_spill] sm:$0xff]  ;;  %v12794_v47 = vld [vmem:[#allocation31_spill] sm:$0xff] }
0x19a2   : > { %v744_v34 = vsel %vm12238_vm3, %v12783_v27, %v12785_v18  ;;  %v5415_v19 = vmul.f32 %v9473_v63, %v9773_v52  ;;  %v762_v43 = vadd.f32 %v742_v5, %v665_v1  ;;  %v763_v51 = vadd.f32 %v12778_v36, %v666_v33  ;;  %v12791_v33 = vld [vmem:[#allocation22_spill] sm:$0xff]  ;;  %v12795_v55 = vld [vmem:[#allocation28_spill] sm:$0xff]  ;;  %v12831_v13 = vld [vmem:[#allocation71_spill] sm:$0xff] }
0x19a3   : > { %v747_v31 = vsel %vm12238_vm3, %v12787_v42, %v12786_v41  ;;  %v748_v30 = vsel %vm12238_vm3, %v12786_v41, %v12788_v46  ;;  %v5442_v63 = vmul.f32 %v5428_v58, %v9822_v2  ;;  %v764_v52 = vadd.f32 %v743_v57, %v667_v28  ;;  %v12793_v36 = vld [vmem:[#allocation26_spill] sm:$0xff] }
0x19a4   : > { %5466 = vrot.lane.b32.xlu1 %v5438_v11, %s7425_s14  ;;  %5468 = vrot.lane.b32.xlu0 %v5439_v0, %s7425_s14  ;;  %v673_v11 = vadd.f32 %v650_v14, %v544_v37  ;;  %v674_v0 = vadd.f32 %v651_v48, %v545_v59  ;;  %v5443_v22 = vmul.f32 %v5432_v23, %v5415_v19  ;;  %v12789_v37 = vld [vmem:[#allocation21_spill] sm:$0xff]  ;;  %v12790_v59 = vld [vmem:[#allocation20_spill] sm:$0xff]  ;;  %v12796_v57 = vld [vmem:[#allocation30_spill] sm:$0xff]  ;;  %vm12239_vm4 = vcmask 1006592  }
0x19a5   : > { %v9924_v1 = vsel %vm12238_vm3, %v12790_v59, %v12789_v37  ;;  %v9929_v14 = vsel %vm12238_vm3, %v12789_v37, %v12791_v33  ;;  %v12792_v48 = vld [vmem:[#allocation29_spill] sm:$0xff]  ;;  %v5416_v58 = vmul.f32 %v9478_v45, %v9780_v61  ;;  %v872_v27 = vsel %vm869_vm8, %v12795_v55, %v12794_v47  ;;  %v12798_v41 = vld [vmem:[#allocation34_spill] sm:$0xff] }
0x19a6   : > { %v871_v5 = vsel %vm869_vm8, %v12793_v36, %v12792_v48  ;;  %v771_v28 = vadd.f32 %v748_v30, %v674_v0  ;;  %v892_v3 = vadd.f32 %v12792_v48, %v763_v51  ;;  %v5445_v45 = vmul.f32 %v5432_v23, %v9822_v2  ;;  %v12797_v19 = vld [vmem:[#allocation37_spill] sm:$0xff]  ;;  %v12799_v0 = vld [vmem:[#allocation36_spill] sm:$0xff]  ;;  %v12805_v48 = vld [vmem:[#allocation42_spill] sm:$0xff] }
0x19a7   : > { %v891_v61 = vadd.f32 %v871_v5, %v762_v43  ;;  %v893_v51 = vadd.f32 %v872_v27, %v764_v52  ;;  %v12803_v43 = vld [vmem:[#allocation33_spill] sm:$0xff]  ;;  %vm1127_vm3 = vcmask 998400  }
0x19a8   : > { %5472 = vrot.lane.b32.xlu0 %v5441_v54, %s7425_s14  ;;  %5470 = vrot.lane.b32.xlu1 %v5440_v25, %s7425_s14  ;;  %v765_v54 = vadd.f32 %v744_v34, %v668_v9  ;;  %v766_v25 = vadd.f32 %v12785_v18, %v669_v20  ;;  %v770_v20 = vadd.f32 %v747_v31, %v673_v11  ;;  %v12800_v31 = vld [vmem:[#allocation40_spill] sm:$0xff]  ;;  %v12806_v5 = vld [vmem:[#allocation41_spill] sm:$0xff] }
0x19a9   : > { %v772_v9 = vadd.f32 %v12788_v46, %v675_v32  ;;  %v873_v18 = vsel %vm869_vm8, %v12794_v47, %v12796_v57  ;;  %v5444_v34 = vmul.f32 %v5432_v23, %v5416_v58  ;;  %v876_v11 = vsel %vm869_vm8, %v12798_v41, %v12797_v19  ;;  %v12801_v46 = vld [vmem:[#allocation39_spill] sm:$0xff]  ;;  %v12802_v23 = vld [vmem:[#allocation32_spill] sm:$0xff] }
0x19aa   : > { %v877_v32 = vsel %vm869_vm8, %v12797_v19, %v12799_v0  ;;  %v895_v42 = vadd.f32 %v12796_v57, %v766_v25  ;;  %v1000_v30 = vsel %vm12239_vm4, %v12801_v46, %v12800_v31  ;;  %v894_v2 = vadd.f32 %v873_v18, %v765_v54  ;;  %v12807_v47 = vld [vmem:[#allocation43_spill] sm:$0xff]  ;;  %v12808_v18 = vld [vmem:[#allocation48_spill] sm:$0xff]  ;;  %v12812_v19 = vld [vmem:[#allocation50_spill] sm:$0xff] }
0x19ab   : > { %v901_v52 = vadd.f32 %v12799_v0, %v772_v9  ;;  %v899_v25 = vadd.f32 %v876_v11, %v770_v20  ;;  %v900_v59 = vadd.f32 %v877_v32, %v771_v28  ;;  %v1001_v58 = vsel %vm12239_vm4, %v12806_v5, %v12805_v48  ;;  %v12810_v20 = vld [vmem:[#allocation49_spill] sm:$0xff]  ;;  %v12817_v5 = vld [vmem:[#allocation52_spill] sm:$0xff] }
0x19ac   : > { %5476 = vrot.lane.b32.xlu0 %v5443_v22, %s7425_s14  ;;  %5474 = vrot.lane.b32.xlu1 %v5442_v63, %s7425_s14  ;;  %v9962_v22 = vsel %vm869_vm8, %v12803_v43, %v12802_v23  ;;  %v12804_v63 = vld [vmem:[#allocation35_spill] sm:$0xff]  ;;  %v1002_v54 = vsel %vm12239_vm4, %v12805_v48, %v12807_v47  ;;  %v1020_v55 = vadd.f32 %v1000_v30, %v891_v61  ;;  %v12813_v32 = vld [vmem:[#allocation45_spill] sm:$0xff]  ;;  %v12815_v30 = vld [vmem:[#allocation46_spill] sm:$0xff] }
0x19ad   : > { %v9967_v37 = vsel %vm869_vm8, %v12802_v23, %v12804_v63  ;;  %v1021_v27 = vadd.f32 %v12800_v31, %v892_v3  ;;  %v1024_v57 = vadd.f32 %v12807_v47, %v895_v42  ;;  %v1006_v28 = vsel %vm12239_vm4, %v12808_v18, %v12810_v20  ;;  %v9990_v61 = vld [vmem:[%s11901_s2 + $0x8] sm:$0xff]  ;;  %v9996_v3 = vld [vmem:[%s11901_s2] sm:$0xff]  ;;  %v12814_v42 = vld [vmem:[#allocation44_spill] sm:$0xff] }
0x19ae   : > { %v1022_v11 = vadd.f32 %v1001_v58, %v893_v51  ;;  %v1023_v0 = vadd.f32 %v1002_v54, %v894_v2  ;;  %v10002_v31 = vsel %vm12239_vm4, %v12814_v42, %v12813_v32  ;;  %v10007_v23 = vsel %vm12239_vm4, %v12813_v32, %v12815_v30  ;;  %v12816_v48 = vld [vmem:[#allocation55_spill] sm:$0xff]  ;;  %v12820_v32 = vld [vmem:[#allocation58_spill] sm:$0xff] }
0x19af   : > { %v1030_v43 = vadd.f32 %v12810_v20, %v901_v52  ;;  %v1130_v47 = vsel %vm1127_vm3, %v12817_v5, %v12816_v48  ;;  %v1029_v58 = vadd.f32 %v1006_v28, %v900_v59  ;;  %v12821_v52 = vld [vmem:[#allocation60_spill] sm:$0xff]  ;;  %v7446_v5 = vmov 46   ;;  %v12824_v28 = vld [vmem:[#allocation66_spill] sm:$0xff] }
0x19b0   : > { %5480 = vrot.lane.b32.xlu0 %v5445_v45, %s7425_s14  ;;  %5478 = vrot.lane.b32.xlu1 %v5444_v34, %s7425_s14  ;;  %v12809_v34 = vld [vmem:[#allocation47_spill] sm:$0xff]  ;;  %v12811_v45 = vld [vmem:[#allocation53_spill] sm:$0xff]  ;;  %v1151_v59 = vadd.f32 %v1130_v47, %v1022_v11 }
0x19b1   : > { %v1005_v9 = vsel %vm12239_vm4, %v12809_v34, %v12808_v18  ;;  %v1129_v41 = vsel %vm1127_vm3, %v12812_v19, %v12811_v45  ;;  %v12818_v18 = vld [vmem:[#allocation54_spill] sm:$0xff]  ;;  %v1150_v34 = vadd.f32 %v12811_v45, %v1021_v27  ;;  %v12819_v19 = vld [vmem:[#allocation61_spill] sm:$0xff]  ;;  %vm1245_vm4 = vcmask 916480   ;;  %v12822_v27 = vld [vmem:[#allocation64_spill] sm:$0xff] }
0x19b2   : > { %v1131_v51 = vsel %vm1127_vm3, %v12816_v48, %v12818_v18  ;;  %v1028_v2 = vadd.f32 %v1005_v9, %v899_v25  ;;  %v1149_v54 = vadd.f32 %v1129_v41, %v1020_v55  ;;  %v1153_v42 = vadd.f32 %v12818_v18, %v1024_v57  ;;  %v10027_v25 = vld [vmem:[%s11901_s2 + $0x10] sm:$0xff]  ;;  %v12823_v57 = vld [vmem:[#allocation63_spill] sm:$0xff]  ;;  %v12825_v45 = vld [vmem:[#allocation65_spill] sm:$0xff] }
0x19b3   : > { %v1134_v46 = vsel %vm1127_vm3, %v12820_v32, %v12819_v19  ;;  %v1135_v20 = vsel %vm1127_vm3, %v12819_v19, %v12821_v52  ;;  %v1152_v55 = vadd.f32 %v1131_v51, %v1023_v0  ;;  %v1247_v9 = vsel %vm1245_vm4, %v12823_v57, %v12822_v27  ;;  %v12826_v41 = vld [vmem:[#allocation56_spill] sm:$0xff]  ;;  %v12827_v48 = vld [vmem:[#allocation57_spill] sm:$0xff]  ;;  %v12828_v32 = vld [vmem:[#allocation59_spill] sm:$0xff] }
0x19b4   : > { %5519 = vperm.xlu0 %7217, %v9990_v61   ;;  %5515 = vperm.xlu1 %7216, %v9996_v3   ;;  %v1248_v19 = vsel %vm1245_vm4, %v12825_v45, %v12824_v28  ;;  %v10040_v18 = vsel %vm1127_vm3, %v12827_v48, %v12826_v41  ;;  %v10045_v11 = vsel %vm1127_vm3, %v12826_v41, %v12828_v32  ;;  %v12829_v47 = vld [vmem:[#allocation67_spill] sm:$0xff]  ;;  %v12832_v41 = vld [vmem:[#allocation73_spill] sm:$0xff] }
0x19b5   : > { %v1159_v0 = vadd.f32 %v12821_v52, %v1030_v43  ;;  %v1249_v51 = vsel %vm1245_vm4, %v12824_v28, %v12829_v47  ;;  %v1157_v57 = vadd.f32 %v1134_v46, %v1028_v2  ;;  %v1158_v45 = vadd.f32 %v1135_v20, %v1029_v58  ;;  %v10062_v52 = vld [vmem:[%s11901_s2 + $0x18] sm:$0xff]  ;;  %v12834_v58 = vld [vmem:[#allocation68_spill] sm:$0xff]  ;;  %v12838_v20 = vld [vmem:[#allocation79_spill] sm:$0xff] }
0x19b6   : > { %v1268_v36 = vadd.f32 %v12822_v27, %v1150_v34  ;;  %v1252_v48 = vsel %vm1245_vm4, %v12831_v13, %v12830_v60  ;;  %v1267_v10 = vadd.f32 %v1247_v9, %v1149_v54  ;;  %v1269_v56 = vadd.f32 %v1248_v19, %v1151_v59  ;;  %v12833_v2 = vld [vmem:[#allocation69_spill] sm:$0xff]  ;;  %v12837_v34 = vld [vmem:[#allocation74_spill] sm:$0xff]  ;;  %v12839_v59 = vld [vmem:[#allocation76_spill] sm:$0xff] }
0x19b7   : > { %v1271_v6 = vadd.f32 %v12829_v47, %v1153_v42  ;;  %v1253_v43 = vsel %vm1245_vm4, %v12830_v60, %v12832_v41  ;;  %v1270_v46 = vadd.f32 %v1249_v51, %v1152_v55  ;;  %v10068_v13 = vsel %vm1245_vm4, %v12834_v58, %v12833_v2  ;;  %v12836_v54 = vld [vmem:[#allocation77_spill] sm:$0xff]  ;;  %v12840_v27 = vld [vmem:[#allocation70_spill] sm:$0xff] }
0x19b8   : > { %7218 = vset.pattern.permute.xlu0 %v7446_v5  ;;  %5523 = vperm.xlu1 %7216, %v10027_v25   ;;  %12835 = vst [vmem:[#allocation7_spill] sm:$0xff] %v10068_v13  ;;  %v1365_v42 = vsel %vm1363_vm13, %v12837_v34, %v12836_v54  ;;  %v1366_v60 = vsel %vm1363_vm13, %v12839_v59, %v12838_v20  ;;  %v12842_v28 = vld [vmem:[#allocation78_spill] sm:$0xff]  ;;  %v12843_v34 = vld [vmem:[#allocation85_spill] sm:$0xff]  ;;  %v6461_v13 = vld [vmem:[#allocation3 + $0x7a8] sm:$0xff] }
0x19b9   : > { %5632 = vperm.xlu0 %7218, %v9996_v3   ;;  %v10080_v9 = vsel %vm1245_vm4, %v12833_v2, %v12840_v27  ;;  %v1275_v55 = vadd.f32 %v1252_v48, %v1157_v57  ;;  %v1367_v19 = vsel %vm1363_vm13, %v12838_v20, %v12842_v28  ;;  %v1276_v47 = vadd.f32 %v1253_v43, %v1158_v45  ;;  %v12845_v2 = vld [vmem:[#allocation84_spill] sm:$0xff]  ;;  %v12847_v45 = vld [vmem:[#allocation81_spill] sm:$0xff] }
0x19ba   : > { %12841 = vst [vmem:[#allocation13_spill] sm:$0xff] %v10080_v9  ;;  %v1277_v51 = vadd.f32 %v12832_v41, %v1159_v0  ;;  %v1386_v58 = vadd.f32 %v12836_v54, %v1268_v36  ;;  %v1370_v59 = vsel %vm1363_vm13, %v12844_v15, %v12843_v34  ;;  %v1385_v8 = vadd.f32 %v1365_v42, %v1267_v10  ;;  %v12846_v20 = vld [vmem:[#allocation80_spill] sm:$0xff]  ;;  %v12850_v41 = vld [vmem:[#allocation87_spill] sm:$0xff]  ;;  %v12854_v54 = vld [vmem:[#allocation89_spill] sm:$0xff] }
0x19bb   : > { %v1389_v35 = vadd.f32 %v12842_v28, %v1271_v6  ;;  %v1387_v44 = vadd.f32 %v1366_v60, %v1269_v56  ;;  %v1371_v57 = vsel %vm1363_vm13, %v12843_v34, %v12845_v2  ;;  %v1388_v48 = vadd.f32 %v1367_v19, %v1270_v46  ;;  %v12849_v36 = vld [vmem:[#allocation88_spill] sm:$0xff]  ;;  %v12851_v10 = vld [vmem:[#allocation83_spill] sm:$0xff]  ;;  %v12853_v46 = vld [vmem:[#allocation90_spill] sm:$0xff] }
0x19bc   : > { %5527 = vperm.xlu1 %7216, %v10062_v52   ;;  %v10097_v0 = vsel %vm1363_vm13, %v12847_v45, %v12846_v20  ;;  %v1483_v43 = vsel %vm12248_vm12, %v12850_v41, %v12849_v36  ;;  %v7447_v15 = vmov 47   ;;  %v10106_v56 = vsel %vm1363_vm13, %v12846_v20, %v12851_v10  ;;  %v6001_v42 = vld [vmem:[#allocation3 + $0x8] sm:$0xff]  ;;  %v6003_v60 = vld [vmem:[#allocation3 + $0x18] sm:$0xff]  ;;  %v6000_v28 = vld [vmem:[#allocation3] sm:$0xff] }
0x19bd   : > { %5644 = vperm.xlu0 %7218, %v10062_v52   ;;  %12848 = vst [vmem:[#allocation10_spill] sm:$0xff] %v10097_v0  ;;  %12852 = vst [vmem:[#allocation12_spill] sm:$0xff] %v10106_v56  ;;  %v1395_v6 = vadd.f32 %v12845_v2, %v1277_v51  ;;  %v1484_v34 = vsel %vm12248_vm12, %v12854_v54, %v12853_v46  ;;  %v1394_v19 = vadd.f32 %v1371_v57, %v1276_v47  ;;  %v12855_v41 = vld [vmem:[#allocation91_spill] sm:$0xff]  ;;  %v6002_v10 = vld [vmem:[#allocation3 + $0x10] sm:$0xff] }
0x19be   : > { %v1504_v45 = vadd.f32 %v12849_v36, %v1386_v58  ;;  %v1485_v20 = vsel %vm12248_vm12, %v12853_v46, %v12855_v41  ;;  %v6729_v4 = vpack.c.bf16 %v6003_v60, %v6001_v42  ;;  %v1503_v51 = vadd.f32 %v1483_v43, %v1385_v8  ;;  %v12858_v27 = vld [vmem:[#allocation97_spill] sm:$0xff]  ;;  %v12860_v36 = vld [vmem:[#allocation92_spill] sm:$0xff]  ;;  %v12862_v43 = vld [vmem:[#allocation94_spill] sm:$0xff] }
0x19bf   : > { %v6731_v54 = vpack.c.bf16 %v6002_v10, %v6000_v28  ;;  %v1505_v56 = vadd.f32 %v1484_v34, %v1387_v44  ;;  %v1507_v0 = vadd.f32 %v12855_v41, %v1389_v35  ;;  %v1506_v58 = vadd.f32 %v1485_v20, %v1388_v48  ;;  %v12859_v57 = vld [vmem:[#allocation93_spill] sm:$0xff]  ;;  %v6005_v44 = vld [vmem:[#allocation3 + $0x28] sm:$0xff]  ;;  %v12865_v48 = vld [vmem:[#allocation98_spill] sm:$0xff] }
0x19c0   : > { %7219 = vset.pattern.permute.xlu1 %v7446_v5  ;;  %v1393_v5 = vadd.f32 %v1370_v59, %v1275_v55  ;;  %v12856_v55 = vld [vmem:[#allocation96_spill] sm:$0xff]  ;;  %v12857_v59 = vld [vmem:[#allocation95_spill] sm:$0xff]  ;;  %6730 = vmatprep.subr.bf16.mxu0 %v6729_v4  ;;  %v10128_v8 = vsel %vm12248_vm12, %v12860_v36, %v12859_v57  ;;  %v10133_v10 = vsel %vm12248_vm12, %v12859_v57, %v12862_v43  ;;  %v6007_v35 = vld [vmem:[#allocation3 + $0x38] sm:$0xff]  ;;  %v12247_v28 = vmov 48  }
0x19c1   : > { %7221 = vset.pattern.permute.xlu0 %v7447_v15  ;;  %5636 = vperm.xlu1 %7219, %v9990_v61   ;;  %v1488_v2 = vsel %vm12248_vm12, %v12857_v59, %v12856_v55  ;;  %v1489_v47 = vsel %vm12248_vm12, %v12856_v55, %v12858_v27  ;;  %12861 = vst [vmem:[#allocation16_spill] sm:$0xff] %v10128_v8  ;;  %12863 = vst [vmem:[#allocation8_spill] sm:$0xff] %v10133_v10  ;;  %v12864_v4 = vld [vmem:[#allocation101_spill] sm:$0xff]  ;;  %v12866_v34 = vld [vmem:[#allocation103_spill] sm:$0xff]  ;;  %vm12250_vm12 = vcmask 883712  }
0x19c2   : > { %5754 = vperm.xlu0 %7221, %v9990_v61   ;;  %6732 = vmatpush1.bf16.msra.mxu0 %v6731_v54  ;;  %v1511_v41 = vadd.f32 %v1488_v2, %v1393_v5  ;;  %v1580_v46 = vsel %vm12249_vm11, %v12865_v48, %v12864_v4  ;;  %v12867_v42 = vld [vmem:[#allocation100_spill] sm:$0xff]  ;;  %v6733_v20 = vpack.c.bf16 %v6007_v35, %v6005_v44  ;;  %v6004_v55 = vld [vmem:[#allocation3 + $0x20] sm:$0xff]  ;;  %v6137_v57 = vld [vmem:[#allocation3 + $0x208] sm:$0xff] }
0x19c3   : > { %v1581_v60 = vsel %vm12249_vm11, %v12867_v42, %v12866_v34  ;;  %v6006_v59 = vld [vmem:[#allocation3 + $0x30] sm:$0xff]  ;;  %v1513_v54 = vadd.f32 %v12858_v27, %v1395_v6  ;;  %v12868_v36 = vld [vmem:[#allocation102_spill] sm:$0xff]  ;;  %v6139_v48 = vld [vmem:[#allocation3 + $0x218] sm:$0xff]  ;;  %v1601_v42 = vadd.f32 %v12864_v4, %v1504_v45  ;;  %v1600_v35 = vadd.f32 %v1580_v46, %v1503_v51 }
0x19c4   : > { %v1582_v5 = vsel %vm12249_vm11, %v12866_v34, %v12868_v36  ;;  %v6735_v2 = vpack.c.bf16 %v6006_v59, %v6004_v55  ;;  %v6136_v43 = vld [vmem:[#allocation3 + $0x200] sm:$0xff]  ;;  %v6138_v10 = vld [vmem:[#allocation3 + $0x210] sm:$0xff]  ;;  %6734 = vmatprep.subr.bf16.mxu0 %v6733_v20  ;;  %v1604_v8 = vadd.f32 %v12868_v36, %v1507_v0  ;;  %v6009_v27 = vld [vmem:[#allocation3 + $0x48] sm:$0xff] }
0x19c5   : > { %5640 = vperm.xlu1 %7219, %v10027_v25   ;;  %v6795_v44 = vpack.c.bf16 %v6138_v10, %v6136_v43  ;;  %v6011_v6 = vld [vmem:[#allocation3 + $0x58] sm:$0xff]  ;;  %v12870_v55 = vld [vmem:[#allocation106_spill] sm:$0xff]  ;;  %v6010_v43 = vld [vmem:[#allocation3 + $0x50] sm:$0xff] }
0x19c6   : > { %5610 = vrot.lane.b32.xlu0 %v7631_v24, %s7448_s20  ;;  %v1512_v24 = vadd.f32 %v1489_v47, %v1394_v19  ;;  %v1602_v19 = vadd.f32 %v1581_v60, %v1505_v56  ;;  %v1603_v47 = vadd.f32 %v1582_v5, %v1506_v58  ;;  %v12869_v34 = vld [vmem:[#allocation109_spill] sm:$0xff]  ;;  %6736 = vmatpush1.bf16.msra.mxu0 %v6735_v2  ;;  %v6008_v45 = vld [vmem:[#allocation3 + $0x40] sm:$0xff]  ;;  %v6141_v51 = vld [vmem:[#allocation3 + $0x228] sm:$0xff] }
0x19c7   : > { %7222 = vset.pattern.permute.xlu0 %v12247_v28  ;;  %v6793_v28 = vpack.c.bf16 %v6139_v48, %v6137_v57  ;;  %v1585_v59 = vsel %vm12249_vm11, %v12870_v55, %v12869_v34  ;;  %v12871_v10 = vld [vmem:[#allocation104_spill] sm:$0xff]  ;;  %v12872_v0 = vld [vmem:[#allocation105_spill] sm:$0xff]  ;;  %v6739_v58 = vpack.c.bf16 %v6010_v43, %v6008_v45  ;;  %v6140_v46 = vld [vmem:[#allocation3 + $0x220] sm:$0xff] }
0x19c8   : > { %v10158_v56 = vsel %vm12249_vm11, %v12872_v0, %v12871_v10  ;;  %v12874_v4 = vld [vmem:[#allocation108_spill] sm:$0xff]  ;;  %v6143_v48 = vld [vmem:[#allocation3 + $0x238] sm:$0xff]  ;;  %v12878_v36 = vld [vmem:[#allocation111_spill] sm:$0xff] }
0x19c9   : > { %7220 = vset.pattern.permute.xlu1 %v7447_v15  ;;  %6794 = vmatprep.subr.bf16.mxu1 %v6793_v28  ;;  %v6737_v15 = vpack.c.bf16 %v6011_v6, %v6009_v27  ;;  %12873 = vst [vmem:[#allocation9_spill] sm:$0xff] %v10158_v56  ;;  %v6142_v60 = vld [vmem:[#allocation3 + $0x230] sm:$0xff]  ;;  %v12875_v28 = vld [vmem:[#allocation107_spill] sm:$0xff]  ;;  %v6797_v2 = vpack.c.bf16 %v6143_v48, %v6141_v51  ;;  %v12880_v55 = vld [vmem:[#allocation113_spill] sm:$0xff] }
0x19ca   : > { %5868 = vperm.xlu0 %7222, %v9996_v3   ;;  %5750 = vperm.xlu1 %7220, %v9996_v3   ;;  %v1586_v3 = vsel %vm12249_vm11, %v12869_v34, %v12874_v4  ;;  %v10166_v20 = vsel %vm12249_vm11, %v12871_v10, %v12875_v28  ;;  %v12877_v57 = vld [vmem:[#allocation112_spill] sm:$0xff]  ;;  %v6799_v27 = vpack.c.bf16 %v6142_v60, %v6140_v46  ;;  %v6013_v43 = vld [vmem:[#allocation3 + $0x68] sm:$0xff]  ;;  %v6015_v10 = vld [vmem:[#allocation3 + $0x78] sm:$0xff]  ;;  %vm12251_vm11 = vcmask 875520  }
0x19cb   : > { %6796 = vmatpush1.bf16.msra.mxu1 %v6795_v44  ;;  %12876 = vst [vmem:[#allocation11_spill] sm:$0xff] %v10166_v20  ;;  %v1698_v5 = vsel %vm12250_vm12, %v12878_v36, %v12877_v57  ;;  %6738 = vmatprep.subr.bf16.mxu0 %v6737_v15  ;;  %v1610_v6 = vadd.f32 %v12874_v4, %v1513_v54  ;;  %v12879_v44 = vld [vmem:[#allocation114_spill] sm:$0xff]  ;;  %v12881_v20 = vld [vmem:[#allocation115_spill] sm:$0xff]  ;;  %v6147_v51 = vld [vmem:[#allocation3 + $0x258] sm:$0xff] }
0x19cc   : > { %v1608_v34 = vadd.f32 %v1585_v59, %v1511_v41  ;;  %v1699_v45 = vsel %vm12250_vm12, %v12880_v55, %v12879_v44  ;;  %v6012_v0 = vld [vmem:[#allocation3 + $0x60] sm:$0xff]  ;;  %v1609_v28 = vadd.f32 %v1586_v3, %v1512_v24  ;;  %v1700_v15 = vsel %vm12250_vm12, %v12879_v44, %v12881_v20  ;;  %6740 = vmatpush1.bf16.msra.mxu0 %v6739_v58  ;;  %v6014_v41 = vld [vmem:[#allocation3 + $0x70] sm:$0xff]  ;;  %v6145_v59 = vld [vmem:[#allocation3 + $0x248] sm:$0xff] }
0x19cd   : > { %6798 = vmatprep.subr.bf16.mxu1 %v6797_v2  ;;  %v6741_v54 = vpack.c.bf16 %v6015_v10, %v6013_v43  ;;  %v1718_v4 = vadd.f32 %v1698_v5, %v1600_v35  ;;  %v1719_v48 = vadd.f32 %v12877_v57, %v1601_v42  ;;  %v6743_v46 = vpack.c.bf16 %v6014_v41, %v6012_v0  ;;  %v6144_v55 = vld [vmem:[#allocation3 + $0x240] sm:$0xff]  ;;  %v6146_v36 = vld [vmem:[#allocation3 + $0x250] sm:$0xff]  ;;  %v12883_v9 = vld [vmem:[#allocation119_spill] sm:$0xff] }
0x19ce   : > { %5880 = vperm.xlu0 %7222, %v10062_v52   ;;  %5758 = vperm.xlu1 %7220, %v10027_v25   ;;  %v6801_v60 = vpack.c.bf16 %v6147_v51, %v6145_v59  ;;  %v1720_v56 = vadd.f32 %v1699_v45, %v1602_v19  ;;  %v1722_v24 = vadd.f32 %v12881_v20, %v1604_v8  ;;  %v12882_v3 = vld [vmem:[#allocation120_spill] sm:$0xff]  ;;  %v12884_v43 = vld [vmem:[#allocation117_spill] sm:$0xff]  ;;  %v12887_v42 = vld [vmem:[#allocation118_spill] sm:$0xff]  ;;  %v12889_v19 = vmov 0  }
0x19cf   : > { %6800 = vmatpush1.bf16.msra.mxu1 %v6799_v27  ;;  %v1703_v58 = vsel %vm12250_vm12, %v12883_v9, %v12882_v3  ;;  %6742 = vmatprep.subr.bf16.mxu0 %v6741_v54  ;;  %v6803_v2 = vpack.c.bf16 %v6146_v36, %v6144_v55  ;;  %v1721_v44 = vadd.f32 %v1700_v15, %v1603_v47  ;;  %v12885_v10 = vld [vmem:[#allocation116_spill] sm:$0xff]  ;;  %v6017_v8 = vld [vmem:[#allocation3 + $0x88] sm:$0xff]  ;;  %v6019_v9 = vld [vmem:[#allocation3 + $0x98] sm:$0xff] }
0x19d0   : > { %v10188_v35 = vsel %vm12250_vm12, %v12885_v10, %v12884_v43  ;;  %v10193_v57 = vsel %vm12250_vm12, %v12884_v43, %v12887_v42  ;;  %v12890_v20 = vld [vmem:[#allocation121_spill] sm:$0xff]  ;;  %v12892_v5 = vld [vmem:[#allocation122_spill] sm:$0xff]  ;;  %6744 = vmatpush1.bf16.msra.mxu0 %v6743_v46  ;;  %v6745_v45 = vpack.c.bf16 %v6019_v9, %v6017_v8  ;;  %v6018_v15 = vld [vmem:[#allocation3 + $0x90] sm:$0xff]  ;;  %v1726_v41 = vadd.f32 %v1703_v58, %v1608_v34 }
0x19d1   : > { %12886 = vst [vmem:[#allocation18_spill] sm:$0xff] %v10188_v35  ;;  %12888 = vst [vmem:[#allocation17_spill] sm:$0xff] %v10193_v57  ;;  %v1704_v47 = vsel %vm12250_vm12, %v12882_v3, %v12890_v20  ;;  %v12891_v36 = vld [vmem:[#allocation125_spill] sm:$0xff]  ;;  %v6016_v0 = vld [vmem:[#allocation3 + $0x80] sm:$0xff]  ;;  %6802 = vmatprep.subr.bf16.mxu1 %v6801_v60  ;;  %vm1932_vm12 = vcmask 867328  }
0x19d2   : > { %7224 = vset.pattern.permute.xlu0 %v12889_v19  ;;  %5762 = vperm.xlu1 %7220, %v10062_v52   ;;  %v1816_v27 = vsel %vm12251_vm11, %v12892_v5, %v12891_v36  ;;  %v6149_v54 = vld [vmem:[#allocation3 + $0x268] sm:$0xff]  ;;  %v1728_v52 = vadd.f32 %v12890_v20, %v1610_v6  ;;  %v12894_v51 = vld [vmem:[#allocation124_spill] sm:$0xff]  ;;  %v6747_v3 = vpack.c.bf16 %v6018_v15, %v6016_v0  ;;  %v6151_v43 = vld [vmem:[#allocation3 + $0x278] sm:$0xff] }
0x19d3   : > { %386 = vperm.xlu0 %7224, %v10027_v25   ;;  %v12893_v59 = vld [vmem:[#allocation127_spill] sm:$0xff]  ;;  %v6148_v10 = vld [vmem:[#allocation3 + $0x260] sm:$0xff]  ;;  %v6150_v42 = vld [vmem:[#allocation3 + $0x270] sm:$0xff]  ;;  %6804 = vmatpush1.bf16.msra.mxu1 %v6803_v2  ;;  %v6805_v8 = vpack.c.bf16 %v6151_v43, %v6149_v54  ;;  %v1727_v34 = vadd.f32 %v1704_v47, %v1609_v28  ;;  %v1836_v58 = vadd.f32 %v1816_v27, %v1718_v4  ;;  %v12898_v2 = vmov 48  }
0x19d4   : > { %v1817_v55 = vsel %vm12251_vm11, %v12894_v51, %v12893_v59  ;;  %v12895_v5 = vld [vmem:[#allocation126_spill] sm:$0xff]  ;;  %6746 = vmatprep.subr.bf16.mxu0 %v6745_v45  ;;  %v6807_v9 = vpack.c.bf16 %v6150_v42, %v6148_v10  ;;  %v1837_v6 = vadd.f32 %v12891_v36, %v1719_v48  ;;  %v6021_v60 = vld [vmem:[#allocation3 + $0xa8] sm:$0xff]  ;;  %v6023_v0 = vld [vmem:[#allocation3 + $0xb8] sm:$0xff] }
0x19d5   : > { %v1818_v46 = vsel %vm12251_vm11, %v12893_v59, %v12895_v5  ;;  %v1840_v20 = vadd.f32 %v12895_v5, %v1722_v24  ;;  %v1838_v15 = vadd.f32 %v1817_v55, %v1720_v56  ;;  %v12896_v51 = vld [vmem:[#allocation133_spill] sm:$0xff]  ;;  %v12897_v57 = vld [vmem:[#allocation130_spill] sm:$0xff]  ;;  %v6749_v28 = vpack.c.bf16 %v6023_v0, %v6021_v60  ;;  %v6022_v48 = vld [vmem:[#allocation3 + $0xb0] sm:$0xff]  ;;  %6748 = vmatpush1.bf16.msra.mxu0 %v6747_v3 }
0x19d6   : > { %5612 = vrot.lane.b32.xlu1 %v7642_v26, %s7448_s20  ;;  %v1821_v59 = vsel %vm12251_vm11, %v12897_v57, %v12896_v51  ;;  %v6020_v4 = vld [vmem:[#allocation3 + $0xa0] sm:$0xff]  ;;  %v6153_v24 = vld [vmem:[#allocation3 + $0x288] sm:$0xff]  ;;  %v1839_v42 = vadd.f32 %v1818_v46, %v1721_v44  ;;  %v12899_v47 = vld [vmem:[#allocation132_spill] sm:$0xff]  ;;  %6806 = vmatprep.subr.bf16.mxu1 %v6805_v8 }
0x19d7   : > { %7223 = vset.pattern.permute.xlu1 %v12898_v2  ;;  %5730 = vrot.lane.b32.xlu0 %v7761_v12, %s7450_s23  ;;  %v1822_v26 = vsel %vm12251_vm11, %v12896_v51, %v12899_v47  ;;  %v6751_v56 = vpack.c.bf16 %v6022_v48, %v6020_v4  ;;  %v6155_v57 = vld [vmem:[#allocation3 + $0x298] sm:$0xff]  ;;  %v6152_v36 = vld [vmem:[#allocation3 + $0x280] sm:$0xff]  ;;  %v6154_v5 = vld [vmem:[#allocation3 + $0x290] sm:$0xff]  ;;  %v1846_v8 = vadd.f32 %v12899_v47, %v1728_v52 }
0x19d8   : > { %v12900_v27 = vld [vmem:[#allocation136_spill] sm:$0xff]  ;;  %v12901_v45 = vld [vmem:[#allocation135_spill] sm:$0xff]  ;;  %6808 = vmatpush1.bf16.msra.mxu1 %v6807_v9  ;;  %6750 = vmatprep.subr.bf16.mxu0 %v6749_v28  ;;  %v6809_v54 = vpack.c.bf16 %v6155_v57, %v6153_v24  ;;  %v6811_v55 = vpack.c.bf16 %v6154_v5, %v6152_v36  ;;  %v12903_v43 = vld [vmem:[#allocation129_spill] sm:$0xff]  ;;  %v1844_v60 = vadd.f32 %v1821_v59, %v1726_v41 }
0x19d9   : > { %v1934_v12 = vsel %vm1932_vm12, %v12901_v45, %v12900_v27  ;;  %v12902_v44 = vld [vmem:[#allocation128_spill] sm:$0xff]  ;;  %v12905_v46 = vld [vmem:[#allocation131_spill] sm:$0xff]  ;;  %v6027_v9 = vld [vmem:[#allocation3 + $0xd8] sm:$0xff]  ;;  %v1955_v57 = vadd.f32 %v12900_v27, %v1837_v6  ;;  %6752 = vmatpush1.bf16.msra.mxu0 %v6751_v56 }
0x19da   : > { %v10230_v10 = vsel %vm12251_vm11, %v12903_v43, %v12902_v44  ;;  %v10235_v3 = vsel %vm12251_vm11, %v12902_v44, %v12905_v46  ;;  %5872 = vperm.xlu1 %7223, %v9990_v61   ;;  %v6025_v0 = vld [vmem:[#allocation3 + $0xc8] sm:$0xff]  ;;  %v12907_v51 = vld [vmem:[#allocation138_spill] sm:$0xff]  ;;  %v12908_v2 = vld [vmem:[#allocation137_spill] sm:$0xff]  ;;  %6810 = vmatprep.subr.bf16.mxu1 %v6809_v54  ;;  %v1845_v61 = vadd.f32 %v1822_v26, %v1727_v34  ;;  %vm2049_vm11 = vcmask 785408  }
0x19db   : > { %12904 = vst [vmem:[#allocation19_spill] sm:$0xff] %v10230_v10  ;;  %12906 = vst [vmem:[#allocation24_spill] sm:$0xff] %v10235_v3  ;;  %v1935_v28 = vsel %vm1932_vm12, %v12908_v2, %v12907_v51  ;;  %v12909_v4 = vld [vmem:[#allocation139_spill] sm:$0xff]  ;;  %5848 = vrot.lane.b32.xlu0 %v7895_v50, %s7451_s22  ;;  %v6753_v24 = vpack.c.bf16 %v6027_v9, %v6025_v0  ;;  %v6024_v52 = vld [vmem:[#allocation3 + $0xc0] sm:$0xff]  ;;  %v1954_v47 = vadd.f32 %v1934_v12, %v1836_v58 }
0x19dc   : > { %v1936_v48 = vsel %vm1932_vm12, %v12907_v51, %v12909_v4  ;;  %v6026_v41 = vld [vmem:[#allocation3 + $0xd0] sm:$0xff]  ;;  %v6157_v59 = vld [vmem:[#allocation3 + $0x2a8] sm:$0xff]  ;;  %v6159_v5 = vld [vmem:[#allocation3 + $0x2b8] sm:$0xff]  ;;  %6812 = vmatpush1.bf16.msra.mxu1 %v6811_v55  ;;  %v1956_v0 = vadd.f32 %v1935_v28, %v1838_v15  ;;  %v1958_v34 = vadd.f32 %v12909_v4, %v1840_v20 }
0x19dd   : > { %v6755_v36 = vpack.c.bf16 %v6026_v41, %v6024_v52  ;;  %v6156_v44 = vld [vmem:[#allocation3 + $0x2a0] sm:$0xff]  ;;  %v6158_v43 = vld [vmem:[#allocation3 + $0x2b0] sm:$0xff]  ;;  %v12911_v51 = vld [vmem:[#allocation143_spill] sm:$0xff]  ;;  %6754 = vmatprep.subr.bf16.mxu0 %v6753_v24  ;;  %v6813_v50 = vpack.c.bf16 %v6159_v5, %v6157_v59  ;;  %v1957_v9 = vadd.f32 %v1936_v48, %v1839_v42 }
0x19de   : > { %v12910_v2 = vld [vmem:[#allocation144_spill] sm:$0xff]  ;;  %v6815_v54 = vpack.c.bf16 %v6158_v43, %v6156_v44  ;;  %5876 = vperm.xlu1 %7223, %v10027_v25   ;;  %v6029_v58 = vld [vmem:[#allocation3 + $0xe8] sm:$0xff]  ;;  %v6031_v6 = vld [vmem:[#allocation3 + $0xf8] sm:$0xff] }
0x19df   : > { %v1939_v45 = vsel %vm1932_vm12, %v12911_v51, %v12910_v2  ;;  %v12912_v26 = vld [vmem:[#allocation141_spill] sm:$0xff]  ;;  %v12913_v56 = vld [vmem:[#allocation140_spill] sm:$0xff]  ;;  %v12917_v52 = vld [vmem:[#allocation146_spill] sm:$0xff]  ;;  %6814 = vmatprep.subr.bf16.mxu1 %v6813_v50  ;;  %v6757_v20 = vpack.c.bf16 %v6031_v6, %v6029_v58  ;;  %6756 = vmatpush1.bf16.msra.mxu0 %v6755_v36 }
0x19e0   : > { %v10256_v27 = vsel %vm1932_vm12, %v12913_v56, %v12912_v26  ;;  %v12915_v12 = vld [vmem:[#allocation145_spill] sm:$0xff]  ;;  %v6028_v42 = vld [vmem:[#allocation3 + $0xe0] sm:$0xff]  ;;  %v6030_v28 = vld [vmem:[#allocation3 + $0xf0] sm:$0xff]  ;;  %v1962_v41 = vadd.f32 %v1939_v45, %v1844_v60  ;;  %6816 = vmatpush1.bf16.msra.mxu1 %v6815_v54 }
0x19e1   : > { %12914 = vst [vmem:[#allocation23_spill] sm:$0xff] %v10256_v27  ;;  %v1940_v55 = vsel %vm1932_vm12, %v12910_v2, %v12915_v12  ;;  %v12916_v24 = vld [vmem:[#allocation149_spill] sm:$0xff]  ;;  %v6161_v25 = vld [vmem:[#allocation3 + $0x2c8] sm:$0xff]  ;;  %v12918_v4 = vld [vmem:[#allocation142_spill] sm:$0xff]  ;;  %v6759_v43 = vpack.c.bf16 %v6030_v28, %v6028_v42  ;;  %6758 = vmatprep.subr.bf16.mxu0 %v6757_v20  ;;  %v1964_v45 = vadd.f32 %v12915_v12, %v1846_v8 }
0x19e2   : > { %v2051_v15 = vsel %vm2049_vm11, %v12917_v52, %v12916_v24  ;;  %v10267_v48 = vsel %vm1932_vm12, %v12912_v26, %v12918_v4  ;;  %v12920_v59 = vld [vmem:[#allocation151_spill] sm:$0xff]  ;;  %v12921_v5 = vld [vmem:[#allocation148_spill] sm:$0xff]  ;;  %v6163_v2 = vld [vmem:[#allocation3 + $0x2d8] sm:$0xff]  ;;  %v1963_v26 = vadd.f32 %v1940_v55, %v1845_v61  ;;  %v2072_v4 = vadd.f32 %v12916_v24, %v1955_v57  ;;  %5728 = vrot.lane.b32.xlu1 %v7764_v17, %s7450_s23 }
0x19e3   : > { %12919 = vst [vmem:[#allocation25_spill] sm:$0xff] %v10267_v48  ;;  %v2052_v44 = vsel %vm2049_vm11, %v12921_v5, %v12920_v59  ;;  %v6160_v51 = vld [vmem:[#allocation3 + $0x2c0] sm:$0xff]  ;;  %v6162_v56 = vld [vmem:[#allocation3 + $0x2d0] sm:$0xff]  ;;  %v6817_v6 = vpack.c.bf16 %v6163_v2, %v6161_v25  ;;  %v2071_v60 = vadd.f32 %v2051_v15, %v1954_v47  ;;  %v6033_v36 = vld [vmem:[#allocation3 + $0x108] sm:$0xff]  ;;  %7225 = vset.pattern.permute.xlu1 %v12889_v19 }
0x19e4   : > { %v12922_v50 = vld [vmem:[#allocation150_spill] sm:$0xff]  ;;  %v6819_v52 = vpack.c.bf16 %v6162_v56, %v6160_v51  ;;  %v6035_v42 = vld [vmem:[#allocation3 + $0x118] sm:$0xff]  ;;  %v6034_v61 = vld [vmem:[#allocation3 + $0x110] sm:$0xff]  ;;  %v2073_v8 = vadd.f32 %v2052_v44, %v1956_v0  ;;  %6760 = vmatpush1.bf16.msra.mxu0 %v6759_v43 }
0x19e5   : > { %v2053_v58 = vsel %vm2049_vm11, %v12920_v59, %v12922_v50  ;;  %v2075_v28 = vadd.f32 %v12922_v50, %v1958_v34  ;;  %v12923_v5 = vld [vmem:[#allocation157_spill] sm:$0xff]  ;;  %v12924_v48 = vld [vmem:[#allocation154_spill] sm:$0xff]  ;;  %6818 = vmatprep.subr.bf16.mxu1 %v6817_v6  ;;  %v6761_v20 = vpack.c.bf16 %v6035_v42, %v6033_v36  ;;  %v6165_v55 = vld [vmem:[#allocation3 + $0x2e8] sm:$0xff] }
0x19e6   : > { %v2056_v54 = vsel %vm2049_vm11, %v12924_v48, %v12923_v5  ;;  %v6032_v25 = vld [vmem:[#allocation3 + $0x100] sm:$0xff]  ;;  %v2074_v47 = vadd.f32 %v2053_v58, %v1957_v9  ;;  %v12925_v57 = vld [vmem:[#allocation156_spill] sm:$0xff]  ;;  %v6167_v34 = vld [vmem:[#allocation3 + $0x2f8] sm:$0xff]  ;;  %6820 = vmatpush1.bf16.msra.mxu1 %v6819_v52  ;;  %5846 = vrot.lane.b32.xlu1 %v7892_v49, %s7451_s22 }
0x19e7   : > { %v2057_v17 = vsel %vm2049_vm11, %v12923_v5, %v12925_v57  ;;  %v6763_v12 = vpack.c.bf16 %v6034_v61, %v6032_v25  ;;  %v6164_v24 = vld [vmem:[#allocation3 + $0x2e0] sm:$0xff]  ;;  %v6166_v15 = vld [vmem:[#allocation3 + $0x2f0] sm:$0xff]  ;;  %v12927_v48 = vld [vmem:[#allocation159_spill] sm:$0xff]  ;;  %6762 = vmatprep.subr.bf16.mxu0 %v6761_v20  ;;  %v6821_v51 = vpack.c.bf16 %v6167_v34, %v6165_v55  ;;  %v2081_v50 = vadd.f32 %v12925_v57, %v1964_v45 }
0x19e8   : > { %v12926_v59 = vld [vmem:[#allocation160_spill] sm:$0xff]  ;;  %v6823_v56 = vpack.c.bf16 %v6166_v15, %v6164_v24  ;;  %v12929_v0 = vld [vmem:[#allocation153_spill] sm:$0xff]  ;;  %v12931_v44 = vld [vmem:[#allocation155_spill] sm:$0xff]  ;;  %v2079_v58 = vadd.f32 %v2056_v54, %v1962_v41  ;;  %v2080_v36 = vadd.f32 %v2057_v17, %v1963_v26 }
0x19e9   : > { %v2167_v2 = vsel %vm1400_vm7, %v12927_v48, %v12926_v59  ;;  %v12928_v19 = vld [vmem:[#allocation152_spill] sm:$0xff]  ;;  %v6037_v52 = vld [vmem:[#allocation3 + $0x128] sm:$0xff]  ;;  %v6039_v6 = vld [vmem:[#allocation3 + $0x138] sm:$0xff]  ;;  %6822 = vmatprep.subr.bf16.mxu1 %v6821_v51  ;;  %v2188_v54 = vadd.f32 %v12926_v59, %v2072_v4  ;;  %6764 = vmatpush1.bf16.msra.mxu0 %v6763_v12 }
0x19ea   : > { %v10293_v9 = vsel %vm2049_vm11, %v12929_v0, %v12928_v19  ;;  %v10298_v43 = vsel %vm2049_vm11, %v12928_v19, %v12931_v44  ;;  %v12933_v42 = vld [vmem:[#allocation162_spill] sm:$0xff]  ;;  %v12934_v5 = vld [vmem:[#allocation161_spill] sm:$0xff]  ;;  %v12935_v25 = vld [vmem:[#allocation163_spill] sm:$0xff]  ;;  %v6765_v55 = vpack.c.bf16 %v6039_v6, %v6037_v52  ;;  %v2187_v41 = vadd.f32 %v2167_v2, %v2071_v60  ;;  %6824 = vmatpush1.bf16.msra.mxu1 %v6823_v56 }
0x19eb   : > { %12930 = vst [vmem:[#allocation21_spill] sm:$0xff] %v10293_v9  ;;  %12932 = vst [vmem:[#allocation20_spill] sm:$0xff] %v10298_v43  ;;  %v2168_v20 = vsel %vm1400_vm7, %v12934_v5, %v12933_v42  ;;  %v2169_v61 = vsel %vm1400_vm7, %v12933_v42, %v12935_v25  ;;  %v6036_v34 = vld [vmem:[#allocation3 + $0x120] sm:$0xff]  ;;  %v6038_v24 = vld [vmem:[#allocation3 + $0x130] sm:$0xff]  ;;  %v2191_v4 = vadd.f32 %v12935_v25, %v2075_v28 }
0x19ec   : > { %v6169_v45 = vld [vmem:[#allocation3 + $0x308] sm:$0xff]  ;;  %v12936_v49 = vld [vmem:[#allocation168_spill] sm:$0xff]  ;;  %v6767_v17 = vpack.c.bf16 %v6038_v24, %v6036_v34  ;;  %v6171_v15 = vld [vmem:[#allocation3 + $0x318] sm:$0xff]  ;;  %6766 = vmatprep.subr.bf16.mxu0 %v6765_v55  ;;  %v2189_v60 = vadd.f32 %v2168_v20, %v2073_v8  ;;  %v2190_v2 = vadd.f32 %v2169_v61, %v2074_v47 }
0x19ed   : > { %v12937_v57 = vld [vmem:[#allocation167_spill] sm:$0xff]  ;;  %v6168_v19 = vld [vmem:[#allocation3 + $0x300] sm:$0xff]  ;;  %v6170_v0 = vld [vmem:[#allocation3 + $0x310] sm:$0xff]  ;;  %v6825_v52 = vpack.c.bf16 %v6171_v15, %v6169_v45 }
0x19ee   : > { %v2172_v26 = vsel %vm1400_vm7, %v12937_v57, %v12936_v49  ;;  %v12938_v5 = vld [vmem:[#allocation169_spill] sm:$0xff]  ;;  %v6827_v6 = vpack.c.bf16 %v6170_v0, %v6168_v19  ;;  %v12940_v42 = vld [vmem:[#allocation170_spill] sm:$0xff]  ;;  %v12942_v24 = vld [vmem:[#allocation164_spill] sm:$0xff]  ;;  %6768 = vmatpush1.bf16.msra.mxu0 %v6767_v17 }
0x19ef   : > { %v2173_v51 = vsel %vm1400_vm7, %v12936_v49, %v12938_v5  ;;  %v12939_v59 = vld [vmem:[#allocation173_spill] sm:$0xff]  ;;  %v12944_v48 = vld [vmem:[#allocation166_spill] sm:$0xff]  ;;  %v2195_v55 = vadd.f32 %v2172_v26, %v2079_v58  ;;  %v2197_v8 = vadd.f32 %v12938_v5, %v2081_v50  ;;  %6826 = vmatprep.subr.bf16.mxu1 %v6825_v52  ;;  %v6041_v47 = vld [vmem:[#allocation3 + $0x148] sm:$0xff] }
0x19f0   : > { %v2283_v12 = vsel %vm12252_vm6, %v12940_v42, %v12939_v59  ;;  %v12941_v34 = vld [vmem:[#allocation165_spill] sm:$0xff]  ;;  %v2196_v20 = vadd.f32 %v2173_v51, %v2080_v36  ;;  %v12946_v25 = vld [vmem:[#allocation175_spill] sm:$0xff]  ;;  %v12947_v61 = vld [vmem:[#allocation172_spill] sm:$0xff]  ;;  %v2304_v50 = vadd.f32 %v12939_v59, %v2188_v54  ;;  %6828 = vmatpush1.bf16.msra.mxu1 %v6827_v6 }
0x19f1   : > { %v10323_v57 = vsel %vm1400_vm7, %v12942_v24, %v12941_v34  ;;  %v10328_v56 = vsel %vm1400_vm7, %v12941_v34, %v12944_v48  ;;  %v6043_v28 = vld [vmem:[#allocation3 + $0x158] sm:$0xff]  ;;  %v2284_v45 = vsel %vm12252_vm6, %v12947_v61, %v12946_v25  ;;  %v12948_v49 = vld [vmem:[#allocation174_spill] sm:$0xff]  ;;  %v6042_v34 = vld [vmem:[#allocation3 + $0x150] sm:$0xff]  ;;  %v2303_v58 = vadd.f32 %v2283_v12, %v2187_v41 }
0x19f2   : > { %12943 = vst [vmem:[#allocation22_spill] sm:$0xff] %v10323_v57  ;;  %12945 = vst [vmem:[#allocation29_spill] sm:$0xff] %v10328_v56  ;;  %v2285_v15 = vsel %vm12252_vm6, %v12946_v25, %v12948_v49  ;;  %v6769_v19 = vpack.c.bf16 %v6043_v28, %v6041_v47  ;;  %v6040_v0 = vld [vmem:[#allocation3 + $0x140] sm:$0xff]  ;;  %v6173_v24 = vld [vmem:[#allocation3 + $0x328] sm:$0xff]  ;;  %v2307_v26 = vadd.f32 %v12948_v49, %v2191_v4 }
0x19f3   : > { %v6771_v36 = vpack.c.bf16 %v6042_v34, %v6040_v0  ;;  %v6175_v5 = vld [vmem:[#allocation3 + $0x338] sm:$0xff]  ;;  %v6172_v51 = vld [vmem:[#allocation3 + $0x320] sm:$0xff]  ;;  %v6174_v52 = vld [vmem:[#allocation3 + $0x330] sm:$0xff]  ;;  %v2305_v12 = vadd.f32 %v2284_v45, %v2189_v60  ;;  %v2306_v54 = vadd.f32 %v2285_v15, %v2190_v2 }
0x19f4   : > { %v12949_v61 = vld [vmem:[#allocation181_spill] sm:$0xff]  ;;  %v12950_v42 = vld [vmem:[#allocation178_spill] sm:$0xff]  ;;  %v12951_v25 = vld [vmem:[#allocation180_spill] sm:$0xff]  ;;  %6770 = vmatprep.subr.bf16.mxu0 %v6769_v19  ;;  %v6829_v47 = vpack.c.bf16 %v6175_v5, %v6173_v24  ;;  %v6831_v41 = vpack.c.bf16 %v6174_v52, %v6172_v51 }
0x19f5   : > { %v2288_v48 = vsel %vm12252_vm6, %v12950_v42, %v12949_v61  ;;  %v2289_v17 = vsel %vm12252_vm6, %v12949_v61, %v12951_v25  ;;  %v12952_v59 = vld [vmem:[#allocation176_spill] sm:$0xff]  ;;  %v12953_v4 = vld [vmem:[#allocation177_spill] sm:$0xff]  ;;  %v12956_v49 = vld [vmem:[#allocation183_spill] sm:$0xff]  ;;  %v2313_v19 = vadd.f32 %v12951_v25, %v2197_v8  ;;  %6772 = vmatpush1.bf16.msra.mxu0 %v6771_v36 }
0x19f6   : > { %v10348_v6 = vsel %vm12252_vm6, %v12953_v4, %v12952_v59  ;;  %v12955_v28 = vld [vmem:[#allocation184_spill] sm:$0xff]  ;;  %v6045_v34 = vld [vmem:[#allocation3 + $0x168] sm:$0xff]  ;;  %v6047_v42 = vld [vmem:[#allocation3 + $0x178] sm:$0xff]  ;;  %6830 = vmatprep.subr.bf16.mxu1 %v6829_v47  ;;  %v2311_v2 = vadd.f32 %v2288_v48, %v2195_v55  ;;  %v2312_v45 = vadd.f32 %v2289_v17, %v2196_v20 }
0x19f7   : > { %12954 = vst [vmem:[#allocation31_spill] sm:$0xff] %v10348_v6  ;;  %v2379_v0 = vsel %vm12253_vm5, %v12956_v49, %v12955_v28  ;;  %v12957_v56 = vld [vmem:[#allocation179_spill] sm:$0xff]  ;;  %v6773_v60 = vpack.c.bf16 %v6047_v42, %v6045_v34  ;;  %v12959_v15 = vld [vmem:[#allocation186_spill] sm:$0xff]  ;;  %v12960_v24 = vld [vmem:[#allocation185_spill] sm:$0xff]  ;;  %6832 = vmatpush1.bf16.msra.mxu1 %v6831_v41  ;;  %v2400_v8 = vadd.f32 %v12955_v28, %v2304_v50 }
0x19f8   : > { %v10356_v61 = vsel %vm12252_vm6, %v12952_v59, %v12957_v56  ;;  %v2380_v5 = vsel %vm12253_vm5, %v12960_v24, %v12959_v15  ;;  %v12961_v51 = vld [vmem:[#allocation187_spill] sm:$0xff]  ;;  %v6044_v4 = vld [vmem:[#allocation3 + $0x160] sm:$0xff]  ;;  %v6046_v49 = vld [vmem:[#allocation3 + $0x170] sm:$0xff]  ;;  %v2399_v56 = vadd.f32 %v2379_v0, %v2303_v58  ;;  %vm12254_vm6 = vcmask 752640  }
0x19f9   : > { %12958 = vst [vmem:[#allocation28_spill] sm:$0xff] %v10356_v61  ;;  %v2381_v52 = vsel %vm12253_vm5, %v12959_v15, %v12961_v51  ;;  %v6177_v59 = vld [vmem:[#allocation3 + $0x348] sm:$0xff]  ;;  %v2403_v36 = vadd.f32 %v12961_v51, %v2307_v26  ;;  %6774 = vmatprep.subr.bf16.mxu0 %v6773_v60  ;;  %v6775_v48 = vpack.c.bf16 %v6046_v49, %v6044_v4  ;;  %v6179_v55 = vld [vmem:[#allocation3 + $0x358] sm:$0xff]  ;;  %v6176_v20 = vld [vmem:[#allocation3 + $0x340] sm:$0xff] }
0x19fa   : > { %v6178_v25 = vld [vmem:[#allocation3 + $0x350] sm:$0xff]  ;;  %v12963_v47 = vld [vmem:[#allocation191_spill] sm:$0xff]  ;;  %v6833_v42 = vpack.c.bf16 %v6179_v55, %v6177_v59  ;;  %v2401_v15 = vadd.f32 %v2380_v5, %v2305_v12  ;;  %v2402_v24 = vadd.f32 %v2381_v52, %v2306_v54  ;;  %v12964_v61 = vld [vmem:[#allocation193_spill] sm:$0xff] }
0x19fb   : > { %v12962_v17 = vld [vmem:[#allocation192_spill] sm:$0xff]  ;;  %v6835_v41 = vpack.c.bf16 %v6178_v25, %v6176_v20  ;;  %v12965_v50 = vld [vmem:[#allocation197_spill] sm:$0xff]  ;;  %v12966_v26 = vld [vmem:[#allocation194_spill] sm:$0xff]  ;;  %6776 = vmatpush1.bf16.msra.mxu0 %v6775_v48 }
0x19fc   : > { %v2384_v34 = vsel %vm12253_vm5, %v12963_v47, %v12962_v17  ;;  %v2385_v58 = vsel %vm12253_vm5, %v12962_v17, %v12964_v61  ;;  %v2497_v28 = vsel %vm12254_vm6, %v12966_v26, %v12965_v50  ;;  %v6049_v49 = vld [vmem:[#allocation3 + $0x188] sm:$0xff]  ;;  %v6051_v0 = vld [vmem:[#allocation3 + $0x198] sm:$0xff]  ;;  %v12968_v51 = vld [vmem:[#allocation188_spill] sm:$0xff]  ;;  %6834 = vmatprep.subr.bf16.mxu1 %v6833_v42 }
0x19fd   : > { %v12967_v60 = vld [vmem:[#allocation189_spill] sm:$0xff]  ;;  %v12970_v59 = vld [vmem:[#allocation199_spill] sm:$0xff]  ;;  %v12971_v55 = vld [vmem:[#allocation196_spill] sm:$0xff]  ;;  %v6777_v52 = vpack.c.bf16 %v6051_v0, %v6049_v49  ;;  %v2407_v47 = vadd.f32 %v2384_v34, %v2311_v2  ;;  %6836 = vmatpush1.bf16.msra.mxu1 %v6835_v41  ;;  %v2408_v6 = vadd.f32 %v2385_v58, %v2312_v45  ;;  %v2517_v57 = vadd.f32 %v2497_v28, %v2399_v56 }
0x19fe   : > { %v10379_v4 = vsel %vm12253_vm5, %v12968_v51, %v12967_v60  ;;  %v2498_v12 = vsel %vm12254_vm6, %v12971_v55, %v12970_v59  ;;  %v12972_v54 = vld [vmem:[#allocation198_spill] sm:$0xff]  ;;  %v6050_v25 = vld [vmem:[#allocation3 + $0x190] sm:$0xff]  ;;  %v2409_v51 = vadd.f32 %v12964_v61, %v2313_v19  ;;  %v6183_v55 = vld [vmem:[#allocation3 + $0x378] sm:$0xff] }
0x19ff   : > { %12969 = vst [vmem:[#allocation30_spill] sm:$0xff] %v10379_v4  ;;  %v2499_v5 = vsel %vm12254_vm6, %v12970_v59, %v12972_v54  ;;  %v6048_v20 = vld [vmem:[#allocation3 + $0x180] sm:$0xff]  ;;  %v6181_v4 = vld [vmem:[#allocation3 + $0x368] sm:$0xff]  ;;  %v2518_v59 = vadd.f32 %v12965_v50, %v2400_v8  ;;  %6778 = vmatprep.subr.bf16.mxu0 %v6777_v52  ;;  %v6182_v0 = vld [vmem:[#allocation3 + $0x370] sm:$0xff]  ;;  %v2521_v44 = vadd.f32 %v12972_v54, %v2403_v36 }
0x1a00   : > { %v12973_v48 = vld [vmem:[#allocation190_spill] sm:$0xff]  ;;  %v6779_v26 = vpack.c.bf16 %v6050_v25, %v6048_v20  ;;  %v6837_v42 = vpack.c.bf16 %v6183_v55, %v6181_v4  ;;  %v2519_v43 = vadd.f32 %v2498_v12, %v2401_v15  ;;  %v6053_v34 = vld [vmem:[#allocation3 + $0x1a8] sm:$0xff]  ;;  %v6055_v61 = vld [vmem:[#allocation3 + $0x1b8] sm:$0xff] }
0x1a01   : > { %v10390_v17 = vsel %vm12253_vm5, %v12967_v60, %v12973_v48  ;;  %v6180_v49 = vld [vmem:[#allocation3 + $0x360] sm:$0xff]  ;;  %v2520_v60 = vadd.f32 %v2499_v5, %v2402_v24  ;;  %v12975_v19 = vld [vmem:[#allocation205_spill] sm:$0xff]  ;;  %v12977_v45 = vld [vmem:[#allocation204_spill] sm:$0xff]  ;;  %vm12255_vm5 = vcmask 744448   ;;  %v6781_v8 = vpack.c.bf16 %v6055_v61, %v6053_v34 }
0x1a02   : > { %12974 = vst [vmem:[#allocation37_spill] sm:$0xff] %v10390_v17  ;;  %6780 = vmatpush1.bf16.msra.mxu0 %v6779_v26  ;;  %v6839_v2 = vpack.c.bf16 %v6182_v0, %v6180_v49  ;;  %v12976_v41 = vld [vmem:[#allocation202_spill] sm:$0xff]  ;;  %v2503_v56 = vsel %vm12254_vm6, %v12975_v19, %v12977_v45  ;;  %6838 = vmatprep.subr.bf16.mxu1 %v6837_v42  ;;  %v6054_v50 = vld [vmem:[#allocation3 + $0x1b0] sm:$0xff]  ;;  %v12979_v15 = vld [vmem:[#allocation201_spill] sm:$0xff] }
0x1a03   : > { %v2502_v20 = vsel %vm12254_vm6, %v12976_v41, %v12975_v19  ;;  %v6052_v58 = vld [vmem:[#allocation3 + $0x1a0] sm:$0xff]  ;;  %v12978_v36 = vld [vmem:[#allocation200_spill] sm:$0xff]  ;;  %v12982_v28 = vld [vmem:[#allocation207_spill] sm:$0xff]  ;;  %v2527_v34 = vadd.f32 %v12977_v45, %v2409_v51  ;;  %6782 = vmatprep.subr.bf16.mxu0 %v6781_v8 }
0x1a04   : > { %v10404_v24 = vsel %vm12254_vm6, %v12979_v15, %v12978_v36  ;;  %v12981_v26 = vld [vmem:[#allocation208_spill] sm:$0xff]  ;;  %v12983_v12 = vld [vmem:[#allocation210_spill] sm:$0xff]  ;;  %v12984_v54 = vld [vmem:[#allocation209_spill] sm:$0xff]  ;;  %6840 = vmatpush1.bf16.msra.mxu1 %v6839_v2  ;;  %v6783_v52 = vpack.c.bf16 %v6054_v50, %v6052_v58  ;;  %v2526_v2 = vadd.f32 %v2503_v56, %v2408_v6 }
0x1a05   : > { %12980 = vst [vmem:[#allocation34_spill] sm:$0xff] %v10404_v24  ;;  %v2615_v4 = vsel %vm12255_vm5, %v12982_v28, %v12981_v26  ;;  %v2616_v5 = vsel %vm12255_vm5, %v12984_v54, %v12983_v12  ;;  %v6185_v25 = vld [vmem:[#allocation3 + $0x388] sm:$0xff]  ;;  %v6187_v55 = vld [vmem:[#allocation3 + $0x398] sm:$0xff]  ;;  %v6184_v42 = vld [vmem:[#allocation3 + $0x380] sm:$0xff]  ;;  %v2525_v54 = vadd.f32 %v2502_v20, %v2407_v47  ;;  %v2636_v58 = vadd.f32 %v12981_v26, %v2518_v59 }
0x1a06   : > { %v12985_v49 = vld [vmem:[#allocation203_spill] sm:$0xff]  ;;  %v6841_v41 = vpack.c.bf16 %v6187_v55, %v6185_v25  ;;  %v6186_v15 = vld [vmem:[#allocation3 + $0x390] sm:$0xff]  ;;  %6784 = vmatpush1.bf16.msra.mxu0 %v6783_v52  ;;  %v6059_v24 = vld [vmem:[#allocation3 + $0x1d8] sm:$0xff]  ;;  %v2635_v48 = vadd.f32 %v2615_v4, %v2517_v57 }
0x1a07   : > { %v10415_v0 = vsel %vm12254_vm6, %v12978_v36, %v12985_v49  ;;  %v12987_v61 = vld [vmem:[#allocation211_spill] sm:$0xff]  ;;  %v6843_v50 = vpack.c.bf16 %v6186_v15, %v6184_v42  ;;  %v2637_v36 = vadd.f32 %v2616_v5, %v2519_v43  ;;  %v6056_v45 = vld [vmem:[#allocation3 + $0x1c0] sm:$0xff]  ;;  %v12988_v25 = vld [vmem:[#allocation213_spill] sm:$0xff]  ;;  %vm12270_vm6 = vcmask 736256  }
0x1a08   : > { %12986 = vst [vmem:[#allocation36_spill] sm:$0xff] %v10415_v0  ;;  %v2617_v19 = vsel %vm12255_vm5, %v12983_v12, %v12987_v61  ;;  %v6057_v28 = vld [vmem:[#allocation3 + $0x1c8] sm:$0xff]  ;;  %v2639_v49 = vadd.f32 %v12987_v61, %v2521_v44  ;;  %6842 = vmatprep.subr.bf16.mxu1 %v6841_v41  ;;  %v6058_v0 = vld [vmem:[#allocation3 + $0x1d0] sm:$0xff]  ;;  %v6191_v43 = vld [vmem:[#allocation3 + $0x3b8] sm:$0xff] }
0x1a09   : > { %v6785_v51 = vpack.c.bf16 %v6059_v24, %v6057_v28  ;;  %v6189_v12 = vld [vmem:[#allocation3 + $0x3a8] sm:$0xff]  ;;  %v2638_v8 = vadd.f32 %v2617_v19, %v2520_v60  ;;  %v12989_v55 = vld [vmem:[#allocation212_spill] sm:$0xff]  ;;  %6844 = vmatpush1.bf16.msra.mxu1 %v6843_v50  ;;  %v6787_v57 = vpack.c.bf16 %v6058_v0, %v6056_v45  ;;  %v6188_v56 = vld [vmem:[#allocation3 + $0x3a0] sm:$0xff] }
0x1a0a   : > { %v10426_v6 = vsel %vm12255_vm5, %v12989_v55, %v12988_v25  ;;  %v12991_v47 = vld [vmem:[#allocation216_spill] sm:$0xff]  ;;  %v12992_v59 = vld [vmem:[#allocation215_spill] sm:$0xff]  ;;  %v12993_v26 = vld [vmem:[#allocation217_spill] sm:$0xff]  ;;  %v6845_v60 = vpack.c.bf16 %v6191_v43, %v6189_v12 }
0x1a0b   : > { %12990 = vst [vmem:[#allocation40_spill] sm:$0xff] %v10426_v6  ;;  %v2620_v20 = vsel %vm12255_vm5, %v12992_v59, %v12991_v47  ;;  %v6190_v44 = vld [vmem:[#allocation3 + $0x3b0] sm:$0xff]  ;;  %v2621_v24 = vsel %vm12255_vm5, %v12991_v47, %v12993_v26  ;;  %6786 = vmatprep.subr.bf16.mxu0 %v6785_v51  ;;  %v6061_v4 = vld [vmem:[#allocation3 + $0x1e8] sm:$0xff]  ;;  %v6063_v5 = vld [vmem:[#allocation3 + $0x1f8] sm:$0xff]  ;;  %v2645_v59 = vadd.f32 %v12993_v26, %v2527_v34 }
0x1a0c   : > { %v6847_v28 = vpack.c.bf16 %v6190_v44, %v6188_v56  ;;  %v12994_v52 = vld [vmem:[#allocation214_spill] sm:$0xff]  ;;  %v12996_v61 = vld [vmem:[#allocation221_spill] sm:$0xff]  ;;  %v12998_v41 = vld [vmem:[#allocation223_spill] sm:$0xff]  ;;  %6788 = vmatpush1.bf16.msra.mxu0 %v6787_v57  ;;  %v6789_v45 = vpack.c.bf16 %v6063_v5, %v6061_v4  ;;  %v2643_v47 = vadd.f32 %v2620_v20, %v2525_v54  ;;  %6846 = vmatprep.subr.bf16.mxu1 %v6845_v60 }
0x1a0d   : > { %v10437_v42 = vsel %vm12255_vm5, %v12988_v25, %v12994_v52  ;;  %v12997_v0 = vld [vmem:[#allocation218_spill] sm:$0xff]  ;;  %v12999_v15 = vld [vmem:[#allocation220_spill] sm:$0xff]  ;;  %v6193_v55 = vld [vmem:[#allocation3 + $0x3c8] sm:$0xff]  ;;  %vm12269_vm5 = vcmask 654336  }
0x1a0e   : > { %12995 = vst [vmem:[#allocation32_spill] sm:$0xff] %v10437_v42  ;;  %v2733_v19 = vsel %vm12270_vm6, %v12997_v0, %v12996_v61  ;;  %v2734_v50 = vsel %vm12270_vm6, %v12999_v15, %v12998_v41  ;;  %v6060_v51 = vld [vmem:[#allocation3 + $0x1e0] sm:$0xff]  ;;  %v6062_v12 = vld [vmem:[#allocation3 + $0x1f0] sm:$0xff]  ;;  %v6195_v44 = vld [vmem:[#allocation3 + $0x3d8] sm:$0xff]  ;;  %v2644_v42 = vadd.f32 %v2621_v24, %v2526_v2  ;;  %6848 = vmatpush1.bf16.msra.mxu1 %v6847_v28 }
0x1a0f   : > { %v13000_v43 = vld [vmem:[#allocation222_spill] sm:$0xff]  ;;  %v6791_v56 = vpack.c.bf16 %v6062_v12, %v6060_v51  ;;  %v6194_v52 = vld [vmem:[#allocation3 + $0x3d0] sm:$0xff]  ;;  %6790 = vmatprep.subr.bf16.mxu0 %v6789_v45  ;;  %v6849_v57 = vpack.c.bf16 %v6195_v44, %v6193_v55  ;;  %v2753_v5 = vadd.f32 %v2733_v19, %v2635_v48  ;;  %v2754_v15 = vadd.f32 %v12996_v61, %v2636_v58  ;;  %v6273_v20 = vld [vmem:[#allocation3 + $0x408] sm:$0xff] }
0x1a10   : > { %v2735_v25 = vsel %vm12270_vm6, %v12998_v41, %v13000_v43  ;;  %v6192_v0 = vld [vmem:[#allocation3 + $0x3c0] sm:$0xff]  ;;  %v2757_v54 = vadd.f32 %v13000_v43, %v2639_v49  ;;  %v2755_v34 = vadd.f32 %v2734_v50, %v2637_v36  ;;  %v6275_v26 = vld [vmem:[#allocation3 + $0x418] sm:$0xff]  ;;  %v6197_v24 = vld [vmem:[#allocation3 + $0x3e8] sm:$0xff] }
0x1a11   : > { %v6851_v4 = vpack.c.bf16 %v6194_v52, %v6192_v0  ;;  %v2756_v6 = vadd.f32 %v2735_v25, %v2638_v8  ;;  %v13001_v41 = vld [vmem:[#allocation229_spill] sm:$0xff]  ;;  %v13002_v60 = vld [vmem:[#allocation226_spill] sm:$0xff]  ;;  %6792 = vmatpush1.bf16.msra.mxu0 %v6791_v56  ;;  %6850 = vmatprep.subr.bf16.mxu1 %v6849_v57  ;;  %v6857_v2 = vpack.c.bf16 %v6275_v26, %v6273_v20  ;;  %v13003_v52 = vld [vmem:[#allocation224_spill] sm:$0xff] }
0x1a12   : > { %v2738_v51 = vsel %vm12270_vm6, %v13002_v60, %v13001_v41  ;;  %v6199_v28 = vld [vmem:[#allocation3 + $0x3f8] sm:$0xff]  ;;  %v6272_v45 = vld [vmem:[#allocation3 + $0x400] sm:$0xff]  ;;  %v13006_v49 = vld [vmem:[#allocation228_spill] sm:$0xff] }
0x1a13   : > { %v13004_v48 = vld [vmem:[#allocation225_spill] sm:$0xff]  ;;  %v2739_v36 = vsel %vm12270_vm6, %v13001_v41, %v13006_v49  ;;  %v6853_v8 = vpack.c.bf16 %v6199_v28, %v6197_v24  ;;  %v6274_v61 = vld [vmem:[#allocation3 + $0x410] sm:$0xff]  ;;  %v6196_v0 = vld [vmem:[#allocation3 + $0x3e0] sm:$0xff]  ;;  %6852 = vmatpush1.bf16.msra.mxu1 %v6851_v4  ;;  %6858 = vmatprep.subr.bf16.mxu0 %v6857_v2  ;;  %v2763_v57 = vadd.f32 %v13006_v49, %v2645_v59 }
0x1a14   : > { %v10457_v58 = vsel %vm12270_vm6, %v13004_v48, %v13003_v52  ;;  %v6198_v19 = vld [vmem:[#allocation3 + $0x3f0] sm:$0xff]  ;;  %v13008_v12 = vld [vmem:[#allocation231_spill] sm:$0xff]  ;;  %v6859_v43 = vpack.c.bf16 %v6274_v61, %v6272_v45  ;;  %v2761_v20 = vadd.f32 %v2738_v51, %v2643_v47  ;;  %v10472_v26 = vld [vmem:[%s7565_s25] sm:$0xff]  ;;  %v2762_v49 = vadd.f32 %v2739_v36, %v2644_v42 }
0x1a15   : > { %13005 = vst [vmem:[#allocation33_spill] sm:$0xff] %v10457_v58  ;;  %v13007_v50 = vld [vmem:[#allocation232_spill] sm:$0xff]  ;;  %v6855_v25 = vpack.c.bf16 %v6198_v19, %v6196_v0  ;;  %v13009_v56 = vld [vmem:[#allocation227_spill] sm:$0xff]  ;;  %6129 = vmatmul.mubr.f32.vlgmr.msra.gmra.mrb[0].mxu0 %v10472_v26  ;;  %6854 = vmatprep.subr.bf16.mxu1 %v6853_v8  ;;  %v6279_v60 = vld [vmem:[#allocation3 + $0x438] sm:$0xff] }
0x1a16   : > { %v2850_v55 = vsel %vm12269_vm5, %v13008_v12, %v13007_v50  ;;  %v10468_v44 = vsel %vm12270_vm6, %v13003_v52, %v13009_v56  ;;  %v6277_v41 = vld [vmem:[#allocation3 + $0x428] sm:$0xff]  ;;  %v13011_v4 = vld [vmem:[#allocation234_spill] sm:$0xff]  ;;  %v13012_v2 = vld [vmem:[#allocation233_spill] sm:$0xff]  ;;  %6860 = vmatpush1.bf16.msra.mxu0 %v6859_v43  ;;  %v2871_v61 = vadd.f32 %v13007_v50, %v2754_v15 }
0x1a17   : > { %13010 = vst [vmem:[#allocation35_spill] sm:$0xff] %v10468_v44  ;;  %v2851_v24 = vsel %vm12269_vm5, %v13012_v2, %v13011_v4  ;;  %v13013_v28 = vld [vmem:[#allocation235_spill] sm:$0xff]  ;;  %v6861_v52 = vpack.c.bf16 %v6279_v60, %v6277_v41  ;;  %v6276_v48 = vld [vmem:[#allocation3 + $0x420] sm:$0xff]  ;;  %v6278_v59 = vld [vmem:[#allocation3 + $0x430] sm:$0xff]  ;;  %v2870_v8 = vadd.f32 %v2850_v55, %v2753_v5  ;;  %6856 = vmatpush1.bf16.msra.mxu1 %v6855_v25 }
0x1a18   : > { %v2852_v45 = vsel %vm12269_vm5, %v13011_v4, %v13013_v28  ;;  %v6409_v47 = vld [vmem:[#allocation3 + $0x608] sm:$0xff]  ;;  %v6863_v0 = vpack.c.bf16 %v6278_v59, %v6276_v48  ;;  %v6411_v19 = vld [vmem:[#allocation3 + $0x618] sm:$0xff]  ;;  %v6408_v2 = vld [vmem:[#allocation3 + $0x600] sm:$0xff]  ;;  %v2872_v4 = vadd.f32 %v2851_v24, %v2755_v34  ;;  %v2874_v42 = vadd.f32 %v13013_v28, %v2757_v54 }
0x1a19   : > { %v10482_v51 = vld [vmem:[%s7565_s25 + $0x28] sm:$0xff]  ;;  %v6410_v12 = vld [vmem:[#allocation3 + $0x610] sm:$0xff]  ;;  %6862 = vmatprep.subr.bf16.mxu0 %v6861_v52  ;;  %v6921_v41 = vpack.c.bf16 %v6411_v19, %v6409_v47  ;;  %v2873_v58 = vadd.f32 %v2852_v45, %v2756_v6  ;;  %v13016_v5 = vld [vmem:[#allocation237_spill] sm:$0xff] }
0x1a1a   : > { %6400 = vmatprep.mubr.f32.mxu0 %v10482_v51  ;;  %v13014_v56 = vld [vmem:[#allocation240_spill] sm:$0xff]  ;;  %v13015_v44 = vld [vmem:[#allocation239_spill] sm:$0xff]  ;;  %v6923_v60 = vpack.c.bf16 %v6410_v12, %v6408_v2  ;;  %v6283_v55 = vld [vmem:[#allocation3 + $0x458] sm:$0xff]  ;;  %6864 = vmatpush1.bf16.msra.mxu0 %v6863_v0 }
0x1a1b   : > { %v2855_v43 = vsel %vm12269_vm5, %v13015_v44, %v13014_v56  ;;  %v13017_v36 = vld [vmem:[#allocation236_spill] sm:$0xff]  ;;  %v6281_v50 = vld [vmem:[#allocation3 + $0x448] sm:$0xff]  ;;  %v13019_v48 = vld [vmem:[#allocation241_spill] sm:$0xff]  ;;  %6922 = vmatprep.subr.bf16.mxu1 %v6921_v41 }
0x1a1c   : > { %v10493_v15 = vsel %vm12269_vm5, %v13017_v36, %v13016_v5  ;;  %v2856_v44 = vsel %vm12269_vm5, %v13014_v56, %v13019_v48  ;;  %v13020_v25 = vld [vmem:[#allocation245_spill] sm:$0xff]  ;;  %v13021_v52 = vld [vmem:[#allocation242_spill] sm:$0xff]  ;;  %v6865_v6 = vpack.c.bf16 %v6283_v55, %v6281_v50  ;;  %v6282_v54 = vld [vmem:[#allocation3 + $0x450] sm:$0xff]  ;;  %v2878_v59 = vadd.f32 %v2855_v43, %v2761_v20  ;;  %v10518_v20 = vpop.permute.xlu1 %5458 }
0x1a1d   : > { %13018 = vst [vmem:[#allocation42_spill] sm:$0xff] %v10493_v15  ;;  %v2966_v12 = vsel %vm12259_vm1, %v13021_v52, %v13020_v25  ;;  %v6280_v34 = vld [vmem:[#allocation3 + $0x440] sm:$0xff]  ;;  %v6413_v24 = vld [vmem:[#allocation3 + $0x628] sm:$0xff]  ;;  %v13025_v19 = vld [vmem:[#allocation244_spill] sm:$0xff] }
0x1a1e   : > { %v13022_v28 = vld [vmem:[#allocation238_spill] sm:$0xff]  ;;  %v13024_v47 = vld [vmem:[#allocation247_spill] sm:$0xff]  ;;  %v10510_v2 = vld [vmem:[%s7565_s25 + $0x10] sm:$0xff]  ;;  %v6867_v0 = vpack.c.bf16 %v6282_v54, %v6280_v34  ;;  %13028 = vst [vmem:[#allocation48_spill] sm:$0xff] %v10518_v20  ;;  %6866 = vmatprep.subr.bf16.mxu0 %v6865_v6  ;;  %v2986_v34 = vadd.f32 %v2966_v12, %v2870_v8  ;;  %v2987_v54 = vadd.f32 %v13020_v25, %v2871_v61 }
0x1a1f   : > { %v10504_v45 = vsel %vm12269_vm5, %v13016_v5, %v13022_v28  ;;  %v2967_v56 = vsel %vm12259_vm1, %v13025_v19, %v13024_v47  ;;  %6265 = vmatmul.mubr.f32.vlgmr.msra.gmra.mrb[0].mxu1 %v10510_v2  ;;  %v6415_v41 = vld [vmem:[#allocation3 + $0x638] sm:$0xff]  ;;  %v6412_v36 = vld [vmem:[#allocation3 + $0x620] sm:$0xff]  ;;  %v6414_v50 = vld [vmem:[#allocation3 + $0x630] sm:$0xff]  ;;  %v10516_v5 = vpop.permute.xlu0 %5460  ;;  %v2879_v28 = vadd.f32 %v2856_v44, %v2762_v49  ;;  %vm13391_vm5 = vcmask 236544  }
0x1a20   : > { %13023 = vst [vmem:[#allocation41_spill] sm:$0xff] %v10504_v45  ;;  %v13026_v55 = vld [vmem:[#allocation246_spill] sm:$0xff]  ;;  %13027 = vst [vmem:[#allocation43_spill] sm:$0xff] %v10516_v5  ;;  %6924 = vmatpush1.bf16.msra.mxu1 %v6923_v60  ;;  %v6925_v43 = vpack.c.bf16 %v6415_v41, %v6413_v24  ;;  %v6927_v19 = vpack.c.bf16 %v6414_v50, %v6412_v36  ;;  %v2880_v45 = vadd.f32 %v13019_v48, %v2763_v57  ;;  %v6285_v15 = vld [vmem:[#allocation3 + $0x468] sm:$0xff] }
0x1a21   : > { %v2968_v52 = vsel %vm12259_vm1, %v13024_v47, %v13026_v55  ;;  %v6287_v17 = vld [vmem:[#allocation3 + $0x478] sm:$0xff]  ;;  %v2990_v47 = vadd.f32 %v13026_v55, %v2874_v42  ;;  %v13030_v20 = vld [vmem:[#allocation250_spill] sm:$0xff]  ;;  %6868 = vmatpush1.bf16.msra.mxu0 %v6867_v0  ;;  %v6286_v57 = vld [vmem:[#allocation3 + $0x470] sm:$0xff]  ;;  %v2988_v48 = vadd.f32 %v2967_v56, %v2872_v4 }
0x1a22   : > { %v10523_v9 = vld [vmem:[%s7565_s25 + $0x38] sm:$0xff]  ;;  %6926 = vmatprep.subr.bf16.mxu1 %v6925_v43  ;;  %v6869_v49 = vpack.c.bf16 %v6287_v17, %v6285_v15  ;;  %v6284_v44 = vld [vmem:[#allocation3 + $0x460] sm:$0xff]  ;;  %v6417_v8 = vld [vmem:[#allocation3 + $0x648] sm:$0xff]  ;;  %v2989_v61 = vadd.f32 %v2968_v52, %v2873_v58  ;;  %v10538_v17 = vpop.permute.xlu1 %5462 }
0x1a23   : > { %6536 = vmatprep.mubr.f32.mxu1 %v10523_v9  ;;  %v13029_v5 = vld [vmem:[#allocation253_spill] sm:$0xff]  ;;  %v13031_v25 = vld [vmem:[#allocation252_spill] sm:$0xff]  ;;  %v6871_v6 = vpack.c.bf16 %v6286_v57, %v6284_v44  ;;  %v6416_v41 = vld [vmem:[#allocation3 + $0x640] sm:$0xff]  ;;  %v10536_v0 = vpop.permute.xlu0 %5464  ;;  %13035 = vst [vmem:[#allocation49_spill] sm:$0xff] %v10538_v17 }
0x1a24   : > { %v2971_v60 = vsel %vm12259_vm1, %v13030_v20, %v13029_v5  ;;  %v2972_v12 = vsel %vm12259_vm1, %v13029_v5, %v13031_v25  ;;  %v6419_v24 = vld [vmem:[#allocation3 + $0x658] sm:$0xff]  ;;  %v6418_v42 = vld [vmem:[#allocation3 + $0x650] sm:$0xff]  ;;  %v13033_v50 = vld [vmem:[#allocation255_spill] sm:$0xff]  ;;  %13034 = vst [vmem:[#allocation47_spill] sm:$0xff] %v10536_v0  ;;  %6928 = vmatpush1.bf16.msra.mxu1 %v6927_v19  ;;  %6870 = vmatprep.subr.bf16.mxu0 %v6869_v49 }
0x1a25   : > { %v13032_v36 = vld [vmem:[#allocation256_spill] sm:$0xff]  ;;  %v6929_v4 = vpack.c.bf16 %v6419_v24, %v6417_v8  ;;  %v6931_v58 = vpack.c.bf16 %v6418_v42, %v6416_v41  ;;  %v13037_v52 = vld [vmem:[#allocation249_spill] sm:$0xff]  ;;  %v13039_v5 = vld [vmem:[#allocation251_spill] sm:$0xff]  ;;  %v2996_v43 = vadd.f32 %v13031_v25, %v2880_v45  ;;  %v2994_v44 = vadd.f32 %v2971_v60, %v2878_v59  ;;  %6872 = vmatpush1.bf16.msra.mxu0 %v6871_v6 }
0x1a26   : > { %v3082_v55 = vsel %vm12264_vm0, %v13033_v50, %v13032_v36  ;;  %v13036_v15 = vld [vmem:[#allocation248_spill] sm:$0xff]  ;;  %v6289_v57 = vld [vmem:[#allocation3 + $0x488] sm:$0xff]  ;;  %v6291_v50 = vld [vmem:[#allocation3 + $0x498] sm:$0xff]  ;;  %v2995_v17 = vadd.f32 %v2972_v12, %v2879_v28  ;;  %v3103_v45 = vadd.f32 %v13032_v36, %v2987_v54  ;;  %v10563_v6 = vpop.permute.xlu1 %5466 }
0x1a27   : > { %v10543_v56 = vsel %vm12259_vm1, %v13037_v52, %v13036_v15  ;;  %v10548_v20 = vsel %vm12259_vm1, %v13036_v15, %v13039_v5  ;;  %v13041_v0 = vld [vmem:[#allocation258_spill] sm:$0xff]  ;;  %v13042_v19 = vld [vmem:[#allocation257_spill] sm:$0xff]  ;;  %v13043_v8 = vld [vmem:[#allocation259_spill] sm:$0xff]  ;;  %6930 = vmatprep.subr.bf16.mxu1 %v6929_v4  ;;  %v6873_v41 = vpack.c.bf16 %v6291_v50, %v6289_v57  ;;  %v3102_v5 = vadd.f32 %v3082_v55, %v2986_v34  ;;  %v10561_v46 = vpop.permute.xlu0 %5468 }
0x1a28   : > { %13038 = vst [vmem:[#allocation53_spill] sm:$0xff] %v10543_v56  ;;  %13040 = vst [vmem:[#allocation45_spill] sm:$0xff] %v10548_v20  ;;  %v3083_v49 = vsel %vm12264_vm0, %v13042_v19, %v13041_v0  ;;  %v3084_v24 = vsel %vm12264_vm0, %v13041_v0, %v13043_v8  ;;  %v6288_v42 = vld [vmem:[#allocation3 + $0x480] sm:$0xff]  ;;  %v6290_v52 = vld [vmem:[#allocation3 + $0x490] sm:$0xff]  ;;  %6932 = vmatpush1.bf16.msra.mxu1 %v6931_v58  ;;  %v3106_v54 = vadd.f32 %v13043_v8, %v2990_v47  ;;  %vm3286_vm1 = vcmask 621568  }
0x1a29   : > { %v6421_v15 = vld [vmem:[#allocation3 + $0x668] sm:$0xff]  ;;  %v6875_v59 = vpack.c.bf16 %v6290_v52, %v6288_v42  ;;  %v6423_v60 = vld [vmem:[#allocation3 + $0x678] sm:$0xff]  ;;  %v6420_v25 = vld [vmem:[#allocation3 + $0x660] sm:$0xff]  ;;  %13046 = vst [vmem:[#allocation44_spill] sm:$0xff] %v10561_v46  ;;  %6874 = vmatprep.subr.bf16.mxu0 %v6873_v41  ;;  %v3104_v28 = vadd.f32 %v3083_v49, %v2988_v48  ;;  %v3105_v34 = vadd.f32 %v3084_v24, %v2989_v61 }
0x1a2a   : > { %v6422_v20 = vld [vmem:[#allocation3 + $0x670] sm:$0xff]  ;;  %v13045_v19 = vld [vmem:[#allocation263_spill] sm:$0xff]  ;;  %13047 = vst [vmem:[#allocation46_spill] sm:$0xff] %v10563_v6  ;;  %v6933_v50 = vpack.c.bf16 %v6423_v60, %v6421_v15  ;;  %v13048_v12 = vld [vmem:[#allocation261_spill] sm:$0xff] }
0x1a2b   : > { %v13044_v56 = vld [vmem:[#allocation264_spill] sm:$0xff]  ;;  %v6935_v0 = vpack.c.bf16 %v6422_v20, %v6420_v25  ;;  %v6293_v4 = vld [vmem:[#allocation3 + $0x4a8] sm:$0xff]  ;;  %v6295_v57 = vld [vmem:[#allocation3 + $0x4b8] sm:$0xff]  ;;  %6876 = vmatpush1.bf16.msra.mxu0 %v6875_v59 }
0x1a2c   : > { %v3087_v27 = vsel %vm12264_vm0, %v13045_v19, %v13044_v56  ;;  %v13049_v36 = vld [vmem:[#allocation260_spill] sm:$0xff]  ;;  %v13051_v42 = vld [vmem:[#allocation265_spill] sm:$0xff]  ;;  %v13052_v19 = vld [vmem:[#allocation266_spill] sm:$0xff]  ;;  %6934 = vmatprep.subr.bf16.mxu1 %v6933_v50  ;;  %v6877_v48 = vpack.c.bf16 %v6295_v57, %v6293_v4  ;;  %v10586_v50 = vpop.permute.xlu0 %5472  ;;  %v10588_v4 = vpop.permute.xlu1 %5470 }
0x1a2d   : > { %v10569_v55 = vsel %vm12264_vm0, %v13049_v36, %v13048_v12  ;;  %v3088_v52 = vsel %vm12264_vm0, %v13044_v56, %v13051_v42  ;;  %v13053_v58 = vld [vmem:[#allocation267_spill] sm:$0xff]  ;;  %v6292_v61 = vld [vmem:[#allocation3 + $0x4a0] sm:$0xff]  ;;  %v6294_v47 = vld [vmem:[#allocation3 + $0x4b0] sm:$0xff]  ;;  %v3110_v24 = vadd.f32 %v3087_v27, %v2994_v44  ;;  %v3112_v59 = vadd.f32 %v13051_v42, %v2996_v43  ;;  %13058 = vst [vmem:[#allocation54_spill] sm:$0xff] %v10586_v50 }
0x1a2e   : > { %13050 = vst [vmem:[#allocation55_spill] sm:$0xff] %v10569_v55  ;;  %v3161_v41 = vsel %vm357_vm2, %v13053_v58, %v13052_v19  ;;  %v6425_v20 = vld [vmem:[#allocation3 + $0x688] sm:$0xff]  ;;  %v13054_v49 = vld [vmem:[#allocation262_spill] sm:$0xff]  ;;  %v13056_v15 = vld [vmem:[#allocation268_spill] sm:$0xff]  ;;  %v6879_v25 = vpack.c.bf16 %v6294_v47, %v6292_v61  ;;  %6936 = vmatpush1.bf16.msra.mxu1 %v6935_v0  ;;  %6878 = vmatprep.subr.bf16.mxu0 %v6877_v48 }
0x1a2f   : > { %v10580_v8 = vsel %vm12264_vm0, %v13048_v12, %v13054_v49  ;;  %v13057_v60 = vld [vmem:[#allocation269_spill] sm:$0xff]  ;;  %v6424_v46 = vld [vmem:[#allocation3 + $0x680] sm:$0xff]  ;;  %v6426_v58 = vld [vmem:[#allocation3 + $0x690] sm:$0xff]  ;;  %13059 = vst [vmem:[#allocation61_spill] sm:$0xff] %v10588_v4  ;;  %v3111_v27 = vadd.f32 %v3088_v52, %v2995_v17  ;;  %v3179_v44 = vadd.f32 %v13052_v19, %v3103_v45  ;;  %v3178_v6 = vadd.f32 %v3161_v41, %v3102_v5 }
0x1a30   : > { %13055 = vst [vmem:[#allocation52_spill] sm:$0xff] %v10580_v8  ;;  %v3162_v56 = vsel %vm357_vm2, %v13057_v60, %v13056_v15  ;;  %v6427_v36 = vld [vmem:[#allocation3 + $0x698] sm:$0xff]  ;;  %v6939_v57 = vpack.c.bf16 %v6426_v58, %v6424_v46  ;;  %v3182_v61 = vadd.f32 %v13056_v15, %v3106_v54  ;;  %v6297_v47 = vld [vmem:[#allocation3 + $0x4c8] sm:$0xff]  ;;  %v3180_v8 = vadd.f32 %v13057_v60, %v3104_v28  ;;  %v6296_v55 = vld [vmem:[#allocation3 + $0x4c0] sm:$0xff]  ;;  %v10607_v60 = vpop.permute.xlu0 %5476 }
0x1a31   : > { %v6937_v12 = vpack.c.bf16 %v6427_v36, %v6425_v20  ;;  %v6299_v49 = vld [vmem:[#allocation3 + $0x4d8] sm:$0xff]  ;;  %v3181_v43 = vadd.f32 %v3162_v56, %v3105_v34  ;;  %6880 = vmatpush1.bf16.msra.mxu0 %v6879_v25  ;;  %v6298_v4 = vld [vmem:[#allocation3 + $0x4d0] sm:$0xff]  ;;  %v6429_v0 = vld [vmem:[#allocation3 + $0x6a8] sm:$0xff]  ;;  %13068 = vst [vmem:[#allocation60_spill] sm:$0xff] %v10607_v60  ;;  %v5475_v56 = vpop.permute.xlu1 %5474  ;;  %vm3640_vm0 = vcmask 523264  }
0x1a32   : > { %v6881_v42 = vpack.c.bf16 %v6299_v49, %v6297_v47  ;;  %v13060_v48 = vld [vmem:[#allocation270_spill] sm:$0xff]  ;;  %v13061_v20 = vld [vmem:[#allocation271_spill] sm:$0xff]  ;;  %v13063_v17 = vld [vmem:[#allocation272_spill] sm:$0xff]  ;;  %v6883_v34 = vpack.c.bf16 %v6298_v4, %v6296_v55 }
0x1a33   : > { %6938 = vmatprep.subr.bf16.mxu1 %v6937_v12  ;;  %v10596_v46 = vsel %vm357_vm2, %v13061_v20, %v13060_v48  ;;  %v13064_v5 = vld [vmem:[#allocation273_spill] sm:$0xff]  ;;  %v13065_v54 = vld [vmem:[#allocation275_spill] sm:$0xff]  ;;  %v13066_v52 = vld [vmem:[#allocation274_spill] sm:$0xff]  ;;  %v3188_v12 = vadd.f32 %v13063_v17, %v3112_v59  ;;  %v10616_v48 = vsel %vm4482_vm9, %v10586_v50, %v5475_v56 }
0x1a34   : > { %13062 = vst [vmem:[#allocation58_spill] sm:$0xff] %v10596_v46  ;;  %v3164_v45 = vsel %vm357_vm2, %v13064_v5, %v13063_v17  ;;  %v3287_v28 = vsel %vm3286_vm1, %v13066_v52, %v13065_v54  ;;  %v6431_v19 = vld [vmem:[#allocation3 + $0x6b8] sm:$0xff]  ;;  %v6428_v58 = vld [vmem:[#allocation3 + $0x6a0] sm:$0xff]  ;;  %v6430_v41 = vld [vmem:[#allocation3 + $0x6b0] sm:$0xff]  ;;  %6940 = vmatpush1.bf16.msra.mxu1 %v6939_v57  ;;  %6882 = vmatprep.subr.bf16.mxu0 %v6881_v42  ;;  %vm3404_vm2 = vcmask 613376  }
0x1a35   : > { %v13067_v49 = vld [vmem:[#allocation276_spill] sm:$0xff]  ;;  %v6941_v25 = vpack.c.bf16 %v6431_v19, %v6429_v0  ;;  %v6943_v36 = vpack.c.bf16 %v6430_v41, %v6428_v58  ;;  %v3186_v47 = vadd.f32 %v13064_v5, %v3110_v24  ;;  %v13069_v52 = vld [vmem:[#allocation278_spill] sm:$0xff]  ;;  %v13070_v55 = vld [vmem:[#allocation277_spill] sm:$0xff]  ;;  %13071 = vst [vmem:[#allocation64_spill] sm:$0xff] %v10616_v48  ;;  %v3187_v46 = vadd.f32 %v3164_v45, %v3111_v27  ;;  %v5481_v27 = vpop.permute.xlu0 %5480  ;;  %v5479_v45 = vpop.permute.xlu1 %5478 }
0x1a36   : > { %v3288_v15 = vsel %vm3286_vm1, %v13065_v54, %v13067_v49  ;;  %v3289_v4 = vsel %vm3286_vm1, %v13070_v55, %v13069_v52  ;;  %v6301_v54 = vld [vmem:[#allocation3 + $0x4e8] sm:$0xff]  ;;  %v6303_v49 = vld [vmem:[#allocation3 + $0x4f8] sm:$0xff]  ;;  %6884 = vmatpush1.bf16.msra.mxu0 %v6883_v34  ;;  %v6300_v42 = vld [vmem:[#allocation3 + $0x4e0] sm:$0xff]  ;;  %v3308_v17 = vadd.f32 %v3287_v28, %v3178_v6  ;;  %v3310_v19 = vadd.f32 %v13070_v55, %v3180_v8 }
0x1a37   : > { %v13072_v20 = vld [vmem:[#allocation279_spill] sm:$0xff]  ;;  %6942 = vmatprep.subr.bf16.mxu1 %v6941_v25  ;;  %v6885_v59 = vpack.c.bf16 %v6303_v49, %v6301_v54  ;;  %v6302_v24 = vld [vmem:[#allocation3 + $0x4f0] sm:$0xff]  ;;  %v3309_v5 = vadd.f32 %v3288_v15, %v3179_v44  ;;  %v6435_v41 = vld [vmem:[#allocation3 + $0x6d8] sm:$0xff]  ;;  %v3311_v50 = vadd.f32 %v3289_v4, %v3181_v43  ;;  %v10629_v8 = vsel %vm4482_vm9, %v10607_v60, %v5479_v45 }
0x1a38   : > { %v3290_v57 = vsel %vm3286_vm1, %v13069_v52, %v13072_v20  ;;  %v6433_v0 = vld [vmem:[#allocation3 + $0x6c8] sm:$0xff]  ;;  %v6887_v58 = vpack.c.bf16 %v6302_v24, %v6300_v42  ;;  %v6432_v56 = vld [vmem:[#allocation3 + $0x6c0] sm:$0xff]  ;;  %v6434_v48 = vld [vmem:[#allocation3 + $0x6d0] sm:$0xff]  ;;  %6944 = vmatpush1.bf16.msra.mxu1 %v6943_v36  ;;  %13076 = vst [vmem:[#allocation65_spill] sm:$0xff] %v10629_v8  ;;  %v10632_v44 = vsel %vm4482_vm9, %v5479_v45, %v5481_v27 }
0x1a39   : > { %6886 = vmatprep.subr.bf16.mxu0 %v6885_v59  ;;  %v6945_v20 = vpack.c.bf16 %v6435_v41, %v6433_v0  ;;  %v6947_v52 = vpack.c.bf16 %v6434_v48, %v6432_v56  ;;  %v3312_v34 = vadd.f32 %v3290_v57, %v3182_v61  ;;  %v13073_v25 = vld [vmem:[#allocation281_spill] sm:$0xff]  ;;  %v13074_v54 = vld [vmem:[#allocation280_spill] sm:$0xff]  ;;  %13077 = vst [vmem:[#allocation56_spill] sm:$0xff] %v10632_v44  ;;  %v6305_v43 = vld [vmem:[#allocation3 + $0x508] sm:$0xff] }
0x1a3a   : > { %v10625_v6 = vsel %vm3286_vm1, %v13074_v54, %v13073_v25  ;;  %v6307_v28 = vld [vmem:[#allocation3 + $0x518] sm:$0xff]  ;;  %v13078_v15 = vld [vmem:[#allocation284_spill] sm:$0xff]  ;;  %v13079_v36 = vld [vmem:[#allocation283_spill] sm:$0xff]  ;;  %6888 = vmatpush1.bf16.msra.mxu0 %v6887_v58 }
0x1a3b   : > { %13075 = vst [vmem:[#allocation66_spill] sm:$0xff] %v10625_v6  ;;  %v3293_v55 = vsel %vm3286_vm1, %v13079_v36, %v13078_v15  ;;  %v13080_v48 = vld [vmem:[#allocation285_spill] sm:$0xff]  ;;  %6946 = vmatprep.subr.bf16.mxu1 %v6945_v20  ;;  %v6889_v4 = vpack.c.bf16 %v6307_v28, %v6305_v43  ;;  %v6304_v49 = vld [vmem:[#allocation3 + $0x500] sm:$0xff]  ;;  %v6306_v57 = vld [vmem:[#allocation3 + $0x510] sm:$0xff]  ;;  %v3316_v8 = vadd.f32 %v13079_v36, %v3186_v47 }
0x1a3c   : > { %v3294_v61 = vsel %vm3286_vm1, %v13078_v15, %v13080_v48  ;;  %v6437_v59 = vld [vmem:[#allocation3 + $0x6e8] sm:$0xff]  ;;  %v13081_v42 = vld [vmem:[#allocation282_spill] sm:$0xff]  ;;  %v13085_v27 = vld [vmem:[#allocation289_spill] sm:$0xff]  ;;  %v6891_v15 = vpack.c.bf16 %v6306_v57, %v6304_v49  ;;  %6948 = vmatpush1.bf16.msra.mxu1 %v6947_v52  ;;  %v3317_v60 = vadd.f32 %v3293_v55, %v3187_v46 }
0x1a3d   : > { %v10643_v24 = vsel %vm3286_vm1, %v13073_v25, %v13081_v42  ;;  %v13083_v0 = vld [vmem:[#allocation286_spill] sm:$0xff]  ;;  %v13084_v41 = vld [vmem:[#allocation287_spill] sm:$0xff]  ;;  %v6439_v58 = vld [vmem:[#allocation3 + $0x6f8] sm:$0xff]  ;;  %6890 = vmatprep.subr.bf16.mxu0 %v6889_v4  ;;  %vm3522_vm1 = vcmask 605184  }
0x1a3e   : > { %13082 = vst [vmem:[#allocation57_spill] sm:$0xff] %v10643_v24  ;;  %v3405_v56 = vsel %vm3404_vm2, %v13084_v41, %v13083_v0  ;;  %v3406_v45 = vsel %vm3404_vm2, %v13083_v0, %v13085_v27  ;;  %v6436_v20 = vld [vmem:[#allocation3 + $0x6e0] sm:$0xff]  ;;  %v6438_v43 = vld [vmem:[#allocation3 + $0x6f0] sm:$0xff]  ;;  %v13086_v28 = vld [vmem:[#allocation291_spill] sm:$0xff]  ;;  %v6949_v25 = vpack.c.bf16 %v6439_v58, %v6437_v59  ;;  %v3318_v41 = vadd.f32 %v3294_v61, %v3188_v12 }
0x1a3f   : > { %v13087_v48 = vld [vmem:[#allocation288_spill] sm:$0xff]  ;;  %v6951_v42 = vpack.c.bf16 %v6438_v43, %v6436_v20  ;;  %v13088_v24 = vld [vmem:[#allocation290_spill] sm:$0xff]  ;;  %v6309_v49 = vld [vmem:[#allocation3 + $0x528] sm:$0xff]  ;;  %v3426_v6 = vadd.f32 %v3405_v56, %v3308_v17  ;;  %6892 = vmatpush1.bf16.msra.mxu0 %v6891_v15  ;;  %v3427_v47 = vadd.f32 %v3406_v45, %v3309_v5 }
0x1a40   : > { %v3407_v44 = vsel %vm3404_vm2, %v13087_v48, %v13086_v28  ;;  %v3408_v0 = vsel %vm3404_vm2, %v13086_v28, %v13088_v24  ;;  %v6311_v57 = vld [vmem:[#allocation3 + $0x538] sm:$0xff]  ;;  %v6308_v27 = vld [vmem:[#allocation3 + $0x520] sm:$0xff]  ;;  %v3428_v54 = vadd.f32 %v13087_v48, %v3310_v19  ;;  %6950 = vmatprep.subr.bf16.mxu1 %v6949_v25  ;;  %v6310_v4 = vld [vmem:[#allocation3 + $0x530] sm:$0xff] }
0x1a41   : > { %v6893_v52 = vpack.c.bf16 %v6311_v57, %v6309_v49  ;;  %v6441_v59 = vld [vmem:[#allocation3 + $0x708] sm:$0xff]  ;;  %v6443_v58 = vld [vmem:[#allocation3 + $0x718] sm:$0xff]  ;;  %v3429_v46 = vadd.f32 %v3407_v44, %v3311_v50  ;;  %v6895_v12 = vpack.c.bf16 %v6310_v4, %v6308_v27  ;;  %v3430_v55 = vadd.f32 %v3408_v0, %v3312_v34  ;;  %v13089_v61 = vld [vmem:[#allocation292_spill] sm:$0xff]  ;;  %6952 = vmatpush1.bf16.msra.mxu1 %v6951_v42 }
0x1a42   : > { %v6953_v36 = vpack.c.bf16 %v6443_v58, %v6441_v59  ;;  %v13090_v24 = vld [vmem:[#allocation293_spill] sm:$0xff]  ;;  %v13093_v56 = vld [vmem:[#allocation294_spill] sm:$0xff]  ;;  %v6442_v43 = vld [vmem:[#allocation3 + $0x710] sm:$0xff] }
0x1a43   : > { %v10662_v20 = vsel %vm3404_vm2, %v13090_v24, %v13089_v61  ;;  %v13092_v17 = vld [vmem:[#allocation297_spill] sm:$0xff]  ;;  %6894 = vmatprep.subr.bf16.mxu0 %v6893_v52  ;;  %v6440_v15 = vld [vmem:[#allocation3 + $0x700] sm:$0xff]  ;;  %v6313_v28 = vld [vmem:[#allocation3 + $0x548] sm:$0xff] }
0x1a44   : > { %13091 = vst [vmem:[#allocation67_spill] sm:$0xff] %v10662_v20  ;;  %v3411_v19 = vsel %vm3404_vm2, %v13093_v56, %v13092_v17  ;;  %v13094_v48 = vld [vmem:[#allocation296_spill] sm:$0xff]  ;;  %v13095_v5 = vld [vmem:[#allocation299_spill] sm:$0xff]  ;;  %v13096_v34 = vld [vmem:[#allocation298_spill] sm:$0xff]  ;;  %6954 = vmatprep.subr.bf16.mxu1 %v6953_v36  ;;  %v6955_v0 = vpack.c.bf16 %v6442_v43, %v6440_v15  ;;  %6896 = vmatpush1.bf16.msra.mxu0 %v6895_v12 }
0x1a45   : > { %v3412_v50 = vsel %vm3404_vm2, %v13092_v17, %v13094_v48  ;;  %v3523_v44 = vsel %vm3522_vm1, %v13096_v34, %v13095_v5  ;;  %v13097_v45 = vld [vmem:[#allocation300_spill] sm:$0xff]  ;;  %v6315_v49 = vld [vmem:[#allocation3 + $0x558] sm:$0xff]  ;;  %v6312_v42 = vld [vmem:[#allocation3 + $0x540] sm:$0xff]  ;;  %v3435_v43 = vadd.f32 %v3411_v19, %v3317_v60 }
0x1a46   : > { %v3524_v25 = vsel %vm3522_vm1, %v13095_v5, %v13097_v45  ;;  %v6314_v57 = vld [vmem:[#allocation3 + $0x550] sm:$0xff]  ;;  %v13098_v27 = vld [vmem:[#allocation302_spill] sm:$0xff]  ;;  %v13099_v52 = vld [vmem:[#allocation301_spill] sm:$0xff]  ;;  %v6897_v17 = vpack.c.bf16 %v6315_v49, %v6313_v28  ;;  %v3434_v5 = vadd.f32 %v13093_v56, %v3316_v8  ;;  %v3436_v24 = vadd.f32 %v3412_v50, %v3318_v41  ;;  %6956 = vmatpush1.bf16.msra.mxu1 %v6955_v0 }
0x1a47   : > { %v3525_v4 = vsel %vm3522_vm1, %v13099_v52, %v13098_v27  ;;  %v13100_v59 = vld [vmem:[#allocation303_spill] sm:$0xff]  ;;  %v6899_v48 = vpack.c.bf16 %v6314_v57, %v6312_v42  ;;  %v6447_v20 = vld [vmem:[#allocation3 + $0x738] sm:$0xff]  ;;  %v3544_v3 = vadd.f32 %v3523_v44, %v3426_v6  ;;  %v3545_v10 = vadd.f32 %v3524_v25, %v3427_v47  ;;  %v6444_v12 = vld [vmem:[#allocation3 + $0x720] sm:$0xff] }
0x1a48   : > { %v3526_v58 = vsel %vm3522_vm1, %v13098_v27, %v13100_v59  ;;  %v6445_v34 = vld [vmem:[#allocation3 + $0x728] sm:$0xff]  ;;  %6898 = vmatprep.subr.bf16.mxu0 %v6897_v17  ;;  %v6446_v28 = vld [vmem:[#allocation3 + $0x730] sm:$0xff]  ;;  %v3546_v42 = vadd.f32 %v13099_v52, %v3428_v54  ;;  %v3547_v57 = vadd.f32 %v3525_v4, %v3429_v46  ;;  %v6319_v27 = vld [vmem:[#allocation3 + $0x578] sm:$0xff] }
0x1a49   : > { %v13101_v36 = vld [vmem:[#allocation295_spill] sm:$0xff]  ;;  %v6957_v45 = vpack.c.bf16 %v6447_v20, %v6445_v34  ;;  %v3548_v8 = vadd.f32 %v3526_v58, %v3430_v55  ;;  %v6959_v56 = vpack.c.bf16 %v6446_v28, %v6444_v12  ;;  %v6318_v59 = vld [vmem:[#allocation3 + $0x570] sm:$0xff]  ;;  %v13105_v41 = vld [vmem:[#allocation309_spill] sm:$0xff]  ;;  %6900 = vmatpush1.bf16.msra.mxu0 %v6899_v48 }
0x1a4a   : > { %v10686_v15 = vsel %vm3404_vm2, %v13089_v61, %v13101_v36  ;;  %v6317_v49 = vld [vmem:[#allocation3 + $0x568] sm:$0xff]  ;;  %v6316_v61 = vld [vmem:[#allocation3 + $0x560] sm:$0xff]  ;;  %v13103_v60 = vld [vmem:[#allocation308_spill] sm:$0xff]  ;;  %vm3758_vm2 = vcmask 515072  }
0x1a4b   : > { %13102 = vst [vmem:[#allocation72_spill] sm:$0xff] %v10686_v15  ;;  %6958 = vmatprep.subr.bf16.mxu1 %v6957_v45  ;;  %v13104_v20 = vld [vmem:[#allocation307_spill] sm:$0xff]  ;;  %v3530_v47 = vsel %vm3522_vm1, %v13103_v60, %v13105_v41  ;;  %v6901_v19 = vpack.c.bf16 %v6319_v27, %v6317_v49  ;;  %v6903_v50 = vpack.c.bf16 %v6318_v59, %v6316_v61  ;;  %v6451_v54 = vld [vmem:[#allocation3 + $0x758] sm:$0xff]  ;;  %v13107_v55 = vld [vmem:[#allocation304_spill] sm:$0xff] }
0x1a4c   : > { %v3529_v6 = vsel %vm3522_vm1, %v13104_v20, %v13103_v60  ;;  %v6449_v34 = vld [vmem:[#allocation3 + $0x748] sm:$0xff]  ;;  %v13106_v46 = vld [vmem:[#allocation305_spill] sm:$0xff]  ;;  %v13109_v25 = vld [vmem:[#allocation306_spill] sm:$0xff]  ;;  %v3552_v48 = vadd.f32 %v13104_v20, %v3434_v5  ;;  %6960 = vmatpush1.bf16.msra.mxu1 %v6959_v56  ;;  %v10715_v41 = vadd.f32 %v3530_v47, %v3436_v24  ;;  %v5516_v20 = vpop.permute.xlu1 %5515 }
0x1a4d   : > { %v10698_v44 = vsel %vm3522_vm1, %v13107_v55, %v13106_v46  ;;  %v10703_v0 = vsel %vm3522_vm1, %v13106_v46, %v13109_v25  ;;  %v13111_v52 = vld [vmem:[#allocation310_spill] sm:$0xff]  ;;  %v13112_v4 = vld [vmem:[#allocation311_spill] sm:$0xff]  ;;  %v6961_v17 = vpack.c.bf16 %v6451_v54, %v6449_v34  ;;  %v13113_v36 = vld [vmem:[#allocation313_spill] sm:$0xff]  ;;  %6902 = vmatprep.subr.bf16.mxu0 %v6901_v19  ;;  %v3553_v60 = vadd.f32 %v3529_v6, %v3435_v43  ;;  %v5520_v54 = vpop.permute.xlu0 %5519 }
0x1a4e   : > { %13108 = vst [vmem:[#allocation71_spill] sm:$0xff] %v10698_v44  ;;  %13110 = vst [vmem:[#allocation73_spill] sm:$0xff] %v10703_v0  ;;  %v3641_v58 = vsel %vm3640_vm0, %v13112_v4, %v13111_v52  ;;  %v3642_v45 = vsel %vm3640_vm0, %v13111_v52, %v13113_v36  ;;  %v13114_v12 = vld [vmem:[#allocation315_spill] sm:$0xff]  ;;  %v13115_v28 = vld [vmem:[#allocation312_spill] sm:$0xff]  ;;  %v5530_v43 = vmul.f32 %v10472_v26, %v5516_v20  ;;  %6904 = vmatpush1.bf16.msra.mxu0 %v6903_v50  ;;  %vm3973_vm1 = vcmask 498688  }
0x1a4f   : > { %v3643_v49 = vsel %vm3640_vm0, %v13115_v28, %v13114_v12  ;;  %v6448_v27 = vld [vmem:[#allocation3 + $0x740] sm:$0xff]  ;;  %v6450_v61 = vld [vmem:[#allocation3 + $0x750] sm:$0xff]  ;;  %v6321_v59 = vld [vmem:[#allocation3 + $0x588] sm:$0xff]  ;;  %6962 = vmatprep.subr.bf16.mxu1 %v6961_v17  ;;  %v10720_v56 = vadd.f32 %v3641_v58, %v3544_v3  ;;  %v10723_v19 = vadd.f32 %v13115_v28, %v3546_v42  ;;  %v5533_v3 = vmul.f32 %v10510_v2, %v5520_v54 }
0x1a50   : > { %v13116_v34 = vld [vmem:[#allocation314_spill] sm:$0xff]  ;;  %v6963_v46 = vpack.c.bf16 %v6450_v61, %v6448_v27  ;;  %v6323_v25 = vld [vmem:[#allocation3 + $0x598] sm:$0xff]  ;;  %v6322_v36 = vld [vmem:[#allocation3 + $0x590] sm:$0xff]  ;;  %v10730_v17 = vadd.f32 %v3643_v49, %v3547_v57  ;;  %5554 = vrot.lane.b32.xlu1 %v5530_v43, %s7422_s11  ;;  %v10745_v49 = vpop.permute.xlu1 %5523 }
0x1a51   : > { %v3644_v5 = vsel %vm3640_vm0, %v13114_v12, %v13116_v34  ;;  %v6320_v52 = vld [vmem:[#allocation3 + $0x580] sm:$0xff]  ;;  %v10727_v24 = vld [vmem:[%s7565_s25 + $0x8] sm:$0xff]  ;;  %v6455_v12 = vld [vmem:[#allocation3 + $0x778] sm:$0xff]  ;;  %v3663_v34 = vadd.f32 %v3642_v45, %v3545_v10  ;;  %v6905_v27 = vpack.c.bf16 %v6323_v25, %v6321_v59 }
0x1a52   : > { %v5531_v6 = vmul.f32 %v10727_v24, %v5516_v20  ;;  %v6453_v47 = vld [vmem:[#allocation3 + $0x768] sm:$0xff]  ;;  %v6907_v61 = vpack.c.bf16 %v6322_v36, %v6320_v52  ;;  %v10732_v4 = vadd.f32 %v3644_v5, %v3548_v8  ;;  %v6452_v58 = vld [vmem:[#allocation3 + $0x760] sm:$0xff]  ;;  %v6454_v28 = vld [vmem:[#allocation3 + $0x770] sm:$0xff]  ;;  %6964 = vmatpush1.bf16.msra.mxu1 %v6963_v46 }
0x1a53   : > { %v6965_v42 = vpack.c.bf16 %v6455_v12, %v6453_v47  ;;  %v6325_v50 = vld [vmem:[#allocation3 + $0x5a8] sm:$0xff]  ;;  %v13117_v0 = vld [vmem:[#allocation316_spill] sm:$0xff]  ;;  %v13118_v44 = vld [vmem:[#allocation317_spill] sm:$0xff]  ;;  %6906 = vmatprep.subr.bf16.mxu0 %v6905_v27  ;;  %v6967_v59 = vpack.c.bf16 %v6454_v28, %v6452_v58  ;;  %v5532_v47 = vmul.f32 0.0, %v5516_v20  ;;  %v10753_v12 = vpop.permute.xlu0 %5632 }
0x1a54   : > { %5556 = vrot.lane.b32.xlu0 %v5531_v6, %s7422_s11  ;;  %v10740_v10 = vsel %vm3640_vm0, %v13118_v44, %v13117_v0  ;;  %v13120_v57 = vld [vmem:[#allocation321_spill] sm:$0xff]  ;;  %v13121_v45 = vld [vmem:[#allocation318_spill] sm:$0xff]  ;;  %v6326_v52 = vld [vmem:[#allocation3 + $0x5b0] sm:$0xff]  ;;  %6908 = vmatpush1.bf16.msra.mxu0 %v6907_v61 }
0x1a55   : > { %13119 = vst [vmem:[#allocation69_spill] sm:$0xff] %v10740_v10  ;;  %v3647_v8 = vsel %vm3640_vm0, %v13121_v45, %v13120_v57  ;;  %v6327_v5 = vld [vmem:[#allocation3 + $0x5b8] sm:$0xff]  ;;  %v6324_v25 = vld [vmem:[#allocation3 + $0x5a0] sm:$0xff]  ;;  %v3670_v36 = vadd.f32 %v13121_v45, %v3552_v48  ;;  %v13122_v43 = vld [vmem:[#allocation319_spill] sm:$0xff]  ;;  %6966 = vmatprep.subr.bf16.mxu1 %v6965_v42  ;;  %5558 = vrot.lane.b32.xlu1 %v5532_v47, %s7422_s11 }
0x1a56   : > { %v10751_v6 = vsel %vm3640_vm0, %v13117_v0, %v13122_v43  ;;  %v6909_v10 = vpack.c.bf16 %v6327_v5, %v6325_v50  ;;  %v6457_v46 = vld [vmem:[#allocation3 + $0x788] sm:$0xff]  ;;  %v6459_v27 = vld [vmem:[#allocation3 + $0x798] sm:$0xff]  ;;  %v13124_v58 = vld [vmem:[#allocation320_spill] sm:$0xff]  ;;  %v6911_v45 = vpack.c.bf16 %v6326_v52, %v6324_v25  ;;  %v10761_v0 = vadd.f32 %v3647_v8, %v3553_v60  ;;  %6968 = vmatpush1.bf16.msra.mxu1 %v6967_v59 }
0x1a57   : > { %13123 = vst [vmem:[#allocation68_spill] sm:$0xff] %v10751_v6  ;;  %v3648_v28 = vsel %vm3640_vm0, %v13120_v57, %v13124_v58  ;;  %v13125_v44 = vld [vmem:[#allocation323_spill] sm:$0xff]  ;;  %v13126_v55 = vld [vmem:[#allocation322_spill] sm:$0xff]  ;;  %v6969_v15 = vpack.c.bf16 %v6459_v27, %v6457_v46  ;;  %v13127_v20 = vld [vmem:[#allocation324_spill] sm:$0xff]  ;;  %v5535_v5 = vmul.f32 0.0, %v5520_v54  ;;  %v10778_v46 = vpop.permute.xlu1 %5527  ;;  %v10782_v6 = vpop.permute.xlu0 %5644  ;;  %vm3876_vm0 = vcmask 506880  }
0x1a58   : > { %v3759_v48 = vsel %vm3758_vm2, %v13126_v55, %v13125_v44  ;;  %v3760_v61 = vsel %vm3758_vm2, %v13125_v44, %v13127_v20  ;;  %v10767_v42 = vld [vmem:[%s7565_s25 + $0x18] sm:$0xff]  ;;  %5560 = vrot.lane.b32.xlu0 %v5533_v3, %s7422_s11  ;;  %v6456_v57 = vld [vmem:[#allocation3 + $0x780] sm:$0xff]  ;;  %v6458_v43 = vld [vmem:[#allocation3 + $0x790] sm:$0xff]  ;;  %6910 = vmatprep.subr.bf16.mxu0 %v6909_v10  ;;  %v3672_v47 = vadd.f32 %v3648_v28, %v10715_v41 }
0x1a59   : > { %v5534_v50 = vmul.f32 %v10767_v42, %v5520_v54  ;;  %v6329_v58 = vld [vmem:[#allocation3 + $0x5c8] sm:$0xff]  ;;  %v13128_v25 = vld [vmem:[#allocation326_spill] sm:$0xff]  ;;  %v13129_v52 = vld [vmem:[#allocation325_spill] sm:$0xff]  ;;  %v6971_v54 = vpack.c.bf16 %v6458_v43, %v6456_v57  ;;  %v3780_v55 = vadd.f32 %v3759_v48, %v10720_v56  ;;  %13131 = vst [vmem:[#allocation77_spill] sm:$0xff] %v10782_v6  ;;  %6912 = vmatpush1.bf16.msra.mxu0 %v6911_v45 }
0x1a5a   : > { %v3761_v60 = vsel %vm3758_vm2, %v13129_v52, %v13128_v25  ;;  %v13130_v8 = vld [vmem:[#allocation327_spill] sm:$0xff]  ;;  %v6331_v27 = vld [vmem:[#allocation3 + $0x5d8] sm:$0xff]  ;;  %v6328_v3 = vld [vmem:[#allocation3 + $0x5c0] sm:$0xff]  ;;  %6970 = vmatprep.subr.bf16.mxu1 %v6969_v15  ;;  %v3782_v59 = vadd.f32 %v13129_v52, %v10723_v19 }
0x1a5b   : > { %v3762_v44 = vsel %vm3758_vm2, %v13128_v25, %v13130_v8  ;;  %v6330_v20 = vld [vmem:[#allocation3 + $0x5d0] sm:$0xff]  ;;  %v6913_v35 = vpack.c.bf16 %v6331_v27, %v6329_v58  ;;  %v6463_v32 = vld [vmem:[#allocation3 + $0x7b8] sm:$0xff]  ;;  %v3781_v25 = vadd.f32 %v3760_v61, %v3663_v34  ;;  %v3783_v43 = vadd.f32 %v3761_v60, %v10730_v17  ;;  %5562 = vrot.lane.b32.xlu1 %v5534_v50, %s7422_s11  ;;  %v13135_v15 = vld [vmem:[#allocation330_spill] sm:$0xff]  ;;  %v10813_v52 = vpop.permute.xlu1 %5636 }
0x1a5c   : > { %v6915_v10 = vpack.c.bf16 %v6330_v20, %v6328_v3  ;;  %v6973_v57 = vpack.c.bf16 %v6463_v32, %v6461_v13  ;;  %v3784_v41 = vadd.f32 %v3762_v44, %v10732_v4  ;;  %v13132_v28 = vld [vmem:[#allocation329_spill] sm:$0xff]  ;;  %v13133_v56 = vld [vmem:[#allocation328_spill] sm:$0xff]  ;;  %5564 = vrot.lane.b32.xlu0 %v5535_v5, %s7422_s11  ;;  %v13137_v32 = vld [vmem:[#allocation331_spill] sm:$0xff]  ;;  %6972 = vmatpush1.bf16.msra.mxu1 %v6971_v54 }
0x1a5d   : > { %v10791_v48 = vsel %vm3758_vm2, %v13133_v56, %v13132_v28  ;;  %v10798_v19 = vsel %vm3758_vm2, %v13132_v28, %v13135_v15  ;;  %v10801_v13 = vadd.f32 %v13137_v32, %v3670_v36  ;;  %v13138_v34 = vld [vmem:[#allocation332_spill] sm:$0xff]  ;;  %6914 = vmatprep.subr.bf16.mxu0 %v6913_v35  ;;  %v6460_v17 = vld [vmem:[#allocation3 + $0x7a0] sm:$0xff]  ;;  %v6333_v61 = vld [vmem:[#allocation3 + $0x5e8] sm:$0xff]  ;;  %v5537_v58 = vmul.f32 %v10482_v51, %v10745_v49  ;;  %v10821_v28 = vpop.permute.xlu0 %5754 }
0x1a5e   : > { %13134 = vst [vmem:[#allocation79_spill] sm:$0xff] %v10791_v48  ;;  %13136 = vst [vmem:[#allocation76_spill] sm:$0xff] %v10798_v19  ;;  %v3765_v4 = vsel %vm3758_vm2, %v13137_v32, %v13138_v34  ;;  %v6462_v45 = vld [vmem:[#allocation3 + $0x7b0] sm:$0xff]  ;;  %v10807_v5 = vld [vmem:[%s7565_s25 + $0x20] sm:$0xff]  ;;  %6916 = vmatpush1.bf16.msra.mxu0 %v6915_v10  ;;  %6974 = vmatprep.subr.bf16.mxu1 %v6973_v57 }
0x1a5f   : > { %v5536_v50 = vmul.f32 %v10807_v5, %v10745_v49  ;;  %v6975_v36 = vpack.c.bf16 %v6462_v45, %v6460_v17  ;;  %v6335_v60 = vld [vmem:[#allocation3 + $0x5f8] sm:$0xff]  ;;  %v6332_v8 = vld [vmem:[#allocation3 + $0x5e0] sm:$0xff]  ;;  %v6334_v44 = vld [vmem:[#allocation3 + $0x5f0] sm:$0xff]  ;;  %13142 = vst [vmem:[#allocation78_spill] sm:$0xff] %v10821_v28  ;;  %v3789_v57 = vadd.f32 %v3765_v4, %v10761_v0 }
0x1a60   : > { %v13139_v35 = vld [vmem:[#allocation333_spill] sm:$0xff]  ;;  %v13140_v27 = vld [vmem:[#allocation334_spill] sm:$0xff]  ;;  %v13141_v3 = vld [vmem:[#allocation335_spill] sm:$0xff]  ;;  %v6917_v15 = vpack.c.bf16 %v6335_v60, %v6333_v61  ;;  %v6919_v51 = vpack.c.bf16 %v6334_v44, %v6332_v8  ;;  %5568 = vrot.lane.b32.xlu0 %v5537_v58, %s7422_s11 }
0x1a61   : > { %v3766_v54 = vsel %vm3758_vm2, %v13138_v34, %v13139_v35  ;;  %v3877_v20 = vsel %vm3876_vm0, %v13141_v3, %v13140_v27  ;;  %v6465_v32 = vld [vmem:[#allocation3 + $0x7c8] sm:$0xff]  ;;  %v6467_v19 = vld [vmem:[#allocation3 + $0x7d8] sm:$0xff]  ;;  %v6464_v10 = vld [vmem:[#allocation3 + $0x7c0] sm:$0xff]  ;;  %5566 = vrot.lane.b32.xlu1 %v5536_v50, %s7422_s11  ;;  %6976 = vmatpush1.bf16.msra.mxu1 %v6975_v36  ;;  %v10836_v50 = vpop.permute.xlu1 %5640  ;;  %v10844_v36 = vpop.permute.xlu0 %5610  ;;  %vm4091_vm2 = vcmask 490496  }
0x1a62   : > { %v13143_v17 = vld [vmem:[#allocation337_spill] sm:$0xff]  ;;  %v6977_v34 = vpack.c.bf16 %v6467_v19, %v6465_v32  ;;  %v6466_v35 = vld [vmem:[#allocation3 + $0x7d0] sm:$0xff]  ;;  %v6469_v3 = vld [vmem:[#allocation3 + $0x7e8] sm:$0xff]  ;;  %6918 = vmatprep.subr.bf16.mxu0 %v6917_v15  ;;  %v3790_v44 = vadd.f32 %v3766_v54, %v3672_v47  ;;  %v3898_v58 = vadd.f32 %v3877_v20, %v3780_v55  ;;  %v5538_v19 = vmul.f32 0.0, %v10745_v49 }
0x1a63   : > { %v3878_v45 = vsel %vm3876_vm0, %v13140_v27, %v13143_v17  ;;  %v6471_v48 = vld [vmem:[#allocation3 + $0x7f8] sm:$0xff]  ;;  %v13144_v56 = vld [vmem:[#allocation339_spill] sm:$0xff]  ;;  %v13145_v61 = vld [vmem:[#allocation336_spill] sm:$0xff]  ;;  %v6979_v4 = vpack.c.bf16 %v6466_v35, %v6464_v10  ;;  %6920 = vmatpush1.bf16.msra.mxu0 %v6919_v51 }
0x1a64   : > { %v3879_v60 = vsel %vm3876_vm0, %v13145_v61, %v13144_v56  ;;  %v13146_v8 = vld [vmem:[#allocation338_spill] sm:$0xff]  ;;  %6978 = vmatprep.subr.bf16.mxu1 %v6977_v34  ;;  %v6470_v32 = vld [vmem:[#allocation3 + $0x7f0] sm:$0xff]  ;;  %v3900_v17 = vadd.f32 %v13145_v61, %v3782_v59  ;;  %v3899_v28 = vadd.f32 %v3878_v45, %v3781_v25  ;;  %v6981_v55 = vpack.c.bf16 %v6471_v48, %v6469_v3  ;;  %v13148_v20 = vld [vmem:[#allocation341_spill] sm:$0xff] }
0x1a65   : > { %v3880_v0 = vsel %vm3876_vm0, %v13144_v56, %v13146_v8  ;;  %v6468_v27 = vld [vmem:[#allocation3 + $0x7e0] sm:$0xff]  ;;  %v10840_v6 = vld [vmem:[%s7565_s25 + $0x30] sm:$0xff]  ;;  %v3901_v47 = vadd.f32 %v3879_v60, %v3783_v43  ;;  %v13149_v51 = vld [vmem:[#allocation345_spill] sm:$0xff]  ;;  %5570 = vrot.lane.b32.xlu1 %v5538_v19, %s7422_s11  ;;  %6980 = vmatpush1.bf16.msra.mxu1 %v6979_v4  ;;  %v5619_v19 = vmul.f32 %v10472_v26, %v10844_v36 }
0x1a66   : > { %v5539_v56 = vmul.f32 %v10840_v6, %v10778_v46  ;;  %v3902_v54 = vadd.f32 %v3880_v0, %v3784_v41  ;;  %v13147_v49 = vld [vmem:[#allocation340_spill] sm:$0xff]  ;;  %v13150_v10 = vld [vmem:[#allocation342_spill] sm:$0xff]  ;;  %v13152_v34 = vld [vmem:[#allocation347_spill] sm:$0xff]  ;;  %v6983_v41 = vpack.c.bf16 %v6470_v32, %v6468_v27  ;;  %v5540_v0 = vmul.f32 %v10523_v9, %v10778_v46  ;;  %6401 = vmatmul.mubr.f32.vlgmr.msra.gmra.mrb[2].mxu0 %v10807_v5 }
0x1a67   : > { %v10849_v15 = vsel %vm3876_vm0, %v13148_v20, %v13147_v49  ;;  %v3883_v59 = vsel %vm3876_vm0, %v13150_v10, %v13149_v51  ;;  %v13151_v25 = vld [vmem:[#allocation344_spill] sm:$0xff]  ;;  %v13153_v35 = vld [vmem:[#allocation346_spill] sm:$0xff]  ;;  %v13156_v60 = vld [vmem:[#allocation349_spill] sm:$0xff]  ;;  %v3906_v4 = vadd.f32 %v13150_v10, %v10801_v13  ;;  %6982 = vmatprep.subr.bf16.mxu1 %v6981_v55 }
0x1a68   : > { %v3884_v45 = vsel %vm3876_vm0, %v13149_v51, %v13151_v25  ;;  %v3974_v43 = vsel %vm3973_vm1, %v13153_v35, %v13152_v34  ;;  %5572 = vrot.lane.b32.xlu0 %v5539_v56, %s7422_s11  ;;  %v13154_v48 = vld [vmem:[#allocation348_spill] sm:$0xff]  ;;  %v13155_v61 = vld [vmem:[#allocation350_spill] sm:$0xff]  ;;  %v13157_v27 = vld [vmem:[#allocation343_spill] sm:$0xff]  ;;  %v5541_v56 = vmul.f32 0.0, %v10778_v46  ;;  %v10881_v51 = vpop.permute.xlu1 %5750  ;;  %v10883_v25 = vpop.permute.xlu0 %5868  ;;  %v3907_v9 = vadd.f32 %v3883_v59, %v3789_v57 }
0x1a69   : > { %v3975_v3 = vsel %vm3973_vm1, %v13152_v34, %v13154_v48  ;;  %v3976_v8 = vsel %vm3973_vm1, %v13156_v60, %v13155_v61  ;;  %v10878_v32 = vsel %vm3876_vm0, %v13147_v49, %v13157_v27  ;;  %v3908_v26 = vadd.f32 %v3884_v45, %v3790_v44  ;;  %v13159_v48 = vld [vmem:[#allocation351_spill] sm:$0xff]  ;;  %5574 = vrot.lane.b32.xlu1 %v5540_v0, %s7422_s11  ;;  %v13160_v46 = vld [vmem:[#allocation356_spill] sm:$0xff]  ;;  %v13162_v57 = vld [vmem:[#allocation357_spill] sm:$0xff] }
0x1a6a   : > { %13158 = vst [vmem:[#allocation85_spill] sm:$0xff] %v10878_v32  ;;  %v3995_v34 = vadd.f32 %v3974_v43, %v3898_v58  ;;  %v3977_v13 = vsel %vm3973_vm1, %v13155_v61, %v13159_v48  ;;  %v3996_v10 = vadd.f32 %v3975_v3, %v3899_v28  ;;  %v3997_v49 = vadd.f32 %v13156_v60, %v3900_v17  ;;  %v13161_v35 = vld [vmem:[#allocation355_spill] sm:$0xff]  ;;  %v13163_v58 = vld [vmem:[#allocation358_spill] sm:$0xff]  ;;  %v13165_v17 = vld [vmem:[#allocation361_spill] sm:$0xff] }
0x1a6b   : > { %v3998_v27 = vadd.f32 %v3976_v8, %v3901_v47  ;;  %6984 = vmatpush1.bf16.msra.mxu1 %v6983_v41  ;;  %v3980_v55 = vsel %vm3973_vm1, %v13161_v35, %v13160_v46  ;;  %v3981_v44 = vsel %vm3973_vm1, %v13160_v46, %v13162_v57  ;;  %v13164_v59 = vld [vmem:[#allocation359_spill] sm:$0xff]  ;;  %v5647_v28 = vmul.f32 %v10753_v12, %v5619_v19  ;;  %v13167_v3 = vld [vmem:[#allocation360_spill] sm:$0xff]  ;;  %v13168_v60 = vld [vmem:[#allocation362_spill] sm:$0xff] }
0x1a6c   : > { %5576 = vrot.lane.b32.xlu0 %v5541_v56, %s7422_s11  ;;  %v4092_v45 = vsel %vm4091_vm2, %v13164_v59, %v13163_v58  ;;  %v3999_v43 = vadd.f32 %v3977_v13, %v3902_v54  ;;  %v4093_v47 = vsel %vm4091_vm2, %v13163_v58, %v13165_v17  ;;  %v13166_v41 = vld [vmem:[#allocation363_spill] sm:$0xff]  ;;  %v10910_v0 = vpop.permute.xlu1 %5758  ;;  %v10912_v56 = vpop.permute.xlu0 %5880  ;;  %v13170_v48 = vld [vmem:[#allocation353_spill] sm:$0xff]  ;;  %v13171_v46 = vld [vmem:[#allocation352_spill] sm:$0xff]  ;;  %v4003_v57 = vadd.f32 %v13161_v35, %v3906_v4  ;;  %s7452_s11 = smov 28  }
0x1a6d   : > { %v4094_v61 = vsel %vm4091_vm2, %v13167_v3, %v13166_v41  ;;  %v4095_v8 = vsel %vm4091_vm2, %v13166_v41, %v13168_v60  ;;  %13169 = vst [vmem:[#allocation82_spill] sm:$0xff] %v10912_v56  ;;  %v10917_v54 = vsel %vm3973_vm1, %v13171_v46, %v13170_v48  ;;  %v13173_v19 = vld [vmem:[#allocation354_spill] sm:$0xff]  ;;  %vm4209_vm0 = vcmask 482304   ;;  %5671 = vrot.lane.b32.xlu1 %v5647_v28, %s7452_s11  ;;  %v13175_v46 = vld [vmem:[#allocation364_spill] sm:$0xff]  ;;  %v13176_v32 = vld [vmem:[#allocation365_spill] sm:$0xff] }
0x1a6e   : > { %13172 = vst [vmem:[#allocation84_spill] sm:$0xff] %v10917_v54  ;;  %v10922_v13 = vsel %vm3973_vm1, %v13170_v48, %v13173_v19  ;;  %6537 = vmatmul.mubr.f32.vlgmr.msra.gmra.mrb[2].mxu1 %v10840_v6  ;;  %v4004_v58 = vadd.f32 %v3980_v55, %v3907_v9  ;;  %v4005_v17 = vadd.f32 %v3981_v44, %v3908_v26  ;;  %v13178_v35 = vld [vmem:[#allocation369_spill] sm:$0xff]  ;;  %v13179_v4 = vld [vmem:[#allocation366_spill] sm:$0xff]  ;;  %v13180_v28 = vld [vmem:[#allocation368_spill] sm:$0xff]  ;;  %vm5614_vm1 = vcmask 400384  }
0x1a6f   : > { %13174 = vst [vmem:[#allocation80_spill] sm:$0xff] %v10922_v13  ;;  %v4113_v41 = vadd.f32 %v4092_v45, %v3995_v34  ;;  %v4115_v60 = vadd.f32 %v13167_v3, %v3997_v49  ;;  %v4114_v59 = vadd.f32 %v4093_v47, %v3996_v10  ;;  %v4116_v56 = vadd.f32 %v4094_v61, %v3998_v27  ;;  %v13181_v26 = vld [vmem:[#allocation371_spill] sm:$0xff]  ;;  %v13182_v34 = vld [vmem:[#allocation370_spill] sm:$0xff]  ;;  %v13183_v10 = vld [vmem:[#allocation372_spill] sm:$0xff] }
0x1a70   : > { %v4117_v54 = vadd.f32 %v4095_v8, %v3999_v43  ;;  %v10931_v48 = vsel %vm4091_vm2, %v13176_v32, %v13175_v46  ;;  %v4098_v19 = vsel %vm4091_vm2, %v13179_v4, %v13178_v35  ;;  %v4099_v9 = vsel %vm4091_vm2, %v13178_v35, %v13180_v28  ;;  %v10945_v55 = vpop.permute.xlu1 %5762  ;;  %v13184_v45 = vld [vmem:[#allocation367_spill] sm:$0xff]  ;;  %v13186_v47 = vld [vmem:[#allocation374_spill] sm:$0xff]  ;;  %v13187_v3 = vld [vmem:[#allocation373_spill] sm:$0xff]  ;;  %v387_v28 = vpop.permute.xlu0 %386 }
0x1a71   : > { %13177 = vst [vmem:[#allocation81_spill] sm:$0xff] %v10931_v48  ;;  %v4210_v49 = vsel %vm4209_vm0, %v13182_v34, %v13181_v26  ;;  %v4211_v27 = vsel %vm4209_vm0, %v13181_v26, %v13183_v10  ;;  %v4121_v44 = vadd.f32 %v13179_v4, %v4003_v57  ;;  %v10951_v43 = vsel %vm4091_vm2, %v13175_v46, %v13184_v45  ;;  %v13188_v8 = vld [vmem:[#allocation375_spill] sm:$0xff] }
0x1a72   : > { %13185 = vst [vmem:[#allocation88_spill] sm:$0xff] %v10951_v43  ;;  %v4212_v61 = vsel %vm4209_vm0, %v13187_v3, %v13186_v47  ;;  %v4213_v35 = vsel %vm4209_vm0, %v13186_v47, %v13188_v8  ;;  %v400_v26 = vmul.f32 %v387_v28, %v9783_v16  ;;  %v401_v10 = vmul.f32 %v387_v28, %v9801_v7 }
0x1a73   : > { %v402_v57 = vmul.f32 %v387_v28, %v9805_v21  ;;  %v4122_v4 = vadd.f32 %v4098_v19, %v4004_v58  ;;  %v4123_v34 = vadd.f32 %v4099_v9, %v4005_v17  ;;  %v4231_v46 = vadd.f32 %v4210_v49, %v4113_v41  ;;  %v13190_v41 = vld [vmem:[#allocation376_spill] sm:$0xff]  ;;  %v13193_v19 = vld [vmem:[#allocation379_spill] sm:$0xff]  ;;  %v13194_v49 = vld [vmem:[#allocation381_spill] sm:$0xff] }
0x1a74   : > { %v4232_v45 = vadd.f32 %v4211_v27, %v4114_v59  ;;  %v4233_v43 = vadd.f32 %v13187_v3, %v4115_v60  ;;  %v541_v48 = vadd.f32 %v9854_v39, %v400_v26  ;;  %v542_v32 = vadd.f32 %v9859_v40, %v401_v10  ;;  %v5613_v8 = vpop.permute.xlu1 %5612  ;;  %v13189_v40 = vld [vmem:[#allocation377_spill] sm:$0xff] }
0x1a75   : > { %v543_v47 = vadd.f32 %v7788_v38, %v402_v57  ;;  %v4234_v13 = vadd.f32 %v4212_v61, %v4116_v56  ;;  %v4235_v16 = vadd.f32 %v4213_v35, %v4117_v54  ;;  %v10967_v7 = vsel %vm5614_vm1, %v10844_v36, %v5613_v8  ;;  %v13191_v56 = vld [vmem:[#allocation378_spill] sm:$0xff]  ;;  %v13197_v57 = vld [vmem:[#allocation385_spill] sm:$0xff] }
0x1a76   : > { %v10969_v21 = vmul.f32 0.0, %v5613_v8  ;;  %v670_v58 = vadd.f32 %v9894_v62, %v541_v48  ;;  %v671_v59 = vadd.f32 %v9899_v53, %v542_v32  ;;  %v5620_v39 = vmul.f32 %v10727_v24, %v10967_v7  ;;  %v13192_v48 = vld [vmem:[#allocation380_spill] sm:$0xff]  ;;  %v13195_v61 = vld [vmem:[#allocation382_spill] sm:$0xff] }
0x1a77   : > { %v672_v17 = vadd.f32 %v12782_v29, %v543_v47  ;;  %v10979_v38 = vsel %vm4209_vm0, %v13190_v41, %v13189_v40  ;;  %v10984_v54 = vsel %vm4209_vm0, %v13189_v40, %v13191_v56  ;;  %vm4327_vm2 = vcmask 474112   ;;  %v13198_v47 = vld [vmem:[#allocation387_spill] sm:$0xff]  ;;  %v13200_v56 = vld [vmem:[#allocation386_spill] sm:$0xff] }
0x1a78   : > { %v5623_v62 = vmul.f32 %v10767_v42, %v10967_v7  ;;  %v767_v53 = vadd.f32 %v9924_v1, %v670_v58  ;;  %v768_v29 = vadd.f32 %v9929_v14, %v671_v59  ;;  %v5649_v60 = vmul.f32 %v10753_v12, %v10969_v21  ;;  %v13196_v14 = vld [vmem:[#allocation383_spill] sm:$0xff] }
0x1a79   : > { %v769_v32 = vadd.f32 %v12791_v33, %v672_v17  ;;  %v4216_v9 = vsel %vm4209_vm0, %v13193_v19, %v13192_v48  ;;  %v4217_v27 = vsel %vm4209_vm0, %v13192_v48, %v13194_v49  ;;  %v5622_v3 = vmul.f32 %v10510_v2, %v10844_v36  ;;  %v13205_v49 = vld [vmem:[#allocation388_spill] sm:$0xff] }
0x1a7a   : > { %v5648_v1 = vmul.f32 %v10753_v12, %v5620_v39  ;;  %v4328_v33 = vsel %vm4327_vm2, %v13196_v14, %v13195_v61  ;;  %v896_v35 = vadd.f32 %v9962_v22, %v767_v53  ;;  %v897_v28 = vadd.f32 %v9967_v37, %v768_v29  ;;  %5675 = vrot.lane.b32.xlu1 %v5649_v60, %s7452_s11  ;;  %v13199_v12 = vld [vmem:[#allocation384_spill] sm:$0xff]  ;;  %v13203_v60 = vld [vmem:[#allocation13_spill] sm:$0xff] }
0x1a7b   : > { %v898_v26 = vadd.f32 %v12804_v63, %v769_v32  ;;  %v4239_v10 = vadd.f32 %v13193_v19, %v4121_v44  ;;  %v4329_v2 = vsel %vm4327_vm2, %v13195_v61, %v13197_v57  ;;  %v4330_v8 = vsel %vm4327_vm2, %v13199_v12, %v13198_v47  ;;  %v13201_v32 = vld [vmem:[#allocation59_spill] sm:$0xff]  ;;  %v13204_v19 = vld [vmem:[#allocation70_spill] sm:$0xff]  ;;  %v13280_v14 = vld [vmem:[#allocation33_spill] sm:$0xff] }
0x1a7c   : > { %v5625_v58 = vmul.f32 %v10807_v5, %v10844_v36  ;;  %5673 = vrot.lane.b32.xlu0 %v5648_v1, %s7452_s11  ;;  %v1025_v22 = vadd.f32 %v10002_v31, %v896_v35  ;;  %v1026_v63 = vadd.f32 %v10007_v23, %v897_v28  ;;  %v5651_v44 = vmul.f32 %v10813_v52, %v5623_v62  ;;  %v13207_v1 = vld [vmem:[#allocation390_spill] sm:$0xff]  ;;  %v13209_v28 = vld [vmem:[#allocation12_spill] sm:$0xff] }
0x1a7d   : > { %v1027_v37 = vadd.f32 %v12815_v30, %v898_v26  ;;  %v4240_v59 = vadd.f32 %v4216_v9, %v4122_v4  ;;  %v4241_v17 = vadd.f32 %v4217_v27, %v4123_v34  ;;  %v4349_v39 = vadd.f32 %v4328_v33, %v4231_v46  ;;  %v13202_v46 = vld [vmem:[#allocation7_spill] sm:$0xff]  ;;  %v13206_v27 = vld [vmem:[#allocation389_spill] sm:$0xff]  ;;  %v13208_v33 = vld [vmem:[#allocation10_spill] sm:$0xff] }
0x1a7e   : > { %v5650_v40 = vmul.f32 %v10813_v52, %v5622_v3  ;;  %v4331_v53 = vsel %vm4327_vm2, %v13198_v47, %v13200_v56  ;;  %v1154_v29 = vadd.f32 %v10040_v18, %v1025_v22  ;;  %v1155_v31 = vadd.f32 %v10045_v11, %v1026_v63  ;;  %5679 = vrot.lane.b32.xlu1 %v5651_v44, %s7452_s11  ;;  %v13211_v47 = vld [vmem:[#allocation393_spill] sm:$0xff]  ;;  %v13215_v44 = vld [vmem:[#allocation16_spill] sm:$0xff] }
0x1a7f   : > { %v1156_v23 = vadd.f32 %v13201_v32, %v1027_v37  ;;  %v4351_v30 = vadd.f32 %v13199_v12, %v4233_v43  ;;  %v4350_v4 = vadd.f32 %v4329_v2, %v4232_v45  ;;  %v4352_v34 = vadd.f32 %v4330_v8, %v4234_v13  ;;  %v11043_v43 = vld [vmem:[%s7565_s25 + $0x28] sm:$0xff]  ;;  %v11053_v2 = vpop.permute.xlu1 %5872  ;;  %v13212_v8 = vld [vmem:[#allocation392_spill] sm:$0xff]  ;;  %v11066_v63 = vld [vmem:[%s7565_s25 + $0x38] sm:$0xff] }
0x1a80   : > { %vm4445_vm0 = vcmask 392192   ;;  %5677 = vrot.lane.b32.xlu0 %v5650_v40, %s7452_s11  ;;  %v1272_v62 = vadd.f32 %v13202_v46, %v1154_v29  ;;  %v1273_v48 = vadd.f32 %v13203_v60, %v1155_v31  ;;  %v5653_v18 = vmul.f32 %v10836_v50, %v5625_v58  ;;  %v13213_v58 = vld [vmem:[#allocation395_spill] sm:$0xff]  ;;  %v13216_v56 = vld [vmem:[#allocation8_spill] sm:$0xff]  ;;  %v13217_v29 = vld [vmem:[#allocation94_spill] sm:$0xff] }
0x1a81   : > { %v1274_v9 = vadd.f32 %v13204_v19, %v1156_v23  ;;  %v4353_v11 = vadd.f32 %v4331_v53, %v4235_v16  ;;  %v11040_v3 = vsel %vm4327_vm2, %v13206_v27, %v13205_v49  ;;  %v5626_v13 = vmul.f32 %v11043_v43, %v10967_v7  ;;  %v13210_v16 = vld [vmem:[#allocation83_spill] sm:$0xff]  ;;  %v13220_v19 = vld [vmem:[#allocation398_spill] sm:$0xff] }
0x1a82   : > { %v5652_v45 = vmul.f32 %v10813_v52, %v10969_v21  ;;  %v4357_v61 = vadd.f32 %v13207_v1, %v4239_v10  ;;  %v1390_v35 = vadd.f32 %v13208_v33, %v1272_v62  ;;  %v1391_v26 = vadd.f32 %v13209_v28, %v1273_v48  ;;  %5683 = vrot.lane.b32.xlu1 %v5653_v18, %s7452_s11  ;;  %v13214_v10 = vld [vmem:[#allocation394_spill] sm:$0xff]  ;;  %v13218_v23 = vld [vmem:[#allocation391_spill] sm:$0xff]  ;;  %v13219_v62 = vld [vmem:[#allocation396_spill] sm:$0xff] }
0x1a83   : > { %v1392_v57 = vadd.f32 %v13210_v16, %v1274_v9  ;;  %v4334_v12 = vsel %vm4327_vm2, %v13207_v1, %v13211_v47  ;;  %v4335_v52 = vsel %vm4327_vm2, %v13211_v47, %v13212_v8  ;;  %v4446_v22 = vsel %vm4445_vm0, %v13214_v10, %v13213_v58  ;;  %v13221_v9 = vld [vmem:[#allocation397_spill] sm:$0xff]  ;;  %v13223_v33 = vld [vmem:[#allocation11_spill] sm:$0xff] }
0x1a84   : > { %v5629_v37 = vmul.f32 %v11066_v63, %v10967_v7  ;;  %5681 = vrot.lane.b32.xlu0 %v5652_v45, %s7452_s11  ;;  %v1508_v40 = vadd.f32 %v13215_v44, %v1390_v35  ;;  %v1509_v53 = vadd.f32 %v13216_v56, %v1391_v26  ;;  %v5655_v32 = vmul.f32 %v10836_v50, %v10969_v21  ;;  %v13222_v45 = vld [vmem:[#allocation9_spill] sm:$0xff]  ;;  %v13224_v28 = vld [vmem:[#allocation107_spill] sm:$0xff]  ;;  %v13228_v44 = vld [vmem:[#allocation118_spill] sm:$0xff]  ;;  %v11101_v56 = vpop.permute.xlu1 %5876 }
0x1a85   : > { %v1510_v31 = vadd.f32 %v13217_v29, %v1392_v57  ;;  %v11079_v46 = vsel %vm4327_vm2, %v13205_v49, %v13218_v23  ;;  %v4447_v7 = vsel %vm4445_vm0, %v13213_v58, %v13219_v62  ;;  %v5628_v60 = vmul.f32 %v10840_v6, %v10844_v36  ;;  %v13225_v47 = vld [vmem:[#allocation399_spill] sm:$0xff]  ;;  %v13227_v8 = vld [vmem:[#allocation17_spill] sm:$0xff] }
0x1a86   : > { %v5654_v48 = vmul.f32 %v10836_v50, %v5626_v13  ;;  %v4448_v18 = vsel %vm4445_vm0, %v13221_v9, %v13220_v19  ;;  %v1605_v1 = vadd.f32 %v13222_v45, %v1508_v40  ;;  %v1606_v35 = vadd.f32 %v13223_v33, %v1509_v53  ;;  %5687 = vrot.lane.b32.xlu1 %v5655_v32, %s7452_s11  ;;  %v13226_v50 = vld [vmem:[#allocation18_spill] sm:$0xff]  ;;  %v13229_v53 = vld [vmem:[#allocation77_spill] sm:$0xff]  ;;  %v13231_v32 = vld [vmem:[#allocation24_spill] sm:$0xff] }
0x1a87   : > { %v1607_v49 = vadd.f32 %v13224_v28, %v1510_v31  ;;  %v4358_v26 = vadd.f32 %v4334_v12, %v4240_v59  ;;  %v4359_v16 = vadd.f32 %v4335_v52, %v4241_v17  ;;  %v4467_v57 = vadd.f32 %v4446_v22, %v4349_v39  ;;  %v13230_v52 = vld [vmem:[#allocation19_spill] sm:$0xff]  ;;  %v13234_v45 = vld [vmem:[#allocation400_spill] sm:$0xff] }
0x1a88   : > { %v4449_v36 = vsel %vm4445_vm0, %v13220_v19, %v13225_v47  ;;  %5685 = vrot.lane.b32.xlu0 %v5654_v48, %s7452_s11  ;;  %v1723_v13 = vadd.f32 %v13226_v50, %v1605_v1  ;;  %v1724_v58 = vadd.f32 %v13227_v8, %v1606_v35  ;;  %v5657_v29 = vmul.f32 %v13229_v53, %v5629_v37  ;;  %v13232_v62 = vld [vmem:[#allocation131_spill] sm:$0xff]  ;;  %v13233_v19 = vld [vmem:[#allocation401_spill] sm:$0xff]  ;;  %v13243_v50 = vld [vmem:[#allocation142_spill] sm:$0xff] }
0x1a89   : > { %v1725_v40 = vadd.f32 %v13228_v44, %v1607_v49  ;;  %v4468_v31 = vadd.f32 %v4447_v7, %v4350_v4  ;;  %v4469_v59 = vadd.f32 %v13221_v9, %v4351_v30  ;;  %v4470_v17 = vadd.f32 %v4448_v18, %v4352_v34  ;;  %v13235_v4 = vld [vmem:[#allocation402_spill] sm:$0xff]  ;;  %v13236_v34 = vld [vmem:[#allocation404_spill] sm:$0xff]  ;;  %v13238_v7 = vld [vmem:[#allocation405_spill] sm:$0xff] }
0x1a8a   : > { %v5656_v39 = vmul.f32 %v13229_v53, %v5628_v60  ;;  %v4471_v12 = vadd.f32 %v4449_v36, %v4353_v11  ;;  %v1841_v22 = vadd.f32 %v13230_v52, %v1723_v13  ;;  %v1842_v23 = vadd.f32 %v13231_v32, %v1724_v58  ;;  %5691 = vrot.lane.b32.xlu1 %v5657_v29, %s7452_s11  ;;  %v13237_v11 = vld [vmem:[#allocation403_spill] sm:$0xff]  ;;  %v5964_v9 = vld [vmem:[%s11902_s3] sm:$0xff]  ;;  %v13242_v47 = vld [vmem:[#allocation25_spill] sm:$0xff] }
0x1a8b   : > { %v1843_v48 = vadd.f32 %v13232_v62, %v1725_v40  ;;  %v11113_v1 = vsel %vm4445_vm0, %v13234_v45, %v13233_v19  ;;  %v11118_v30 = vsel %vm4445_vm0, %v13233_v19, %v13235_v4  ;;  %v4452_v37 = vsel %vm4445_vm0, %v13237_v11, %v13236_v34  ;;  %v13239_v18 = vld [vmem:[#allocation406_spill] sm:$0xff]  ;;  %v13240_v33 = vld [vmem:[#allocation407_spill] sm:$0xff]  ;;  %v13244_v58 = vld [vmem:[#allocation409_spill] sm:$0xff] }
0x1a8c   : > { %v4453_v60 = vsel %vm4445_vm0, %v13236_v34, %v13238_v7  ;;  %5689 = vrot.lane.b32.xlu0 %v5656_v39, %s7452_s11  ;;  %v4564_v35 = vsel %vm4563_vm10, %v13240_v33, %v13239_v18  ;;  %v13241_v28 = vld [vmem:[#allocation23_spill] sm:$0xff]  ;;  %v1960_v36 = vadd.f32 %v13242_v47, %v1842_v23  ;;  %v4475_v8 = vadd.f32 %v13237_v11, %v4357_v61  ;;  %v13246_v29 = vld [vmem:[#allocation408_spill] sm:$0xff]  ;;  %v13247_v32 = vld [vmem:[#allocation21_spill] sm:$0xff] }
0x1a8d   : > { %v1959_v49 = vadd.f32 %v13241_v28, %v1841_v22  ;;  %v1961_v13 = vadd.f32 %v13243_v50, %v1843_v48  ;;  %v4565_v44 = vsel %vm4563_vm10, %v13239_v18, %v13244_v58  ;;  %v13245_v40 = vld [vmem:[#allocation411_spill] sm:$0xff]  ;;  %v5658_v52 = vmul.f32 %v13229_v53, %v10969_v21  ;;  %v13248_v22 = vld [vmem:[#allocation20_spill] sm:$0xff]  ;;  %v11148_v48 = vpop.permute.xlu1 %5728  ;;  %v13250_v53 = vld [vmem:[#allocation410_spill] sm:$0xff] }
0x1a8e   : > { %v4566_v39 = vsel %vm4563_vm10, %v13246_v29, %v13245_v40  ;;  %v2077_v19 = vadd.f32 %v13248_v22, %v1960_v36  ;;  %v13249_v23 = vld [vmem:[#allocation155_spill] sm:$0xff]  ;;  %vm5732_vm1 = vcmask 408576   ;;  %5970 = vperm.xlu1 %7225, %v5964_v9   ;;  %v4476_v61 = vadd.f32 %v4452_v37, %v4358_v26  ;;  %v5966_v21 = vld [vmem:[%s11902_s3 + $0x10] sm:$0xff]  ;;  %v13251_v28 = vld [vmem:[#allocation22_spill] sm:$0xff] }
0x1a8f   : > { %v2076_v62 = vadd.f32 %v13247_v32, %v1959_v49  ;;  %v2078_v4 = vadd.f32 %v13249_v23, %v1961_v13  ;;  %v4477_v34 = vadd.f32 %v4453_v60, %v4359_v16  ;;  %v4585_v11 = vadd.f32 %v4564_v35, %v4467_v57  ;;  %v13252_v47 = vld [vmem:[#allocation29_spill] sm:$0xff]  ;;  %v13253_v36 = vld [vmem:[#allocation166_spill] sm:$0xff]  ;;  %v5731_v16 = vpop.permute.xlu0 %5730  ;;  %v5965_v57 = vld [vmem:[%s11902_s3 + $0x8] sm:$0xff] }
0x1a90   : > { %v4587_v7 = vadd.f32 %v13246_v29, %v4469_v59  ;;  %5693 = vrot.lane.b32.xlu0 %v5658_v52, %s7452_s11  ;;  %v4567_v18 = vsel %vm4563_vm10, %v13245_v40, %v13250_v53  ;;  %v2193_v9 = vadd.f32 %v13252_v47, %v2077_v19  ;;  %v4586_v59 = vadd.f32 %v4565_v44, %v4468_v31  ;;  %v11169_v35 = vld [vmem:[%s7565_s25] sm:$0xff]  ;;  %v13254_v13 = vld [vmem:[#allocation417_spill] sm:$0xff]  ;;  %v13256_v29 = vld [vmem:[#allocation31_spill] sm:$0xff] }
0x1a91   : > { %v2192_v49 = vadd.f32 %v13251_v28, %v2076_v62  ;;  %v2194_v26 = vadd.f32 %v13253_v36, %v2078_v4  ;;  %v4588_v37 = vadd.f32 %v4566_v39, %v4470_v17  ;;  %v11166_v60 = vsel %vm5732_vm1, %v11148_v48, %v5731_v16  ;;  %v13255_v58 = vld [vmem:[#allocation414_spill] sm:$0xff]  ;;  %v13257_v32 = vld [vmem:[#allocation28_spill] sm:$0xff]  ;;  %v13258_v22 = vld [vmem:[#allocation179_spill] sm:$0xff] }
0x1a92   : > { %v5737_v50 = vmul.f32 %v11169_v35, %v11148_v48  ;;  %v4570_v40 = vsel %vm4563_vm10, %v13255_v58, %v13254_v13  ;;  %v2309_v62 = vadd.f32 %v13257_v32, %v2193_v9  ;;  %5980 = vperm.xlu1 %7225, %v5966_v21   ;;  %v4589_v17 = vadd.f32 %v4567_v18, %v4471_v12  ;;  %v13259_v44 = vld [vmem:[#allocation412_spill] sm:$0xff]  ;;  %v13260_v39 = vld [vmem:[#allocation413_spill] sm:$0xff]  ;;  %v13262_v4 = vld [vmem:[#allocation415_spill] sm:$0xff] }
0x1a93   : > { %v2308_v52 = vadd.f32 %v13256_v29, %v2192_v49  ;;  %v2310_v31 = vadd.f32 %v13258_v22, %v2194_v26  ;;  %v11182_v19 = vsel %vm4563_vm10, %v13260_v39, %v13259_v44  ;;  %v4593_v23 = vadd.f32 %v13255_v58, %v4475_v8  ;;  %v5967_v28 = vld [vmem:[%s11902_s3 + $0x18] sm:$0xff]  ;;  %v13264_v49 = vld [vmem:[#allocation30_spill] sm:$0xff]  ;;  %v13267_v36 = vld [vmem:[#allocation416_spill] sm:$0xff] }
0x1a94   : > { %13261 = vst [vmem:[#allocation90_spill] sm:$0xff] %v11182_v19  ;;  %v11188_v53 = vsel %vm4563_vm10, %v13259_v44, %v13262_v4  ;;  %5975 = vperm.xlu0 %7224, %v5965_v57   ;;  %v13265_v12 = vld [vmem:[#allocation37_spill] sm:$0xff]  ;;  %v13266_v47 = vld [vmem:[#allocation190_spill] sm:$0xff]  ;;  %v5738_v8 = vmul.f32 %v10727_v24, %v11166_v60  ;;  %v4571_v26 = vsel %vm4563_vm10, %v13254_v13, %v13267_v36  ;;  %v11201_v57 = vmul.f32 0.0, %v5731_v16  ;;  %v13268_v32 = vld [vmem:[#allocation419_spill] sm:$0xff] }
0x1a95   : > { %13263 = vst [vmem:[#allocation89_spill] sm:$0xff] %v11188_v53  ;;  %v2404_v21 = vadd.f32 %v13264_v49, %v2308_v52  ;;  %v2405_v18 = vadd.f32 %v13265_v12, %v2309_v62  ;;  %v2406_v9 = vadd.f32 %v13266_v47, %v2310_v31  ;;  %v4594_v58 = vadd.f32 %v4570_v40, %v4476_v61  ;;  %v13269_v22 = vld [vmem:[#allocation418_spill] sm:$0xff]  ;;  %v13271_v4 = vld [vmem:[#allocation36_spill] sm:$0xff]  ;;  %v13272_v49 = vld [vmem:[#allocation203_spill] sm:$0xff] }
0x1a96   : > { %v5765_v29 = vmul.f32 %v10881_v51, %v5737_v50  ;;  %v4682_v52 = vsel %vm4681_vm14, %v13269_v22, %v13268_v32  ;;  %v13270_v44 = vld [vmem:[#allocation34_spill] sm:$0xff]  ;;  %5985 = vperm.xlu1 %7225, %v5967_v28   ;;  %v13273_v47 = vld [vmem:[#allocation420_spill] sm:$0xff]  ;;  %v13275_v16 = vld [vmem:[#allocation421_spill] sm:$0xff]  ;;  %vm4896_vm10 = vcmask 359424   ;;  %vm5132_vm2 = vcmask 343040  }
0x1a97   : > { %v2522_v62 = vadd.f32 %v13270_v44, %v2404_v21  ;;  %v2523_v31 = vadd.f32 %v13271_v4, %v2405_v18  ;;  %v2524_v12 = vadd.f32 %v13272_v49, %v2406_v9  ;;  %v4683_v13 = vsel %vm4681_vm14, %v13268_v32, %v13273_v47  ;;  %v13274_v61 = vld [vmem:[#allocation422_spill] sm:$0xff]  ;;  %v13276_v50 = vld [vmem:[#allocation423_spill] sm:$0xff]  ;;  %v11220_v22 = vld [vmem:[%s7565_s25 + $0x10] sm:$0xff]  ;;  %s7454_s25 = smov 26  }
0x1a98   : > { %v4684_v40 = vsel %vm4681_vm14, %v13275_v16, %v13274_v61  ;;  %v4685_v36 = vsel %vm4681_vm14, %v13274_v61, %v13276_v50  ;;  %v5740_v21 = vmul.f32 %v11220_v22, %v11148_v48  ;;  %5789 = vrot.lane.b32.xlu0 %v5765_v29, %s7453_s13  ;;  %v13277_v28 = vld [vmem:[#allocation40_spill] sm:$0xff]  ;;  %v13279_v44 = vld [vmem:[#allocation214_spill] sm:$0xff]  ;;  %v5766_v49 = vmul.f32 %v10881_v51, %v5738_v8  ;;  %v13281_v29 = vld [vmem:[#allocation35_spill] sm:$0xff] }
0x1a99   : > { %v2640_v18 = vadd.f32 %v13277_v28, %v2522_v62  ;;  %v13278_v9 = vld [vmem:[#allocation32_spill] sm:$0xff]  ;;  %v2642_v4 = vadd.f32 %v13279_v44, %v2524_v12  ;;  %v4595_v47 = vadd.f32 %v4571_v26, %v4477_v34  ;;  %v4703_v33 = vadd.f32 %v4682_v52, %v4585_v11  ;;  %v13282_v62 = vld [vmem:[#allocation227_spill] sm:$0xff]  ;;  %v13283_v11 = vld [vmem:[#allocation425_spill] sm:$0xff] }
0x1a9a   : > { %v2641_v32 = vadd.f32 %v13278_v9, %v2523_v31  ;;  %v5767_v61 = vmul.f32 %v10881_v51, %v11201_v57  ;;  %v5741_v50 = vmul.f32 %v10767_v42, %v11166_v60  ;;  %v4704_v10 = vadd.f32 %v4683_v13, %v4586_v59  ;;  %5791 = vrot.lane.b32.xlu1 %v5766_v49, %s7453_s13  ;;  %v13284_v26 = vld [vmem:[#allocation424_spill] sm:$0xff]  ;;  %v13285_v59 = vld [vmem:[#allocation42_spill] sm:$0xff]  ;;  %v13294_v49 = vld [vmem:[#allocation53_spill] sm:$0xff] }
0x1a9b   : > { %v2758_v53 = vadd.f32 %v13280_v14, %v2640_v18  ;;  %v2760_v28 = vadd.f32 %v13282_v62, %v2642_v4  ;;  %v4705_v31 = vadd.f32 %v13275_v16, %v4587_v7  ;;  %v4706_v8 = vadd.f32 %v4684_v40, %v4588_v37  ;;  %v13286_v14 = vld [vmem:[#allocation41_spill] sm:$0xff]  ;;  %v13287_v13 = vld [vmem:[#allocation238_spill] sm:$0xff]  ;;  %v13289_v44 = vld [vmem:[#allocation428_spill] sm:$0xff] }
0x1a9c   : > { %v2759_v19 = vadd.f32 %v13281_v29, %v2641_v32  ;;  %v4707_v34 = vadd.f32 %v4685_v36, %v4589_v17  ;;  %v11241_v51 = vsel %vm4681_vm14, %v13284_v26, %v13283_v11  ;;  %5793 = vrot.lane.b32.xlu0 %v5767_v61, %s7453_s13  ;;  %v13288_v9 = vld [vmem:[#allocation78_spill] sm:$0xff]  ;;  %v13290_v4 = vld [vmem:[#allocation427_spill] sm:$0xff]  ;;  %v13291_v37 = vld [vmem:[#allocation429_spill] sm:$0xff]  ;;  %v5743_v16 = vmul.f32 %v10807_v5, %v11148_v48 }
0x1a9d   : > { %v2875_v52 = vadd.f32 %v13285_v59, %v2758_v53  ;;  %v2877_v18 = vadd.f32 %v13287_v13, %v2760_v28  ;;  %v5768_v32 = vmul.f32 %v13288_v9, %v5740_v21  ;;  %v4688_v7 = vsel %vm4681_vm14, %v13290_v4, %v13289_v44  ;;  %v13292_v53 = vld [vmem:[#allocation430_spill] sm:$0xff]  ;;  %v13293_v36 = vld [vmem:[#allocation431_spill] sm:$0xff]  ;;  %v13295_v21 = vld [vmem:[#allocation45_spill] sm:$0xff] }
0x1a9e   : > { %v2876_v12 = vadd.f32 %v13286_v14, %v2759_v19  ;;  %v4689_v17 = vsel %vm4681_vm14, %v13289_v44, %v13291_v37  ;;  %v5769_v40 = vmul.f32 %v13288_v9, %v5741_v50  ;;  %v4779_v19 = vsel %vm4778_vm15, %v13293_v36, %v13292_v53  ;;  %v13296_v62 = vld [vmem:[#allocation251_spill] sm:$0xff]  ;;  %v13297_v59 = vld [vmem:[#allocation426_spill] sm:$0xff]  ;;  %v13298_v50 = vld [vmem:[#allocation433_spill] sm:$0xff] }
0x1a9f   : > { %v2991_v61 = vadd.f32 %v13294_v49, %v2875_v52  ;;  %v2993_v28 = vadd.f32 %v13296_v62, %v2877_v18  ;;  %5795 = vrot.lane.b32.xlu1 %v5768_v32, %s7453_s13  ;;  %v11267_v14 = vsel %vm4681_vm14, %v13283_v11, %v13297_v59  ;;  %v4711_v13 = vadd.f32 %v13290_v4, %v4593_v23  ;;  %v13299_v18 = vld [vmem:[#allocation55_spill] sm:$0xff]  ;;  %v13300_v37 = vld [vmem:[#allocation52_spill] sm:$0xff]  ;;  %v13301_v11 = vld [vmem:[#allocation262_spill] sm:$0xff] }
0x1aa0   : > { %v2992_v29 = vadd.f32 %v13295_v21, %v2876_v12  ;;  %v4780_v44 = vsel %vm4778_vm15, %v13292_v53, %v13298_v50  ;;  %5797 = vrot.lane.b32.xlu0 %v5769_v40, %s7453_s13  ;;  %v5770_v52 = vmul.f32 %v13288_v9, %v11201_v57  ;;  %v5744_v12 = vmul.f32 %v11043_v43, %v11166_v60  ;;  %v13303_v40 = vld [vmem:[#allocation435_spill] sm:$0xff]  ;;  %v13304_v59 = vld [vmem:[#allocation432_spill] sm:$0xff] }
0x1aa1   : > { %v3107_v32 = vadd.f32 %v13299_v18, %v2991_v61  ;;  %v3109_v21 = vadd.f32 %v13301_v11, %v2993_v28  ;;  %v11281_v62 = vadd.f32 %v4688_v7, %v4594_v58  ;;  %v11283_v23 = vadd.f32 %v4689_v17, %v4595_v47  ;;  %v13305_v50 = vld [vmem:[#allocation271_spill] sm:$0xff]  ;;  %v13306_v61 = vld [vmem:[#allocation58_spill] sm:$0xff] }
0x1aa2   : > { %v3108_v49 = vadd.f32 %v13300_v37, %v2992_v29  ;;  %v4800_v4 = vadd.f32 %v4779_v19, %v4703_v33  ;;  %v5771_v53 = vmul.f32 %v10910_v0, %v5743_v16  ;;  %v4781_v9 = vsel %vm4778_vm15, %v13304_v59, %v13303_v40  ;;  %v13307_v29 = vld [vmem:[#allocation270_spill] sm:$0xff]  ;;  %v13309_v19 = vld [vmem:[#allocation280_spill] sm:$0xff] }
0x1aa3   : > { %13302 = vst [vmem:[#allocation91_spill] sm:$0xff] %v11283_v23  ;;  %5799 = vrot.lane.b32.xlu1 %v5770_v52, %s7453_s13  ;;  %v3183_v36 = vadd.f32 %v13305_v50, %v3107_v32  ;;  %v3185_v37 = vadd.f32 %v13307_v29, %v3109_v21  ;;  %v4802_v58 = vadd.f32 %v13304_v59, %v4705_v31  ;;  %v13308_v47 = vld [vmem:[#allocation434_spill] sm:$0xff]  ;;  %vm12268_vm14 = vcmask 416768   ;;  %v13314_v59 = vld [vmem:[#allocation72_spill] sm:$0xff]  ;;  %v13318_v29 = vld [vmem:[#allocation439_spill] sm:$0xff] }
0x1aa4   : > { %v3184_v18 = vadd.f32 %v13306_v61, %v3108_v49  ;;  %v4801_v7 = vadd.f32 %v4780_v44, %v4704_v10  ;;  %v4782_v33 = vsel %vm4778_vm15, %v13303_v40, %v13308_v47  ;;  %v5746_v17 = vmul.f32 %v10840_v6, %v11148_v48  ;;  %5801 = vrot.lane.b32.xlu0 %v5771_v53, %s7453_s13  ;;  %v13310_v52 = vld [vmem:[#allocation66_spill] sm:$0xff]  ;;  %v13311_v49 = vld [vmem:[#allocation57_spill] sm:$0xff]  ;;  %v5849_v44 = vpop.permute.xlu0 %5848  ;;  %v11308_v48 = vpop.permute.xlu1 %5846  ;;  %v13313_v53 = vld [vmem:[#allocation67_spill] sm:$0xff] }
0x1aa5   : > { %v5772_v16 = vmul.f32 %v10910_v0, %v5744_v12  ;;  %v3313_v28 = vadd.f32 %v13309_v19, %v3183_v36  ;;  %v3315_v11 = vadd.f32 %v13311_v49, %v3185_v37  ;;  %v4803_v21 = vadd.f32 %v4781_v9, %v4706_v8  ;;  %v13312_v12 = vld [vmem:[#allocation293_spill] sm:$0xff]  ;;  %v13315_v9 = vld [vmem:[#allocation436_spill] sm:$0xff]  ;;  %v13323_v49 = vld [vmem:[#allocation442_spill] sm:$0xff] }
0x1aa6   : > { %v3314_v32 = vadd.f32 %v13310_v52, %v3184_v18  ;;  %v5773_v10 = vmul.f32 %v10910_v0, %v11201_v57  ;;  %v5747_v31 = vmul.f32 %v11066_v63, %v11166_v60  ;;  %v4804_v8 = vadd.f32 %v4782_v33, %v4707_v34  ;;  %v13316_v61 = vld [vmem:[#allocation437_spill] sm:$0xff]  ;;  %v13317_v18 = vld [vmem:[#allocation438_spill] sm:$0xff]  ;;  %v13336_v23 = vld [vmem:[#allocation447_spill] sm:$0xff] }
0x1aa7   : > { %5803 = vrot.lane.b32.xlu1 %v5772_v16, %s7453_s13  ;;  %v3431_v36 = vadd.f32 %v13312_v12, %v3313_v28  ;;  %v3433_v50 = vadd.f32 %v13314_v59, %v3315_v11  ;;  %v11317_v0 = vsel %vm4778_vm15, %v13316_v61, %v13315_v9  ;;  %v4808_v60 = vadd.f32 %v13317_v18, %v4711_v13  ;;  %v13319_v16 = vld [vmem:[#allocation304_spill] sm:$0xff]  ;;  %v13320_v28 = vld [vmem:[#allocation71_spill] sm:$0xff]  ;;  %v13321_v33 = vld [vmem:[#allocation73_spill] sm:$0xff] }
0x1aa8   : > { %v3432_v40 = vadd.f32 %v13313_v53, %v3314_v32  ;;  %v11323_v37 = vsel %vm4778_vm15, %v13315_v9, %v13318_v29  ;;  %5805 = vrot.lane.b32.xlu0 %v5773_v10, %s7453_s13  ;;  %v5774_v47 = vmul.f32 %v10945_v55, %v5746_v17  ;;  %v13322_v32 = vld [vmem:[#allocation443_spill] sm:$0xff]  ;;  %v11335_v13 = vsel %vm12268_vm14, %v11308_v48, %v5849_v44  ;;  %v13324_v17 = vld [vmem:[#allocation444_spill] sm:$0xff]  ;;  %v13325_v53 = vld [vmem:[#allocation317_spill] sm:$0xff] }
0x1aa9   : > { %v3549_v19 = vadd.f32 %v13319_v16, %v3431_v36  ;;  %v3551_v52 = vadd.f32 %v13321_v33, %v3433_v50  ;;  %v4897_v11 = vsel %vm4896_vm10, %v13323_v49, %v13322_v32  ;;  %v5855_v12 = vmul.f32 %v11169_v35, %v11308_v48  ;;  %v13326_v59 = vld [vmem:[#allocation69_spill] sm:$0xff]  ;;  %v13327_v9 = vld [vmem:[#allocation68_spill] sm:$0xff]  ;;  %v13331_v33 = vld [vmem:[#allocation446_spill] sm:$0xff] }
0x1aaa   : > { %v3550_v34 = vadd.f32 %v13320_v28, %v3432_v40  ;;  %v5775_v10 = vmul.f32 %v10945_v55, %v5747_v31  ;;  %v4898_v36 = vsel %vm4896_vm10, %v13322_v32, %v13324_v17  ;;  %v13328_v16 = vld [vmem:[#allocation441_spill] sm:$0xff]  ;;  %v13329_v35 = vld [vmem:[#allocation440_spill] sm:$0xff]  ;;  %v13334_v17 = vld [vmem:[#allocation79_spill] sm:$0xff]  ;;  %v11368_v49 = vmul.f32 0.0, %v5849_v44 }
0x1aab   : > { %5807 = vrot.lane.b32.xlu1 %v5774_v47, %s7453_s13  ;;  %v3667_v40 = vadd.f32 %v13325_v53, %v3549_v19  ;;  %v3669_v29 = vadd.f32 %v13327_v9, %v3551_v52  ;;  %v11350_v28 = vsel %vm4778_vm15, %v13317_v18, %v13328_v16  ;;  %v11355_v31 = vsel %vm4778_vm15, %v13328_v16, %v13329_v35  ;;  %v13332_v32 = vld [vmem:[#allocation445_spill] sm:$0xff]  ;;  %v13333_v52 = vld [vmem:[#allocation328_spill] sm:$0xff] }
0x1aac   : > { %v3668_v50 = vadd.f32 %v13326_v59, %v3550_v34  ;;  %13330 = vst [vmem:[#allocation96_spill] sm:$0xff] %v11355_v31  ;;  %v4899_v47 = vsel %vm4896_vm10, %v13332_v32, %v13331_v33  ;;  %5809 = vrot.lane.b32.xlu0 %v5775_v10, %s7453_s13  ;;  %v5776_v19 = vmul.f32 %v10945_v55, %v11201_v57  ;;  %v13335_v59 = vld [vmem:[#allocation76_spill] sm:$0xff]  ;;  %v13337_v57 = vld [vmem:[#allocation85_spill] sm:$0xff]  ;;  %vm5014_vm15 = vcmask 351232  }
0x1aad   : > { %v5856_v34 = vmul.f32 %v10727_v24, %v11335_v13  ;;  %v3785_v18 = vadd.f32 %v13333_v52, %v3667_v40  ;;  %v3787_v9 = vadd.f32 %v13335_v59, %v3669_v29  ;;  %v4918_v16 = vadd.f32 %v4897_v11, %v4800_v4  ;;  %v13338_v44 = vld [vmem:[#allocation352_spill] sm:$0xff]  ;;  %v13348_v59 = vld [vmem:[#allocation450_spill] sm:$0xff] }
0x1aae   : > { %v3786_v53 = vadd.f32 %v13334_v17, %v3668_v50  ;;  %v4919_v35 = vadd.f32 %v4898_v36, %v4801_v7  ;;  %v5883_v31 = vmul.f32 %v10883_v25, %v5855_v12  ;;  %v4900_v10 = vsel %vm4896_vm10, %v13331_v33, %v13336_v23  ;;  %v13339_v12 = vld [vmem:[#allocation84_spill] sm:$0xff]  ;;  %v13341_v33 = vld [vmem:[#allocation449_spill] sm:$0xff] }
0x1aaf   : > { %5811 = vrot.lane.b32.xlu1 %v5776_v19, %s7453_s13  ;;  %v3903_v24 = vadd.f32 %v13148_v20, %v3785_v18  ;;  %v3905_v40 = vadd.f32 %v13337_v57, %v3787_v9  ;;  %v4920_v50 = vadd.f32 %v13332_v32, %v4802_v58  ;;  %v4921_v4 = vadd.f32 %v4899_v47, %v4803_v21  ;;  %v13340_v36 = vld [vmem:[#allocation80_spill] sm:$0xff]  ;;  %v13344_v32 = vld [vmem:[#allocation455_spill] sm:$0xff] }
0x1ab0   : > { %v3904_v55 = vadd.f32 %v10849_v15, %v3786_v53  ;;  %v5858_v7 = vmul.f32 %v11220_v22, %v11308_v48  ;;  %5907 = vrot.lane.b32.xlu0 %v5883_v31, %s7454_s25  ;;  %v5884_v23 = vmul.f32 %v10883_v25, %v5856_v34  ;;  %v4922_v29 = vadd.f32 %v4900_v10, %v4804_v8  ;;  %v13342_v19 = vld [vmem:[#allocation448_spill] sm:$0xff]  ;;  %v13343_v31 = vld [vmem:[#allocation454_spill] sm:$0xff]  ;;  %v13345_v34 = vld [vmem:[#allocation365_spill] sm:$0xff] }
0x1ab1   : > { %v4000_v11 = vadd.f32 %v13338_v44, %v3903_v24  ;;  %v4002_v15 = vadd.f32 %v13340_v36, %v3905_v40  ;;  %v11389_v58 = vsel %vm4896_vm10, %v13342_v19, %v13341_v33  ;;  %v5885_v22 = vmul.f32 %v10883_v25, %v11368_v49  ;;  %v13346_v8 = vld [vmem:[#allocation81_spill] sm:$0xff]  ;;  %v13347_v17 = vld [vmem:[#allocation88_spill] sm:$0xff]  ;;  %v13349_v25 = vld [vmem:[#allocation451_spill] sm:$0xff] }
0x1ab2   : > { %v4001_v20 = vadd.f32 %v13339_v12, %v3904_v55  ;;  %v5859_v21 = vmul.f32 %v10767_v42, %v11335_v13  ;;  %v5015_v47 = vsel %vm5014_vm15, %v13344_v32, %v13343_v31  ;;  %v4902_v9 = vsel %vm4896_vm10, %v13341_v33, %v13348_v59  ;;  %v13350_v42 = vld [vmem:[#allocation457_spill] sm:$0xff]  ;;  %v13351_v55 = vld [vmem:[#allocation459_spill] sm:$0xff]  ;;  %v13352_v57 = vld [vmem:[#allocation456_spill] sm:$0xff] }
0x1ab3   : > { %5909 = vrot.lane.b32.xlu1 %v5884_v23, %s7454_s25  ;;  %v4118_v52 = vadd.f32 %v13345_v34, %v4000_v11  ;;  %v4120_v53 = vadd.f32 %v13347_v17, %v4002_v15  ;;  %v11406_v10 = vadd.f32 %v13349_v25, %v4808_v60  ;;  %v5016_v24 = vsel %vm5014_vm15, %v13343_v31, %v13350_v42  ;;  %v13355_v34 = vld [vmem:[#allocation461_spill] sm:$0xff]  ;;  %v13361_v17 = vld [vmem:[#allocation463_spill] sm:$0xff]  ;;  %v13362_v59 = vld [vmem:[#allocation470_spill] sm:$0xff] }
0x1ab4   : > { %v4119_v18 = vadd.f32 %v13346_v8, %v4001_v20  ;;  %v5017_v40 = vsel %vm5014_vm15, %v13352_v57, %v13351_v55  ;;  %5911 = vrot.lane.b32.xlu0 %v5885_v22, %s7454_s25  ;;  %v5886_v23 = vmul.f32 %v11053_v2, %v5858_v7  ;;  %v5036_v60 = vadd.f32 %v5015_v47, %v4918_v16  ;;  %v13353_v20 = vld [vmem:[#allocation458_spill] sm:$0xff]  ;;  %v13358_v8 = vld [vmem:[#allocation468_spill] sm:$0xff]  ;;  %v13363_v42 = vld [vmem:[#allocation469_spill] sm:$0xff] }
0x1ab5   : > { %v4236_v44 = vadd.f32 %v13190_v41, %v4118_v52  ;;  %v4238_v12 = vadd.f32 %v10984_v54, %v4120_v53  ;;  %v5018_v36 = vsel %vm5014_vm15, %v13351_v55, %v13353_v20  ;;  %v5861_v15 = vmul.f32 %v10807_v5, %v11308_v48 }
0x1ab6   : > { %v4237_v11 = vadd.f32 %v10979_v38, %v4119_v18  ;;  %v5887_v33 = vmul.f32 %v11053_v2, %v5859_v21  ;;  %v5038_v54 = vadd.f32 %v13352_v57, %v4920_v50  ;;  %v5037_v16 = vadd.f32 %v5016_v24, %v4919_v35  ;;  %v13356_v50 = vld [vmem:[#allocation467_spill] sm:$0xff] }
0x1ab7   : > { %5913 = vrot.lane.b32.xlu1 %v5886_v23, %s7454_s25  ;;  %v4354_v7 = vadd.f32 %v13206_v27, %v4236_v44  ;;  %v4356_v38 = vadd.f32 %v11079_v46, %v4238_v12  ;;  %v5039_v22 = vadd.f32 %v5017_v40, %v4921_v4  ;;  %v5888_v5 = vmul.f32 %v11053_v2, %v11368_v49  ;;  %v13354_v46 = vld [vmem:[#allocation460_spill] sm:$0xff]  ;;  %v13357_v4 = vld [vmem:[#allocation466_spill] sm:$0xff] }
0x1ab8   : > { %v4355_v41 = vadd.f32 %v11040_v3, %v4237_v11  ;;  %5915 = vrot.lane.b32.xlu0 %v5887_v33, %s7454_s25  ;;  %v5862_v21 = vmul.f32 %v11043_v43, %v11335_v13  ;;  %v5040_v47 = vadd.f32 %v5018_v36, %v4922_v29  ;;  %v5019_v35 = vsel %vm5014_vm15, %v13355_v34, %v13354_v46  ;;  %v13360_v29 = vld [vmem:[#allocation89_spill] sm:$0xff]  ;;  %v13364_v36 = vld [vmem:[#allocation471_spill] sm:$0xff] }
0x1ab9   : > { %v4472_v31 = vadd.f32 %v13234_v45, %v4354_v7  ;;  %v4474_v3 = vadd.f32 %v11118_v30, %v4356_v38  ;;  %v5133_v52 = vsel %vm5132_vm2, %v13357_v4, %v13356_v50  ;;  %v5889_v2 = vmul.f32 %v11101_v56, %v5861_v15  ;;  %v13365_v15 = vld [vmem:[#allocation478_spill] sm:$0xff] }
0x1aba   : > { %v4473_v27 = vadd.f32 %v11113_v1, %v4355_v41  ;;  %v5134_v43 = vsel %vm5132_vm2, %v13356_v50, %v13358_v8  ;;  %v13359_v1 = vld [vmem:[#allocation90_spill] sm:$0xff]  ;;  %v5020_v53 = vsel %vm5014_vm15, %v13354_v46, %v13361_v17  ;;  %v5135_v24 = vsel %vm5132_vm2, %v13363_v42, %v13362_v59  ;;  %v13375_v50 = vld [vmem:[#allocation480_spill] sm:$0xff] }
0x1abb   : > { %5917 = vrot.lane.b32.xlu1 %v5888_v5, %s7454_s25  ;;  %v4590_v45 = vadd.f32 %v13260_v39, %v4472_v31  ;;  %v4592_v18 = vadd.f32 %v13360_v29, %v4474_v3  ;;  %vm5249_vm0 = vcmask 261120   ;;  %v5864_v55 = vmul.f32 %v10840_v6, %v11308_v48  ;;  %v13368_v7 = vld [vmem:[#allocation82_spill] sm:$0xff]  ;;  %v13376_v8 = vld [vmem:[#allocation492_spill] sm:$0xff] }
0x1abc   : > { %v4591_v30 = vadd.f32 %v13359_v1, %v4473_v27  ;;  %5919 = vrot.lane.b32.xlu0 %v5889_v2, %s7454_s25  ;;  %v5890_v39 = vmul.f32 %v11101_v56, %v5862_v21  ;;  %v5154_v44 = vadd.f32 %v5133_v52, %v5036_v60  ;;  %v5155_v11 = vadd.f32 %v5134_v43, %v5037_v16  ;;  %v13370_v16 = vld [vmem:[#allocation472_spill] sm:$0xff]  ;;  %v13371_v5 = vld [vmem:[#allocation474_spill] sm:$0xff]  ;;  %v13372_v27 = vld [vmem:[#allocation491_spill] sm:$0xff] }
0x1abd   : > { %v4708_v57 = vadd.f32 %v13284_v26, %v4590_v45  ;;  %v4710_v23 = vadd.f32 %v11267_v14, %v4592_v18  ;;  %v5891_v12 = vmul.f32 %v11101_v56, %v11368_v49  ;;  %v5865_v20 = vmul.f32 %v11066_v63, %v11335_v13  ;;  %v13366_v56 = vld [vmem:[#allocation479_spill] sm:$0xff]  ;;  %v13367_v63 = vld [vmem:[#allocation481_spill] sm:$0xff]  ;;  %v13373_v3 = vld [vmem:[#allocation490_spill] sm:$0xff] }
0x1abe   : > { %v4709_v40 = vadd.f32 %v11241_v51, %v4591_v30  ;;  %v5136_v6 = vsel %vm5132_vm2, %v13362_v59, %v13364_v36  ;;  %v5156_v48 = vadd.f32 %v13363_v42, %v5038_v54  ;;  %v5157_v60 = vadd.f32 %v5135_v24, %v5039_v22  ;;  %v13369_v54 = vld [vmem:[#allocation473_spill] sm:$0xff]  ;;  %v13378_v45 = vld [vmem:[#allocation43_spill] sm:$0xff]  ;;  %v13379_v1 = vld [vmem:[#allocation48_spill] sm:$0xff] }
0x1abf   : > { %5921 = vrot.lane.b32.xlu1 %v5890_v39, %s7454_s25  ;;  %v4805_v26 = vadd.f32 %v13316_v61, %v4708_v57  ;;  %v4807_v14 = vadd.f32 %v11323_v37, %v4710_v23  ;;  %v5250_v33 = vsel %vm5249_vm0, %v13366_v56, %v13365_v15  ;;  %v5251_v13 = vsel %vm5249_vm0, %v13365_v15, %v13367_v63  ;;  %v13380_v18 = vld [vmem:[#allocation483_spill] sm:$0xff]  ;;  %v13382_v59 = vld [vmem:[#allocation485_spill] sm:$0xff]  ;;  %v13384_v57 = vld [vmem:[#allocation482_spill] sm:$0xff] }
0x1ac0   : > { %v4806_v51 = vadd.f32 %v11317_v0, %v4709_v40  ;;  %5923 = vrot.lane.b32.xlu0 %v5891_v12, %s7454_s25  ;;  %v5892_v41 = vmul.f32 %v13368_v7, %v5864_v55  ;;  %v5158_v38 = vadd.f32 %v5136_v6, %v5040_v47  ;;  %v5137_v22 = vsel %vm5132_vm2, %v13370_v16, %v13369_v54  ;;  %v13383_v24 = vld [vmem:[#allocation487_spill] sm:$0xff]  ;;  %v13385_v12 = vld [vmem:[#allocation493_spill] sm:$0xff]  ;;  %v13387_v6 = vld [vmem:[#allocation496_spill] sm:$0xff] }
0x1ac1   : > { %v4923_v61 = vadd.f32 %v13342_v19, %v4805_v26  ;;  %v4925_v37 = vadd.f32 %v4902_v9, %v4807_v14  ;;  %v5138_v21 = vsel %vm5132_vm2, %v13369_v54, %v13371_v5  ;;  %v5893_v31 = vmul.f32 %v13368_v7, %v5865_v20  ;;  %v13386_v36 = vld [vmem:[#allocation497_spill] sm:$0xff]  ;;  %v13389_v15 = vld [vmem:[#allocation498_spill] sm:$0xff] }
0x1ac2   : > { %v4924_v0 = vadd.f32 %v11389_v58, %v4806_v51  ;;  %vm13374_vm1 = vcmask 252928   ;;  %v5271_v47 = vadd.f32 %v5250_v33, %v5154_v44  ;;  %v5273_v52 = vadd.f32 %v13375_v50, %v5156_v48  ;;  %v11527_v48 = vpop.permute.xlu1 %5554  ;;  %v13390_v63 = vld [vmem:[#allocation49_spill] sm:$0xff] }
0x1ac3   : > { %v5366_v46 = vsel %vm13374_vm1, %v13373_v3, %v13372_v27  ;;  %5925 = vrot.lane.b32.xlu1 %v5892_v41, %s7454_s25  ;;  %v5041_v19 = vadd.f32 %v13355_v34, %v4923_v61  ;;  %v5043_v9 = vadd.f32 %v5020_v53, %v4925_v37  ;;  %v5272_v2 = vadd.f32 %v5251_v13, %v5155_v11  ;;  %vm13377_vm14 = vmmov %vm13374_vm1  ;;  %v13381_v53 = vld [vmem:[#allocation484_spill] sm:$0xff]  ;;  %v13392_v61 = vld [vmem:[#allocation494_spill] sm:$0xff] }
0x1ac4   : > { %v5042_v58 = vadd.f32 %v5019_v35, %v4924_v0  ;;  %v5367_v43 = vsel %vm13377_vm14, %v13372_v27, %v13376_v8  ;;  %5927 = vrot.lane.b32.xlu0 %v5893_v31, %s7454_s25  ;;  %v5482_v30 = vsel %vm4482_vm9, %v13379_v1, %v13378_v45  ;;  %v5894_v29 = vmul.f32 %v13368_v7, %v11368_v49  ;;  %vm13388_vm14 = vmmov %vm13374_vm1  ;;  %v13394_v37 = vld [vmem:[#allocation54_spill] sm:$0xff]  ;;  %v13395_v54 = vld [vmem:[#allocation61_spill] sm:$0xff] }
0x1ac5   : > { %v5161_v35 = vadd.f32 %v5138_v21, %v5043_v9  ;;  %v5252_v17 = vsel %vm5249_vm0, %v13375_v50, %v13380_v18  ;;  %v5254_v42 = vsel %vm5249_vm0, %v13382_v59, %v13381_v53  ;;  %v5255_v55 = vsel %vm5249_vm0, %v13381_v53, %v13383_v24  ;;  %vm13393_vm6 = vmmov %vm13374_vm1  ;;  %v13396_v21 = vld [vmem:[#allocation495_spill] sm:$0xff]  ;;  %v13399_v8 = vld [vmem:[#allocation64_spill] sm:$0xff] }
0x1ac6   : > { %v5160_v34 = vadd.f32 %v5137_v22, %v5042_v58  ;;  %v5387_v39 = vadd.f32 %v5366_v46, %v5271_v47  ;;  %v5253_v40 = vsel %vm5249_vm0, %v13380_v18, %v13384_v57  ;;  %v5159_v49 = vadd.f32 %v13370_v16, %v5041_v19  ;;  %v5557_v14 = vpop.permute.xlu0 %5556  ;;  %v13398_v27 = vld [vmem:[#allocation47_spill] sm:$0xff]  ;;  %v13402_v53 = vld [vmem:[#allocation452_spill] sm:$0xff]  ;;  %v13404_v24 = vld [vmem:[#allocation14_spill] sm:$0xff] }
0x1ac7   : > { %5929 = vrot.lane.b32.xlu1 %v5894_v29, %s7454_s25  ;;  %v5278_v44 = vadd.f32 %v5255_v55, %v5161_v35  ;;  %v5388_v11 = vadd.f32 %v5367_v43, %v5272_v2  ;;  %v5389_v20 = vadd.f32 %v13385_v12, %v5273_v52  ;;  %v5370_v26 = vsel %vm13388_vm14, %v13387_v6, %v13386_v36  ;;  %vm13397_vm14 = vmmov %vm13374_vm1  ;;  %v5559_v2 = vpop.permute.xlu1 %5558  ;;  %v13401_v29 = vld [vmem:[#allocation44_spill] sm:$0xff]  ;;  %v13406_v57 = vld [vmem:[#allocation91_spill] sm:$0xff] }
0x1ac8   : > { %v5277_v23 = vadd.f32 %v5254_v42, %v5160_v34  ;;  %v5503_v51 = vadd.f32 %v5482_v30, %v5387_v39  ;;  %v5371_v33 = vsel %vm13374_vm1, %v13386_v36, %v13389_v15  ;;  %v5483_v13 = vsel %vm4482_vm9, %v13378_v45, %v13390_v63  ;;  %v13400_v45 = vld [vmem:[#allocation46_spill] sm:$0xff]  ;;  %v13403_v42 = vld [vmem:[#allocation15_spill] sm:$0xff]  ;;  %v13410_v15 = vld [vmem:[#allocation465_spill] sm:$0xff] }
0x1ac9   : > { %v5578_v7 = vsel %vm13391_vm5, %v11527_v48, %v5557_v14  ;;  %v5368_v0 = vsel %vm13393_vm6, %v13385_v12, %v13392_v61  ;;  %v5486_v16 = vsel %vm4482_vm9, %v13395_v54, %v13394_v37  ;;  %v5394_v5 = vadd.f32 %v5371_v33, %v5278_v44  ;;  %v13408_v44 = vld [vmem:[#allocation453_spill] sm:$0xff]  ;;  %vm13412_vm1 = vmmov %vm13391_vm5  ;;  %v13413_v33 = vld [vmem:[#allocation464_spill] sm:$0xff] }
0x1aca   : > { %v5393_v41 = vadd.f32 %v5370_v26, %v5277_v23  ;;  %v11543_v22 = vadd.f32 %v5578_v7, %v5503_v51  ;;  %v5369_v31 = vsel %vm13397_vm14, %v13392_v61, %v13396_v21  ;;  %v5505_v46 = vadd.f32 %v13398_v27, %v5389_v20  ;;  %v5561_v52 = vpop.permute.xlu0 %5560  ;;  %v13415_v61 = vld [vmem:[#allocation6_spill] sm:$0xff] }
0x1acb   : > { %v5276_v19 = vadd.f32 %v13382_v59, %v5159_v49  ;;  %v5274_v9 = vadd.f32 %v5252_v17, %v5157_v60  ;;  %v5275_v47 = vadd.f32 %v5253_v40, %v5158_v38  ;;  %v5504_v50 = vadd.f32 %v5483_v13, %v5388_v11  ;;  %v13407_v40 = vld [vmem:[#allocation96_spill] sm:$0xff]  ;;  %v13409_v11 = vld [vmem:[#allocation462_spill] sm:$0xff]  ;;  %v13414_v13 = vld [vmem:[#allocation475_spill] sm:$0xff] }
0x1acc   : > { %v5509_v58 = vadd.f32 %v5486_v16, %v5393_v41  ;;  %v5510_v43 = vadd.f32 %v13399_v8, %v5394_v5  ;;  %v5484_v30 = vsel %vm4482_vm9, %v13398_v27, %v13400_v45  ;;  %v5485_v34 = vsel %vm4482_vm9, %v13400_v45, %v13401_v29  ;;  %vm13411_vm9 = vmmov %vm13391_vm5  ;;  %v13416_v16 = vld [vmem:[#allocation476_spill] sm:$0xff]  ;;  %v13418_v27 = vld [vmem:[#allocation27_spill] sm:$0xff] }
0x1acd   : > { %v11557_v35 = vadd.f32 %v5561_v52, %v5505_v46  ;;  %v5579_v18 = vsel %vm13391_vm5, %v5557_v14, %v5559_v2  ;;  %v4903_v60 = vsel %vm4896_vm10, %v13349_v25, %v13402_v53  ;;  %v5390_v38 = vadd.f32 %v5368_v0, %v5274_v9  ;;  %v5563_v51 = vpop.permute.xlu1 %5562  ;;  %v13419_v9 = vld [vmem:[#allocation477_spill] sm:$0xff] }
0x1ace   : > { %v5391_v17 = vadd.f32 %v5369_v31, %v5275_v47  ;;  %v11563_v59 = vadd.f32 %v5579_v18, %v5504_v50  ;;  %vm13405_vm6 = vcmask 1022976   ;;  %v4809_v39 = vadd.f32 %v11350_v28, %v11281_v62  ;;  %v5565_v26 = vpop.permute.xlu0 %5564  ;;  %v13417_v31 = vld [vmem:[#allocation26_spill] sm:$0xff] }
0x1acf   : > { %v741_v55 = vsel %vm13405_vm6, %v13404_v24, %v13403_v42  ;;  %v4810_v49 = vadd.f32 %v13407_v40, %v13406_v57  ;;  %v5392_v23 = vadd.f32 %v13387_v6, %v5276_v19  ;;  %v4904_v25 = vsel %vm4896_vm10, %v13402_v53, %v13408_v44  ;;  %v13420_v50 = vld [vmem:[#allocation486_spill] sm:$0xff]  ;;  %vm13422_vm10 = vmmov %vm13412_vm1  ;;  %v13423_v53 = vld [vmem:[#allocation488_spill] sm:$0xff] }
0x1ad0   : > { %v5044_v12 = vadd.f32 %v13409_v11, %v11406_v10  ;;  %v5506_v20 = vadd.f32 %v5484_v30, %v5390_v38  ;;  %v5507_v36 = vadd.f32 %v5485_v34, %v5391_v17  ;;  %v4927_v14 = vadd.f32 %v4903_v60, %v4809_v39  ;;  %v13421_v30 = vld [vmem:[#allocation489_spill] sm:$0xff]  ;;  %v13424_v38 = vld [vmem:[#allocation499_spill] sm:$0xff]  ;;  %v13428_v40 = vld [vmem:[#allocation500_spill] sm:$0xff] }
0x1ad1   : > { %v5021_v62 = vsel %vm5014_vm15, %v13409_v11, %v13410_v15  ;;  %v5580_v28 = vsel %vm13411_vm9, %v5561_v52, %v5563_v51  ;;  %v5581_v6 = vsel %vm13412_vm1, %v5563_v51, %v5565_v26  ;;  %v5022_v63 = vsel %vm5014_vm15, %v13410_v15, %v13413_v33  ;;  %v13425_v24 = vld [vmem:[#allocation39_spill] sm:$0xff]  ;;  %vm13429_vm15 = vmmov %vm13397_vm14 }
0x1ad2   : > { %v5162_v7 = vadd.f32 %v13414_v13, %v5044_v12  ;;  %v11587_v10 = vadd.f32 %v5580_v28, %v5506_v20  ;;  %v11589_v41 = vadd.f32 %v5581_v6, %v5507_v36  ;;  %v761_v0 = vadd.f32 %v741_v55, %v13415_v61  ;;  %v5569_v2 = vpop.permute.xlu0 %5568  ;;  %v13426_v55 = vld [vmem:[#allocation38_spill] sm:$0xff]  ;;  %v13432_v12 = vld [vmem:[#allocation60_spill] sm:$0xff]  ;;  %v13434_v26 = vld [vmem:[#allocation51_spill] sm:$0xff] }
0x1ad3   : > { %v4928_v37 = vadd.f32 %v4904_v25, %v4810_v49  ;;  %v5139_v5 = vsel %vm5132_vm2, %v13414_v13, %v13416_v16  ;;  %v5508_v21 = vadd.f32 %v13395_v54, %v5392_v23  ;;  %v870_v46 = vsel %vm869_vm8, %v13418_v27, %v13417_v31  ;;  %v5567_v8 = vpop.permute.xlu1 %5566  ;;  %v13430_v25 = vld [vmem:[#allocation501_spill] sm:$0xff]  ;;  %v13436_v13 = vld [vmem:[#allocation63_spill] sm:$0xff]  ;;  %v13439_v31 = vld [vmem:[#allocation74_spill] sm:$0xff] }
0x1ad4   : > { %v5045_v19 = vadd.f32 %v5021_v62, %v4927_v14  ;;  %v5140_v47 = vsel %vm5132_vm2, %v13416_v16, %v13419_v9  ;;  %v5279_v52 = vadd.f32 %v13420_v50, %v5162_v7  ;;  %v5256_v29 = vsel %vm5249_vm0, %v13420_v50, %v13421_v30  ;;  %vm13431_vm2 = vmmov %vm13397_vm14  ;;  %v13437_v7 = vld [vmem:[#allocation62_spill] sm:$0xff]  ;;  %v13438_v16 = vld [vmem:[#allocation65_spill] sm:$0xff] }
0x1ad5   : > { %v5046_v45 = vadd.f32 %v5022_v63, %v4928_v37  ;;  %v5582_v54 = vsel %vm13422_vm10, %v5567_v8, %v5569_v2  ;;  %v11607_v34 = vadd.f32 %v5567_v8, %v5508_v21  ;;  %v5257_v60 = vsel %vm5249_vm0, %v13421_v30, %v13423_v53  ;;  %vm13435_vm0 = vmmov %vm13412_vm1  ;;  %v13440_v27 = vld [vmem:[#allocation75_spill] sm:$0xff] }
0x1ad6   : > { %v5163_v18 = vadd.f32 %v5139_v5, %v5045_v19  ;;  %v5395_v17 = vadd.f32 %v13424_v38, %v5279_v52  ;;  %v11613_v42 = vadd.f32 %v5582_v54, %v5509_v58  ;;  %vm13427_vm8 = vcmask 1006592   ;;  %v13433_v58 = vld [vmem:[#allocation50_spill] sm:$0xff]  ;;  %v13441_v19 = vld [vmem:[#allocation56_spill] sm:$0xff]  ;;  %vm13443_vm14 = vmmov %vm13435_vm0 }
0x1ad7   : > { %v999_v39 = vsel %vm13427_vm8, %v13426_v55, %v13425_v24  ;;  %v5164_v57 = vadd.f32 %v5140_v47, %v5046_v45  ;;  %v5372_v49 = vsel %vm13429_vm15, %v13424_v38, %v13428_v40  ;;  %v890_v23 = vadd.f32 %v870_v46, %v761_v0  ;;  %v5571_v36 = vpop.permute.xlu1 %5570  ;;  %v13444_v8 = vld [vmem:[#allocation87_spill] sm:$0xff]  ;;  %v13445_v45 = vld [vmem:[#allocation86_spill] sm:$0xff] }
0x1ad8   : > { %v5280_v44 = vadd.f32 %v5256_v29, %v5163_v18  ;;  %v5373_v11 = vsel %vm13431_vm2, %v13428_v40, %v13430_v25  ;;  %v5511_v20 = vadd.f32 %v13432_v12, %v5395_v17  ;;  %v1128_v51 = vsel %vm1127_vm3, %v13434_v26, %v13433_v58  ;;  %vm13442_vm3 = vmmov %vm13435_vm0  ;;  %v13447_v18 = vld [vmem:[#allocation98_spill] sm:$0xff]  ;;  %v13448_v53 = vld [vmem:[#allocation99_spill] sm:$0xff] }
0x1ad9   : > { %v5281_v14 = vadd.f32 %v5257_v60, %v5164_v57  ;;  %v5583_v62 = vsel %vm13435_vm0, %v5569_v2, %v5571_v36  ;;  %v1019_v28 = vadd.f32 %v999_v39, %v890_v23  ;;  %v1246_v61 = vsel %vm1245_vm4, %v13437_v7, %v13436_v13  ;;  %v13450_v17 = vld [vmem:[#allocation111_spill] sm:$0xff]  ;;  %v13451_v24 = vld [vmem:[#allocation110_spill] sm:$0xff] }
0x1ada   : > { %v5573_v15 = vpop.permute.xlu0 %5572  ;;  %v5396_v6 = vadd.f32 %v5372_v49, %v5280_v44  ;;  %v11631_v63 = vadd.f32 %v5583_v62, %v5510_v43  ;;  %v1364_v46 = vsel %vm1363_vm13, %v13440_v27, %v13439_v31  ;;  %vm13446_vm4 = vcmask 900096   ;;  %v13453_v57 = vld [vmem:[#allocation122_spill] sm:$0xff]  ;;  %v13454_v40 = vld [vmem:[#allocation123_spill] sm:$0xff] }
0x1adb   : > { %v11629_v33 = vadd.f32 %v5573_v15, %v5511_v20  ;;  %v5397_v0 = vadd.f32 %v5373_v11, %v5281_v14  ;;  %v1148_v37 = vadd.f32 %v1128_v51, %v1019_v28  ;;  %v5575_v21 = vpop.permute.xlu1 %5574  ;;  %v1482_v30 = vsel %vm13446_vm4, %v13445_v45, %v13444_v8  ;;  %v13456_v44 = vld [vmem:[#allocation135_spill] sm:$0xff]  ;;  %v13457_v25 = vld [vmem:[#allocation134_spill] sm:$0xff] }
0x1adc   : > { %v5512_v5 = vadd.f32 %v13438_v16, %v5396_v6  ;;  %v5584_v50 = vsel %vm13442_vm3, %v5573_v15, %v5575_v21  ;;  %vm13449_vm13 = vcmask 891904   ;;  %vm13452_vm5 = vcmask 883712   ;;  %v13458_v20 = vld [vmem:[#allocation146_spill] sm:$0xff]  ;;  %v13459_v36 = vld [vmem:[#allocation147_spill] sm:$0xff] }
0x1add   : > { %v5513_v9 = vadd.f32 %v13441_v19, %v5397_v0  ;;  %v1266_v43 = vadd.f32 %v1246_v61, %v1148_v37  ;;  %v1579_v60 = vsel %vm13449_vm13, %v13448_v53, %v13447_v18  ;;  %v1697_v55 = vsel %vm13452_vm5, %v13451_v24, %v13450_v17  ;;  %v13460_v51 = vld [vmem:[#allocation159_spill] sm:$0xff]  ;;  %v13461_v14 = vld [vmem:[#allocation158_spill] sm:$0xff] }
0x1ade   : > { %v5577_v47 = vpop.permute.xlu0 %5576  ;;  %v11643_v2 = vadd.f32 %v5584_v50, %v5512_v5  ;;  %vm13455_vm6 = vcmask 875520   ;;  %v1933_v11 = vsel %vm1932_vm12, %v13457_v25, %v13456_v44  ;;  %v2050_v58 = vsel %vm2049_vm11, %v13459_v36, %v13458_v20  ;;  %v13462_v28 = vld [vmem:[#allocation170_spill] sm:$0xff]  ;;  %v13463_v6 = vld [vmem:[#allocation171_spill] sm:$0xff] }
0x1adf   : > { %v5585_v52 = vsel %vm13443_vm14, %v5575_v21, %v5577_v47  ;;  %v1384_v54 = vadd.f32 %v1364_v46, %v1266_v43  ;;  %v1815_v49 = vsel %vm13455_vm6, %v13454_v40, %v13453_v57  ;;  %v2166_v15 = vsel %vm1400_vm7, %v13461_v14, %v13460_v51  ;;  %v11671_v61 = vpop.permute.xlu1 %5671  ;;  %v13465_v0 = vld [vmem:[#allocation183_spill] sm:$0xff]  ;;  %v13466_v37 = vld [vmem:[#allocation182_spill] sm:$0xff] }
0x1ae0   : > { %v11648_v29 = vadd.f32 %v5585_v52, %v5513_v9  ;;  %vm13464_vm9 = vcmask 769024   ;;  %vm13467_vm12 = vcmask 760832   ;;  %v13468_v21 = vld [vmem:[#allocation194_spill] sm:$0xff]  ;;  %v13469_v31 = vld [vmem:[#allocation195_spill] sm:$0xff]  ;;  %vm13470_vm11 = vcmask 752640  }
0x1ae1   : > { %v1502_v38 = vadd.f32 %v1482_v30, %v1384_v54  ;;  %v2282_v13 = vsel %vm13464_vm9, %v13463_v6, %v13462_v28  ;;  %v2378_v16 = vsel %vm13467_vm12, %v13466_v37, %v13465_v0  ;;  %v2496_v27 = vsel %vm13470_vm11, %v13469_v31, %v13468_v21  ;;  %v13471_v47 = vld [vmem:[#allocation207_spill] sm:$0xff]  ;;  %v13472_v50 = vld [vmem:[#allocation206_spill] sm:$0xff] }
0x1ae2   : > { %vm13473_vm7 = vcmask 744448   ;;  %v13474_v8 = vld [vmem:[#allocation218_spill] sm:$0xff]  ;;  %v13475_v45 = vld [vmem:[#allocation219_spill] sm:$0xff]  ;;  %vm13476_vm1 = vcmask 736256   ;;  %vm13479_vm10 = vcmask 654336   ;;  %vm13482_vm8 = vcmask 646144  }
0x1ae3   : > { %v1599_v39 = vadd.f32 %v1579_v60, %v1502_v38  ;;  %v2614_v43 = vsel %vm13473_vm7, %v13472_v50, %v13471_v47  ;;  %v2732_v30 = vsel %vm13476_vm1, %v13475_v45, %v13474_v8  ;;  %v13477_v18 = vld [vmem:[#allocation231_spill] sm:$0xff]  ;;  %v13478_v53 = vld [vmem:[#allocation230_spill] sm:$0xff]  ;;  %vm13485_vm15 = vcmask 637952  }
0x1ae4   : > { %v2849_v60 = vsel %vm13479_vm10, %v13478_v53, %v13477_v18  ;;  %v13484_v44 = vld [vmem:[#allocation254_spill] sm:$0xff]  ;;  %v13492_v50 = vld [vmem:[#allocation335_spill] sm:$0xff]  ;;  %vm5695_vm2 = vcmask 228352   ;;  %vm5813_vm0 = vcmask 220160   ;;  %vm5931_vm3 = vcmask 211968  }
0x1ae5   : > { %v1717_v23 = vadd.f32 %v1697_v55, %v1599_v39  ;;  %v13480_v55 = vld [vmem:[#allocation242_spill] sm:$0xff]  ;;  %v13481_v39 = vld [vmem:[#allocation243_spill] sm:$0xff]  ;;  %vm13502_vm14 = vcmask 416768  }
0x1ae6   : > { %v2965_v57 = vsel %vm13482_vm8, %v13481_v39, %v13480_v55  ;;  %v13489_v37 = vld [vmem:[#allocation298_spill] sm:$0xff]  ;;  %v13496_v39 = vld [vmem:[#allocation383_spill] sm:$0xff]  ;;  %vm13503_vm4 = vmmov %vm13502_vm14 }
0x1ae7   : > { %v1835_v12 = vadd.f32 %v1815_v49, %v1717_v23  ;;  %v13483_v23 = vld [vmem:[#allocation255_spill] sm:$0xff]  ;;  %v13495_v53 = vld [vmem:[#allocation370_spill] sm:$0xff]  ;;  %vm13504_vm13 = vmmov %vm13503_vm4 }
0x1ae8   : > { %v11699_v49 = vpop.f32.mrb[0].mxu0  ;;  %v3081_v25 = vsel %vm13485_vm15, %v13484_v44, %v13483_v23  ;;  %vm13505_vm5 = vmmov %vm13503_vm4 }
0x1ae9   : > { %v1953_v26 = vadd.f32 %v1933_v11, %v1835_v12  ;;  %v11704_v11 = vpop.f32.mrb[1].mxu0  ;;  %vm13506_vm6 = vmmov %vm13503_vm4 }
0x1aea   : > { %vm13507_vm9 = vmmov %vm13503_vm4 }
0x1aeb   : > { %v2070_v62 = vadd.f32 %v2050_v58, %v1953_v26  ;;  %v13486_v26 = vld [vmem:[#allocation267_spill] sm:$0xff]  ;;  %vm13508_vm12 = vmmov %vm13503_vm4 }
0x1aec   : > { %v11681_v9 = vpop.permute.xlu1 %5675  ;;  %vm13509_vm11 = vmmov %vm13503_vm4 }
0x1aed   : > { %v2186_v7 = vadd.f32 %v2166_v15, %v2070_v62  ;;  %v13487_v62 = vld [vmem:[#allocation274_spill] sm:$0xff] }
0x1aee   : > { %v11679_v46 = vpop.permute.xlu0 %5673 }
0x1aef   : > { %v2302_v5 = vadd.f32 %v2282_v13, %v2186_v7  ;;  %v13488_v13 = vld [vmem:[#allocation287_spill] sm:$0xff] }
0x1af0   : > { %v11694_v24 = vpop.permute.xlu1 %5679 }
0x1af1   : > { %v2398_v19 = vadd.f32 %v2378_v16, %v2302_v5  ;;  %v13490_v5 = vld [vmem:[#allocation311_spill] sm:$0xff] }
0x1af2   : > { %v11692_v38 = vpop.permute.xlu0 %5677  ;;  %v11711_v14 = vpop.f32.mrb[0].mxu1 }
0x1af3   : > { %v2516_v52 = vadd.f32 %v2496_v27, %v2398_v19  ;;  %v11713_v15 = vpop.f32.mrb[1].mxu1  ;;  %v13491_v27 = vld [vmem:[#allocation322_spill] sm:$0xff] }
0x1af4   : > { %v11708_v58 = vpop.permute.xlu1 %5683 }
0x1af5   : > { %v2634_v54 = vadd.f32 %v2614_v43, %v2516_v52  ;;  %v13493_v52 = vld [vmem:[#allocation346_spill] sm:$0xff] }
0x1af6   : > { %v11706_v20 = vpop.permute.xlu0 %5681 }
0x1af7   : > { %v2752_v17 = vadd.f32 %v2732_v30, %v2634_v54  ;;  %v13494_v54 = vld [vmem:[#allocation359_spill] sm:$0xff] }
0x1af8   : > { %v11719_v0 = vpop.permute.xlu1 %5687 }
0x1af9   : > { %v2869_v40 = vadd.f32 %v2849_v60, %v2752_v17 }
0x1afa   : > { %v11716_v6 = vpop.permute.xlu0 %5685 }
0x1afb   : > { %v2985_v12 = vadd.f32 %v2965_v57, %v2869_v40  ;;  %v13497_v40 = vld [vmem:[#allocation394_spill] sm:$0xff] }
0x1afc   : > { %v11726_v47 = vpop.permute.xlu1 %5691 }
0x1afd   : > { %v3101_v36 = vadd.f32 %v3081_v25, %v2985_v12  ;;  %v13498_v12 = vld [vmem:[#allocation407_spill] sm:$0xff] }
0x1afe   : > { %v11723_v31 = vpop.permute.xlu0 %5689 }
0x1aff   : > { %v3177_v51 = vadd.f32 %v13486_v26, %v3101_v36  ;;  %v13499_v26 = vld [vmem:[#allocation418_spill] sm:$0xff] }
0x1b01   : > { %v3307_v28 = vadd.f32 %v13487_v62, %v3177_v51 }
0x1b02   : > { %v11732_v30 = vpop.permute.xlu0 %5693 }
0x1b03   : > { %v3425_v7 = vadd.f32 %v13488_v13, %v3307_v28  ;;  %v13500_v13 = vld [vmem:[#allocation431_spill] sm:$0xff] }
0x1b05   : > { %v3543_v16 = vadd.f32 %v13489_v37, %v3425_v7  ;;  %v13501_v37 = vld [vmem:[#allocation442_spill] sm:$0xff] }
0x1b07   : > { %v3661_v21 = vadd.f32 %v13490_v5, %v3543_v16 }
0x1b09   : > { %v3779_v19 = vadd.f32 %v13491_v27, %v3661_v21 }
0x1b0b   : > { %v3897_v43 = vadd.f32 %v13492_v50, %v3779_v19 }
0x1b0d   : > { %v3994_v8 = vadd.f32 %v13493_v52, %v3897_v43  ;;  %v11730_v45 = vpop.permute.xlu1 %5970 }
0x1b0f   : > { %v4112_v18 = vadd.f32 %v13494_v54, %v3994_v8 }
0x1b11   : > { %v4230_v60 = vadd.f32 %v13495_v53, %v4112_v18  ;;  %v11736_v17 = vpop.permute.xlu1 %5980 }
0x1b13   : > { %v11738_v55 = vpop.permute.xlu0 %5975  ;;  %v4348_v57 = vadd.f32 %v13496_v39, %v4230_v60 }
0x1b15   : > { %v4466_v23 = vadd.f32 %v13497_v40, %v4348_v57  ;;  %v11742_v44 = vpop.permute.xlu1 %5985 }
0x1b17   : > { %v5790_v25 = vpop.permute.xlu0 %5789  ;;  %v4584_v36 = vadd.f32 %v13498_v12, %v4466_v23 }
0x1b19   : > { %v4702_v51 = vadd.f32 %v13499_v26, %v4584_v36  ;;  %v5792_v62 = vpop.permute.xlu1 %5791 }
0x1b1b   : > { %v5794_v28 = vpop.permute.xlu0 %5793  ;;  %v4799_v7 = vadd.f32 %v13500_v13, %v4702_v51 }
0x1b1c   : > { %v5815_v12 = vsel %vm5813_vm0, %v5792_v62, %v5794_v28 }
0x1b1d   : > { %v4917_v16 = vadd.f32 %v13501_v37, %v4799_v7  ;;  %v5796_v5 = vpop.permute.xlu1 %5795 }
0x1b1f   : > { %v5798_v21 = vpop.permute.xlu0 %5797  ;;  %v5035_v27 = vadd.f32 %v13344_v32, %v4917_v16  ;;  %v5699_v16 = vsel %vm5695_vm2, %v11694_v24, %v11706_v20 }
0x1b21   : > { %v5153_v19 = vadd.f32 %v13357_v4, %v5035_v27  ;;  %v5800_v50 = vpop.permute.xlu1 %5799  ;;  %v5696_v4 = vsel %vm5695_vm2, %v11671_v61, %v11679_v46 }
0x1b22   : > { %v5717_v23 = vadd.f32 %v5696_v4, %v11543_v22  ;;  %v5722_v4 = vadd.f32 %v11708_v58, %v11607_v34 }
0x1b23   : > { %v5802_v43 = vpop.permute.xlu0 %5801  ;;  %v5270_v52 = vadd.f32 %v13366_v56, %v5153_v19  ;;  %v5697_v56 = vsel %vm5695_vm2, %v11679_v46, %v11681_v9 }
0x1b24   : > { %v5718_v26 = vadd.f32 %v5697_v56, %v11563_v59 }
0x1b25   : > { %v5386_v8 = vadd.f32 %v13373_v3, %v5270_v52  ;;  %v5804_v54 = vpop.permute.xlu1 %5803 }
0x1b26   : > { %v5836_v13 = vadd.f32 %v5815_v12, %v5718_v26 }
0x1b27   : > { %v5806_v18 = vpop.permute.xlu0 %5805  ;;  %v5502_v53 = vadd.f32 %v13379_v1, %v5386_v8  ;;  %v5817_v8 = vsel %vm5813_vm0, %v5798_v21, %v5800_v50  ;;  %v5818_v50 = vsel %vm5813_vm0, %v5802_v43, %v5804_v54 }
0x1b28   : > { %v5819_v12 = vsel %vm5813_vm0, %v5804_v54, %v5806_v18  ;;  %v5725_v18 = vadd.f32 %v11723_v31, %v11629_v33 }
0x1b29   : > { %v5598_v60 = vadd.f32 %v11527_v48, %v5502_v53  ;;  %v11754_v39 = vpop.permute.xlu1 %5807  ;;  %v5814_v48 = vsel %vm5813_vm0, %v5790_v25, %v5792_v62  ;;  %v5816_v62 = vsel %vm5813_vm0, %v5796_v5, %v5798_v21  ;;  %v5840_v21 = vadd.f32 %v5802_v43, %v5722_v4  ;;  %v288_v4 = vld [vmem:[%s11856_s29 + $0x8] sm:$0xff] }
0x1b2a   : > { %v5835_v51 = vadd.f32 %v5814_v48, %v5717_v23  ;;  %v5702_v43 = vsel %vm5695_vm2, %v11723_v31, %v11726_v47  ;;  %v5843_v33 = vadd.f32 %v11754_v39, %v5725_v18 }
0x1b2b   : > { %v11756_v57 = vpop.permute.xlu0 %5809  ;;  %v5716_v32 = vadd.f32 %v11671_v61, %v5598_v60  ;;  %v5698_v61 = vsel %vm5695_vm2, %v11692_v38, %v11694_v24  ;;  %v5700_v24 = vsel %vm5695_vm2, %v11708_v58, %v11716_v6 }
0x1b2c   : > { %v5720_v37 = vadd.f32 %v5698_v61, %v11587_v10  ;;  %v5721_v10 = vadd.f32 %v5699_v16, %v11589_v41  ;;  %v5723_v23 = vadd.f32 %v5700_v24, %v11613_v42  ;;  %v6543_v24 = vmax.f32 %v11699_v49, 0.0 }
0x1b2d   : > { %v5834_v3 = vadd.f32 %v5790_v25, %v5716_v32  ;;  %v11765_v1 = vpop.permute.xlu1 %5811  ;;  %v5719_v25 = vadd.f32 %v11692_v38, %v11557_v35 }
0x1b2e   : > { %v5838_v52 = vadd.f32 %v5816_v62, %v5720_v37  ;;  %v5839_v34 = vadd.f32 %v5817_v8, %v5721_v10  ;;  %v5841_v61 = vadd.f32 %v5818_v50, %v5723_v23 }
0x1b2f   : > { %v5908_v40 = vpop.permute.xlu0 %5907  ;;  %v5837_v27 = vadd.f32 %v5796_v5, %v5719_v25 }
0x1b30   : > { %v5952_v36 = vadd.f32 %v5908_v40, %v5834_v3 }
0x1b31   : > { %v5910_v9 = vpop.permute.xlu1 %5909 }
0x1b32   : > { %v5988_v46 = vadd.f32 %v11730_v45, %v5952_v36  ;;  %v5932_v22 = vsel %vm5931_vm3, %v5908_v40, %v5910_v9 }
0x1b33   : > { %v5912_v7 = vpop.permute.xlu0 %5911  ;;  %v5953_v28 = vadd.f32 %v5932_v22, %v5835_v51 }
0x1b34   : > { %v5933_v59 = vsel %vm5931_vm3, %v5910_v9, %v5912_v7  ;;  %6563 = vrot.lane.b32.xlu0 %v5988_v46, %s7451_s22  ;;  %v5703_v7 = vsel %vm5695_vm2, %v11726_v47, %v11732_v30 }
0x1b35   : > { %v5954_v19 = vadd.f32 %v5933_v59, %v5836_v13  ;;  %v5989_v35 = vadd.f32 %v11730_v45, %v5953_v28  ;;  %v5914_v38 = vpop.permute.xlu1 %5913 }
0x1b36   : > { %v5955_v60 = vadd.f32 %v5914_v38, %v5837_v27 }
0x1b37   : > { %v5990_v53 = vadd.f32 %v11730_v45, %v5954_v19  ;;  %v5916_v32 = vpop.permute.xlu0 %5915  ;;  %6565 = vrot.lane.b32.xlu1 %v5989_v35, %s7451_s22  ;;  %v5701_v45 = vsel %vm5695_vm2, %v11716_v6, %v11719_v0 }
0x1b38   : > { %v5934_v56 = vsel %vm5931_vm3, %v5914_v38, %v5916_v32  ;;  %v5991_v20 = vadd.f32 %v11738_v55, %v5955_v60  ;;  %v5724_v0 = vadd.f32 %v5701_v45, %v11631_v63  ;;  %v5820_v63 = vsel %vm5813_vm0, %v11754_v39, %v11756_v57  ;;  %v287_v60 = vld [vmem:[%s11856_s29] sm:$0xff] }
0x1b39   : > { %v5956_v5 = vadd.f32 %v5934_v56, %v5838_v52  ;;  %6567 = vrot.lane.b32.xlu0 %v5990_v53, %s7451_s22  ;;  %v5918_v41 = vpop.permute.xlu1 %5917  ;;  %v11804_v58 = vpop.f32.mrb[2].mxu0  ;;  %v5727_v39 = vadd.f32 %v5703_v7, %v11648_v29 }
0x1b3a   : > { %v5935_v48 = vsel %vm5931_vm3, %v5916_v32, %v5918_v41  ;;  %v11809_v6 = vpop.f32.mrb[3].mxu0  ;;  %v5842_v46 = vadd.f32 %v5819_v12, %v5724_v0  ;;  %v289_v41 = vld [vmem:[%s11856_s29 + $0x10] sm:$0xff]  ;;  %v6546_v0 = vmax.f32 %v11713_v15, 0.0 }
0x1b3b   : > { %v5992_v3 = vadd.f32 %v11738_v55, %v5956_v5  ;;  %v5920_v40 = vpop.permute.xlu0 %5919  ;;  %v5957_v36 = vadd.f32 %v5935_v48, %v5839_v34  ;;  %6569 = vrot.lane.b32.xlu1 %v5991_v20, %s7451_s22  ;;  %v6544_v5 = vmax.f32 %v11704_v11, 0.0  ;;  %v6545_v11 = vmax.f32 %v11711_v14, 0.0 }
0x1b3c   : > { %v5958_v26 = vadd.f32 %v5920_v40, %v5840_v21  ;;  %v6547_v14 = vmax.f32 %v11804_v58, 0.0 }
0x1b3d   : > { %6571 = vrot.lane.b32.xlu0 %v5992_v3, %s7451_s22  ;;  %v5993_v51 = vadd.f32 %v11738_v55, %v5957_v36  ;;  %v5922_v54 = vpop.permute.xlu1 %5921  ;;  %v5726_v55 = vadd.f32 %v5702_v43, %v11643_v2  ;;  %v5821_v2 = vsel %vm5813_vm0, %v11756_v57, %v11765_v1 }
0x1b3e   : > { %v5994_v42 = vadd.f32 %v11736_v17, %v5958_v26  ;;  %v5936_v9 = vsel %vm5931_vm3, %v5920_v40, %v5922_v54  ;;  %v5845_v52 = vadd.f32 %v5821_v2, %v5727_v39  ;;  %v290_v40 = vld [vmem:[%s11856_s29 + $0x18] sm:$0xff] }
0x1b3f   : > { %v5924_v25 = vpop.permute.xlu0 %5923  ;;  %v5959_v13 = vadd.f32 %v5936_v9, %v5841_v61  ;;  %6573 = vrot.lane.b32.xlu1 %v5993_v51, %s7451_s22  ;;  %v5844_v16 = vadd.f32 %v5820_v63, %v5726_v55  ;;  %v291_v61 = vld [vmem:[%s11856_s29 + $0x20] sm:$0xff]  ;;  %v6548_v9 = vmax.f32 %v11809_v6, 0.0  ;;  %v293_v55 = vld [vmem:[%s11856_s29 + $0x30] sm:$0xff]  ;;  %v294_v6 = vld [vmem:[%s11856_s29 + $0x38] sm:$0xff] }
0x1b40   : > { %v5937_v22 = vsel %vm5931_vm3, %v5922_v54, %v5924_v25  ;;  %v292_v54 = vld [vmem:[%s11856_s29 + $0x28] sm:$0xff] }
0x1b41   : > { %v5960_v31 = vadd.f32 %v5937_v22, %v5842_v46  ;;  %6575 = vrot.lane.b32.xlu0 %v5994_v42, %s7451_s22  ;;  %v11832_v62 = vpop.f32.mrb[2].mxu1  ;;  %v5995_v28 = vadd.f32 %v11736_v17, %v5959_v13  ;;  %v5926_v59 = vpop.permute.xlu1 %5925 }
0x1b42   : > { %v11835_v37 = vpop.f32.mrb[3].mxu1  ;;  %v5961_v47 = vadd.f32 %v5926_v59, %v5843_v33  ;;  %v6549_v33 = vmax.f32 %v11832_v62, 0.0 }
0x1b43   : > { %v5996_v27 = vadd.f32 %v11736_v17, %v5960_v31  ;;  %v5928_v30 = vpop.permute.xlu0 %5927  ;;  %6577 = vrot.lane.b32.xlu1 %v5995_v28, %s7451_s22 }
0x1b44   : > { %v5938_v19 = vsel %vm5931_vm3, %v5926_v59, %v5928_v30  ;;  %v5997_v35 = vadd.f32 %v11742_v44, %v5961_v47  ;;  %v6550_v59 = vmax.f32 %v11835_v37, 0.0 }
0x1b45   : > { %v5962_v38 = vadd.f32 %v5938_v19, %v5844_v16  ;;  %6579 = vrot.lane.b32.xlu0 %v5996_v27, %s7451_s22  ;;  %v5930_v8 = vpop.permute.xlu1 %5929 }
0x1b46   : > { %v5939_v17 = vsel %vm5931_vm3, %v5928_v30, %v5930_v8 }
0x1b47   : > { %v5998_v57 = vadd.f32 %v11742_v44, %v5962_v38  ;;  %v5963_v1 = vadd.f32 %v5939_v17, %v5845_v52  ;;  %6581 = vrot.lane.b32.xlu1 %v5997_v35, %s7451_s22 }
0x1b49   : > { %6583 = vrot.lane.b32.xlu0 %v5998_v57, %s7451_s22  ;;  %v5999_v29 = vadd.f32 %v11742_v44, %v5963_v1 }
0x1b4b   : > { %6585 = vrot.lane.b32.xlu1 %v5999_v29, %s7451_s22 }
0x1ba6   : > { %v6564_v53 = vpop.permute.xlu0 %6563 }
0x1ba9   : > { %v6566_v32 = vpop.permute.xlu1 %6565 }
0x1baa   : > { %v6587_v10 = vsel %vm13502_vm14, %v6564_v53, %v6566_v32 }
0x1bab   : > { %v6568_v56 = vpop.permute.xlu0 %6567  ;;  %v6603_v44 = vmul.f32 %v6587_v10, %v287_v60 }
0x1bac   : > { %v6588_v20 = vsel %vm13503_vm4, %v6566_v32, %v6568_v56 }
0x1bad   : > { %v6604_v45 = vmul.f32 %v6588_v20, %v288_v4  ;;  %v6611_v34 = vadd.f32 %v6603_v44, %v6543_v24  ;;  %v6570_v21 = vpop.permute.xlu1 %6569 }
0x1baf   : > { %v6612_v49 = vadd.f32 %v6604_v45, %v6544_v5  ;;  %v6572_v50 = vpop.permute.xlu0 %6571  ;;  %6619 = vst [vmem:[%s11868_s8] sm:$0xff] %v6611_v34 }
0x1bb0   : > { %v6589_v3 = vsel %vm13504_vm13, %v6570_v21, %v6572_v50 }
0x1bb1   : > { %6620 = vst [vmem:[%s11868_s8 + $0x8] sm:$0xff] %v6612_v49  ;;  %v6605_v48 = vmul.f32 %v6589_v3, %v289_v41  ;;  %v6574_v23 = vpop.permute.xlu1 %6573 }
0x1bb2   : > { %v6590_v36 = vsel %vm13505_vm5, %v6572_v50, %v6574_v23 }
0x1bb3   : > { %v6613_v12 = vadd.f32 %v6605_v48, %v6545_v11  ;;  %v6576_v26 = vpop.permute.xlu0 %6575  ;;  %v6606_v43 = vmul.f32 %v6590_v36, %v290_v40 }
0x1bb5   : > { %6621 = vst [vmem:[%s11868_s8 + $0x10] sm:$0xff] %v6613_v12  ;;  %v6614_v51 = vadd.f32 %v6606_v43, %v6546_v0  ;;  %v6578_v42 = vpop.permute.xlu1 %6577 }
0x1bb6   : > { %v6591_v18 = vsel %vm13506_vm6, %v6576_v26, %v6578_v42 }
0x1bb7   : > { %v6580_v46 = vpop.permute.xlu0 %6579  ;;  %6622 = vst [vmem:[%s11868_s8 + $0x18] sm:$0xff] %v6614_v51  ;;  %v6607_v25 = vmul.f32 %v6591_v18, %v291_v61 }
0x1bb8   : > { %v6592_v15 = vsel %vm13507_vm9, %v6578_v42, %v6580_v46 }
0x1bb9   : > { %v6608_v63 = vmul.f32 %v6592_v15, %v292_v54  ;;  %v6615_v13 = vadd.f32 %v6607_v25, %v6547_v14  ;;  %v6582_v22 = vpop.permute.xlu1 %6581 }
0x1bbb   : > { %v6616_v7 = vadd.f32 %v6608_v63, %v6548_v9  ;;  %v6584_v58 = vpop.permute.xlu0 %6583  ;;  %6623 = vst [vmem:[%s11868_s8 + $0x20] sm:$0xff] %v6615_v13 }
0x1bbc   : > { %v6593_v31 = vsel %vm13508_vm12, %v6582_v22, %v6584_v58 }
0x1bbd   : > { %6624 = vst [vmem:[%s11868_s8 + $0x28] sm:$0xff] %v6616_v7  ;;  %v6609_v28 = vmul.f32 %v6593_v31, %v293_v55  ;;  %v6586_v16 = vpop.permute.xlu1 %6585 }
0x1bbe   : > { %v6594_v27 = vsel %vm13509_vm11, %v6584_v58, %v6586_v16 }
0x1bbf   : > { %v6617_v2 = vadd.f32 %v6609_v28, %v6549_v33  ;;  %v6610_v47 = vmul.f32 %v6594_v27, %v294_v6 }
0x1bc1   : > { %6625 = vst [vmem:[%s11868_s8 + $0x30] sm:$0xff] %v6617_v2  ;;  %v6618_v30 = vadd.f32 %v6610_v47, %v6550_v59 }
0x1bc3   : > { %6626 = vst [vmem:[%s11868_s8 + $0x38] sm:$0xff] %v6618_v30 }
0x1bc4 PF: > { %s17_s21 = sadd.s32 1, %s7329_s21  }
0x1bc5   : > { %p14_p3 = scmp.ge.s32.totalorder %s17_s21, 4  }
0x1bc7   :  { %16 = sbr.rel (!%p14_p3) target bundleno = 1 (0x1), region = 90 }
0x1bce   :  { %6648 = vsyncpa [#allocation4], 1 }
0x1bcf   :  { %6650 = vsyncpa [#allocation4 + $0x1], 1 }

</bundles_post_ra>
